<compile_context>
chip_gen: v7x
topology: tpu7x:2x2x1
jax: 0.10.0
libtpu: 0.0.40
codegen_flags: <defaults>
</compile_context>

<pallas_src>
import functools

import numpy as np

import jax
import jax.numpy as jnp
from jax import lax
from jax.experimental import pallas as pl
from jax.experimental.pallas import tpu as pltpu


def _round_up(x: int, m: int) -> int:
    return ((x + m - 1) // m) * m


def _span_bow_kernel(ids_ref, emb_ref, out_ref, *, counts_dtype):
    k = pl.program_id(1)

    ids = ids_ref[...]                      # [SB, L] int32, padding == -1
    emb = emb_ref[...]                      # [VB, D] compute dtype (f32/bf16)

    sb, max_len = ids.shape
    vb = emb.shape[0]

    # Token ids relative to this vocab slab. Padding (-1) and ids that fall in
    # other slabs land outside [0, vb) and never match the iota below.
    rel = ids - k * vb                      # [SB, L]

    vocab_iota = lax.broadcasted_iota(jnp.int32, (sb, vb), 1)  # loop-invariant

    # counts[s, v] = #{ j : span s, position j hits local vocab id v }
    # Initialize from the j=0 one-hot (saves one full (sb, vb) add pass).
    counts = (vocab_iota == rel[:, 0:1]).astype(counts_dtype)
    for j in range(1, max_len):             # max_len small & static -> unrolled
        counts = counts + (vocab_iota == rel[:, j:j + 1]).astype(counts_dtype)

    # Counts are small exact integers (<= max_len); cast (if needed) once just
    # before the dot so the MXU runs at the table's native rate, f32 accumulate.
    lhs = counts if counts.dtype == emb.dtype else counts.astype(emb.dtype)
    part = jnp.dot(lhs, emb, preferred_element_type=jnp.float32)

    # f32 output block is resident across the (innermost) vocab axis:
    # accumulate directly into it, no scratch / finalize copy needed.
    @pl.when(k == 0)
    def _init():
        out_ref[...] = part

    @pl.when(k != 0)
    def _accum():
        out_ref[...] += part


@functools.partial(
    jax.jit,
    static_argnames=("span_block", "v_block", "compute_dtype", "counts_dtype",
                     "vmem_budget_bytes"))
def trained_word_embedding_forward(ids, lengths, emb, *, span_block=512,
                                   v_block=2048, compute_dtype=jnp.float32,
                                   counts_dtype=None,
                                   vmem_budget_bytes=24 * 1024 * 1024):
    """ids: [S, L] int32 (padded), lengths: [S] int32, emb: [V, D] -> [S, D] f32.

    compute_dtype=float32 (default) matches the PyTorch module exactly;
    compute_dtype=bfloat16 runs the MXU/VPU at native bf16 rate (pass a
    pre-cast bf16 table to skip the per-call convert). Out-of-range token ids
    are silently dropped (match no one-hot column) instead of raising like
    torch.nn.Embedding.
    """
    S, L = ids.shape
    V, D = emb.shape

    compute_dtype = np.dtype(compute_dtype)
    if counts_dtype is None:
        # bf16 counts (v6e/v7x native VPU) when the table is bf16, else f32.
        counts_dtype = compute_dtype if compute_dtype == np.dtype(jnp.bfloat16) \
            else np.dtype(jnp.float32)
    else:
        counts_dtype = np.dtype(counts_dtype)
    if counts_dtype == np.dtype(jnp.bfloat16):
        assert L <= 256, "bf16 counts are only exact for max_span_len <= 256"

    ids = ids.astype(jnp.int32)
    lengths = lengths.astype(jnp.int32)

    if L == 0:
        return jnp.zeros((S, D), jnp.float32)

    # Pre-mask padded token slots to -1 (cheap [S, L] XLA op); the kernel then
    # needs no lengths input and no validity AND on its hot path.
    pos = lax.broadcasted_iota(jnp.int32, (S, L), 1)
    ids_masked = jnp.where(pos < lengths[:, None], ids, -1)

    # ---- tile selection & padding (alignment rules) -------------------------
    D_pad = _round_up(D, 128)                       # lane-dense output / MXU N
    sb = _round_up(min(span_block, _round_up(S, 8)), 8)   # MXU M, f32 sublane
    S_pad = _round_up(S, sb)

    emb_isz = int(compute_dtype.itemsize)
    cnt_isz = int(counts_dtype.itemsize)

    # VMEM budget (conservative for v7x's 64 MiB/TC): double-buffered ids and
    # emb slab, (possibly double-buffered) resident f32 output block, counts.
    fixed = 2 * sb * D_pad * 4 + 2 * sb * L * 4
    per_vb = 2 * D_pad * emb_isz + sb * cnt_isz
    vb_cap = max(256, int((vmem_budget_bytes - fixed) // per_vb))
    vb = min(int(v_block), vb_cap)
    vb = max(256, (vb // 256) * 256)                # MXU K / bf16 (16,128) tile
    vb = min(vb, _round_up(V, 256))
    V_pad = _round_up(V, vb)

    if S_pad != S:
        ids_masked = jnp.pad(ids_masked, ((0, S_pad - S), (0, 0)),
                             constant_values=-1)

    # Only cast when dtypes differ -> callers can cache a pre-cast bf16 table
    # outside the jit and avoid the per-call HBM convert pass.
    emb_c = emb if emb.dtype == compute_dtype else emb.astype(compute_dtype)
    if V_pad != V or D_pad != D:
        emb_c = jnp.pad(emb_c, ((0, V_pad - V), (0, D_pad - D)))

    grid = (S_pad // sb, V_pad // vb)

    cost = pl.CostEstimate(
        flops=2 * S_pad * V_pad * D_pad,
        transcendentals=0,
        bytes_accessed=int(ids_masked.size * 4
                           + grid[0] * V_pad * D_pad * emb_isz
                           + S_pad * D_pad * 4),
    )

    kernel = functools.partial(_span_bow_kernel, counts_dtype=counts_dtype)

    out = pl.pallas_call(
        kernel,
        out_shape=jax.ShapeDtypeStruct((S_pad, D_pad), jnp.float32),
        grid_spec=pltpu.PrefetchScalarGridSpec(
            num_scalar_prefetch=0,
            grid=grid,
            in_specs=[
                pl.BlockSpec((sb, L), lambda i, k: (i, 0)),       # span ids tile
                pl.BlockSpec((vb, D_pad), lambda i, k: (k, 0)),   # vocab slab
            ],
            out_specs=pl.BlockSpec((sb, D_pad), lambda i, k: (i, 0)),
        ),
        compiler_params=pltpu.CompilerParams(
            dimension_semantics=("parallel", "arbitrary"),
            vmem_limit_bytes=48 * 1024 * 1024),
        cost_estimate=cost,
    )(ids_masked, emb_c)

    return out[:S, :D]


if __name__ == "__main__":
    key = jax.random.PRNGKey(0)

    # Small-but-tile-friendly shapes: lane-dense d_word, enough vocab/spans to
    # exercise both the single-tile and the multi-tile reduction paths.
    vocab, d_word = 1024, 128
    num_spans, max_len = 256, 6

    k_emb, k_ids, k_len = jax.random.split(key, 3)
    emb = jax.random.normal(k_emb, (vocab, d_word), dtype=jnp.float32)
    ids = jax.random.randint(k_ids, (num_spans, max_len), 0, vocab, dtype=jnp.int32)
    lengths = jax.random.randint(k_len, (num_spans,), 0, max_len + 1, dtype=jnp.int32)
    lengths = lengths.at[1].set(0)   # ensure an empty span -> zero row

    # Pure-JAX reference with identical semantics to the PyTorch loop.
    def reference(table_f32):
        m = (jnp.arange(max_len)[None, :] < lengths[:, None]).astype(jnp.float32)
        return jnp.sum(table_f32[ids] * m[:, :, None], axis=1)

    ref_f32 = reference(emb)

    # Default path: f32 compute (exact parity with the PyTorch module), big tiles.
    out = jax.block_until_ready(trained_word_embedding_forward(ids, lengths, emb))
    assert out.shape == (num_spans, d_word) and out.dtype == jnp.float32
    assert jnp.allclose(out, ref_f32, atol=1e-4, rtol=1e-4)
    assert jnp.all(out[1] == 0.0)    # empty span -> zero row

    # Multi-tile path: 2 span tiles x 2 vocab tiles (parallel span axis + the
    # resident-output reduction accumulator across the vocab axis).
    out_tiled = jax.block_until_ready(
        trained_word_embedding_forward(ids, lengths, emb,
                                       span_block=128, v_block=512))
    assert jnp.allclose(out_tiled, ref_f32, atol=1e-4, rtol=1e-4)

    # bf16 operand path (v6e/v7x native rate): bf16 table + bf16 counts,
    # f32 MXU accumulation.
    out_bf16 = jax.block_until_ready(
        trained_word_embedding_forward(ids, lengths, emb,
                                       span_block=128, v_block=512,
                                       compute_dtype=jnp.bfloat16))
    ref_bf16 = reference(emb.astype(jnp.bfloat16).astype(jnp.float32))
    assert jnp.allclose(out_bf16, ref_bf16, atol=1e-3, rtol=1e-3)

    print("KERNEL_OK")
</pallas_src>

<mosaic_0001>
module attributes {stable_mosaic.version = 11 : i64} {
  func.func @_span_bow_kernel(%arg0: i32, %arg1: i32, %arg2: memref<256x6xi32, #tpu.memory_space<vmem>>, %arg3: memref<1024x128xf32, #tpu.memory_space<vmem>>, %arg4: memref<256x128xf32, #tpu.memory_space<vmem>>) attributes {dimension_semantics = [#tpu.dimension_semantics<parallel>, #tpu.dimension_semantics<arbitrary>], iteration_bounds = array<i64: 1, 1>, scalar_prefetch = 0 : i64, scratch_operands = 0 : i64, tpu.core_type = #tpu.core_type<tc>, window_params = [{transform_indices = @transform_0, window_bounds = array<i64: 256, 6>}, {transform_indices = @transform_1, window_bounds = array<i64: 1024, 128>}, {transform_indices = @transform_2, window_bounds = array<i64: 256, 128>}]} {
    %c0 = arith.constant 0 : index
    %c0_0 = arith.constant 0 : index
    %0 = vector.load %arg2[%c0, %c0_0] : memref<256x6xi32, #tpu.memory_space<vmem>>, vector<256x6xi32>
    %c0_1 = arith.constant 0 : index
    %c0_2 = arith.constant 0 : index
    %1 = vector.load %arg3[%c0_1, %c0_2] : memref<1024x128xf32, #tpu.memory_space<vmem>>, vector<1024x128xf32>
    %c1024_i32 = arith.constant 1024 : i32
    %2 = arith.muli %arg1, %c1024_i32 : i32
    %3 = vector.broadcast %2 : i32 to vector<256x6xi32>
    %4 = arith.subi %0, %3 : vector<256x6xi32>
    %5 = tpu.iota {dimensions = array<i32: 1>} : vector<256x1024xi32>
    %6 = vector.extract_strided_slice %4 {offsets = [0, 0], sizes = [256, 1], strides = [1, 1]} : vector<256x6xi32> to vector<256x1xi32>
    %7 = vector.broadcast %6 : vector<256x1xi32> to vector<256x1024xi32>
    %8 = arith.cmpi eq, %5, %7 : vector<256x1024xi32>
    %9 = arith.extui %8 : vector<256x1024xi1> to vector<256x1024xi32>
    %10 = arith.sitofp %9 : vector<256x1024xi32> to vector<256x1024xf32>
    %11 = vector.extract_strided_slice %4 {offsets = [0, 1], sizes = [256, 1], strides = [1, 1]} : vector<256x6xi32> to vector<256x1xi32>
    %12 = vector.broadcast %11 : vector<256x1xi32> to vector<256x1024xi32>
    %13 = arith.cmpi eq, %5, %12 : vector<256x1024xi32>
    %14 = arith.extui %13 : vector<256x1024xi1> to vector<256x1024xi32>
    %15 = arith.sitofp %14 : vector<256x1024xi32> to vector<256x1024xf32>
    %16 = arith.addf %10, %15 : vector<256x1024xf32>
    %17 = vector.extract_strided_slice %4 {offsets = [0, 2], sizes = [256, 1], strides = [1, 1]} : vector<256x6xi32> to vector<256x1xi32>
    %18 = vector.broadcast %17 : vector<256x1xi32> to vector<256x1024xi32>
    %19 = arith.cmpi eq, %5, %18 : vector<256x1024xi32>
    %20 = arith.extui %19 : vector<256x1024xi1> to vector<256x1024xi32>
    %21 = arith.sitofp %20 : vector<256x1024xi32> to vector<256x1024xf32>
    %22 = arith.addf %16, %21 : vector<256x1024xf32>
    %23 = vector.extract_strided_slice %4 {offsets = [0, 3], sizes = [256, 1], strides = [1, 1]} : vector<256x6xi32> to vector<256x1xi32>
    %24 = vector.broadcast %23 : vector<256x1xi32> to vector<256x1024xi32>
    %25 = arith.cmpi eq, %5, %24 : vector<256x1024xi32>
    %26 = arith.extui %25 : vector<256x1024xi1> to vector<256x1024xi32>
    %27 = arith.sitofp %26 : vector<256x1024xi32> to vector<256x1024xf32>
    %28 = arith.addf %22, %27 : vector<256x1024xf32>
    %29 = vector.extract_strided_slice %4 {offsets = [0, 4], sizes = [256, 1], strides = [1, 1]} : vector<256x6xi32> to vector<256x1xi32>
    %30 = vector.broadcast %29 : vector<256x1xi32> to vector<256x1024xi32>
    %31 = arith.cmpi eq, %5, %30 : vector<256x1024xi32>
    %32 = arith.extui %31 : vector<256x1024xi1> to vector<256x1024xi32>
    %33 = arith.sitofp %32 : vector<256x1024xi32> to vector<256x1024xf32>
    %34 = arith.addf %28, %33 : vector<256x1024xf32>
    %35 = vector.extract_strided_slice %4 {offsets = [0, 5], sizes = [256, 1], strides = [1, 1]} : vector<256x6xi32> to vector<256x1xi32>
    %36 = vector.broadcast %35 : vector<256x1xi32> to vector<256x1024xi32>
    %37 = arith.cmpi eq, %5, %36 : vector<256x1024xi32>
    %38 = arith.extui %37 : vector<256x1024xi1> to vector<256x1024xi32>
    %39 = arith.sitofp %38 : vector<256x1024xi32> to vector<256x1024xf32>
    %40 = arith.addf %34, %39 : vector<256x1024xf32>
    %cst = arith.constant dense<0.000000e+00> : vector<256x128xf32>
    %41 = tpu.matmul %40, %1, %cst {dimension_numbers = #tpu.dot_dimension_numbers<[1], [0], [0], [1], [0, 0, 1, 1], [], []>} : vector<256x1024xf32>, vector<1024x128xf32>, vector<256x128xf32> -> vector<256x128xf32>
    %c0_i32 = arith.constant 0 : i32
    %42 = arith.cmpi eq, %arg1, %c0_i32 : i32
    %43 = arith.extui %42 : i1 to i32
    %c0_i32_3 = arith.constant 0 : i32
    %44 = arith.cmpi ne, %43, %c0_i32_3 : i32
    scf.if %44 {
      %c0_6 = arith.constant 0 : index
      %c0_7 = arith.constant 0 : index
      %48 = vector.load %arg4[%c0_6, %c0_7] : memref<256x128xf32, #tpu.memory_space<vmem>>, vector<256x128xf32>
      tpu.vector_store %arg4[%c0_6, %c0_7], %41 {strides = array<i32>} : memref<256x128xf32, #tpu.memory_space<vmem>>, vector<256x128xf32>,
    } else {
    }
    %c0_i32_4 = arith.constant 0 : i32
    %45 = arith.cmpi ne, %arg1, %c0_i32_4 : i32
    %46 = arith.extui %45 : i1 to i32
    %c0_i32_5 = arith.constant 0 : i32
    %47 = arith.cmpi ne, %46, %c0_i32_5 : i32
    scf.if %47 {
      %c0_6 = arith.constant 0 : index
      %c0_7 = arith.constant 0 : index
      %48 = vector.load %arg4[%c0_6, %c0_7] : memref<256x128xf32, #tpu.memory_space<vmem>>, vector<256x128xf32>
      %49 = arith.addf %48, %41 : vector<256x128xf32>
      %c0_8 = arith.constant 0 : index
      %c0_9 = arith.constant 0 : index
      %50 = vector.load %arg4[%c0_8, %c0_9] : memref<256x128xf32, #tpu.memory_space<vmem>>, vector<256x128xf32>
      tpu.vector_store %arg4[%c0_8, %c0_9], %49 {strides = array<i32>} : memref<256x128xf32, #tpu.memory_space<vmem>>, vector<256x128xf32>,
    } else {
    }
    return
  }
  func.func @transform_0(%arg0: i32, %arg1: i32) -> (i32, i32) {
    %c0_i32 = arith.constant 0 : i32
    %c0_i32_0 = arith.constant 0 : i32
    return %arg0, %c0_i32 : i32, i32
  }
  func.func @transform_1(%arg0: i32, %arg1: i32) -> (i32, i32) {
    %c0_i32 = arith.constant 0 : i32
    %c0_i32_0 = arith.constant 0 : i32
    return %arg1, %c0_i32 : i32, i32
  }
  func.func @transform_2(%arg0: i32, %arg1: i32) -> (i32, i32) {
    %c0_i32 = arith.constant 0 : i32
    %c0_i32_0 = arith.constant 0 : i32
    return %arg0, %c0_i32 : i32, i32
  }
}

</mosaic_0001>

<bundles_post_ra>
// kernel: trained_word_embedding_forward.1
= control target key start
LH: loop header
LB: loop body
LE: loop exit
PB: predicated region body
PF: predicated region fallthrough
CT: control target
= control target key end

     0   :  { %7 = vsyncpa [#allocation3], 0  ;;  %s16712_s0 = inlined_call_operand.vmem [shape: s32[256,6], index: 0, kind: input, shape index: {}]   ;;  %s16713_s1 = inlined_call_operand.hbm [shape: f32[1024,128], index: 1, kind: input, shape index: {}]   ;;  %s16714_s2 = inlined_call_operand.hbm [shape: f32[256,128], index: 2, kind: output, shape index: {}]  }
   0x1   :  { %8 = vsyncpa [#allocation4], 0  ;;  %s9828_s9 = smov [#allocation2]   ;;  %s9780_s13 = scalar_lea.hbm %s16713_s1, 16384 }
   0x2   :  { %s16_s10 = sshll.u32 %s9828_s9, 4  ;;  %p9781_p0 = scmp.ne.s32.totalorder %s16713_s1, %s9780_s13  ;;  %s17_s10 = int_to_ptr.vmem [resolvable:$true] %s16_s10 }
   0x3   :  { %p9784_p1 = scmp.lt.u32.totalorder %s9780_s13, %s16713_s1 }
   0x5   :  { %p9786_p2 = pnand %p9784_p1, %p9781_p0 }
   0x7   :  { %9789 = shalt.err (!%p9786_p2)
}
   0x8   :  { %s9790_s18 = scalar_lea.vmem %s17_s10, 16384  ;;  %p9795_p4 = scmp.lt.s32.totalorder %s17_s10, %s17_s10 }
   0x9   :  { %p9791_p3 = scmp.ne.s32.totalorder %s17_s10, %s9790_s18  ;;  %p9796_p5 = scmp.lt.s32.totalorder %s9790_s18, %s9790_s18 }
   0xb   :  { %p9797_p6 = por %p9796_p5, %p9795_p4 }
   0xd   :  { %p9798_p7 = pnand %p9797_p6, %p9791_p3 }
   0xf   :  { %9801 = shalt.err (!%p9798_p7)
}
  0x10   :  { %s9829_s19 = smov 128   ;;  %s9830_s20 = smov 8  }
  0x11   :  { %22 = dma.hbm_to_vmem [thread:$0]  %s16713_s1, 16384, %s17_s10, [#allocation3], %s9829_s19, %s9829_s19, %s9830_s20  }
  0x12   :  { %9824 = dma.done.wait [#allocation3], 16384  }
  0x13   :  { %9825 = vsyncadd [#allocation3], 4294950912  ;;  %v9831_v0 = vmov 0   ;;  %v9873_v1 = vld [vmem:[%s16712_s0 + $0x10] sm:$0xff]  ;;  %v9878_v2 = vld [vmem:[%s16712_s0] sm:$0xff]  ;;  %v16715_v33 = vmov 1  }
  0x14   :  { %9647 = vset.pattern.permute.xlu1 %v9831_v0  ;;  %9646 = vset.pattern.permute.xlu0 %v9831_v0  ;;  %v9885_v3 = vld [vmem:[%s16712_s0 + $0x18] sm:$0xff]  ;;  %v9890_v4 = vld [vmem:[%s16712_s0 + $0x8] sm:$0xff]  ;;  %v9902_v6 = vld [vmem:[%s16712_s0 + $0x20] sm:$0xff]  ;;  %v16717_v34 = vmov 3   ;;  %v16723_v35 = vmov 4   ;;  %v16721_v36 = vmov 5  }
  0x15   :  { %236 = vperm.xlu1 %9647, %v9873_v1   ;;  %230 = vperm.xlu0 %9646, %v9878_v2   ;;  %v9897_v5 = vld [vmem:[%s16712_s0 + $0x28] sm:$0xff]  ;;  %v9909_v7 = vld [vmem:[%s16712_s0 + $0x38] sm:$0xff]  ;;  %v9914_v8 = vld [vmem:[%s16712_s0 + $0x30] sm:$0xff]  ;;  %v16719_v37 = vmov 2   ;;  %v16725_v46 = vmov 0.0|0.0  }
  0x16   :  { %v9921_v9 = vld [vmem:[%s16712_s0 + $0x48] sm:$0xff]  ;;  %v9926_v10 = vld [vmem:[%s16712_s0 + $0x40] sm:$0xff]  ;;  %v9933_v11 = vld [vmem:[%s16712_s0 + $0x58] sm:$0xff]  ;;  %9282 = vmatprep.subr.bf16.mxu1 %v16725_v46  ;;  %9378 = vmatprep.subr.bf16.mxu0 %v16725_v46 }
  0x17   :  { %v9938_v12 = vld [vmem:[%s16712_s0 + $0x50] sm:$0xff]  ;;  %v9945_v13 = vld [vmem:[%s16712_s0 + $0x68] sm:$0xff]  ;;  %v38_v14 = vld [vmem:[%s16712_s0 + $0x60] sm:$0xff] }
  0x18   :  { %v9954_v15 = vld [vmem:[%s16712_s0 + $0x78] sm:$0xff]  ;;  %v9959_v16 = vld [vmem:[%s16712_s0 + $0x70] sm:$0xff]  ;;  %v9966_v17 = vld [vmem:[%s16712_s0 + $0x88] sm:$0xff] }
  0x19   :  { %239 = vperm.xlu1 %9647, %v9885_v3   ;;  %233 = vperm.xlu0 %9646, %v9890_v4   ;;  %v9971_v18 = vld [vmem:[%s16712_s0 + $0x80] sm:$0xff]  ;;  %v9978_v19 = vld [vmem:[%s16712_s0 + $0x98] sm:$0xff]  ;;  %v44_v20 = vld [vmem:[%s16712_s0 + $0x90] sm:$0xff] }
  0x1a   :  { %v9987_v21 = vld [vmem:[%s16712_s0 + $0xa8] sm:$0xff]  ;;  %v9992_v22 = vld [vmem:[%s16712_s0 + $0xa0] sm:$0xff]  ;;  %v9999_v23 = vld [vmem:[%s16712_s0 + $0xb8] sm:$0xff] }
  0x1b   :  { %v48_v24 = vld [vmem:[%s16712_s0 + $0xb0] sm:$0xff]  ;;  %v10008_v25 = vld [vmem:[%s16712_s0 + $0xc8] sm:$0xff]  ;;  %v50_v26 = vld [vmem:[%s16712_s0 + $0xc0] sm:$0xff] }
  0x1c   :  { %v53_v27 = vld [vmem:[%s16712_s0 + $0xd8] sm:$0xff]  ;;  %v52_v28 = vld [vmem:[%s16712_s0 + $0xd0] sm:$0xff]  ;;  %v55_v29 = vld [vmem:[%s16712_s0 + $0xe8] sm:$0xff] }
  0x1d   :  { %245 = vperm.xlu1 %9647, %v9897_v5   ;;  %242 = vperm.xlu0 %9646, %v9902_v6   ;;  %v10026_v30 = vld [vmem:[%s16712_s0 + $0xe0] sm:$0xff]  ;;  %v57_v31 = vld [vmem:[%s16712_s0 + $0xf8] sm:$0xff]  ;;  %v56_v32 = vld [vmem:[%s16712_s0 + $0xf0] sm:$0xff] }
  0x1e   :  { %v58_v38 = vld [vmem:[#allocation2] sm:$0xff]  ;;  %v59_v39 = vld [vmem:[#allocation2 + $0x8] sm:$0xff]  ;;  %v60_v47 = vld [vmem:[#allocation2 + $0x10] sm:$0xff] }
  0x1f   :  { %v122_v40 = vld [vmem:[#allocation2 + $0x200] sm:$0xff]  ;;  %v9283_v43 = vpack.c.bf16 %v59_v39, %v58_v38  ;;  %v123_v44 = vld [vmem:[#allocation2 + $0x208] sm:$0xff]  ;;  %v61_v48 = vld [vmem:[#allocation2 + $0x18] sm:$0xff] }
  0x20   :  { %v9379_v45 = vpack.c.bf16 %v123_v44, %v122_v40  ;;  %v124_v49 = vld [vmem:[#allocation2 + $0x210] sm:$0xff]  ;;  %v9286_v52 = vpack.c.bf16 %v61_v48, %v60_v47  ;;  %v125_v53 = vld [vmem:[#allocation2 + $0x218] sm:$0xff]  ;;  %v62_v55 = vld [vmem:[#allocation2 + $0x20] sm:$0xff] }
  0x21   :  { %251 = vperm.xlu1 %9647, %v9909_v7   ;;  %248 = vperm.xlu0 %9646, %v9914_v8   ;;  %v9382_v54 = vpack.c.bf16 %v125_v53, %v124_v49  ;;  %v63_v56 = vld [vmem:[#allocation2 + $0x28] sm:$0xff]  ;;  %v126_v57 = vld [vmem:[#allocation2 + $0x220] sm:$0xff]  ;;  %v64_v63 = vld [vmem:[#allocation2 + $0x30] sm:$0xff] }
  0x22   :  { %9284 = vmatpush1.bf16.msra.mxu1 %v9283_v43  ;;  %9380 = vmatpush1.bf16.msra.mxu0 %v9379_v45  ;;  %v9289_v60 = vpack.c.bf16 %v63_v56, %v62_v55  ;;  %v127_v61 = vld [vmem:[#allocation2 + $0x228] sm:$0xff]  ;;  %v65_v0 = vld [vmem:[#allocation2 + $0x38] sm:$0xff]  ;;  %v68_v40 = vld [vmem:[#allocation2 + $0x50] sm:$0xff] }
  0x23   :  { %9285 = vmatprep.subr.bf16.mxu1 %v16725_v46  ;;  %9381 = vmatprep.subr.bf16.mxu0 %v16725_v46  ;;  %v9385_v62 = vpack.c.bf16 %v127_v61, %v126_v57  ;;  %v131_v38 = vld [vmem:[#allocation2 + $0x248] sm:$0xff]  ;;  %v69_v43 = vld [vmem:[#allocation2 + $0x58] sm:$0xff]  ;;  %v132_v44 = vld [vmem:[#allocation2 + $0x250] sm:$0xff] }
  0x24   :  { %v9298_v48 = vpack.c.bf16 %v69_v43, %v68_v40  ;;  %v133_v49 = vld [vmem:[#allocation2 + $0x258] sm:$0xff]  ;;  %v71_v53 = vld [vmem:[#allocation2 + $0x68] sm:$0xff]  ;;  %v76_v43 = vld [vmem:[#allocation2 + $0x90] sm:$0xff] }
  0x25   :  { %257 = vperm.xlu1 %9647, %v9921_v9   ;;  %254 = vperm.xlu0 %9646, %v9926_v10  }
  0x26   :  { %9287 = vmatpush1.bf16.msra.mxu1 %v9286_v52  ;;  %9383 = vmatpush1.bf16.msra.mxu0 %v9382_v54  ;;  %v70_v52 = vld [vmem:[#allocation2 + $0x60] sm:$0xff] }
  0x27   :  { %9288 = vmatprep.subr.bf16.mxu1 %v16725_v46  ;;  %9384 = vmatprep.subr.bf16.mxu0 %v16725_v46  ;;  %v134_v54 = vld [vmem:[#allocation2 + $0x260] sm:$0xff]  ;;  %v9301_v57 = vpack.c.bf16 %v71_v53, %v70_v52  ;;  %v141_v53 = vld [vmem:[#allocation2 + $0x298] sm:$0xff] }
  0x29   :  { %263 = vperm.xlu1 %9647, %v9933_v11   ;;  %260 = vperm.xlu0 %9646, %v9938_v12  }
  0x2a   :  { %9290 = vmatpush1.bf16.msra.mxu1 %v9289_v60  ;;  %9386 = vmatpush1.bf16.msra.mxu0 %v9385_v62  ;;  %v135_v60 = vld [vmem:[#allocation2 + $0x268] sm:$0xff]  ;;  %v72_v62 = vld [vmem:[#allocation2 + $0x70] sm:$0xff] }
  0x2b   :  { %9291 = vmatprep.subr.bf16.mxu1 %v16725_v46  ;;  %9387 = vmatprep.subr.bf16.mxu0 %v16725_v46  ;;  %v9397_v61 = vpack.c.bf16 %v135_v60, %v134_v54  ;;  %v79_v60 = vld [vmem:[#allocation2 + $0xa8] sm:$0xff] }
  0x2d   :  { %269 = vperm.xlu1 %9647, %v9945_v13   ;;  %266 = vperm.xlu0 %9646, %v38_v14  }
  0x31   :  { %275 = vperm.xlu1 %9647, %v9954_v15   ;;  %272 = vperm.xlu0 %9646, %v9959_v16  }
  0x35   :  { %281 = vperm.xlu1 %9647, %v9966_v17   ;;  %278 = vperm.xlu0 %9646, %v9971_v18  }
  0x39   :  { %287 = vperm.xlu1 %9647, %v9978_v19   ;;  %284 = vperm.xlu0 %9646, %v44_v20  }
  0x3d   :  { %293 = vperm.xlu1 %9647, %v9987_v21   ;;  %290 = vperm.xlu0 %9646, %v9992_v22  }
  0x41   :  { %299 = vperm.xlu1 %9647, %v9999_v23   ;;  %296 = vperm.xlu0 %9646, %v48_v24  }
  0x45   :  { %305 = vperm.xlu1 %9647, %v10008_v25   ;;  %302 = vperm.xlu0 %9646, %v50_v26  }
  0x49   :  { %311 = vperm.xlu1 %9647, %v53_v27   ;;  %308 = vperm.xlu0 %9646, %v52_v28   ;;  %v67_v27 = vld [vmem:[#allocation2 + $0x48] sm:$0xff]  ;;  %v130_v28 = vld [vmem:[#allocation2 + $0x240] sm:$0xff] }
  0x4a   :  { %v9391_v39 = vpack.c.bf16 %v131_v38, %v130_v28  ;;  %v138_v28 = vld [vmem:[#allocation2 + $0x280] sm:$0xff] }
  0x4d   :  { %317 = vperm.xlu1 %9647, %v55_v29   ;;  %314 = vperm.xlu0 %9646, %v10026_v30  }
  0x51   :  { %323 = vperm.xlu1 %9647, %v57_v31   ;;  %320 = vperm.xlu0 %9646, %v56_v32  }
  0x55   :  { %9648 = vset.pattern.permute.xlu1 %v16715_v33  ;;  %9657 = vset.pattern.permute.xlu0 %v16717_v34 }
  0x56   :  { %1097 = vperm.xlu1 %9648, %v9890_v4   ;;  %3343 = vperm.xlu0 %9657, %v9885_v3  }
  0x5a   :  { %1100 = vperm.xlu1 %9648, %v9873_v1   ;;  %3352 = vperm.xlu0 %9657, %v9914_v8  }
  0x5e   :  { %1106 = vperm.xlu1 %9648, %v9902_v6   ;;  %9666 = vset.pattern.permute.xlu0 %v16723_v35 }
  0x5f   :  { %4454 = vperm.xlu0 %9666, %v9878_v2  }
  0x62   :  { %1112 = vperm.xlu1 %9648, %v9914_v8  }
  0x63   :  { %4463 = vperm.xlu0 %9666, %v9885_v3  }
  0x66   :  { %1118 = vperm.xlu1 %9648, %v9926_v10  }
  0x67   :  { %4472 = vperm.xlu0 %9666, %v9914_v8  }
  0x6a   :  { %1124 = vperm.xlu1 %9648, %v9938_v12  }
  0x6b   :  { %4481 = vperm.xlu0 %9666, %v9921_v9  }
  0x6e   :  { %1130 = vperm.xlu1 %9648, %v38_v14  }
  0x6f   :  { %4490 = vperm.xlu0 %9666, %v38_v14  }
  0x72   :  { %1136 = vperm.xlu1 %9648, %v9959_v16  }
  0x73   :  { %4499 = vperm.xlu0 %9666, %v9954_v15  }
  0x76   :  { %1142 = vperm.xlu1 %9648, %v9971_v18  }
  0x77   :  { %9693 = vset.pattern.permute.xlu0 %v16721_v36 }
  0x78   :  { %5577 = vperm.xlu0 %9693, %v9890_v4  }
  0x7a   :  { %1148 = vperm.xlu1 %9648, %v44_v20   ;;  %v9292_v20 = vpack.c.bf16 %v65_v0, %v64_v63  ;;  %v73_v63 = vld [vmem:[#allocation2 + $0x78] sm:$0xff]  ;;  %v136_v0 = vld [vmem:[#allocation2 + $0x270] sm:$0xff] }
  0x7c   :  { %5586 = vperm.xlu0 %9693, %v9902_v6   ;;  %9293 = vmatpush1.bf16.msra.mxu1 %v9292_v20 }
  0x7d   :  { %9294 = vmatprep.subr.bf16.mxu1 %v16725_v46 }
  0x7e   :  { %1154 = vperm.xlu1 %9648, %v9992_v22  }
  0x80   :  { %5595 = vperm.xlu0 %9693, %v9909_v7  }
  0x82   :  { %1160 = vperm.xlu1 %9648, %v48_v24   ;;  %v129_v24 = vld [vmem:[#allocation2 + $0x238] sm:$0xff] }
  0x84   :  { %5604 = vperm.xlu0 %9693, %v9938_v12   ;;  %v128_v12 = vld [vmem:[#allocation2 + $0x230] sm:$0xff] }
  0x86   :  { %1166 = vperm.xlu1 %9648, %v50_v26   ;;  %v9388_v26 = vpack.c.bf16 %v129_v24, %v128_v12  ;;  %v9304_v24 = vpack.c.bf16 %v73_v63, %v72_v62 }
  0x88   :  { %5613 = vperm.xlu0 %9693, %v9945_v13   ;;  %9389 = vmatpush1.bf16.msra.mxu0 %v9388_v26  ;;  %v137_v26 = vld [vmem:[#allocation2 + $0x278] sm:$0xff] }
  0x89   :  { %9390 = vmatprep.subr.bf16.mxu0 %v16725_v46 }
  0x8a   :  { %9649 = vset.pattern.permute.xlu1 %v16717_v34 }
  0x8b   :  { %3334 = vperm.xlu1 %9649, %v9878_v2  }
  0x8c   :  { %5622 = vperm.xlu0 %9693, %v9971_v18   ;;  %9392 = vmatpush1.bf16.msra.mxu0 %v9391_v39 }
  0x8d   :  { %9393 = vmatprep.subr.bf16.mxu0 %v16725_v46 }
  0x8f   :  { %9650 = vset.pattern.permute.xlu1 %v16719_v37 }
  0x90   :  { %2217 = vperm.xlu1 %9650, %v9890_v4   ;;  %5631 = vperm.xlu0 %9693, %v9978_v19  }
  0x94   :  { %v10066_v41 = vpop.permute.xlu1 %236  ;;  %9651 = vset.pattern.permute.xlu1 %v16717_v34  ;;  %9706 = vset.pattern.permute.xlu0 %v16715_v33  ;;  %v10070_v42 = vpop.permute.xlu0 %230 }
  0x95   :  { %17070 = vst [vmem:[#allocation8_spill] sm:$0xff] %v10066_v41  ;;  %17071 = vst [vmem:[#allocation9_spill] sm:$0xff] %v10070_v42  ;;  %3337 = vperm.xlu1 %9651, %v9890_v4   ;;  %1094 = vperm.xlu0 %9706, %v9878_v2  }
  0x98   :  { %v10076_v50 = vpop.permute.xlu1 %239  ;;  %v10078_v51 = vpop.permute.xlu0 %233 }
  0x99   :  { %17072 = vst [vmem:[#allocation10_spill] sm:$0xff] %v10076_v50  ;;  %17073 = vst [vmem:[#allocation11_spill] sm:$0xff] %v10078_v51  ;;  %9652 = vset.pattern.permute.xlu1 %v16721_v36  ;;  %1103 = vperm.xlu0 %9706, %v9885_v3  }
  0x9a   :  { %5574 = vperm.xlu1 %9652, %v9878_v2  }
  0x9c   :  { %v10085_v58 = vpop.permute.xlu1 %245  ;;  %v10087_v59 = vpop.permute.xlu0 %242 }
  0x9d   :  { %17074 = vst [vmem:[#allocation12_spill] sm:$0xff] %v10085_v58  ;;  %17075 = vst [vmem:[#allocation13_spill] sm:$0xff] %v10087_v59  ;;  %1109 = vperm.xlu0 %9706, %v9897_v5  }
  0x9e   :  { %9653 = vset.pattern.permute.xlu1 %v16723_v35 }
  0x9f   :  { %4457 = vperm.xlu1 %9653, %v9890_v4   ;;  %v66_v4 = vld [vmem:[#allocation2 + $0x40] sm:$0xff] }
  0xa0   :  { %v10094_v14 = vpop.permute.xlu1 %251  ;;  %v10096_v18 = vpop.permute.xlu0 %248  ;;  %v9295_v32 = vpack.c.bf16 %v67_v27, %v66_v4  ;;  %v74_v4 = vld [vmem:[#allocation2 + $0x80] sm:$0xff]  ;;  %v75_v27 = vld [vmem:[#allocation2 + $0x88] sm:$0xff] }
  0xa1   :  { %17076 = vst [vmem:[#allocation14_spill] sm:$0xff] %v10094_v14  ;;  %17077 = vst [vmem:[#allocation15_spill] sm:$0xff] %v10096_v18  ;;  %1115 = vperm.xlu0 %9706, %v9909_v7   ;;  %v9307_v39 = vpack.c.bf16 %v75_v27, %v74_v4  ;;  %v144_v4 = vld [vmem:[#allocation2 + $0x2b0] sm:$0xff] }
  0xa2   :  { %9296 = vmatpush1.bf16.msra.mxu1 %v9295_v32 }
  0xa3   :  { %9654 = vset.pattern.permute.xlu1 %v16717_v34  ;;  %9297 = vmatprep.subr.bf16.mxu1 %v16725_v46 }
  0xa4   :  { %v10102_v29 = vpop.permute.xlu1 %257  ;;  %3340 = vperm.xlu1 %9654, %v9873_v1   ;;  %v10105_v31 = vpop.permute.xlu0 %254 }
  0xa5   :  { %17078 = vst [vmem:[#allocation16_spill] sm:$0xff] %v10102_v29  ;;  %17079 = vst [vmem:[#allocation17_spill] sm:$0xff] %v10105_v31  ;;  %1121 = vperm.xlu0 %9706, %v9921_v9   ;;  %v9394_v9 = vpack.c.bf16 %v133_v49, %v132_v44  ;;  %v77_v44 = vld [vmem:[#allocation2 + $0x98] sm:$0xff] }
  0xa6   :  { %9299 = vmatpush1.bf16.msra.mxu1 %v9298_v48  ;;  %v140_v48 = vld [vmem:[#allocation2 + $0x290] sm:$0xff]  ;;  %v9310_v52 = vpack.c.bf16 %v77_v44, %v76_v43  ;;  %v82_v43 = vld [vmem:[#allocation2 + $0xc0] sm:$0xff]  ;;  %v83_v44 = vld [vmem:[#allocation2 + $0xc8] sm:$0xff] }
  0xa7   :  { %9395 = vmatpush1.bf16.msra.mxu0 %v9394_v9  ;;  %9300 = vmatprep.subr.bf16.mxu1 %v16725_v46  ;;  %v9406_v54 = vpack.c.bf16 %v141_v53, %v140_v48  ;;  %v146_v48 = vld [vmem:[#allocation2 + $0x2c0] sm:$0xff] }
  0xa8   :  { %v10110_v45 = vpop.permute.xlu1 %263  ;;  %9655 = vset.pattern.permute.xlu1 %v16719_v37  ;;  %v10113_v47 = vpop.permute.xlu0 %260  ;;  %9396 = vmatprep.subr.bf16.mxu0 %v16725_v46 }
  0xa9   :  { %17080 = vst [vmem:[#allocation18_spill] sm:$0xff] %v10110_v45  ;;  %17081 = vst [vmem:[#allocation19_spill] sm:$0xff] %v10113_v47  ;;  %2223 = vperm.xlu1 %9655, %v9885_v3   ;;  %1127 = vperm.xlu0 %9706, %v9933_v11  }
  0xaa   :  { %9302 = vmatpush1.bf16.msra.mxu1 %v9301_v57  ;;  %v78_v57 = vld [vmem:[#allocation2 + $0xa0] sm:$0xff] }
  0xab   :  { %9398 = vmatpush1.bf16.msra.mxu0 %v9397_v61  ;;  %9303 = vmatprep.subr.bf16.mxu1 %v16725_v46  ;;  %v142_v61 = vld [vmem:[#allocation2 + $0x2a0] sm:$0xff] }
  0xac   :  { %v10119_v55 = vpop.permute.xlu1 %269  ;;  %v10121_v56 = vpop.permute.xlu0 %266  ;;  %9399 = vmatprep.subr.bf16.mxu0 %v16725_v46 }
  0xad   :  { %17082 = vst [vmem:[#allocation20_spill] sm:$0xff] %v10119_v55  ;;  %17083 = vst [vmem:[#allocation21_spill] sm:$0xff] %v10121_v56  ;;  %9656 = vset.pattern.permute.xlu1 %v16723_v35  ;;  %1133 = vperm.xlu0 %9706, %v9945_v13   ;;  %v9400_v13 = vpack.c.bf16 %v137_v26, %v136_v0  ;;  %v9313_v0 = vpack.c.bf16 %v79_v60, %v78_v57  ;;  %v80_v26 = vld [vmem:[#allocation2 + $0xb0] sm:$0xff]  ;;  %v147_v57 = vld [vmem:[#allocation2 + $0x2c8] sm:$0xff] }
  0xae   :  { %4460 = vperm.xlu1 %9656, %v9873_v1   ;;  %9305 = vmatpush1.bf16.msra.mxu1 %v9304_v24  ;;  %v143_v24 = vld [vmem:[#allocation2 + $0x2a8] sm:$0xff] }
  0xaf   :  { %9401 = vmatpush1.bf16.msra.mxu0 %v9400_v13  ;;  %9306 = vmatprep.subr.bf16.mxu1 %v16725_v46  ;;  %v81_v13 = vld [vmem:[#allocation2 + $0xb8] sm:$0xff] }
  0xb0   :  { %v10128_v12 = vpop.permute.xlu1 %275  ;;  %v10130_v20 = vpop.permute.xlu0 %272  ;;  %9402 = vmatprep.subr.bf16.mxu0 %v16725_v46 }
  0xb1   :  { %17084 = vst [vmem:[#allocation22_spill] sm:$0xff] %v10128_v12  ;;  %17085 = vst [vmem:[#allocation23_spill] sm:$0xff] %v10130_v20  ;;  %1139 = vperm.xlu0 %9706, %v9954_v15   ;;  %v139_v15 = vld [vmem:[#allocation2 + $0x288] sm:$0xff] }
  0xb2   :  { %9658 = vset.pattern.permute.xlu1 %v16721_v36  ;;  %v9403_v40 = vpack.c.bf16 %v139_v15, %v138_v28  ;;  %9308 = vmatpush1.bf16.msra.mxu1 %v9307_v39  ;;  %v9316_v39 = vpack.c.bf16 %v81_v13, %v80_v26  ;;  %v145_v15 = vld [vmem:[#allocation2 + $0x2b8] sm:$0xff] }
  0xb3   :  { %5580 = vperm.xlu1 %9658, %v9873_v1   ;;  %9309 = vmatprep.subr.bf16.mxu1 %v16725_v46 }
  0xb4   :  { %v10137_v32 = vpop.permute.xlu1 %281  ;;  %v10139_v38 = vpop.permute.xlu0 %278  ;;  %9404 = vmatpush1.bf16.msra.mxu0 %v9403_v40  ;;  %v220_v40 = vlaneseq }
  0xb5   :  { %17086 = vst [vmem:[#allocation24_spill] sm:$0xff] %v10137_v32  ;;  %17087 = vst [vmem:[#allocation25_spill] sm:$0xff] %v10139_v38  ;;  %1145 = vperm.xlu0 %9706, %v9966_v17   ;;  %9405 = vmatprep.subr.bf16.mxu0 %v16725_v46 }
  0xb6   :  { %9311 = vmatpush1.bf16.msra.mxu1 %v9310_v52  ;;  %v10179_v60 = vand.u32 127, %v220_v40  ;;  %v150_v40 = vld [vmem:[#allocation2 + $0x2e0] sm:$0xff] }
  0xb7   :  { %9659 = vset.pattern.permute.xlu1 %v16719_v37  ;;  %9312 = vmatprep.subr.bf16.mxu1 %v16725_v46 }
  0xb8   :  { %v10145_v49 = vpop.permute.xlu1 %287  ;;  %2226 = vperm.xlu1 %9659, %v9902_v6   ;;  %v10148_v9 = vpop.permute.xlu0 %284  ;;  %9407 = vmatpush1.bf16.msra.mxu0 %v9406_v54  ;;  %v9319_v54 = vpack.c.bf16 %v83_v44, %v82_v43  ;;  %v10195_v43 = vadd.s32 640, %v10179_v60  ;;  %v10198_v44 = vadd.s32 512, %v10179_v60  ;;  %vm341_vm3 = vcmp.eq.s32.totalorder %v10179_v60, %v10066_v41 }
  0xb9   :  { %17088 = vst [vmem:[#allocation26_spill] sm:$0xff] %v10145_v49  ;;  %17089 = vst [vmem:[#allocation27_spill] sm:$0xff] %v10148_v9  ;;  %1151 = vperm.xlu0 %9706, %v9978_v19   ;;  %v9409_v19 = vpack.c.bf16 %v143_v24, %v142_v61  ;;  %9408 = vmatprep.subr.bf16.mxu0 %v16725_v46  ;;  %v84_v61 = vld [vmem:[#allocation2 + $0xd0] sm:$0xff]  ;;  %vm333_vm6 = vcmp.eq.s32.totalorder %v10179_v60, %v10078_v51 }
  0xba   :  { %9314 = vmatpush1.bf16.msra.mxu1 %v9313_v0  ;;  %v85_v0 = vld [vmem:[#allocation2 + $0xd8] sm:$0xff]  ;;  %v148_v24 = vld [vmem:[#allocation2 + $0x2d0] sm:$0xff]  ;;  %vm346_vm2 = vcmp.eq.s32.totalorder %v10195_v43, %v10066_v41  ;;  %vm345_vm4 = vcmp.eq.s32.totalorder %v10198_v44, %v10066_v41  ;;  %vm338_vm5 = vcmp.eq.s32.totalorder %v10195_v43, %v10078_v51  ;;  %vm337_vm7 = vcmp.eq.s32.totalorder %v10198_v44, %v10078_v51 }
  0xbb   :  { %9315 = vmatprep.subr.bf16.mxu1 %v16725_v46  ;;  %v9322_v13 = vpack.c.bf16 %v85_v0, %v84_v61  ;;  %v10209_v61 = vadd.s32 256, %v10179_v60  ;;  %v88_v0 = vld [vmem:[#allocation2 + $0xf0] sm:$0xff]  ;;  %vm354_vm9 = vcmp.eq.s32.totalorder %v10195_v43, %v10076_v50  ;;  %vm349_vm10 = vcmp.eq.s32.totalorder %v10179_v60, %v10076_v50 }
  0xbc   :  { %v10153_v62 = vpop.permute.xlu1 %293  ;;  %9660 = vset.pattern.permute.xlu1 %v16717_v34  ;;  %v10156_v63 = vpop.permute.xlu0 %290  ;;  %9410 = vmatpush1.bf16.msra.mxu0 %v9409_v19  ;;  %vm353_vm11 = vcmp.eq.s32.totalorder %v10198_v44, %v10076_v50  ;;  %vm362_vm13 = vcmp.eq.s32.totalorder %v10195_v43, %v10087_v59  ;;  %vm357_vm14 = vcmp.eq.s32.totalorder %v10179_v60, %v10087_v59 }
  0xbd   :  { %17090 = vst [vmem:[#allocation28_spill] sm:$0xff] %v10153_v62  ;;  %17091 = vst [vmem:[#allocation29_spill] sm:$0xff] %v10156_v63  ;;  %3346 = vperm.xlu1 %9660, %v9902_v6   ;;  %1157 = vperm.xlu0 %9706, %v9987_v21   ;;  %v9412_v21 = vpack.c.bf16 %v145_v15, %v144_v4  ;;  %v149_v4 = vld [vmem:[#allocation2 + $0x2d8] sm:$0xff]  ;;  %v86_v15 = vld [vmem:[#allocation2 + $0xe0] sm:$0xff]  ;;  %vm361_vm15 = vcmp.eq.s32.totalorder %v10198_v44, %v10087_v59 }
  0xbe   :  { %9411 = vmatprep.subr.bf16.mxu0 %v16725_v46  ;;  %9317 = vmatpush1.bf16.msra.mxu1 %v9316_v39  ;;  %v9418_v39 = vpack.c.bf16 %v149_v4, %v148_v24  ;;  %17100 = vst [vmem:[#allocation38_spill] sm:$0xff] %v10209_v61  ;;  %v89_v24 = vld [vmem:[#allocation2 + $0xf8] sm:$0xff] }
  0xbf   :  { %9318 = vmatprep.subr.bf16.mxu1 %v16725_v46 }
  0xc0   :  { %v10162_v27 = vpop.permute.xlu1 %299  ;;  %v10164_v28 = vpop.permute.xlu0 %296  ;;  %9413 = vmatpush1.bf16.msra.mxu0 %v9412_v21  ;;  %v87_v21 = vld [vmem:[#allocation2 + $0xe8] sm:$0xff] }
  0xc1   :  { %17092 = vst [vmem:[#allocation30_spill] sm:$0xff] %v10162_v27  ;;  %17093 = vst [vmem:[#allocation31_spill] sm:$0xff] %v10164_v28  ;;  %9661 = vset.pattern.permute.xlu1 %v16721_v36  ;;  %1163 = vperm.xlu0 %9706, %v9999_v23  }
  0xc2   :  { %5583 = vperm.xlu1 %9661, %v9885_v3   ;;  %9414 = vmatprep.subr.bf16.mxu0 %v16725_v46  ;;  %v9415_v3 = vpack.c.bf16 %v147_v57, %v146_v48  ;;  %v151_v57 = vld [vmem:[#allocation2 + $0x2e8] sm:$0xff] }
  0xc3   :  { %9320 = vmatpush1.bf16.msra.mxu1 %v9319_v54  ;;  %v9325_v54 = vpack.c.bf16 %v87_v21, %v86_v15  ;;  %v9328_v15 = vpack.c.bf16 %v89_v24, %v88_v0  ;;  %v153_v21 = vld [vmem:[#allocation2 + $0x2f8] sm:$0xff] }
  0xc4   :  { %v10171_v52 = vpop.permute.xlu1 %305  ;;  %v10173_v53 = vpop.permute.xlu0 %302  ;;  %9416 = vmatpush1.bf16.msra.mxu0 %v9415_v3  ;;  %9321 = vmatprep.subr.bf16.mxu1 %v16725_v46  ;;  %v9421_v3 = vpack.c.bf16 %v151_v57, %v150_v40 }
  0xc5   :  { %17094 = vst [vmem:[#allocation32_spill] sm:$0xff] %v10171_v52  ;;  %17095 = vst [vmem:[#allocation33_spill] sm:$0xff] %v10173_v53  ;;  %1169 = vperm.xlu0 %9706, %v10008_v25   ;;  %9417 = vmatprep.subr.bf16.mxu0 %v16725_v46 }
  0xc6   :  { %9662 = vset.pattern.permute.xlu1 %v16723_v35 }
  0xc7   :  { %4466 = vperm.xlu1 %9662, %v9902_v6   ;;  %v10191_v6 = vadd.s32 128, %v10179_v60  ;;  %9323 = vmatpush1.bf16.msra.mxu1 %v9322_v13  ;;  %v152_v13 = vld [vmem:[#allocation2 + $0x2f0] sm:$0xff] }
  0xc8   :  { %v10182_v19 = vpop.permute.xlu1 %311  ;;  %v10184_v26 = vpop.permute.xlu0 %308  ;;  %9419 = vmatpush1.bf16.msra.mxu0 %v9418_v39  ;;  %9324 = vmatprep.subr.bf16.mxu1 %v16725_v46  ;;  %v10227_v39 = vadd.s32 768, %v10179_v60  ;;  %v9424_v40 = vpack.c.bf16 %v153_v21, %v152_v13 }
  0xc9   :  { %17096 = vst [vmem:[#allocation34_spill] sm:$0xff] %v10182_v19  ;;  %17097 = vst [vmem:[#allocation35_spill] sm:$0xff] %v10184_v26  ;;  %9717 = vset.pattern.permute.xlu0 %v16719_v37  ;;  %9420 = vmatprep.subr.bf16.mxu0 %v16725_v46  ;;  %vm342_vm0 = vcmp.eq.s32.totalorder %v10191_v6, %v10066_v41  ;;  %vm334_vm1 = vcmp.eq.s32.totalorder %v10191_v6, %v10078_v51 }
  0xca   :  { %2214 = vperm.xlu0 %9717, %v9878_v2   ;;  %17103 = vst [vmem:[#allocation41_spill] sm:$0xff] %v10227_v39  ;;  %vm350_vm8 = vcmp.eq.s32.totalorder %v10191_v6, %v10076_v50  ;;  %vm358_vm12 = vcmp.eq.s32.totalorder %v10191_v6, %v10087_v59 }
  0xcb   :  { %9663 = vset.pattern.permute.xlu1 %v16717_v34  ;;  %9326 = vmatpush1.bf16.msra.mxu1 %v9325_v54  ;;  %v16780_v54 = vmov 0.0  }
  0xcc   :  { %v10200_v48 = vpop.permute.xlu1 %317  ;;  %3349 = vperm.xlu1 %9663, %v9897_v5   ;;  %v10203_v2 = vpop.permute.xlu0 %314  ;;  %9422 = vmatpush1.bf16.msra.mxu0 %v9421_v3  ;;  %v10241_v57 = vsel %vm342_vm0, 1.0, %v16780_v54  ;;  %v10251_v3 = vsel %vm346_vm2, 1.0, %v16780_v54  ;;  %v10257_v0 = vsel %vm341_vm3, 1.0, %v16780_v54  ;;  %v10263_v24 = vsel %vm345_vm4, 1.0, %v16780_v54 }
  0xcd   :  { %17098 = vst [vmem:[#allocation36_spill] sm:$0xff] %v10200_v48  ;;  %17099 = vst [vmem:[#allocation37_spill] sm:$0xff] %v10203_v2  ;;  %9327 = vmatprep.subr.bf16.mxu1 %v16725_v46  ;;  %9423 = vmatprep.subr.bf16.mxu0 %v16725_v46  ;;  %v10271_v13 = vsel %vm334_vm1, 1.0, %v16780_v54  ;;  %v10277_v21 = vsel %vm338_vm5, 1.0, %v16780_v54  ;;  %v10283_v33 = vsel %vm333_vm6, 1.0, %v16780_v54  ;;  %v10294_v34 = vsel %vm350_vm8, 1.0, %v16780_v54 }
  0xce   :  { %2220 = vperm.xlu0 %9717, %v9873_v1   ;;  %17104 = vst [vmem:[#allocation42_spill] sm:$0xff] %v10294_v34  ;;  %v10307_v36 = vsel %vm354_vm9, 1.0, %v16780_v54  ;;  %vm366_vm0 = vcmp.eq.s32.totalorder %v10191_v6, %v10085_v58  ;;  %vm370_vm1 = vcmp.eq.s32.totalorder %v10195_v43, %v10085_v58  ;;  %vm365_vm2 = vcmp.eq.s32.totalorder %v10179_v60, %v10085_v58 }
  0xcf   :  { %9329 = vmatpush1.bf16.msra.mxu1 %v9328_v15  ;;  %v10291_v15 = vsel %vm337_vm7, 1.0, %v16780_v54  ;;  %17107 = vst [vmem:[#allocation45_spill] sm:$0xff] %v10307_v36  ;;  %vm369_vm3 = vcmp.eq.s32.totalorder %v10198_v44, %v10085_v58  ;;  %vm374_vm4 = vcmp.eq.s32.totalorder %v10191_v6, %v10096_v18  ;;  %v10347_v41 = vsel %vm362_vm13, 1.0, %v16780_v54 }
  0xd0   :  { %v10221_v1 = vpop.permute.xlu1 %323  ;;  %9664 = vset.pattern.permute.xlu1 %v16719_v37  ;;  %v10224_v4 = vpop.permute.xlu0 %320  ;;  %9425 = vmatpush1.bf16.msra.mxu0 %v9424_v40  ;;  %v10350_v51 = vsel %vm357_vm14, 1.0, %v16780_v54  ;;  %v10353_v50 = vsel %vm361_vm15, 1.0, %v16780_v54  ;;  %vm378_vm5 = vcmp.eq.s32.totalorder %v10195_v43, %v10096_v18  ;;  %v10362_v58 = vsel %vm366_vm0, 1.0, %v16780_v54 }
  0xd1   :  { %17101 = vst [vmem:[#allocation39_spill] sm:$0xff] %v10221_v1  ;;  %17102 = vst [vmem:[#allocation40_spill] sm:$0xff] %v10224_v4  ;;  %2232 = vperm.xlu1 %9664, %v9914_v8   ;;  %9330 = vmatprep.subr.bf16.mxu1 %v16725_v46  ;;  %v10365_v4 = vsel %vm370_vm1, 1.0, %v16780_v54  ;;  %v10368_v48 = vsel %vm365_vm2, 1.0, %v16780_v54  ;;  %vm373_vm6 = vcmp.eq.s32.totalorder %v10179_v60, %v10096_v18  ;;  %v17115_v2 = vmov 5  }
  0xd2   :  { %2229 = vperm.xlu0 %9717, %v9897_v5   ;;  %9426 = vmatprep.subr.bf16.mxu0 %v16725_v46  ;;  %v10340_v46 = vsel %vm358_vm12, 1.0, %v16780_v54  ;;  %17112 = vst [vmem:[#allocation50_spill] sm:$0xff] %v10362_v58  ;;  %17113 = vst [vmem:[#allocation51_spill] sm:$0xff] %v10365_v4  ;;  %v10375_v19 = vsel %vm369_vm3, 1.0, %v16780_v54  ;;  %v10378_v26 = vsel %vm374_vm4, 1.0, %v16780_v54  ;;  %vm377_vm7 = vcmp.eq.s32.totalorder %v10198_v44, %v10096_v18 }
  0xd3   :  { %17114 = vst [vmem:[#allocation52_spill] sm:$0xff] %v10368_v48  ;;  %17116 = vst [vmem:[#allocation53_spill] sm:$0xff] %v10375_v19  ;;  %vm382_vm8 = vcmp.eq.s32.totalorder %v10191_v6, %v10094_v14  ;;  %v10386_v52 = vsel %vm378_vm5, 1.0, %v16780_v54  ;;  %vm386_vm9 = vcmp.eq.s32.totalorder %v10195_v43, %v10094_v14  ;;  %vm390_vm12 = vcmp.eq.s32.totalorder %v10191_v6, %v10105_v31 }
  0xd4   :  { %vm394_vm13 = vcmp.eq.s32.totalorder %v10195_v43, %v10105_v31  ;;  %vm389_vm14 = vcmp.eq.s32.totalorder %v10179_v60, %v10105_v31  ;;  %v10406_v18 = vsel %vm377_vm7, 1.0, %v16780_v54  ;;  %v10409_v53 = vsel %vm382_vm8, 1.0, %v16780_v54 }
  0xd5   :  { %v10301_v37 = vpop.permute.xlu1 %1097  ;;  %9665 = vset.pattern.permute.xlu1 %v16723_v35  ;;  %v10304_v40 = vpop.permute.xlu0 %3343  ;;  %v10322_v35 = vsel %vm349_vm10, 1.0, %v16780_v54  ;;  %vm381_vm10 = vcmp.eq.s32.totalorder %v10179_v60, %v10094_v14  ;;  %17118 = vst [vmem:[#allocation55_spill] sm:$0xff] %v10409_v53  ;;  %vm393_vm15 = vcmp.eq.s32.totalorder %v10198_v44, %v10105_v31  ;;  %vm398_vm0 = vcmp.eq.s32.totalorder %v10191_v6, %v10102_v29 }
  0xd6   :  { %17105 = vst [vmem:[#allocation43_spill] sm:$0xff] %v10301_v37  ;;  %17106 = vst [vmem:[#allocation44_spill] sm:$0xff] %v10304_v40  ;;  %4469 = vperm.xlu1 %9665, %v9897_v5   ;;  %2238 = vperm.xlu0 %9717, %v9926_v10   ;;  %v10334_v10 = vsel %vm353_vm11, 1.0, %v16780_v54  ;;  %vm385_vm11 = vcmp.eq.s32.totalorder %v10198_v44, %v10094_v14  ;;  %v10419_v39 = vsel %vm386_vm9, 1.0, %v16780_v54  ;;  %v10422_v27 = vsel %vm381_vm10, 1.0, %v16780_v54 }
  0xd7   :  { %17108 = vst [vmem:[#allocation46_spill] sm:$0xff] %v10322_v35  ;;  %17109 = vst [vmem:[#allocation47_spill] sm:$0xff] %v10334_v10  ;;  %v10425_v28 = vsel %vm385_vm11, 1.0, %v16780_v54  ;;  %vm402_vm1 = vcmp.eq.s32.totalorder %v10195_v43, %v10102_v29  ;;  %v17123_v31 = vmov 2   ;;  %v10431_v62 = vsel %vm390_vm12, 1.0, %v16780_v54 }
  0xd8   :  { %17120 = vst [vmem:[#allocation57_spill] sm:$0xff] %v10419_v39  ;;  %17121 = vst [vmem:[#allocation58_spill] sm:$0xff] %v10422_v27  ;;  %v10437_v63 = vsel %vm389_vm14, 1.0, %v16780_v54  ;;  %vm397_vm2 = vcmp.eq.s32.totalorder %v10179_v60, %v10102_v29  ;;  %v10443_v49 = vsel %vm393_vm15, 1.0, %v16780_v54  ;;  %v10446_v9 = vsel %vm398_vm0, 1.0, %v16780_v54 }
  0xd9   :  { %v10357_v59 = vpop.permute.xlu1 %1100  ;;  %v10359_v1 = vpop.permute.xlu0 %3352  ;;  %17122 = vst [vmem:[#allocation59_spill] sm:$0xff] %v10425_v28  ;;  %17124 = vst [vmem:[#allocation60_spill] sm:$0xff] %v10446_v9  ;;  %vm401_vm3 = vcmp.eq.s32.totalorder %v10198_v44, %v10102_v29  ;;  %vm406_vm4 = vcmp.eq.s32.totalorder %v10191_v6, %v10113_v47  ;;  %v10455_v38 = vsel %vm402_vm1, 1.0, %v16780_v54  ;;  %vm410_vm5 = vcmp.eq.s32.totalorder %v10195_v43, %v10113_v47 }
  0xda   :  { %17110 = vst [vmem:[#allocation48_spill] sm:$0xff] %v10357_v59  ;;  %17111 = vst [vmem:[#allocation49_spill] sm:$0xff] %v10359_v1  ;;  %9667 = vset.pattern.permute.xlu1 %v17115_v2  ;;  %2247 = vperm.xlu0 %9717, %v9933_v11   ;;  %v10395_v11 = vsel %vm373_vm6, 1.0, %v16780_v54  ;;  %vm405_vm6 = vcmp.eq.s32.totalorder %v10179_v60, %v10113_v47  ;;  %vm409_vm7 = vcmp.eq.s32.totalorder %v10198_v44, %v10113_v47  ;;  %v17144_v35 = vmov 4  }
  0xdb   :  { %5589 = vperm.xlu1 %9667, %v9897_v5   ;;  %17126 = vst [vmem:[#allocation62_spill] sm:$0xff] %v10455_v38  ;;  %v10467_v61 = vsel %vm397_vm2, 1.0, %v16780_v54  ;;  %vm414_vm8 = vcmp.eq.s32.totalorder %v10191_v6, %v10110_v45  ;;  %vm418_vm9 = vcmp.eq.s32.totalorder %v10195_v43, %v10110_v45  ;;  %vm413_vm10 = vcmp.eq.s32.totalorder %v10179_v60, %v10110_v45 }
  0xdc   :  { %17128 = vst [vmem:[#allocation64_spill] sm:$0xff] %v10467_v61  ;;  %v10476_v12 = vsel %vm401_vm3, 1.0, %v16780_v54  ;;  %v10479_v47 = vsel %vm406_vm4, 1.0, %v16780_v54  ;;  %vm417_vm11 = vcmp.eq.s32.totalorder %v10198_v44, %v10110_v45  ;;  %vm430_vm12 = vcmp.eq.s32.totalorder %v10191_v6, %v10119_v55 }
  0xdd   :  { %v10403_v5 = vpop.permute.xlu1 %1106  ;;  %17129 = vst [vmem:[#allocation65_spill] sm:$0xff] %v10476_v12  ;;  %v10487_v61 = vsel %vm410_vm5, 1.0, %v16780_v54  ;;  %v10490_v38 = vsel %vm405_vm6, 1.0, %v16780_v54  ;;  %v10493_v9 = vsel %vm409_vm7, 1.0, %v16780_v54  ;;  %v10501_v28 = vsel %vm414_vm8, 1.0, %v16780_v54 }
  0xde   :  { %17117 = vst [vmem:[#allocation54_spill] sm:$0xff] %v10403_v5  ;;  %2256 = vperm.xlu0 %9717, %v9959_v16   ;;  %v10416_v14 = vpop.permute.xlu0 %4454  ;;  %v10434_v16 = vsel %vm394_vm13, 1.0, %v16780_v54  ;;  %vm434_vm13 = vcmp.eq.s32.totalorder %v10195_v43, %v10119_v55  ;;  %17132 = vst [vmem:[#allocation67_spill] sm:$0xff] %v10501_v28  ;;  %v10504_v27 = vsel %vm418_vm9, 1.0, %v16780_v54  ;;  %v10507_v39 = vsel %vm413_vm10, 1.0, %v16780_v54 }
  0xdf   :  { %17119 = vst [vmem:[#allocation56_spill] sm:$0xff] %v10416_v14  ;;  %9668 = vset.pattern.permute.xlu1 %v17123_v31  ;;  %17133 = vst [vmem:[#allocation68_spill] sm:$0xff] %v10504_v27  ;;  %vm429_vm14 = vcmp.eq.s32.totalorder %v10179_v60, %v10119_v55  ;;  %vm326_vm15 = vcmp.eq.s32.totalorder %v10191_v6, %v10070_v42  ;;  %v10520_v28 = vsel %vm417_vm11, 1.0, %v16780_v54 }
  0xe0   :  { %2235 = vperm.xlu1 %9668, %v9909_v7   ;;  %17134 = vst [vmem:[#allocation69_spill] sm:$0xff] %v10507_v39  ;;  %17136 = vst [vmem:[#allocation71_spill] sm:$0xff] %v10520_v28  ;;  %v10526_v39 = vsel %vm430_vm12, 1.0, %v16780_v54  ;;  %vm433_vm0 = vcmp.eq.s32.totalorder %v10198_v44, %v10119_v55  ;;  %vm1198_vm1 = vcmp.eq.s32.totalorder %v10191_v6, %v10301_v37  ;;  %v10549_v45 = vsel %vm429_vm14, 1.0, %v16780_v54 }
  0xe1   :  { %v10452_v32 = vpop.permute.xlu1 %1112  ;;  %17137 = vst [vmem:[#allocation72_spill] sm:$0xff] %v10526_v39  ;;  %vm1202_vm2 = vcmp.eq.s32.totalorder %v10195_v43, %v10301_v37  ;;  %vm1197_vm3 = vcmp.eq.s32.totalorder %v10179_v60, %v10301_v37  ;;  %vm330_vm4 = vcmp.eq.s32.totalorder %v10195_v43, %v10070_v42  ;;  %vm325_vm5 = vcmp.eq.s32.totalorder %v10179_v60, %v10070_v42 }
  0xe2   :  { %17125 = vst [vmem:[#allocation61_spill] sm:$0xff] %v10452_v32  ;;  %2265 = vperm.xlu0 %9717, %v9966_v17   ;;  %v10464_v29 = vpop.permute.xlu0 %4463  ;;  %v17130_v17 = vmov 3   ;;  %vm1201_vm6 = vcmp.eq.s32.totalorder %v10198_v44, %v10301_v37  ;;  %17139 = vst [vmem:[#allocation74_spill] sm:$0xff] %v10549_v45  ;;  %v10555_v55 = vsel %vm326_vm15, 1.0, %v16780_v54  ;;  %vm329_vm7 = vcmp.eq.s32.totalorder %v10198_v44, %v10070_v42 }
  0xe3   :  { %17127 = vst [vmem:[#allocation63_spill] sm:$0xff] %v10464_v29  ;;  %vm1206_vm8 = vcmp.eq.s32.totalorder %v10191_v6, %v10357_v59  ;;  %v8011_v28 = vsel %vm1198_vm1, 1.0, %v16780_v54  ;;  %v8015_v27 = vsel %vm1202_vm2, 1.0, %v16780_v54  ;;  %vm1210_vm9 = vcmp.eq.s32.totalorder %v10195_v43, %v10357_v59 }
  0xe4   :  { %9669 = vset.pattern.permute.xlu1 %v17130_v17  ;;  %vm1205_vm10 = vcmp.eq.s32.totalorder %v10179_v60, %v10357_v59  ;;  %v10601_v19 = vsel %vm329_vm7, 1.0, %v16780_v54  ;;  %v8019_v48 = vsel %vm1206_vm8, 1.0, %v16780_v54  ;;  %vm1209_vm11 = vcmp.eq.s32.totalorder %v10198_v44, %v10357_v59 }
  0xe5   :  { %v10497_v12 = vpop.permute.xlu1 %1118  ;;  %3355 = vperm.xlu1 %9669, %v9909_v7   ;;  %vm3454_vm12 = vcmp.eq.s32.totalorder %v10191_v6, %v10304_v40  ;;  %v10611_v4 = vadd.f32 %v8011_v28, %v10271_v13  ;;  %v10614_v37 = vadd.f32 %v8015_v27, %v10277_v21  ;;  %v8023_v10 = vsel %vm1210_vm9, 1.0, %v16780_v54 }
  0xe6   :  { %17131 = vst [vmem:[#allocation66_spill] sm:$0xff] %v10497_v12  ;;  %2274 = vperm.xlu0 %9717, %v9992_v22   ;;  %v10512_v53 = vpop.permute.xlu0 %4472  ;;  %v10540_v22 = vsel %vm434_vm13, 1.0, %v16780_v54  ;;  %v8018_v28 = vsel %vm1205_vm10, 1.0, %v16780_v54  ;;  %vm3458_vm13 = vcmp.eq.s32.totalorder %v10195_v43, %v10304_v40  ;;  %vm3453_vm14 = vcmp.eq.s32.totalorder %v10179_v60, %v10304_v40 }
  0xe7   :  { %17135 = vst [vmem:[#allocation70_spill] sm:$0xff] %v10512_v53  ;;  %17138 = vst [vmem:[#allocation73_spill] sm:$0xff] %v10540_v22  ;;  %v10562_v22 = vsel %vm433_vm0, 1.0, %v16780_v54  ;;  %vm1222_vm15 = vcmp.eq.s32.totalorder %v10191_v6, %v10403_v5  ;;  %vm4550_vm0 = vcmp.eq.s32.totalorder %v10191_v6, %v10416_v14  ;;  %vm4554_vm1 = vcmp.eq.s32.totalorder %v10195_v43, %v10416_v14 }
  0xe8   :  { %17141 = vst [vmem:[#allocation76_spill] sm:$0xff] %v10562_v22  ;;  %v8010_v22 = vsel %vm1197_vm3, 1.0, %v16780_v54  ;;  %vm3457_vm2 = vcmp.eq.s32.totalorder %v10198_v44, %v10304_v40  ;;  %vm4549_vm3 = vcmp.eq.s32.totalorder %v10179_v60, %v10416_v14  ;;  %v8035_v13 = vsel %vm1222_vm15, 1.0, %v16780_v54 }
  0xe9   :  { %v10551_v39 = vpop.permute.xlu1 %1124  ;;  %9670 = vset.pattern.permute.xlu1 %v17115_v2  ;;  %v10617_v58 = vadd.f32 %v8010_v22, %v10283_v33  ;;  %v10634_v33 = vadd.f32 %v8019_v48, %v10241_v57  ;;  %v10662_v48 = vadd.f32 %v8018_v28, %v10257_v0  ;;  %v10680_v0 = vsel %vm3458_vm13, 1.0, %v16780_v54 }
  0xea   :  { %17140 = vst [vmem:[#allocation75_spill] sm:$0xff] %v10551_v39  ;;  %5592 = vperm.xlu1 %9670, %v9914_v8   ;;  %2283 = vperm.xlu0 %9717, %v9999_v23   ;;  %v10566_v45 = vpop.permute.xlu0 %4481  ;;  %v10586_v8 = vsel %vm330_vm4, 1.0, %v16780_v54  ;;  %v10592_v23 = vsel %vm325_vm5, 1.0, %v16780_v54  ;;  %vm1226_vm4 = vcmp.eq.s32.totalorder %v10195_v43, %v10403_v5  ;;  %vm1221_vm5 = vcmp.eq.s32.totalorder %v10179_v60, %v10403_v5 }
  0xeb   :  { %17142 = vst [vmem:[#allocation77_spill] sm:$0xff] %v10566_v45  ;;  %v8014_v45 = vsel %vm1201_vm6, 1.0, %v16780_v54  ;;  %17146 = vst [vmem:[#allocation80_spill] sm:$0xff] %v10634_v33  ;;  %vm4553_vm6 = vcmp.eq.s32.totalorder %v10198_v44, %v10416_v14  ;;  %v10700_v21 = vsel %vm3453_vm14, 1.0, %v16780_v54  ;;  %v10718_v22 = vsel %vm4549_vm3, 1.0, %v16780_v54 }
  0xec   :  { %v10625_v34 = vadd.f32 %v8014_v45, %v10291_v15  ;;  %v10644_v45 = vsel %vm3454_vm12, 1.0, %v16780_v54  ;;  %17149 = vst [vmem:[#allocation83_spill] sm:$0xff] %v10662_v48  ;;  %v10706_v15 = vsel %vm3457_vm2, 1.0, %v16780_v54  ;;  %17153 = vst [vmem:[#allocation87_spill] sm:$0xff] %v10718_v22  ;;  %v8039_v28 = vsel %vm1226_vm4, 1.0, %v16780_v54  ;;  %v10822_v22 = vld [vmem:[%s16712_s0 + $0x60] sm:$0xff] }
  0xed   :  { %v10608_v42 = vpop.permute.xlu1 %1130  ;;  %vm1225_vm7 = vcmp.eq.s32.totalorder %v10198_v44, %v10403_v5  ;;  %v10736_v59 = vsel %vm4553_vm6, 1.0, %v16780_v54  ;;  %vm1238_vm8 = vcmp.eq.s32.totalorder %v10191_v6, %v10452_v32  ;;  %vm1242_vm9 = vcmp.eq.s32.totalorder %v10195_v43, %v10452_v32 }
  0xee   :  { %17143 = vst [vmem:[#allocation78_spill] sm:$0xff] %v10608_v42  ;;  %9671 = vset.pattern.permute.xlu1 %v17144_v35  ;;  %2289 = vperm.xlu0 %9717, %v10008_v25   ;;  %v10622_v36 = vpop.permute.xlu0 %4490  ;;  %v8022_v25 = vsel %vm1209_vm11, 1.0, %v16780_v54  ;;  %17155 = vst [vmem:[#allocation89_spill] sm:$0xff] %v10736_v59  ;;  %vm4574_vm10 = vcmp.eq.s32.totalorder %v10191_v6, %v10464_v29  ;;  %vm4578_vm11 = vcmp.eq.s32.totalorder %v10195_v43, %v10464_v29 }
  0xef   :  { %17145 = vst [vmem:[#allocation79_spill] sm:$0xff] %v10622_v36  ;;  %4475 = vperm.xlu1 %9671, %v9909_v7   ;;  %v10653_v7 = vadd.f32 %v8023_v10, %v10251_v3  ;;  %v10674_v3 = vadd.f32 %v8022_v25, %v10263_v24  ;;  %v10694_v24 = vsel %vm4554_vm1, 1.0, %v16780_v54  ;;  %v10711_v10 = vld [vmem:[%s16712_s0 + $0x40] sm:$0xff]  ;;  %v8034_v25 = vsel %vm1221_vm5, 1.0, %v16780_v54 }
  0xf0   :  { %17152 = vst [vmem:[#allocation86_spill] sm:$0xff] %v10694_v24  ;;  %vm4573_vm12 = vcmp.eq.s32.totalorder %v10179_v60, %v10464_v29  ;;  %vm4577_vm13 = vcmp.eq.s32.totalorder %v10198_v44, %v10464_v29  ;;  %v10766_v14 = vadd.f32 %v8034_v25, %v10350_v51  ;;  %vm1237_vm14 = vcmp.eq.s32.totalorder %v10179_v60, %v10452_v32 }
  0xf1   :  { %17147 = vst [vmem:[#allocation81_spill] sm:$0xff] %v10653_v7  ;;  %v10657_v27 = vpop.permute.xlu1 %1136  ;;  %17151 = vst [vmem:[#allocation85_spill] sm:$0xff] %v10674_v3  ;;  %vm3478_vm15 = vcmp.eq.s32.totalorder %v10191_v6, %v10359_v1  ;;  %vm3477_vm1 = vcmp.eq.s32.totalorder %v10179_v60, %v10359_v1  ;;  %vm1241_vm2 = vcmp.eq.s32.totalorder %v10198_v44, %v10452_v32 }
  0xf2   :  { %17148 = vst [vmem:[#allocation82_spill] sm:$0xff] %v10657_v27  ;;  %2298 = vperm.xlu0 %9717, %v10026_v30   ;;  %v10669_v57 = vpop.permute.xlu0 %4499  ;;  %v10688_v30 = vsel %vm4550_vm0, 1.0, %v16780_v54  ;;  %v10763_v54 = vadd.f32 %v8039_v28, %v10347_v41  ;;  %vm3482_vm0 = vcmp.eq.s32.totalorder %v10195_v43, %v10359_v1  ;;  %vm1254_vm3 = vcmp.eq.s32.totalorder %v10191_v6, %v10497_v12 }
  0xf3   :  { %17150 = vst [vmem:[#allocation84_spill] sm:$0xff] %v10669_v57  ;;  %9672 = vset.pattern.permute.xlu1 %v17130_v17  ;;  %v10739_v57 = vadd.f32 %v8035_v13, %v10340_v46  ;;  %v10757_v46 = vld [vmem:[%s16712_s0 + $0x48] sm:$0xff]  ;;  %vm1258_vm4 = vcmp.eq.s32.totalorder %v10195_v43, %v10497_v12  ;;  %vm1253_vm5 = vcmp.eq.s32.totalorder %v10179_v60, %v10497_v12 }
  0xf4   :  { %3358 = vperm.xlu1 %9672, %v10711_v10   ;;  %vm1257_vm6 = vcmp.eq.s32.totalorder %v10198_v44, %v10497_v12 }
  0xf5   :  { %v10730_v40 = vpop.permute.xlu1 %1142 }
  0xf6   :  { %17154 = vst [vmem:[#allocation88_spill] sm:$0xff] %v10730_v40  ;;  %9730 = vset.pattern.permute.xlu0 %v17130_v17  ;;  %v17157_v40 = vmov 0.0  }
  0xf7   :  { %3361 = vperm.xlu0 %9730, %v10757_v46   ;;  %v10760_v13 = vpop.permute.xlu0 %5577  ;;  %v8038_v36 = vsel %vm1225_vm7, 1.0, %v17157_v40  ;;  %v8051_v3 = vsel %vm1238_vm8, 1.0, %v17157_v40  ;;  %v8055_v41 = vsel %vm1242_vm9, 1.0, %v17157_v40  ;;  %v10791_v28 = vsel %vm4574_vm10, 1.0, %v17157_v40 }
  0xf8   :  { %17156 = vst [vmem:[#allocation90_spill] sm:$0xff] %v10760_v13  ;;  %9673 = vset.pattern.permute.xlu1 %v17123_v31  ;;  %v10797_v25 = vsel %vm4578_vm11, 1.0, %v17157_v40  ;;  %v10803_v5 = vsel %vm4573_vm12, 1.0, %v17157_v40  ;;  %v10812_v48 = vadd.f32 %v8038_v36, %v10353_v50  ;;  %v8050_v59 = vsel %vm1237_vm14, 1.0, %v17157_v40 }
  0xf9   :  { %v10784_v51 = vpop.permute.xlu1 %1148  ;;  %2241 = vperm.xlu1 %9673, %v10757_v46   ;;  %v10828_v36 = vadd.f32 %v8051_v3, %v10378_v26  ;;  %v10834_v50 = vsel %vm3478_vm15, 1.0, %v17157_v40  ;;  %v10837_v7 = vadd.f32 %v8055_v41, %v10386_v52  ;;  %v10843_v33 = vsel %vm3482_vm0, 1.0, %v17157_v40 }
  0xfa   :  { %17158 = vst [vmem:[#allocation91_spill] sm:$0xff] %v10784_v51  ;;  %v10809_v51 = vsel %vm4577_vm13, 1.0, %v17157_v40  ;;  %17161 = vst [vmem:[#allocation94_spill] sm:$0xff] %v10834_v50  ;;  %vm4598_vm7 = vcmp.eq.s32.totalorder %v10191_v6, %v10512_v53  ;;  %vm4602_vm8 = vcmp.eq.s32.totalorder %v10195_v43, %v10512_v53  ;;  %v10861_v26 = vadd.f32 %v8050_v59, %v10395_v11  ;;  %v10883_v59 = vld [vmem:[%s16712_s0 + $0x78] sm:$0xff] }
  0xfb   :  { %3370 = vperm.xlu0 %9730, %v10822_v22   ;;  %v10825_v29 = vpop.permute.xlu0 %5586  ;;  %17160 = vst [vmem:[#allocation93_spill] sm:$0xff] %v10828_v36  ;;  %17162 = vst [vmem:[#allocation95_spill] sm:$0xff] %v10837_v7  ;;  %v10867_v3 = vsel %vm3477_vm1, 1.0, %v17157_v40  ;;  %vm4597_vm9 = vcmp.eq.s32.totalorder %v10179_v60, %v10512_v53  ;;  %v8054_v41 = vsel %vm1241_vm2, 1.0, %v17157_v40  ;;  %vm3481_vm10 = vcmp.eq.s32.totalorder %v10198_v44, %v10359_v1 }
  0xfc   :  { %17159 = vst [vmem:[#allocation92_spill] sm:$0xff] %v10825_v29  ;;  %17163 = vst [vmem:[#allocation96_spill] sm:$0xff] %v10843_v33  ;;  %vm4601_vm11 = vcmp.eq.s32.totalorder %v10198_v44, %v10512_v53  ;;  %v8067_v32 = vsel %vm1254_vm3, 1.0, %v17157_v40  ;;  %v8070_v33 = vsel %vm1257_vm6, 1.0, %v17157_v40  ;;  %v10908_v50 = vsel %vm4598_vm7, 1.0, %v17157_v40  ;;  %v10960_v53 = vld [vmem:[%s16712_s0 + $0x90] sm:$0xff] }
  0xfd   :  { %v10853_v52 = vpop.permute.xlu1 %1154  ;;  %9674 = vset.pattern.permute.xlu1 %v17144_v35  ;;  %17165 = vst [vmem:[#allocation98_spill] sm:$0xff] %v10861_v26  ;;  %17166 = vst [vmem:[#allocation99_spill] sm:$0xff] %v10867_v3  ;;  %v8066_v3 = vsel %vm1253_vm5, 1.0, %v17157_v40  ;;  %v10914_v26 = vsel %vm4602_vm8, 1.0, %v17157_v40  ;;  %vm1270_vm12 = vcmp.eq.s32.totalorder %v10191_v6, %v10551_v39  ;;  %vm1274_vm13 = vcmp.eq.s32.totalorder %v10195_v43, %v10551_v39 }
  0xfe   :  { %17164 = vst [vmem:[#allocation97_spill] sm:$0xff] %v10853_v52  ;;  %4478 = vperm.xlu1 %9674, %v10711_v10   ;;  %v8071_v52 = vsel %vm1258_vm4, 1.0, %v17157_v40  ;;  %17168 = vst [vmem:[#allocation101_spill] sm:$0xff] %v10908_v50  ;;  %v10926_v7 = vsel %vm4597_vm9, 1.0, %v17157_v40  ;;  %v10929_v50 = vadd.f32 %v8054_v41, %v10406_v18  ;;  %v10945_v36 = vadd.f32 %v8067_v32, %v10431_v62 }
  0xff   :  { %3379 = vperm.xlu0 %9730, %v10883_v59   ;;  %v10886_v11 = vpop.permute.xlu0 %5595  ;;  %17169 = vst [vmem:[#allocation102_spill] sm:$0xff] %v10914_v26  ;;  %17171 = vst [vmem:[#allocation104_spill] sm:$0xff] %v10926_v7  ;;  %v10935_v26 = vsel %vm3481_vm10, 1.0, %v17157_v40  ;;  %v10948_v18 = vadd.f32 %v8071_v52, %v10434_v16  ;;  %v10951_v41 = vadd.f32 %v8066_v3, %v10437_v63  ;;  %v8083_v62 = vsel %vm1270_vm12, 1.0, %v17157_v40  ;;  %v11007_v3 = vld [vmem:[%s16712_s0 + $0xa8] sm:$0xff] }
 0x100   :  { %17167 = vst [vmem:[#allocation100_spill] sm:$0xff] %v10886_v11  ;;  %17172 = vst [vmem:[#allocation105_spill] sm:$0xff] %v10929_v50  ;;  %v10954_v1 = vadd.f32 %v8070_v33, %v10443_v49  ;;  %v8087_v49 = vsel %vm1274_vm13, 1.0, %v17157_v40  ;;  %vm1269_vm14 = vcmp.eq.s32.totalorder %v10179_v60, %v10551_v39  ;;  %vm1273_vm15 = vcmp.eq.s32.totalorder %v10198_v44, %v10551_v39 }
 0x101   :  { %v10920_v12 = vpop.permute.xlu1 %1160  ;;  %17173 = vst [vmem:[#allocation106_spill] sm:$0xff] %v10935_v26  ;;  %17175 = vst [vmem:[#allocation108_spill] sm:$0xff] %v10945_v36  ;;  %vm422_vm0 = vcmp.eq.s32.totalorder %v10191_v6, %v10121_v56  ;;  %vm1286_vm1 = vcmp.eq.s32.totalorder %v10191_v6, %v10608_v42  ;;  %vm426_vm2 = vcmp.eq.s32.totalorder %v10195_v43, %v10121_v56  ;;  %v8086_v52 = vsel %vm1273_vm15, 1.0, %v17157_v40 }
 0x102   :  { %17170 = vst [vmem:[#allocation103_spill] sm:$0xff] %v10920_v12  ;;  %v10941_v12 = vsel %vm4601_vm11, 1.0, %v17157_v40  ;;  %9675 = vset.pattern.permute.xlu1 %v17115_v2  ;;  %17176 = vst [vmem:[#allocation109_spill] sm:$0xff] %v10948_v18  ;;  %vm1290_vm3 = vcmp.eq.s32.totalorder %v10195_v43, %v10608_v42  ;;  %vm421_vm4 = vcmp.eq.s32.totalorder %v10179_v60, %v10121_v56 }
 0x103   :  { %17174 = vst [vmem:[#allocation107_spill] sm:$0xff] %v10941_v12  ;;  %17177 = vst [vmem:[#allocation110_spill] sm:$0xff] %v10951_v41  ;;  %5598 = vperm.xlu1 %9675, %v10711_v10   ;;  %3388 = vperm.xlu0 %9730, %v10960_v53   ;;  %v10963_v32 = vpop.permute.xlu0 %5604  ;;  %vm1285_vm5 = vcmp.eq.s32.totalorder %v10179_v60, %v10608_v42  ;;  %vm425_vm6 = vcmp.eq.s32.totalorder %v10198_v44, %v10121_v56  ;;  %v8082_v10 = vsel %vm1269_vm14, 1.0, %v17157_v40  ;;  %v11073_v12 = vld [vmem:[%s16712_s0 + $0xc8] sm:$0xff] }
 0x104   :  { %17178 = vst [vmem:[#allocation111_spill] sm:$0xff] %v10954_v1  ;;  %17179 = vst [vmem:[#allocation112_spill] sm:$0xff] %v10963_v32  ;;  %vm1289_vm7 = vcmp.eq.s32.totalorder %v10198_v44, %v10608_v42  ;;  %v10996_v16 = vadd.f32 %v8083_v62, %v10479_v47  ;;  %v10999_v33 = vadd.f32 %v8087_v49, %v10487_v61  ;;  %v7843_v47 = vsel %vm422_vm0, 1.0, %v17157_v40 }
 0x105   :  { %v10985_v63 = vpop.permute.xlu1 %1166  ;;  %v8099_v61 = vsel %vm1286_vm1, 1.0, %v17157_v40  ;;  %v7847_v62 = vsel %vm426_vm2, 1.0, %v17157_v40  ;;  %v8103_v49 = vsel %vm1290_vm3, 1.0, %v17157_v40  ;;  %v8102_v1 = vsel %vm1289_vm7, 1.0, %v17157_v40 }
 0x106   :  { %17180 = vst [vmem:[#allocation113_spill] sm:$0xff] %v10985_v63  ;;  %17181 = vst [vmem:[#allocation114_spill] sm:$0xff] %v10996_v16  ;;  %v11031_v63 = vld [vmem:[%s16712_s0 + $0x50] sm:$0xff]  ;;  %v7846_v16 = vsel %vm425_vm6, 1.0, %v17157_v40  ;;  %vm5678_vm8 = vcmp.eq.s32.totalorder %v10191_v6, %v10760_v13  ;;  %vm5682_vm9 = vcmp.eq.s32.totalorder %v10195_v43, %v10760_v13  ;;  %vm5677_vm10 = vcmp.eq.s32.totalorder %v10179_v60, %v10760_v13 }
 0x107   :  { %17182 = vst [vmem:[#allocation115_spill] sm:$0xff] %v10999_v33  ;;  %9676 = vset.pattern.permute.xlu1 %v17123_v31  ;;  %3397 = vperm.xlu0 %9730, %v11007_v3   ;;  %v11010_v39 = vpop.permute.xlu0 %5613  ;;  %v8098_v33 = vsel %vm1285_vm5, 1.0, %v17157_v40  ;;  %vm5681_vm11 = vcmp.eq.s32.totalorder %v10198_v44, %v10760_v13  ;;  %v11061_v56 = vadd.f32 %v8082_v10, %v10490_v38  ;;  %v11091_v10 = vsel %vm5678_vm8, 1.0, %v17157_v40 }
 0x108   :  { %17183 = vst [vmem:[#allocation116_spill] sm:$0xff] %v11010_v39  ;;  %2244 = vperm.xlu1 %9676, %v11031_v63   ;;  %v7842_v39 = vsel %vm421_vm4, 1.0, %v17157_v40  ;;  %v11064_v42 = vadd.f32 %v8086_v52, %v10493_v9  ;;  %v11066_v18 = vadd.f32 %v8099_v61, %v7843_v47  ;;  %v11068_v36 = vadd.f32 %v8103_v49, %v7847_v62  ;;  %v11135_v61 = vld [vmem:[%s16712_s0 + $0xe0] sm:$0xff] }
 0x109   :  { %17185 = vst [vmem:[#allocation118_spill] sm:$0xff] %v11061_v56  ;;  %vm5702_vm12 = vcmp.eq.s32.totalorder %v10191_v6, %v10825_v29  ;;  %vm5706_vm13 = vcmp.eq.s32.totalorder %v10195_v43, %v10825_v29  ;;  %v11082_v38 = vadd.f32 %v8098_v33, %v7842_v39  ;;  %v11084_v9 = vadd.f32 %v8102_v1, %v7846_v16 }
 0x10a   :  { %v11058_v41 = vpop.permute.xlu1 %3334  ;;  %17186 = vst [vmem:[#allocation119_spill] sm:$0xff] %v11064_v42  ;;  %17187 = vst [vmem:[#allocation120_spill] sm:$0xff] %v11066_v18  ;;  %v11097_v52 = vsel %vm5682_vm9, 1.0, %v17157_v40  ;;  %v11103_v1 = vsel %vm5677_vm10, 1.0, %v17157_v40  ;;  %v11109_v39 = vsel %vm5681_vm11, 1.0, %v17157_v40  ;;  %vm438_vm14 = vcmp.eq.s32.totalorder %v10191_v6, %v10130_v20 }
 0x10b   :  { %17184 = vst [vmem:[#allocation117_spill] sm:$0xff] %v11058_v41  ;;  %17188 = vst [vmem:[#allocation121_spill] sm:$0xff] %v11068_v36  ;;  %3409 = vperm.xlu0 %9730, %v11073_v12   ;;  %v11076_v26 = vpop.permute.xlu0 %5622  ;;  %vm1302_vm15 = vcmp.eq.s32.totalorder %v10191_v6, %v10657_v27  ;;  %vm442_vm0 = vcmp.eq.s32.totalorder %v10195_v43, %v10130_v20  ;;  %vm1306_vm1 = vcmp.eq.s32.totalorder %v10195_v43, %v10657_v27 }
 0x10c   :  { %17189 = vst [vmem:[#allocation122_spill] sm:$0xff] %v11076_v26  ;;  %17190 = vst [vmem:[#allocation123_spill] sm:$0xff] %v11082_v38  ;;  %9677 = vset.pattern.permute.xlu1 %v17130_v17  ;;  %v11121_v16 = vsel %vm5702_vm12, 1.0, %v17157_v40  ;;  %v11124_v33 = vsel %vm5706_vm13, 1.0, %v17157_v40  ;;  %vm5701_vm2 = vcmp.eq.s32.totalorder %v10179_v60, %v10825_v29  ;;  %vm5705_vm3 = vcmp.eq.s32.totalorder %v10198_v44, %v10825_v29 }
 0x10d   :  { %17191 = vst [vmem:[#allocation124_spill] sm:$0xff] %v11084_v9  ;;  %3364 = vperm.xlu1 %9677, %v11031_v63   ;;  %17192 = vst [vmem:[#allocation125_spill] sm:$0xff] %v11121_v16  ;;  %vm437_vm4 = vcmp.eq.s32.totalorder %v10179_v60, %v10130_v20  ;;  %vm1301_vm5 = vcmp.eq.s32.totalorder %v10179_v60, %v10657_v27  ;;  %vm441_vm6 = vcmp.eq.s32.totalorder %v10198_v44, %v10130_v20 }
 0x10e   :  { %17193 = vst [vmem:[#allocation126_spill] sm:$0xff] %v11124_v33  ;;  %vm1305_vm7 = vcmp.eq.s32.totalorder %v10198_v44, %v10657_v27  ;;  %v7859_v49 = vsel %vm438_vm14, 1.0, %v17157_v40  ;;  %v8115_v13 = vsel %vm1302_vm15, 1.0, %v17157_v40  ;;  %v8119_v26 = vsel %vm1306_vm1, 1.0, %v17157_v40 }
 0x10f   :  { %v11130_v47 = vpop.permute.xlu1 %2217  ;;  %3418 = vperm.xlu0 %9730, %v11135_v61   ;;  %v11138_v62 = vpop.permute.xlu0 %5631  ;;  %vm5726_vm8 = vcmp.eq.s32.totalorder %v10191_v6, %v10886_v11  ;;  %vm5730_vm9 = vcmp.eq.s32.totalorder %v10195_v43, %v10886_v11  ;;  %vm5725_vm10 = vcmp.eq.s32.totalorder %v10179_v60, %v10886_v11  ;;  %vm5729_vm11 = vcmp.eq.s32.totalorder %v10198_v44, %v10886_v11 }
 0x110   :  { %17194 = vst [vmem:[#allocation127_spill] sm:$0xff] %v11130_v47  ;;  %17195 = vst [vmem:[#allocation128_spill] sm:$0xff] %v11138_v62  ;;  %v7863_v62 = vsel %vm442_vm0, 1.0, %v17157_v40  ;;  %v7858_v20 = vsel %vm437_vm4, 1.0, %v17157_v40  ;;  %v8114_v27 = vsel %vm1301_vm5, 1.0, %v17157_v40  ;;  %v7862_v9 = vsel %vm441_vm6, 1.0, %v17157_v40 }
 0x111   :  { %9678 = vset.pattern.permute.xlu1 %v17115_v2  ;;  %v8118_v38 = vsel %vm1305_vm7, 1.0, %v17157_v40  ;;  %v11183_v36 = vsel %vm5701_vm2, 1.0, %v17157_v40  ;;  %v11191_v18 = vadd.f32 %v8115_v13, %v7859_v49  ;;  %v11193_v42 = vadd.f32 %v8119_v26, %v7863_v62 }
 0x112   :  { %5601 = vperm.xlu1 %9678, %v10757_v46   ;;  %17196 = vst [vmem:[#allocation129_spill] sm:$0xff] %v11183_v36  ;;  %v11189_v46 = vsel %vm5705_vm3, 1.0, %v17157_v40  ;;  %v11204_v50 = vsel %vm5726_vm8, 1.0, %v17157_v40  ;;  %v11210_v13 = vsel %vm5730_vm9, 1.0, %v17157_v40  ;;  %v11216_v26 = vsel %vm5725_vm10, 1.0, %v17157_v40 }
 0x113   :  { %9733 = vset.pattern.permute.xlu0 %v17144_v35  ;;  %17197 = vst [vmem:[#allocation130_spill] sm:$0xff] %v11189_v46  ;;  %17198 = vst [vmem:[#allocation131_spill] sm:$0xff] %v11191_v18  ;;  %vm3430_vm12 = vcmp.eq.s32.totalorder %v10191_v6, %v11058_v41  ;;  %vm2318_vm13 = vcmp.eq.s32.totalorder %v10191_v6, %v11130_v47  ;;  %v11228_v62 = vadd.f32 %v8114_v27, %v7858_v20 }
 0x114   :  { %17199 = vst [vmem:[#allocation132_spill] sm:$0xff] %v11193_v42  ;;  %v11195_v56 = vpop.permute.xlu1 %3337  ;;  %4508 = vperm.xlu0 %9733, %v10960_v53   ;;  %v11198_v7 = vpop.permute.xlu0 %1094  ;;  %17202 = vst [vmem:[#allocation135_spill] sm:$0xff] %v11204_v50  ;;  %v11222_v53 = vsel %vm5729_vm11, 1.0, %v17157_v40  ;;  %v11230_v49 = vadd.f32 %v8118_v38, %v7862_v9  ;;  %vm3434_vm14 = vcmp.eq.s32.totalorder %v10195_v43, %v11058_v41  ;;  %v11257_v27 = vsel %vm3430_vm12, 1.0, %v17157_v40 }
 0x115   :  { %17200 = vst [vmem:[#allocation133_spill] sm:$0xff] %v11195_v56  ;;  %17201 = vst [vmem:[#allocation134_spill] sm:$0xff] %v11198_v7  ;;  %vm3429_vm15 = vcmp.eq.s32.totalorder %v10179_v60, %v11058_v41  ;;  %vm2322_vm0 = vcmp.eq.s32.totalorder %v10195_v43, %v11130_v47  ;;  %vm2317_vm1 = vcmp.eq.s32.totalorder %v10179_v60, %v11130_v47  ;;  %v11273_v38 = vsel %vm3434_vm14, 1.0, %v17157_v40 }
 0x116   :  { %17203 = vst [vmem:[#allocation136_spill] sm:$0xff] %v11210_v13  ;;  %17204 = vst [vmem:[#allocation137_spill] sm:$0xff] %v11216_v26  ;;  %9679 = vset.pattern.permute.xlu1 %v17144_v35  ;;  %vm1190_vm2 = vcmp.eq.s32.totalorder %v10191_v6, %v11198_v7  ;;  %vm1194_vm3 = vcmp.eq.s32.totalorder %v10195_v43, %v11198_v7  ;;  %vm3433_vm4 = vcmp.eq.s32.totalorder %v10198_v44, %v11058_v41  ;;  %v11303_v26 = vld [vmem:[%s16712_s0 + $0x58] sm:$0xff] }
 0x117   :  { %17205 = vst [vmem:[#allocation138_spill] sm:$0xff] %v11222_v53  ;;  %17206 = vst [vmem:[#allocation139_spill] sm:$0xff] %v11228_v62  ;;  %4484 = vperm.xlu1 %9679, %v11031_v63   ;;  %vm2321_vm5 = vcmp.eq.s32.totalorder %v10198_v44, %v11130_v47  ;;  %vm1189_vm6 = vcmp.eq.s32.totalorder %v10179_v60, %v11198_v7  ;;  %v8267_v63 = vsel %vm2318_vm13, 1.0, %v17157_v40  ;;  %v11279_v9 = vsel %vm3429_vm15, 1.0, %v17157_v40 }
 0x118   :  { %17207 = vst [vmem:[#allocation140_spill] sm:$0xff] %v11230_v49  ;;  %4517 = vperm.xlu0 %9733, %v11007_v3   ;;  %v11251_v20 = vpop.permute.xlu0 %1103  ;;  %vm3438_vm7 = vcmp.eq.s32.totalorder %v10191_v6, %v11195_v56  ;;  %v8271_v11 = vsel %vm2322_vm0, 1.0, %v17157_v40  ;;  %v8266_v29 = vsel %vm2317_vm1, 1.0, %v17157_v40  ;;  %v8003_v49 = vsel %vm1190_vm2, 1.0, %v17157_v40 }
 0x119   :  { %17208 = vst [vmem:[#allocation141_spill] sm:$0xff] %v11251_v20  ;;  %v11267_v3 = vpop.permute.xlu1 %5574  ;;  %v8007_v62 = vsel %vm1194_vm3, 1.0, %v17157_v40  ;;  %vm3442_vm8 = vcmp.eq.s32.totalorder %v10195_v43, %v11195_v56  ;;  %v8270_v42 = vsel %vm2321_vm5, 1.0, %v17157_v40  ;;  %v8002_v18 = vsel %vm1189_vm6, 1.0, %v17157_v40 }
 0x11a   :  { %17209 = vst [vmem:[#allocation142_spill] sm:$0xff] %v11267_v3  ;;  %vm1193_vm9 = vcmp.eq.s32.totalorder %v10198_v44, %v11198_v7  ;;  %v3086_v53 = vadd.f32 %v8267_v63, %v10611_v4  ;;  %v8523_v47 = vsel %vm3438_vm7, 1.0, %v17157_v40  ;;  %v11313_v50 = vsel %vm3433_vm4, 1.0, %v17157_v40 }
 0x11b   :  { %9680 = vset.pattern.permute.xlu1 %v17130_v17  ;;  %v3090_v4 = vadd.f32 %v8271_v11, %v10614_v37  ;;  %v3085_v63 = vadd.f32 %v8266_v29, %v10617_v58  ;;  %vm3437_vm10 = vcmp.eq.s32.totalorder %v10179_v60, %v11195_v56  ;;  %v11320_v46 = vadd.f32 %v8003_v49, %v10555_v55 }
 0x11c   :  { %3367 = vperm.xlu1 %9680, %v11303_v26   ;;  %4529 = vperm.xlu0 %9733, %v11073_v12   ;;  %v11307_v13 = vpop.permute.xlu0 %1109  ;;  %v11323_v36 = vadd.f32 %v8007_v62, %v10586_v8  ;;  %v8527_v41 = vsel %vm3442_vm8, 1.0, %v17157_v40  ;;  %v3089_v33 = vadd.f32 %v8270_v42, %v10625_v34  ;;  %v11333_v37 = vadd.f32 %v8002_v18, %v10592_v23 }
 0x11d   :  { %17210 = vst [vmem:[#allocation143_spill] sm:$0xff] %v11307_v13  ;;  %v8006_v58 = vsel %vm1193_vm9, 1.0, %v17157_v40  ;;  %v4206_v29 = vadd.f32 %v8523_v47, %v3086_v53  ;;  %vm3441_vm11 = vcmp.eq.s32.totalorder %v10198_v44, %v11195_v56  ;;  %v8522_v34 = vsel %vm3437_vm10, 1.0, %v17157_v40 }
 0x11e   :  { %v11330_v16 = vpop.permute.xlu1 %4457  ;;  %v4210_v8 = vadd.f32 %v8527_v41, %v3090_v4  ;;  %v8526_v18 = vsel %vm3441_vm11, 1.0, %v17157_v40  ;;  %vm1214_vm0 = vcmp.eq.s32.totalorder %v10191_v6, %v11251_v20  ;;  %vm1218_vm1 = vcmp.eq.s32.totalorder %v10195_v43, %v11251_v20 }
 0x11f   :  { %17211 = vst [vmem:[#allocation144_spill] sm:$0xff] %v11330_v16  ;;  %vm4558_vm12 = vcmp.eq.s32.totalorder %v10191_v6, %v11330_v16  ;;  %vm4562_vm13 = vcmp.eq.s32.totalorder %v10195_v43, %v11330_v16  ;;  %vm4557_vm14 = vcmp.eq.s32.totalorder %v10179_v60, %v11330_v16  ;;  %vm4561_vm15 = vcmp.eq.s32.totalorder %v10198_v44, %v11330_v16 }
 0x120   :  { %9681 = vset.pattern.permute.xlu1 %v17123_v31  ;;  %4538 = vperm.xlu0 %9733, %v11135_v61   ;;  %v11350_v42 = vpop.permute.xlu0 %1115  ;;  %v8779_v55 = vsel %vm4558_vm12, 1.0, %v17157_v40  ;;  %v8783_v23 = vsel %vm4562_vm13, 1.0, %v17157_v40  ;;  %v8778_v11 = vsel %vm4557_vm14, 1.0, %v17157_v40  ;;  %vm5670_vm2 = vcmp.eq.s32.totalorder %v10191_v6, %v11267_v3 }
 0x121   :  { %17212 = vst [vmem:[#allocation145_spill] sm:$0xff] %v11350_v42  ;;  %2250 = vperm.xlu1 %9681, %v10822_v22   ;;  %vm5674_vm3 = vcmp.eq.s32.totalorder %v10195_v43, %v11267_v3  ;;  %vm5669_vm4 = vcmp.eq.s32.totalorder %v10179_v60, %v11267_v3  ;;  %v4205_v41 = vadd.f32 %v8522_v34, %v3085_v63  ;;  %v8782_v49 = vsel %vm4561_vm15, 1.0, %v17157_v40  ;;  %v9760_v63 = vld [vmem:[%s16712_s0 + $0xb0] sm:$0xff] }
 0x122   :  { %vm5673_vm5 = vcmp.eq.s32.totalorder %v10198_v44, %v11267_v3  ;;  %v5326_v53 = vadd.f32 %v8779_v55, %v4206_v29  ;;  %v5330_v62 = vadd.f32 %v8783_v23, %v4210_v8  ;;  %v4209_v56 = vadd.f32 %v8526_v18, %v3089_v33 }
 0x123   :  { %v11369_v47 = vpop.permute.xlu1 %3340  ;;  %v5325_v16 = vadd.f32 %v8778_v11, %v4205_v41  ;;  %v8027_v7 = vsel %vm1214_vm0, 1.0, %v17157_v40  ;;  %v8031_v24 = vsel %vm1218_vm1, 1.0, %v17157_v40  ;;  %v11387_v29 = vsel %vm5670_vm2, 1.0, %v17157_v40  ;;  %v17217_v11 = vld [vmem:[#allocation42_spill] sm:$0xff]  ;;  %v17218_v41 = vld [vmem:[#allocation45_spill] sm:$0xff] }
 0x124   :  { %17213 = vst [vmem:[#allocation146_spill] sm:$0xff] %v11369_v47  ;;  %9736 = vset.pattern.permute.xlu0 %v17115_v2  ;;  %v11375_v4 = vpop.permute.xlu0 %1121  ;;  %v11393_v33 = vsel %vm5674_vm3, 1.0, %v17157_v40  ;;  %v11396_v34 = vadd.f32 %v8006_v58, %v10601_v19  ;;  %vm1213_vm6 = vcmp.eq.s32.totalorder %v10179_v60, %v11251_v20  ;;  %v11405_v55 = vsel %vm5669_vm4, 1.0, %v17157_v40 }
 0x125   :  { %17214 = vst [vmem:[#allocation147_spill] sm:$0xff] %v11375_v4  ;;  %9682 = vset.pattern.permute.xlu1 %v17144_v35  ;;  %5640 = vperm.xlu0 %9736, %v9760_v63   ;;  %17215 = vst [vmem:[#allocation148_spill] sm:$0xff] %v11393_v33  ;;  %v11411_v8 = vsel %vm5673_vm5, 1.0, %v17157_v40  ;;  %v5329_v23 = vadd.f32 %v8782_v49, %v4209_v56  ;;  %vm1217_vm7 = vcmp.eq.s32.totalorder %v10198_v44, %v11251_v20 }
 0x126   :  { %4487 = vperm.xlu1 %9682, %v11303_v26   ;;  %17216 = vst [vmem:[#allocation149_spill] sm:$0xff] %v11405_v55  ;;  %v11416_v19 = vadd.f32 %v11091_v10, %v5326_v53  ;;  %v11419_v58 = vadd.f32 %v11097_v52, %v5330_v62  ;;  %v1982_v18 = vadd.f32 %v8027_v7, %v17217_v11  ;;  %v8026_v56 = vsel %vm1213_vm6, 1.0, %v17157_v40  ;;  %v17223_v62 = vld [vmem:[#allocation47_spill] sm:$0xff] }
 0x127   :  { %v1986_v63 = vadd.f32 %v8031_v24, %v17218_v41  ;;  %v11428_v3 = vadd.f32 %v11103_v1, %v5325_v16  ;;  %vm3446_vm8 = vcmp.eq.s32.totalorder %v10191_v6, %v11369_v47  ;;  %v8030_v10 = vsel %vm1217_vm7, 1.0, %v17157_v40  ;;  %v17221_v24 = vld [vmem:[#allocation46_spill] sm:$0xff] }
 0x128   :  { %v11423_v55 = vpop.permute.xlu1 %2223  ;;  %v11425_v33 = vpop.permute.xlu0 %1127  ;;  %vm3450_vm13 = vcmp.eq.s32.totalorder %v10195_v43, %v11369_v47  ;;  %vm3445_vm14 = vcmp.eq.s32.totalorder %v10179_v60, %v11369_v47  ;;  %vm3449_vm15 = vcmp.eq.s32.totalorder %v10198_v44, %v11369_v47  ;;  %v1981_v52 = vadd.f32 %v8026_v56, %v17221_v24 }
 0x129   :  { %17219 = vst [vmem:[#allocation42_spill] sm:$0xff] %v11423_v55  ;;  %17220 = vst [vmem:[#allocation45_spill] sm:$0xff] %v11425_v33  ;;  %5649 = vperm.xlu0 %9736, %v11073_v12   ;;  %vm2334_vm9 = vcmp.eq.s32.totalorder %v10191_v6, %v11423_v55  ;;  %vm2338_vm10 = vcmp.eq.s32.totalorder %v10195_v43, %v11423_v55  ;;  %vm2333_vm11 = vcmp.eq.s32.totalorder %v10179_v60, %v11423_v55  ;;  %v17230_v33 = vld [vmem:[#allocation51_spill] sm:$0xff] }
 0x12a   :  { %vm2337_vm12 = vcmp.eq.s32.totalorder %v10198_v44, %v11423_v55  ;;  %9683 = vset.pattern.permute.xlu1 %v17115_v2  ;;  %v8283_v12 = vsel %vm2334_vm9, 1.0, %v17157_v40  ;;  %v8287_v7 = vsel %vm2338_vm10, 1.0, %v17157_v40  ;;  %v8282_v1 = vsel %vm2333_vm11, 1.0, %v17157_v40  ;;  %v11502_v55 = vld [vmem:[%s16712_s0 + $0x68] sm:$0xff] }
 0x12b   :  { %5607 = vperm.xlu1 %9683, %v11303_v26   ;;  %v8286_v16 = vsel %vm2337_vm12, 1.0, %v17157_v40  ;;  %v1985_v49 = vadd.f32 %v8030_v10, %v17223_v62  ;;  %vm1230_vm0 = vcmp.eq.s32.totalorder %v10191_v6, %v11307_v13  ;;  %vm1234_vm1 = vcmp.eq.s32.totalorder %v10195_v43, %v11307_v13 }
 0x12c   :  { %v11456_v53 = vpop.permute.xlu0 %1133  ;;  %vm1229_vm2 = vcmp.eq.s32.totalorder %v10179_v60, %v11307_v13  ;;  %v11469_v11 = vadd.f32 %v11109_v39, %v5329_v23  ;;  %v11475_v41 = vsel %vm3446_vm8, 1.0, %v17157_v40  ;;  %v3102_v56 = vadd.f32 %v8283_v12, %v1982_v18 }
 0x12d   :  { %17222 = vst [vmem:[#allocation46_spill] sm:$0xff] %v11456_v53  ;;  %v11465_v26 = vpop.permute.xlu1 %4460  ;;  %5658 = vperm.xlu0 %9736, %v11135_v61   ;;  %v3106_v10 = vadd.f32 %v8287_v7, %v1986_v63  ;;  %v11481_v24 = vsel %vm3450_vm13, 1.0, %v17157_v40  ;;  %v11487_v39 = vsel %vm3445_vm14, 1.0, %v17157_v40  ;;  %v3101_v23 = vadd.f32 %v8282_v1, %v1981_v52  ;;  %v17229_v53 = vld [vmem:[#allocation50_spill] sm:$0xff] }
 0x12e   :  { %17224 = vst [vmem:[#allocation47_spill] sm:$0xff] %v11465_v26  ;;  %17225 = vst [vmem:[#allocation150_spill] sm:$0xff] %v11469_v11  ;;  %v3105_v62 = vadd.f32 %v8286_v16, %v1985_v49  ;;  %v11494_v18 = vsel %vm3449_vm15, 1.0, %v17157_v40  ;;  %v8043_v63 = vsel %vm1230_vm0, 1.0, %v17157_v40  ;;  %v8047_v12 = vsel %vm1234_vm1, 1.0, %v17157_v40 }
 0x12f   :  { %9684 = vset.pattern.permute.xlu1 %v17123_v31  ;;  %v8042_v7 = vsel %vm1229_vm2, 1.0, %v17157_v40  ;;  %vm4566_vm3 = vcmp.eq.s32.totalorder %v10191_v6, %v11465_v26  ;;  %vm4570_vm4 = vcmp.eq.s32.totalorder %v10195_v43, %v11465_v26  ;;  %vm4565_vm5 = vcmp.eq.s32.totalorder %v10179_v60, %v11465_v26 }
 0x130   :  { %2253 = vperm.xlu1 %9684, %v11502_v55   ;;  %v11505_v52 = vpop.permute.xlu0 %1139  ;;  %vm1233_vm6 = vcmp.eq.s32.totalorder %v10198_v44, %v11307_v13  ;;  %v17227_v1 = vmov 1   ;;  %vm4569_vm7 = vcmp.eq.s32.totalorder %v10198_v44, %v11465_v26  ;;  %v4222_v16 = vadd.f32 %v10644_v45, %v3102_v56 }
 0x131   :  { %17226 = vst [vmem:[#allocation151_spill] sm:$0xff] %v11505_v52  ;;  %9739 = vset.pattern.permute.xlu0 %v17227_v1  ;;  %v4226_v49 = vadd.f32 %v10680_v0, %v3106_v10  ;;  %vm1246_vm8 = vcmp.eq.s32.totalorder %v10191_v6, %v11350_v42  ;;  %v4221_v47 = vadd.f32 %v10700_v21, %v3101_v23  ;;  %v11534_v45 = vsel %vm4566_vm3, 1.0, %v17157_v40 }
 0x132   :  { %v11522_v20 = vpop.permute.xlu1 %5580  ;;  %1178 = vperm.xlu0 %9739, %v11135_v61   ;;  %v4225_v52 = vadd.f32 %v10706_v15, %v3105_v62  ;;  %v11528_v1 = vadd.f32 %v8043_v63, %v17229_v53  ;;  %v11531_v11 = vadd.f32 %v8047_v12, %v17230_v33  ;;  %v11537_v0 = vsel %vm4570_vm4, 1.0, %v17157_v40  ;;  %v17232_v61 = vld [vmem:[#allocation52_spill] sm:$0xff]  ;;  %v9762_v63 = vld [vmem:[%s16712_s0 + $0xf8] sm:$0xff] }
 0x133   :  { %17228 = vst [vmem:[#allocation152_spill] sm:$0xff] %v11522_v20  ;;  %v11540_v56 = vsel %vm4565_vm5, 1.0, %v17157_v40  ;;  %v11543_v10 = vadd.f32 %v8042_v7, %v17232_v61  ;;  %v11552_v15 = vsel %vm4569_vm7, 1.0, %v17157_v40  ;;  %v8046_v33 = vsel %vm1233_vm6, 1.0, %v17157_v40  ;;  %v17236_v7 = vld [vmem:[#allocation53_spill] sm:$0xff] }
 0x134   :  { %17231 = vst [vmem:[#allocation50_spill] sm:$0xff] %v11531_v11  ;;  %9685 = vset.pattern.permute.xlu1 %v17130_v17  ;;  %v11546_v21 = vpop.permute.xlu0 %1145  ;;  %v8059_v53 = vsel %vm1246_vm8, 1.0, %v17157_v40  ;;  %vm1250_vm9 = vcmp.eq.s32.totalorder %v10195_v43, %v11350_v42  ;;  %vm5686_vm10 = vcmp.eq.s32.totalorder %v10191_v6, %v11522_v20  ;;  %v11565_v23 = vadd.f32 %v10791_v28, %v4222_v16 }
 0x135   :  { %17233 = vst [vmem:[#allocation51_spill] sm:$0xff] %v11543_v10  ;;  %17234 = vst [vmem:[#allocation52_spill] sm:$0xff] %v11546_v21  ;;  %3373 = vperm.xlu1 %9685, %v11502_v55   ;;  %v11568_v62 = vadd.f32 %v10797_v25, %v4226_v49  ;;  %vm1245_vm11 = vcmp.eq.s32.totalorder %v10179_v60, %v11350_v42  ;;  %vm5690_vm12 = vcmp.eq.s32.totalorder %v10195_v43, %v11522_v20  ;;  %v17238_v49 = vld [vmem:[#allocation55_spill] sm:$0xff]  ;;  %v17249_v10 = vld [vmem:[#allocation60_spill] sm:$0xff] }
 0x136   :  { %1187 = vperm.xlu0 %9739, %v9762_v63   ;;  %v11578_v12 = vadd.f32 %v10803_v5, %v4221_v47  ;;  %v11581_v28 = vadd.f32 %v10809_v51, %v4225_v52  ;;  %vm1249_vm13 = vcmp.eq.s32.totalorder %v10198_v44, %v11350_v42  ;;  %v11588_v16 = vadd.f32 %v8046_v33, %v17236_v7 }
 0x137   :  { %v11585_v25 = vpop.permute.xlu1 %2226  ;;  %v11591_v61 = vadd.f32 %v8059_v53, %v17238_v49  ;;  %v8063_v13 = vsel %vm1250_vm9, 1.0, %v17157_v40  ;;  %vm1262_vm14 = vcmp.eq.s32.totalorder %v10191_v6, %v11375_v4  ;;  %v11602_v51 = vsel %vm5686_vm10, 1.0, %v17157_v40 }
 0x138   :  { %17235 = vst [vmem:[#allocation153_spill] sm:$0xff] %v11585_v25  ;;  %17237 = vst [vmem:[#allocation53_spill] sm:$0xff] %v11588_v16  ;;  %v11596_v5 = vpop.permute.xlu0 %1151  ;;  %vm5685_vm15 = vcmp.eq.s32.totalorder %v10179_v60, %v11522_v20  ;;  %vm5689_vm0 = vcmp.eq.s32.totalorder %v10198_v44, %v11522_v20  ;;  %v8058_v47 = vsel %vm1245_vm11, 1.0, %v17157_v40  ;;  %v11614_v52 = vsel %vm5690_vm12, 1.0, %v17157_v40  ;;  %v17244_v20 = vld [vmem:[#allocation77_spill] sm:$0xff] }
 0x139   :  { %17239 = vst [vmem:[#allocation55_spill] sm:$0xff] %v11591_v61  ;;  %17240 = vst [vmem:[#allocation154_spill] sm:$0xff] %v11596_v5  ;;  %9686 = vset.pattern.permute.xlu1 %v17115_v2  ;;  %vm2342_vm1 = vcmp.eq.s32.totalorder %v10191_v6, %v11585_v25  ;;  %vm2346_vm2 = vcmp.eq.s32.totalorder %v10195_v43, %v11585_v25  ;;  %v8062_v33 = vsel %vm1249_vm13, 1.0, %v17157_v40  ;;  %v8075_v53 = vsel %vm1262_vm14, 1.0, %v17157_v40  ;;  %v17247_v61 = vld [vmem:[#allocation58_spill] sm:$0xff] }
 0x13a   :  { %5610 = vperm.xlu1 %9686, %v10822_v22   ;;  %9744 = vset.pattern.permute.xlu0 %v17123_v31  ;;  %vm2341_vm3 = vcmp.eq.s32.totalorder %v10179_v60, %v11585_v25  ;;  %vm2345_vm4 = vcmp.eq.s32.totalorder %v10198_v44, %v11585_v25  ;;  %vm1266_vm5 = vcmp.eq.s32.totalorder %v10195_v43, %v11375_v4  ;;  %v11631_v7 = vsel %vm5685_vm15, 1.0, %v17157_v40  ;;  %v17242_v22 = vld [vmem:[#allocation57_spill] sm:$0xff]  ;;  %v17252_v25 = vld [vmem:[#allocation62_spill] sm:$0xff] }
 0x13b   :  { %2307 = vperm.xlu0 %9744, %v9762_v63   ;;  %v11634_v49 = vsel %vm5689_vm0, 1.0, %v17157_v40  ;;  %v11637_v42 = vadd.f32 %v8063_v13, %v17242_v22  ;;  %vm4622_vm6 = vcmp.eq.s32.totalorder %v10191_v6, %v17244_v20  ;;  %v8291_v63 = vsel %vm2342_vm1, 1.0, %v17157_v40  ;;  %v17248_v22 = vld [vmem:[#allocation59_spill] sm:$0xff] }
 0x13c   :  { %17241 = vst [vmem:[#allocation155_spill] sm:$0xff] %v11634_v49  ;;  %v11641_v26 = vpop.permute.xlu1 %3346  ;;  %v11643_v5 = vpop.permute.xlu0 %1157  ;;  %v8295_v21 = vsel %vm2346_vm2, 1.0, %v17157_v40  ;;  %v11654_v13 = vadd.f32 %v8058_v47, %v17247_v61  ;;  %v8290_v16 = vsel %vm2341_vm3, 1.0, %v17157_v40  ;;  %v11662_v11 = vadd.f32 %v8075_v53, %v17249_v10 }
 0x13d   :  { %17243 = vst [vmem:[#allocation57_spill] sm:$0xff] %v11637_v42  ;;  %17245 = vst [vmem:[#allocation156_spill] sm:$0xff] %v11641_v26  ;;  %v11657_v42 = vadd.f32 %v8062_v33, %v17248_v22  ;;  %v8079_v49 = vsel %vm1266_vm5, 1.0, %v17157_v40  ;;  %vm3462_vm7 = vcmp.eq.s32.totalorder %v10191_v6, %v11641_v26  ;;  %vm3466_vm8 = vcmp.eq.s32.totalorder %v10195_v43, %v11641_v26 }
 0x13e   :  { %17246 = vst [vmem:[#allocation157_spill] sm:$0xff] %v11643_v5  ;;  %v8294_v5 = vsel %vm2345_vm4, 1.0, %v17157_v40  ;;  %9687 = vset.pattern.permute.xlu1 %v17144_v35  ;;  %vm3461_vm9 = vcmp.eq.s32.totalorder %v10179_v60, %v11641_v26  ;;  %v11673_v61 = vsel %vm4622_vm6, 1.0, %v17157_v40  ;;  %v3110_v10 = vadd.f32 %v8291_v63, %v10739_v57 }
 0x13f   :  { %17250 = vst [vmem:[#allocation58_spill] sm:$0xff] %v11673_v61  ;;  %4493 = vperm.xlu1 %9687, %v11502_v55   ;;  %v3114_v47 = vadd.f32 %v8295_v21, %v10763_v54  ;;  %vm3465_vm10 = vcmp.eq.s32.totalorder %v10198_v44, %v11641_v26  ;;  %vm1261_vm11 = vcmp.eq.s32.totalorder %v10179_v60, %v11375_v4  ;;  %v8547_v57 = vsel %vm3462_vm7, 1.0, %v17157_v40  ;;  %v9763_v55 = vld [vmem:[%s16712_s0 + $0xf0] sm:$0xff] }
 0x140   :  { %v11682_v33 = vpop.permute.xlu0 %1163  ;;  %v3109_v53 = vadd.f32 %v8290_v16, %v10766_v14  ;;  %v3113_v22 = vadd.f32 %v8294_v5, %v10812_v48  ;;  %v11687_v61 = vadd.f32 %v8079_v49, %v17252_v25  ;;  %vm1265_vm12 = vcmp.eq.s32.totalorder %v10198_v44, %v11375_v4  ;;  %9747 = vset.pattern.permute.xlu0 %v17115_v2  ;;  %v11737_v5 = vld [vmem:[%s16712_s0 + $0x70] sm:$0xff] }
 0x141   :  { %17251 = vst [vmem:[#allocation59_spill] sm:$0xff] %v11682_v33  ;;  %v11692_v54 = vpop.permute.xlu1 %5583  ;;  %v8551_v14 = vsel %vm3466_vm8, 1.0, %v17157_v40  ;;  %v8546_v48 = vsel %vm3461_vm9, 1.0, %v17157_v40  ;;  %vm4626_vm13 = vcmp.eq.s32.totalorder %v10195_v43, %v17244_v20  ;;  %5664 = vperm.xlu0 %9747, %v9763_v55   ;;  %v8550_v21 = vsel %vm3465_vm10, 1.0, %v17157_v40 }
 0x142   :  { %17253 = vst [vmem:[#allocation60_spill] sm:$0xff] %v11687_v61  ;;  %17254 = vst [vmem:[#allocation62_spill] sm:$0xff] %v11692_v54  ;;  %vm5694_vm14 = vcmp.eq.s32.totalorder %v10191_v6, %v11692_v54  ;;  %vm5698_vm15 = vcmp.eq.s32.totalorder %v10195_v43, %v11692_v54  ;;  %v8074_v25 = vsel %vm1261_vm11, 1.0, %v17157_v40  ;;  %vm5693_vm0 = vcmp.eq.s32.totalorder %v10179_v60, %v11692_v54 }
 0x143   :  { %9688 = vset.pattern.permute.xlu1 %v17130_v17  ;;  %vm5697_vm1 = vcmp.eq.s32.totalorder %v10198_v44, %v11692_v54  ;;  %vm4621_vm2 = vcmp.eq.s32.totalorder %v10179_v60, %v17244_v20  ;;  %v8078_v16 = vsel %vm1265_vm12, 1.0, %v17157_v40  ;;  %v4230_v63 = vadd.f32 %v8547_v57, %v3110_v10  ;;  %v17257_v10 = vld [vmem:[#allocation64_spill] sm:$0xff] }
 0x144   :  { %3376 = vperm.xlu1 %9688, %v11737_v5   ;;  %v11740_v49 = vpop.permute.xlu0 %1169  ;;  %v4234_v55 = vadd.f32 %v8551_v14, %v3114_v47  ;;  %v4229_v26 = vadd.f32 %v8546_v48, %v3109_v53  ;;  %v11746_v33 = vsel %vm4626_vm13, 1.0, %v17157_v40  ;;  %v9051_v4 = vsel %vm5694_vm14, 1.0, %v17157_v40  ;;  %v17260_v48 = vld [vmem:[#allocation65_spill] sm:$0xff] }
 0x145   :  { %17255 = vst [vmem:[#allocation158_spill] sm:$0xff] %v11740_v49  ;;  %17256 = vst [vmem:[#allocation159_spill] sm:$0xff] %v11746_v33  ;;  %v9055_v61 = vsel %vm5698_vm15, 1.0, %v17157_v40  ;;  %v4233_v49 = vadd.f32 %v8550_v21, %v3113_v22  ;;  %v11757_v47 = vadd.f32 %v8074_v25, %v17257_v10  ;;  %v9050_v57 = vsel %vm5693_vm0, 1.0, %v17157_v40 }
 0x146   :  { %v11759_v53 = vpop.permute.xlu1 %4466  ;;  %v9054_v14 = vsel %vm5697_vm1, 1.0, %v17157_v40  ;;  %v11773_v22 = vsel %vm4621_vm2, 1.0, %v17157_v40  ;;  %v11776_v21 = vadd.f32 %v8078_v16, %v17260_v48  ;;  %v11788_v25 = vadd.f32 %v9051_v4, %v11565_v23 }
 0x147   :  { %17258 = vst [vmem:[#allocation64_spill] sm:$0xff] %v11759_v53  ;;  %17259 = vst [vmem:[#allocation160_spill] sm:$0xff] %v11773_v22  ;;  %vm4582_vm3 = vcmp.eq.s32.totalorder %v10191_v6, %v11759_v53  ;;  %vm4586_vm4 = vcmp.eq.s32.totalorder %v10195_v43, %v11759_v53  ;;  %vm4581_vm5 = vcmp.eq.s32.totalorder %v10179_v60, %v11759_v53 }
 0x148   :  { %17261 = vst [vmem:[#allocation65_spill] sm:$0xff] %v11776_v21  ;;  %vm4585_vm6 = vcmp.eq.s32.totalorder %v10198_v44, %v11759_v53  ;;  %9689 = vset.pattern.permute.xlu1 %v17123_v31  ;;  %v11791_v16 = vadd.f32 %v9055_v61, %v11568_v62  ;;  %v8803_v10 = vsel %vm4582_vm3, 1.0, %v17157_v40  ;;  %v8807_v48 = vsel %vm4586_vm4, 1.0, %v17157_v40 }
 0x149   :  { %2259 = vperm.xlu1 %9689, %v10883_v59   ;;  %v11796_v54 = vpop.permute.xlu0 %2214  ;;  %v11799_v22 = vadd.f32 %v9050_v57, %v11578_v12  ;;  %v11802_v53 = vadd.f32 %v9054_v14, %v11581_v28  ;;  %v8802_v4 = vsel %vm4581_vm5, 1.0, %v17157_v40  ;;  %v8806_v23 = vsel %vm4585_vm6, 1.0, %v17157_v40 }
 0x14a   :  { %17262 = vst [vmem:[#allocation161_spill] sm:$0xff] %v11796_v54  ;;  %vm4625_vm7 = vcmp.eq.s32.totalorder %v10198_v44, %v17244_v20  ;;  %vm2310_vm8 = vcmp.eq.s32.totalorder %v10191_v6, %v11796_v54  ;;  %vm2314_vm9 = vcmp.eq.s32.totalorder %v10195_v43, %v11796_v54  ;;  %v5350_v59 = vadd.f32 %v8803_v10, %v4230_v63 }
 0x14b   :  { %v5354_v62 = vadd.f32 %v8807_v48, %v4234_v55  ;;  %vm5750_vm10 = vcmp.eq.s32.totalorder %v10191_v6, %v10963_v32  ;;  %v11814_v12 = vpop.permute.xlu1 %3349  ;;  %v8259_v28 = vsel %vm2310_vm8, 1.0, %v17157_v40  ;;  %v8263_v61 = vsel %vm2314_vm9, 1.0, %v17157_v40 }
 0x14c   :  { %vm2309_vm11 = vcmp.eq.s32.totalorder %v10179_v60, %v11796_v54  ;;  %vm2313_vm12 = vcmp.eq.s32.totalorder %v10198_v44, %v11796_v54  ;;  %vm5754_vm13 = vcmp.eq.s32.totalorder %v10195_v43, %v10963_v32  ;;  %v3078_v63 = vadd.f32 %v8259_v28, %v11320_v46 }
 0x14d   :  { %v3082_v55 = vadd.f32 %v8263_v61, %v11323_v36  ;;  %v8258_v57 = vsel %vm2309_vm11, 1.0, %v17157_v40  ;;  %v8262_v14 = vsel %vm2313_vm12, 1.0, %v17157_v40  ;;  %9690 = vset.pattern.permute.xlu1 %v17144_v35  ;;  %v11829_v10 = vpop.permute.xlu0 %2220  ;;  %v5349_v54 = vadd.f32 %v8802_v4, %v4229_v26  ;;  %v17263_v4 = vld [vmem:[#allocation86_spill] sm:$0xff] }
 0x14e   :  { %v3077_v48 = vadd.f32 %v8258_v57, %v11333_v37  ;;  %v3081_v33 = vadd.f32 %v8262_v14, %v11396_v34  ;;  %v11833_v21 = vadd.f32 %v8806_v23, %v4233_v49  ;;  %4496 = vperm.xlu1 %9690, %v11737_v5   ;;  %v4198_v46 = vadd.f32 %v11257_v27, %v3078_v63  ;;  %v17264_v23 = vld [vmem:[#allocation80_spill] sm:$0xff]  ;;  %v17265_v63 = vld [vmem:[#allocation81_spill] sm:$0xff]  ;;  %v17266_v14 = vld [vmem:[#allocation87_spill] sm:$0xff] }
 0x14f   :  { %v4202_v36 = vadd.f32 %v11273_v38, %v3082_v55  ;;  %vm2326_vm14 = vcmp.eq.s32.totalorder %v10191_v6, %v11829_v10  ;;  %vm2330_vm15 = vcmp.eq.s32.totalorder %v10195_v43, %v11829_v10  ;;  %vm2325_vm0 = vcmp.eq.s32.totalorder %v10179_v60, %v11829_v10 }
 0x150   :  { %v4197_v28 = vadd.f32 %v11279_v9, %v3077_v48  ;;  %v4201_v37 = vadd.f32 %v11313_v50, %v3081_v33  ;;  %v8275_v34 = vsel %vm2326_vm14, 1.0, %v17157_v40  ;;  %v8279_v26 = vsel %vm2330_vm15, 1.0, %v17157_v40  ;;  %v11846_v49 = vpop.permute.xlu1 %2232  ;;  %v17267_v48 = vld [vmem:[#allocation89_spill] sm:$0xff]  ;;  %v17268_v33 = vld [vmem:[#allocation148_spill] sm:$0xff] }
 0x151   :  { %v5318_v27 = vadd.f32 %v10688_v30, %v4198_v46  ;;  %v5322_v38 = vadd.f32 %v17263_v4, %v4202_v36  ;;  %v3094_v61 = vadd.f32 %v8275_v34, %v17264_v23  ;;  %v3098_v55 = vadd.f32 %v8279_v26, %v17265_v63  ;;  %v11852_v57 = vpop.permute.xlu0 %2229 }
 0x152   :  { %v5317_v9 = vadd.f32 %v17266_v14, %v4197_v28  ;;  %v5321_v50 = vadd.f32 %v17267_v48, %v4201_v37  ;;  %vm2329_vm1 = vcmp.eq.s32.totalorder %v10198_v44, %v11829_v10  ;;  %9691 = vset.pattern.permute.xlu1 %v17115_v2  ;;  %v17269_v28 = vld [vmem:[#allocation149_spill] sm:$0xff]  ;;  %v8274_v4 = vsel %vm2325_vm0, 1.0, %v17157_v40 }
 0x153   :  { %v6438_v30 = vadd.f32 %v11387_v29, %v5318_v27  ;;  %v6442_v46 = vadd.f32 %v17268_v33, %v5322_v38  ;;  %v4214_v36 = vadd.f32 %v11475_v41, %v3094_v61  ;;  %v4218_v34 = vadd.f32 %v11481_v24, %v3098_v55  ;;  %5616 = vperm.xlu1 %9691, %v11737_v5   ;;  %v17270_v38 = vld [vmem:[#allocation83_spill] sm:$0xff]  ;;  %v17272_v61 = vld [vmem:[#allocation85_spill] sm:$0xff] }
 0x154   :  { %v6437_v37 = vadd.f32 %v17269_v28, %v5317_v9  ;;  %v6441_v26 = vadd.f32 %v11411_v8, %v5321_v50  ;;  %v8278_v23 = vsel %vm2329_vm1, 1.0, %v17157_v40  ;;  %v3093_v41 = vadd.f32 %v8274_v4, %v17270_v38  ;;  %v17273_v55 = vld [vmem:[#allocation125_spill] sm:$0xff] }
 0x155   :  { %6757 = vmatprep.mubr.f32.mxu1 %v6438_v30  ;;  %7207 = vmatprep.mubr.f32.mxu0 %v6442_v46  ;;  %v5334_v29 = vadd.f32 %v11534_v45, %v4214_v36  ;;  %v5338_v27 = vadd.f32 %v11537_v0, %v4218_v34  ;;  %v11877_v24 = vsel %vm4625_vm7, 1.0, %v17157_v40  ;;  %v11879_v5 = vpop.permute.xlu1 %4469  ;;  %v11881_v8 = vpop.permute.xlu0 %2238  ;;  %v3097_v63 = vadd.f32 %v8278_v23, %v17272_v61  ;;  %v17274_v0 = vld [vmem:[#allocation126_spill] sm:$0xff]  ;;  %v17275_v30 = vld [vmem:[#allocation129_spill] sm:$0xff] }
 0x156   :  { %6758 = vmatmul.mubr.f32.vlgmr.msra.gmra.mrb[0].mxu1 %v6437_v37  ;;  %7208 = vmatmul.mubr.f32.vlgmr.msra.gmra.mrb[0].mxu0 %v6441_v26  ;;  %17271 = vst [vmem:[#allocation86_spill] sm:$0xff] %v11881_v8  ;;  %v11885_v45 = vadd.f32 %v17273_v55, %v5350_v59  ;;  %v11888_v14 = vadd.f32 %v17274_v0, %v5354_v62  ;;  %v11894_v9 = vsel %vm5750_vm10, 1.0, %v17157_v40  ;;  %v11907_v62 = vsel %vm5754_vm13, 1.0, %v17157_v40  ;;  %v17279_v26 = vld [vmem:[#allocation50_spill] sm:$0xff] }
 0x157   :  { %6762 = vmatprep.mubr.f32.mxu1 %v11416_v19  ;;  %7212 = vmatprep.mubr.f32.mxu0 %v11419_v58  ;;  %v6454_v48 = vadd.f32 %v11602_v51, %v5334_v29  ;;  %v4213_v50 = vadd.f32 %v11487_v39, %v3093_v41  ;;  %v11901_v59 = vadd.f32 %v17275_v30, %v5349_v54  ;;  %v11920_v19 = vld [vmem:[%s16712_s0 + $0x80] sm:$0xff]  ;;  %v17276_v54 = vld [vmem:[#allocation150_spill] sm:$0xff] }
 0x158   :  { %9692 = vset.pattern.permute.xlu1 %v17123_v31  ;;  %v4217_v33 = vadd.f32 %v11494_v18, %v3097_v63  ;;  %vm2350_vm2 = vcmp.eq.s32.totalorder %v10191_v6, %v11852_v57  ;;  %vm3470_vm3 = vcmp.eq.s32.totalorder %v10191_v6, %v11814_v12  ;;  %vm4590_vm4 = vcmp.eq.s32.totalorder %v10191_v6, %v11879_v5 }
 0x159   :  { %2262 = vperm.xlu1 %9692, %v11920_v19   ;;  %v6458_v58 = vadd.f32 %v11614_v52, %v5338_v27  ;;  %v5333_v39 = vadd.f32 %v11540_v56, %v4213_v50  ;;  %v8299_v18 = vsel %vm2350_vm2, 1.0, %v17157_v40  ;;  %v8555_v51 = vsel %vm3470_vm3, 1.0, %v17157_v40  ;;  %v11929_v46 = vpop.permute.xlu0 %2247  ;;  %v17280_v27 = vld [vmem:[#allocation45_spill] sm:$0xff] }
 0x15a   :  { %6763 = vmatmul.mubr.f32.gmra.mrb[2].mxu1 %v11428_v3  ;;  %7213 = vmatmul.mubr.f32.gmra.mrb[2].mxu0 %v17276_v54  ;;  %17277 = vst [vmem:[#allocation80_spill] sm:$0xff] %v11929_v46  ;;  %v5337_v36 = vadd.f32 %v11552_v15, %v4217_v33  ;;  %v3118_v34 = vadd.f32 %v8299_v18, %v11528_v1  ;;  %v8811_v28 = vsel %vm4590_vm4, 1.0, %v17157_v40  ;;  %v11936_v56 = vpop.permute.xlu1 %5589  ;;  %v17278_v1 = vld [vmem:[#allocation155_spill] sm:$0xff] }
 0x15b   :  { %vm2354_vm5 = vcmp.eq.s32.totalorder %v10195_v43, %v11852_v57  ;;  %6767 = vmatprep.mubr.f32.mxu1 %v6454_v48  ;;  %7217 = vmatprep.mubr.f32.mxu0 %v6458_v58  ;;  %v6453_v52 = vadd.f32 %v11631_v7, %v5333_v39  ;;  %vm3474_vm6 = vcmp.eq.s32.totalorder %v10195_v43, %v11814_v12  ;;  %v17282_v48 = vld [vmem:[#allocation130_spill] sm:$0xff]  ;;  %v17283_v33 = vld [vmem:[#allocation51_spill] sm:$0xff] }
 0x15c   :  { %v8303_v3 = vsel %vm2354_vm5, 1.0, %v17157_v40  ;;  %vm4594_vm7 = vcmp.eq.s32.totalorder %v10195_v43, %v11879_v5  ;;  %v6457_v15 = vadd.f32 %v17278_v1, %v5337_v36  ;;  %v4238_v37 = vadd.f32 %v8555_v51, %v3118_v34  ;;  %v9766_v34 = vld [vmem:[%s16712_s0 + $0x78] sm:$0xff] }
 0x15d   :  { %vm5710_vm8 = vcmp.eq.s32.totalorder %v10191_v6, %v11936_v56  ;;  %v3122_v4 = vadd.f32 %v8303_v3, %v17279_v26  ;;  %vm5749_vm9 = vcmp.eq.s32.totalorder %v10179_v60, %v10963_v32  ;;  %9694 = vset.pattern.permute.xlu1 %v17130_v17  ;;  %v8559_v23 = vsel %vm3474_vm6, 1.0, %v17157_v40  ;;  %v11959_v38 = vpop.permute.xlu0 %2256 }
 0x15e   :  { %v9067_v7 = vsel %vm5710_vm8, 1.0, %v17157_v40  ;;  %v8815_v29 = vsel %vm4594_vm7, 1.0, %v17157_v40  ;;  %vm5714_vm10 = vcmp.eq.s32.totalorder %v10195_v43, %v11936_v56  ;;  %vm1278_vm11 = vcmp.eq.s32.totalorder %v10191_v6, %v17280_v27  ;;  %3382 = vperm.xlu1 %9694, %v11920_v19   ;;  %6768 = vmatmul.mubr.f32.gmra.mrb[4].mxu1 %v6453_v52  ;;  %17281 = vst [vmem:[#allocation81_spill] sm:$0xff] %v11959_v38 }
 0x15f   :  { %v5358_v41 = vadd.f32 %v8811_v28, %v4238_v37  ;;  %v4242_v61 = vadd.f32 %v8559_v23, %v3122_v4  ;;  %v9071_v63 = vsel %vm5714_vm10, 1.0, %v17157_v40  ;;  %vm2349_vm12 = vcmp.eq.s32.totalorder %v10179_v60, %v11852_v57  ;;  %7218 = vmatmul.mubr.f32.gmra.mrb[4].mxu0 %v6457_v15  ;;  %6772 = vmatprep.mubr.f32.mxu1 %v11788_v25  ;;  %v11973_v0 = vpop.permute.xlu1 %2235  ;;  %v17285_v28 = vld [vmem:[#allocation53_spill] sm:$0xff] }
 0x160   :  { %v8298_v55 = vsel %vm2349_vm12, 1.0, %v17157_v40  ;;  %vm3469_vm13 = vcmp.eq.s32.totalorder %v10179_v60, %v11814_v12  ;;  %vm4589_vm14 = vcmp.eq.s32.totalorder %v10179_v60, %v11879_v5  ;;  %vm5709_vm15 = vcmp.eq.s32.totalorder %v10179_v60, %v11936_v56  ;;  %7222 = vmatprep.mubr.f32.mxu0 %v11791_v16  ;;  %v17287_v4 = vld [vmem:[#allocation93_spill] sm:$0xff] }
 0x161   :  { %v6473_v50 = vadd.f32 %v17282_v48, %v11833_v21  ;;  %v6478_v30 = vadd.f32 %v9067_v7, %v5358_v41  ;;  %v5362_v25 = vadd.f32 %v8815_v29, %v4242_v61  ;;  %v3117_v58 = vadd.f32 %v8298_v55, %v17283_v33  ;;  %v11986_v16 = vpop.permute.xlu0 %2265  ;;  %v17288_v61 = vld [vmem:[#allocation95_spill] sm:$0xff]  ;;  %v17289_v55 = vld [vmem:[#allocation98_spill] sm:$0xff] }
 0x162   :  { %v8554_v39 = vsel %vm3469_vm13, 1.0, %v17157_v40  ;;  %v8810_v18 = vsel %vm4589_vm14, 1.0, %v17157_v40  ;;  %vm2353_vm0 = vcmp.eq.s32.totalorder %v10198_v44, %v11852_v57  ;;  %vm3473_vm1 = vcmp.eq.s32.totalorder %v10198_v44, %v11814_v12  ;;  %9695 = vset.pattern.permute.xlu1 %v17115_v2  ;;  %6773 = vmatmul.mubr.f32.gmra.mrb[6].mxu1 %v11799_v22  ;;  %17284 = vst [vmem:[#allocation87_spill] sm:$0xff] %v11986_v16 }
 0x163   :  { %v6482_v21 = vadd.f32 %v9071_v63, %v5362_v25  ;;  %v4237_v51 = vadd.f32 %v8554_v39, %v3117_v58  ;;  %v9066_v54 = vsel %vm5709_vm15, 1.0, %v17157_v40  ;;  %v8302_v36 = vsel %vm2353_vm0, 1.0, %v17157_v40  ;;  %7223 = vmatmul.mubr.f32.gmra.mrb[6].mxu0 %v11802_v53  ;;  %5619 = vperm.xlu1 %9695, %v9766_v34   ;;  %v17290_v25 = vld [vmem:[#allocation94_spill] sm:$0xff]  ;;  %v17291_v39 = vld [vmem:[#allocation96_spill] sm:$0xff]  ;;  %v17294_v34 = vld [vmem:[#allocation101_spill] sm:$0xff] }
 0x164   :  { %v3121_v22 = vadd.f32 %v8302_v36, %v17285_v28  ;;  %v8558_v52 = vsel %vm3473_vm1, 1.0, %v17157_v40  ;;  %vm4593_vm2 = vcmp.eq.s32.totalorder %v10198_v44, %v11879_v5  ;;  %vm5713_vm3 = vcmp.eq.s32.totalorder %v10198_v44, %v11936_v56  ;;  %6777 = vmatprep.mubr.f32.mxu1 %v11885_v45  ;;  %7227 = vmatprep.mubr.f32.mxu0 %v11888_v14  ;;  %v12009_v15 = vpop.permute.xlu1 %3355 }
 0x165   :  { %v5357_v53 = vadd.f32 %v8810_v18, %v4237_v51  ;;  %v8814_v3 = vsel %vm4593_vm2, 1.0, %v17157_v40  ;;  %v9070_v1 = vsel %vm5713_vm3, 1.0, %v17157_v40  ;;  %vm2358_vm4 = vcmp.eq.s32.totalorder %v10191_v6, %v11846_v49  ;;  %v12017_v45 = vpop.permute.xlu0 %2274  ;;  %v17292_v18 = vld [vmem:[#allocation99_spill] sm:$0xff] }
 0x166   :  { %v4241_v37 = vadd.f32 %v8558_v52, %v3121_v22  ;;  %v8307_v26 = vsel %vm2358_vm4, 1.0, %v17157_v40  ;;  %vm2362_vm5 = vcmp.eq.s32.totalorder %v10195_v43, %v11846_v49  ;;  %vm2357_vm6 = vcmp.eq.s32.totalorder %v10179_v60, %v11846_v49  ;;  %6778 = vmatmul.mubr.f32.gmra.mrb[8].mxu1 %v11901_v59  ;;  %17286 = vst [vmem:[#allocation89_spill] sm:$0xff] %v12017_v45  ;;  %v17295_v22 = vld [vmem:[#allocation105_spill] sm:$0xff] }
 0x167   :  { %v6477_v14 = vadd.f32 %v9066_v54, %v5357_v53  ;;  %v3126_v7 = vadd.f32 %v8307_v26, %v17287_v4  ;;  %v8311_v23 = vsel %vm2362_vm5, 1.0, %v17157_v40  ;;  %v8306_v29 = vsel %vm2357_vm6, 1.0, %v17157_v40  ;;  %7228 = vmatmul.mubr.f32.gmra.mrb[8].mxu0 %v6473_v50  ;;  %9696 = vset.pattern.permute.xlu1 %v17144_v35  ;;  %v17298_v4 = vld [vmem:[#allocation106_spill] sm:$0xff] }
 0x168   :  { %v5361_v41 = vadd.f32 %v8814_v3, %v4241_v37  ;;  %v3130_v63 = vadd.f32 %v8311_v23, %v17288_v61  ;;  %v3125_v48 = vadd.f32 %v8306_v29, %v17289_v55  ;;  %v12029_v59 = vsel %vm5749_vm9, 1.0, %v17157_v40  ;;  %6782 = vmatprep.mubr.f32.mxu1 %v6478_v30  ;;  %7232 = vmatprep.mubr.f32.mxu0 %v6482_v21  ;;  %v12073_v61 = vld [vmem:[%s16712_s0 + $0x88] sm:$0xff]  ;;  %v17299_v55 = vld [vmem:[#allocation107_spill] sm:$0xff] }
 0x169   :  { %v4246_v33 = vadd.f32 %v17290_v25, %v3126_v7  ;;  %vm2361_vm7 = vcmp.eq.s32.totalorder %v10198_v44, %v11846_v49  ;;  %vm2366_vm8 = vcmp.eq.s32.totalorder %v10191_v6, %v11973_v0  ;;  %v12040_v50 = vsel %vm1278_vm11, 1.0, %v17157_v40  ;;  %4502 = vperm.xlu1 %9696, %v11920_v19   ;;  %v12046_v54 = vpop.permute.xlu1 %5592  ;;  %v12048_v36 = vpop.permute.xlu0 %2283  ;;  %v17296_v19 = vld [vmem:[#allocation102_spill] sm:$0xff] }
 0x16a   :  { %v6481_v58 = vadd.f32 %v9070_v1, %v5361_v41  ;;  %v4250_v30 = vadd.f32 %v17291_v39, %v3130_v63  ;;  %v4245_v21 = vadd.f32 %v17292_v18, %v3125_v48  ;;  %v8310_v51 = vsel %vm2361_vm7, 1.0, %v17157_v40  ;;  %6783 = vmatmul.mubr.f32.gmra.mrb[10].mxu1 %v6477_v14  ;;  %17293 = vst [vmem:[#allocation148_spill] sm:$0xff] %v12048_v36  ;;  %v17297_v1 = vld [vmem:[#allocation104_spill] sm:$0xff] }
 0x16b   :  { %v5366_v28 = vadd.f32 %v17294_v34, %v4246_v33  ;;  %v3129_v52 = vadd.f32 %v8310_v51, %v17295_v22  ;;  %v8315_v53 = vsel %vm2366_vm8, 1.0, %v17157_v40  ;;  %vm3486_vm9 = vcmp.eq.s32.totalorder %v10191_v6, %v12009_v15  ;;  %v17300_v33 = vld [vmem:[#allocation55_spill] sm:$0xff]  ;;  %v17302_v22 = vld [vmem:[#allocation57_spill] sm:$0xff] }
 0x16c   :  { %7233 = vmatmul.mubr.f32.gmra.mrb[10].mxu0 %v6481_v58  ;;  %vm5718_vm10 = vcmp.eq.s32.totalorder %v10191_v6, %v12046_v54  ;;  %v5370_v3 = vadd.f32 %v17296_v19, %v4250_v30  ;;  %vm5722_vm11 = vcmp.eq.s32.totalorder %v10195_v43, %v12046_v54  ;;  %v5365_v37 = vadd.f32 %v17297_v1, %v4245_v21 }
 0x16d   :  { %v9075_v26 = vsel %vm5718_vm10, 1.0, %v17157_v40  ;;  %v9079_v14 = vsel %vm5722_vm11, 1.0, %v17157_v40  ;;  %vm5717_vm12 = vcmp.eq.s32.totalorder %v10179_v60, %v12046_v54  ;;  %v4249_v7 = vadd.f32 %v17298_v4, %v3129_v52  ;;  %9697 = vset.pattern.permute.xlu1 %v17130_v17  ;;  %v12091_v18 = vpop.permute.xlu0 %2289 }
 0x16e   :  { %v6486_v23 = vadd.f32 %v9075_v26, %v5366_v28  ;;  %v6490_v29 = vadd.f32 %v9079_v14, %v5370_v3  ;;  %v9074_v41 = vsel %vm5717_vm12, 1.0, %v17157_v40  ;;  %vm5721_vm13 = vcmp.eq.s32.totalorder %v10198_v44, %v12046_v54  ;;  %3385 = vperm.xlu1 %9697, %v12073_v61   ;;  %v12079_v39 = vpop.permute.xlu1 %4475  ;;  %17301 = vst [vmem:[#allocation149_spill] sm:$0xff] %v12091_v18 }
 0x16f   :  { %v6485_v63 = vadd.f32 %v9074_v41, %v5365_v37  ;;  %v5369_v48 = vadd.f32 %v17299_v55, %v4249_v7  ;;  %v9078_v25 = vsel %vm5721_vm13, 1.0, %v17157_v40  ;;  %v3134_v58 = vadd.f32 %v8315_v53, %v17300_v33  ;;  %v12109_v37 = vld [vmem:[%s16712_s0 + $0x90] sm:$0xff] }
 0x170   :  { %6787 = vmatprep.mubr.f32.mxu1 %v6486_v23  ;;  %7237 = vmatprep.mubr.f32.mxu0 %v6490_v29  ;;  %v8571_v30 = vsel %vm3486_vm9, 1.0, %v17157_v40  ;;  %vm2370_vm14 = vcmp.eq.s32.totalorder %v10195_v43, %v11973_v0  ;;  %vm3490_vm15 = vcmp.eq.s32.totalorder %v10195_v43, %v12009_v15  ;;  %vm2365_vm0 = vcmp.eq.s32.totalorder %v10179_v60, %v11973_v0  ;;  %v17304_v23 = vld [vmem:[#allocation135_spill] sm:$0xff] }
 0x171   :  { %6788 = vmatmul.mubr.f32.gmra.mrb[12].mxu1 %v6485_v63  ;;  %v6489_v21 = vadd.f32 %v9078_v25, %v5369_v48  ;;  %v4254_v51 = vadd.f32 %v8571_v30, %v3134_v58  ;;  %vm4606_vm1 = vcmp.eq.s32.totalorder %v10191_v6, %v12079_v39  ;;  %v8319_v34 = vsel %vm2370_vm14, 1.0, %v17157_v40  ;;  %v12126_v25 = vpop.permute.xlu0 %2298  ;;  %v17306_v58 = vld [vmem:[#allocation136_spill] sm:$0xff] }
 0x172   :  { %v8827_v28 = vsel %vm4606_vm1, 1.0, %v17157_v40  ;;  %v3138_v52 = vadd.f32 %v8319_v34, %v17302_v22  ;;  %v8575_v53 = vsel %vm3490_vm15, 1.0, %v17157_v40  ;;  %vm4610_vm2 = vcmp.eq.s32.totalorder %v10195_v43, %v12079_v39  ;;  %9698 = vset.pattern.permute.xlu1 %v17123_v31  ;;  %17305 = vst [vmem:[#allocation85_spill] sm:$0xff] %v12126_v25 }
 0x173   :  { %7238 = vmatmul.mubr.f32.gmra.mrb[12].mxu0 %v6489_v21  ;;  %v5374_v19 = vadd.f32 %v8827_v28, %v4254_v51  ;;  %v8831_v3 = vsel %vm4610_vm2, 1.0, %v17157_v40  ;;  %v8314_v1 = vsel %vm2365_vm0, 1.0, %v17157_v40  ;;  %vm3485_vm3 = vcmp.eq.s32.totalorder %v10179_v60, %v12009_v15  ;;  %2268 = vperm.xlu1 %9698, %v12109_v37   ;;  %v12116_v7 = vpop.permute.xlu1 %3358  ;;  %v17307_v28 = vld [vmem:[#allocation108_spill] sm:$0xff] }
 0x174   :  { %v4258_v26 = vadd.f32 %v8575_v53, %v3138_v52  ;;  %v3133_v14 = vadd.f32 %v8314_v1, %v11654_v13  ;;  %v8570_v4 = vsel %vm3485_vm3, 1.0, %v17157_v40  ;;  %vm4605_vm4 = vcmp.eq.s32.totalorder %v10179_v60, %v12079_v39  ;;  %17303 = vst [vmem:[#allocation83_spill] sm:$0xff] %v12116_v7  ;;  %v17308_v53 = vld [vmem:[#allocation137_spill] sm:$0xff] }
 0x175   :  { %v6494_v29 = vadd.f32 %v17304_v23, %v5374_v19  ;;  %v8826_v41 = vsel %vm4605_vm4, 1.0, %v17157_v40  ;;  %vm2369_vm5 = vcmp.eq.s32.totalorder %v10198_v44, %v11973_v0  ;;  %vm3489_vm6 = vcmp.eq.s32.totalorder %v10198_v44, %v12009_v15 }
 0x176   :  { %v5378_v63 = vadd.f32 %v8831_v3, %v4258_v26  ;;  %v4253_v55 = vadd.f32 %v8570_v4, %v3133_v14  ;;  %v8318_v13 = vsel %vm2369_vm5, 1.0, %v17157_v40  ;;  %v8574_v48 = vsel %vm3489_vm6, 1.0, %v17157_v40  ;;  %v17310_v4 = vld [vmem:[#allocation109_spill] sm:$0xff] }
 0x177   :  { %6792 = vmatprep.mubr.f32.mxu1 %v6494_v29  ;;  %v3137_v33 = vadd.f32 %v8318_v13, %v11657_v42  ;;  %vm4609_vm7 = vcmp.eq.s32.totalorder %v10198_v44, %v12079_v39  ;;  %vm2374_vm8 = vcmp.eq.s32.totalorder %v10191_v6, %v11881_v8  ;;  %vm3494_vm9 = vcmp.eq.s32.totalorder %v10191_v6, %v12116_v7  ;;  %v12162_v13 = vpop.permute.xlu0 %3361 }
 0x178   :  { %9699 = vset.pattern.permute.xlu1 %v17144_v35  ;;  %v6498_v30 = vadd.f32 %v17306_v58, %v5378_v63  ;;  %v5373_v21 = vadd.f32 %v8826_v41, %v4253_v55  ;;  %v8830_v51 = vsel %vm4609_vm7, 1.0, %v17157_v40  ;;  %v8323_v34 = vsel %vm2374_vm8, 1.0, %v17157_v40  ;;  %v12145_v3 = vpop.permute.xlu1 %2241  ;;  %v17311_v63 = vld [vmem:[#allocation138_spill] sm:$0xff]  ;;  %17312 = vst [vmem:[#allocation126_spill] sm:$0xff] %v12162_v13 }
 0x179   :  { %4505 = vperm.xlu1 %9699, %v12073_v61   ;;  %v4257_v42 = vadd.f32 %v8574_v48, %v3137_v33  ;;  %v3142_v22 = vadd.f32 %v8323_v34, %v17307_v28  ;;  %v8579_v52 = vsel %vm3494_vm9, 1.0, %v17157_v40  ;;  %vm2378_vm10 = vcmp.eq.s32.totalorder %v10195_v43, %v11881_v8  ;;  %17309 = vst [vmem:[#allocation125_spill] sm:$0xff] %v12145_v3  ;;  %v17313_v33 = vld [vmem:[#allocation110_spill] sm:$0xff]  ;;  %v17315_v28 = vld [vmem:[#allocation111_spill] sm:$0xff] }
 0x17a   :  { %7242 = vmatprep.mubr.f32.mxu0 %v6498_v30  ;;  %v6493_v19 = vadd.f32 %v17308_v53, %v5373_v21  ;;  %v8327_v1 = vsel %vm2378_vm10, 1.0, %v17157_v40  ;;  %vm3498_vm11 = vcmp.eq.s32.totalorder %v10195_v43, %v12116_v7  ;;  %vm2373_vm12 = vcmp.eq.s32.totalorder %v10179_v60, %v11881_v8 }
 0x17b   :  { %v5377_v26 = vadd.f32 %v8830_v51, %v4257_v42  ;;  %v4262_v14 = vadd.f32 %v8579_v52, %v3142_v22  ;;  %v3146_v23 = vadd.f32 %v8327_v1, %v17310_v4  ;;  %v8583_v29 = vsel %vm3498_vm11, 1.0, %v17157_v40 }
 0x17c   :  { %6793 = vmatmul.mubr.f32.gmra.mrb[14].mxu1 %v6493_v19  ;;  %v8322_v41 = vsel %vm2373_vm12, 1.0, %v17157_v40  ;;  %vm3493_vm13 = vcmp.eq.s32.totalorder %v10179_v60, %v12116_v7  ;;  %vm2377_vm14 = vcmp.eq.s32.totalorder %v10198_v44, %v11881_v8  ;;  %vm3497_vm15 = vcmp.eq.s32.totalorder %v10198_v44, %v12116_v7 }
 0x17d   :  { %v6497_v55 = vadd.f32 %v17311_v63, %v5377_v26  ;;  %9700 = vset.pattern.permute.xlu1 %v17115_v2  ;;  %v4266_v48 = vadd.f32 %v8583_v29, %v3146_v23  ;;  %v3141_v58 = vadd.f32 %v8322_v41, %v17313_v33  ;;  %v8578_v30 = vsel %vm3493_vm13, 1.0, %v17157_v40  ;;  %v12176_v34 = vpop.permute.xlu1 %4478  ;;  %v12197_v63 = vld [vmem:[%s16712_s0 + $0x98] sm:$0xff] }
 0x17e   :  { %5625 = vperm.xlu1 %9700, %v12073_v61   ;;  %v8326_v21 = vsel %vm2377_vm14, 1.0, %v17157_v40  ;;  %v8582_v51 = vsel %vm3497_vm15, 1.0, %v17157_v40  ;;  %vm2382_vm0 = vcmp.eq.s32.totalorder %v10191_v6, %v12145_v3  ;;  %vm3502_vm1 = vcmp.eq.s32.totalorder %v10191_v6, %v12162_v13  ;;  %17314 = vst [vmem:[#allocation129_spill] sm:$0xff] %v12176_v34 }
 0x17f   :  { %vm1282_vm2 = vcmp.eq.s32.totalorder %v10195_v43, %v17280_v27  ;;  %7243 = vmatmul.mubr.f32.gmra.mrb[14].mxu0 %v6497_v55  ;;  %v4261_v42 = vadd.f32 %v8578_v30, %v3141_v58  ;;  %v3145_v22 = vadd.f32 %v8326_v21, %v17315_v28  ;;  %v8331_v61 = vsel %vm2382_vm0, 1.0, %v17157_v40 }
 0x180   :  { %v8587_v52 = vsel %vm3502_vm1, 1.0, %v17157_v40  ;;  %vm4614_vm3 = vcmp.eq.s32.totalorder %v10191_v6, %v12176_v34  ;;  %vm4618_vm4 = vcmp.eq.s32.totalorder %v10195_v43, %v12176_v34  ;;  %vm4613_vm5 = vcmp.eq.s32.totalorder %v10179_v60, %v12176_v34 }
 0x181   :  { %vm4617_vm6 = vcmp.eq.s32.totalorder %v10198_v44, %v12176_v34  ;;  %v8835_v53 = vsel %vm4614_vm3, 1.0, %v17157_v40  ;;  %v8839_v19 = vsel %vm4618_vm4, 1.0, %v17157_v40  ;;  %v8834_v1 = vsel %vm4613_vm5, 1.0, %v17157_v40 }
 0x182   :  { %v4265_v26 = vadd.f32 %v8582_v51, %v3145_v22  ;;  %9701 = vset.pattern.permute.xlu1 %v17123_v31  ;;  %v5382_v4 = vadd.f32 %v8835_v53, %v4262_v14  ;;  %v5386_v23 = vadd.f32 %v8839_v19, %v4266_v48  ;;  %v5381_v29 = vadd.f32 %v8834_v1, %v4261_v42  ;;  %v12205_v14 = vpop.permute.xlu1 %5598  ;;  %v17317_v19 = vld [vmem:[#allocation60_spill] sm:$0xff] }
 0x183   :  { %v8838_v41 = vsel %vm4617_vm6, 1.0, %v17157_v40  ;;  %2271 = vperm.xlu1 %9701, %v12197_v63   ;;  %v3150_v33 = vadd.f32 %v8331_v61, %v11662_v11  ;;  %vm2386_vm7 = vcmp.eq.s32.totalorder %v10195_v43, %v12145_v3  ;;  %vm3506_vm8 = vcmp.eq.s32.totalorder %v10195_v43, %v12162_v13  ;;  %17316 = vst [vmem:[#allocation150_spill] sm:$0xff] %v12205_v14 }
 0x184   :  { %v5385_v55 = vadd.f32 %v8838_v41, %v4265_v26  ;;  %v8335_v48 = vsel %vm2386_vm7, 1.0, %v17157_v40  ;;  %v8591_v58 = vsel %vm3506_vm8, 1.0, %v17157_v40  ;;  %vm2381_vm9 = vcmp.eq.s32.totalorder %v10179_v60, %v12145_v3 }
 0x185   :  { %vm3501_vm10 = vcmp.eq.s32.totalorder %v10179_v60, %v12162_v13  ;;  %vm5734_vm11 = vcmp.eq.s32.totalorder %v10191_v6, %v12205_v14  ;;  %vm5738_vm12 = vcmp.eq.s32.totalorder %v10195_v43, %v12205_v14  ;;  %vm5733_vm13 = vcmp.eq.s32.totalorder %v10179_v60, %v12205_v14 }
 0x186   :  { %vm5737_vm14 = vcmp.eq.s32.totalorder %v10198_v44, %v12205_v14  ;;  %v9091_v11 = vsel %vm5734_vm11, 1.0, %v17157_v40  ;;  %v9095_v30 = vsel %vm5738_vm12, 1.0, %v17157_v40  ;;  %v9090_v21 = vsel %vm5733_vm13, 1.0, %v17157_v40 }
 0x187   :  { %v9094_v51 = vsel %vm5737_vm14, 1.0, %v17157_v40  ;;  %9702 = vset.pattern.permute.xlu1 %v17130_v17  ;;  %v6502_v42 = vadd.f32 %v9091_v11, %v5382_v4  ;;  %v6506_v28 = vadd.f32 %v9095_v30, %v5386_v23  ;;  %v6501_v22 = vadd.f32 %v9090_v21, %v5381_v29  ;;  %v12236_v20 = vpop.permute.xlu1 %2244  ;;  %v17319_v23 = vld [vmem:[#allocation58_spill] sm:$0xff]  ;;  %v17320_v11 = vld [vmem:[#allocation65_spill] sm:$0xff]  ;;  %v17321_v21 = vld [vmem:[#allocation159_spill] sm:$0xff] }
 0x188   :  { %v6505_v61 = vadd.f32 %v9094_v51, %v5385_v55  ;;  %3391 = vperm.xlu1 %9702, %v12197_v63   ;;  %v4270_v53 = vadd.f32 %v8587_v52, %v3150_v33  ;;  %v3154_v1 = vadd.f32 %v8335_v48, %v17317_v19  ;;  %v8330_v26 = vsel %vm2381_vm9, 1.0, %v17157_v40  ;;  %17318 = vst [vmem:[#allocation155_spill] sm:$0xff] %v12236_v20 }
 0x189   :  { %v8586_v41 = vsel %vm3501_vm10, 1.0, %v17157_v40  ;;  %6797 = vmatprep.mubr.f32.mxu1 %v6502_v42  ;;  %7247 = vmatprep.mubr.f32.mxu0 %v6506_v28  ;;  %v3149_v4 = vadd.f32 %v8330_v26, %v11757_v47  ;;  %vm2385_vm15 = vcmp.eq.s32.totalorder %v10198_v44, %v12145_v3  ;;  %vm3505_vm0 = vcmp.eq.s32.totalorder %v10198_v44, %v12162_v13  ;;  %v17322_v28 = vld [vmem:[#allocation160_spill] sm:$0xff] }
 0x18a   :  { %v8095_v52 = vsel %vm1282_vm2, 1.0, %v17157_v40  ;;  %6798 = vmatmul.mubr.f32.gmra.mrb[16].mxu1 %v6501_v22  ;;  %7248 = vmatmul.mubr.f32.gmra.mrb[16].mxu0 %v6505_v61  ;;  %v5390_v29 = vadd.f32 %v17319_v23, %v4270_v53  ;;  %v4274_v55 = vadd.f32 %v8591_v58, %v3154_v1  ;;  %v8334_v33 = vsel %vm2385_vm15, 1.0, %v17157_v40  ;;  %v17323_v53 = vld [vmem:[#allocation114_spill] sm:$0xff]  ;;  %v17324_v1 = vld [vmem:[#allocation115_spill] sm:$0xff] }
 0x18b   :  { %v8590_v47 = vsel %vm3505_vm0, 1.0, %v17157_v40  ;;  %v4269_v48 = vadd.f32 %v8586_v41, %v3149_v4  ;;  %v3153_v30 = vadd.f32 %v8334_v33, %v17320_v11  ;;  %vm2390_vm1 = vcmp.eq.s32.totalorder %v10191_v6, %v12236_v20  ;;  %v17326_v23 = vld [vmem:[#allocation67_spill] sm:$0xff]  ;;  %v17327_v33 = vld [vmem:[#allocation118_spill] sm:$0xff] }
 0x18c   :  { %vm2394_vm3 = vcmp.eq.s32.totalorder %v10195_v43, %v12236_v20  ;;  %9703 = vset.pattern.permute.xlu1 %v17115_v2  ;;  %v5394_v51 = vadd.f32 %v17321_v21, %v4274_v55  ;;  %v8339_v42 = vsel %vm2390_vm1, 1.0, %v17157_v40  ;;  %vm2389_vm2 = vcmp.eq.s32.totalorder %v10179_v60, %v12236_v20  ;;  %v12267_v41 = vpop.permute.xlu1 %3364 }
 0x18d   :  { %v8343_v58 = vsel %vm2394_vm3, 1.0, %v17157_v40  ;;  %5628 = vperm.xlu1 %9703, %v12109_v37   ;;  %v5389_v22 = vadd.f32 %v17322_v28, %v4269_v48  ;;  %v4273_v61 = vadd.f32 %v8590_v47, %v3153_v30  ;;  %v3158_v19 = vadd.f32 %v8339_v42, %v17323_v53  ;;  %17325 = vst [vmem:[#allocation50_spill] sm:$0xff] %v12267_v41  ;;  %v17328_v42 = vld [vmem:[#allocation119_spill] sm:$0xff]  ;;  %v17329_v53 = vld [vmem:[#allocation68_spill] sm:$0xff] }
 0x18e   :  { %v3162_v26 = vadd.f32 %v8343_v58, %v17324_v1  ;;  %vm5753_vm4 = vcmp.eq.s32.totalorder %v10198_v44, %v10963_v32  ;;  %v8338_v4 = vsel %vm2389_vm2, 1.0, %v17157_v40  ;;  %vm2393_vm5 = vcmp.eq.s32.totalorder %v10198_v44, %v12236_v20 }
 0x18f   :  { %v2046_v37 = vadd.f32 %v12040_v50, %v17326_v23  ;;  %vm2398_vm6 = vcmp.eq.s32.totalorder %v10191_v6, %v11929_v46  ;;  %v5393_v55 = vadd.f32 %v11877_v24, %v4273_v61  ;;  %vm3510_vm7 = vcmp.eq.s32.totalorder %v10191_v6, %v12267_v41 }
 0x190   :  { %vm3514_vm8 = vcmp.eq.s32.totalorder %v10195_v43, %v12267_v41  ;;  %v3157_v47 = vadd.f32 %v8338_v4, %v17327_v33  ;;  %v8595_v48 = vsel %vm3510_vm7, 1.0, %v17157_v40  ;;  %vm3509_vm9 = vcmp.eq.s32.totalorder %v10179_v60, %v12267_v41  ;;  %v17331_v33 = vld [vmem:[#allocation22_spill] sm:$0xff] }
 0x191   :  { %v8599_v11 = vsel %vm3514_vm8, 1.0, %v17157_v40  ;;  %v8342_v50 = vsel %vm2393_vm5, 1.0, %v17157_v40  ;;  %9704 = vset.pattern.permute.xlu1 %v17144_v35  ;;  %v4278_v24 = vadd.f32 %v8595_v48, %v3158_v19  ;;  %v8594_v21 = vsel %vm3509_vm9, 1.0, %v17157_v40  ;;  %v12298_v4 = vpop.permute.xlu1 %5601 }
 0x192   :  { %v4282_v30 = vadd.f32 %v8599_v11, %v3162_v26  ;;  %v3161_v58 = vadd.f32 %v8342_v50, %v17328_v42  ;;  %4511 = vperm.xlu1 %9704, %v12197_v63   ;;  %v4277_v28 = vadd.f32 %v8594_v21, %v3157_v47  ;;  %vm3513_vm10 = vcmp.eq.s32.totalorder %v10198_v44, %v12267_v41  ;;  %v12327_v21 = vld [vmem:[%s16712_s0 + $0xa0] sm:$0xff] }
 0x193   :  { %v8347_v61 = vsel %vm2398_vm6, 1.0, %v17157_v40  ;;  %v2050_v1 = vadd.f32 %v8095_v52, %v17329_v53  ;;  %17330 = vst [vmem:[#allocation130_spill] sm:$0xff] %v12298_v4  ;;  %v8598_v19 = vsel %vm3513_vm10, 1.0, %v17157_v40  ;;  %vm2402_vm11 = vcmp.eq.s32.totalorder %v10195_v43, %v11929_v46 }
 0x194   :  { %v12301_v26 = vadd.f32 %v8347_v61, %v2046_v37  ;;  %vm1277_vm12 = vcmp.eq.s32.totalorder %v10179_v60, %v17280_v27  ;;  %vm5742_vm13 = vcmp.eq.s32.totalorder %v10191_v6, %v12298_v4  ;;  %vm5746_vm14 = vcmp.eq.s32.totalorder %v10195_v43, %v12298_v4 }
 0x195   :  { %vm5741_vm15 = vcmp.eq.s32.totalorder %v10179_v60, %v12298_v4  ;;  %vm5745_vm0 = vcmp.eq.s32.totalorder %v10198_v44, %v12298_v4  ;;  %v9099_v63 = vsel %vm5742_vm13, 1.0, %v17157_v40  ;;  %v9103_v52 = vsel %vm5746_vm14, 1.0, %v17157_v40  ;;  %v17427_v4 = vld [vmem:[#allocation113_spill] sm:$0xff] }
 0x196   :  { %v9098_v23 = vsel %vm5741_vm15, 1.0, %v17157_v40  ;;  %v9102_v37 = vsel %vm5745_vm0, 1.0, %v17157_v40  ;;  %vm446_vm1 = vcmp.eq.s32.totalorder %v10191_v6, %v17331_v33  ;;  %9705 = vset.pattern.permute.xlu1 %v17130_v17  ;;  %v6510_v47 = vadd.f32 %v9099_v63, %v5390_v29 }
 0x197   :  { %v6514_v48 = vadd.f32 %v9103_v52, %v5394_v51  ;;  %v6509_v11 = vadd.f32 %v9098_v23, %v5389_v22  ;;  %v6513_v50 = vadd.f32 %v9102_v37, %v5393_v55  ;;  %vm450_vm3 = vcmp.eq.s32.totalorder %v10195_v43, %v17331_v33  ;;  %3394 = vperm.xlu1 %9705, %v12327_v21   ;;  %v12340_v51 = vpop.permute.xlu1 %4484 }
 0x198   :  { %v4281_v42 = vadd.f32 %v8598_v19, %v3161_v58  ;;  %v8351_v61 = vsel %vm2402_vm11, 1.0, %v17157_v40  ;;  %v8090_v29 = vsel %vm1277_vm12, 1.0, %v17157_v40  ;;  %vm2397_vm2 = vcmp.eq.s32.totalorder %v10179_v60, %v11929_v46  ;;  %17332 = vst [vmem:[#allocation51_spill] sm:$0xff] %v12340_v51  ;;  %6802 = vmatprep.mubr.f32.mxu1 %v6510_v47  ;;  %v17333_v58 = vld [vmem:[#allocation69_spill] sm:$0xff] }
 0x199   :  { %7252 = vmatprep.mubr.f32.mxu0 %v6514_v48  ;;  %v9110_v22 = vsel %vm5753_vm4, 1.0, %v17157_v40  ;;  %v3170_v55 = vadd.f32 %v8351_v61, %v2050_v1  ;;  %v2045_v53 = vadd.f32 %v8090_v29, %v17333_v58  ;;  %vm1281_vm5 = vcmp.eq.s32.totalorder %v10198_v44, %v17280_v27  ;;  %6803 = vmatmul.mubr.f32.gmra.mrb[18].mxu1 %v6509_v11  ;;  %v12366_v11 = vld [vmem:[%s16712_s0 + $0xa8] sm:$0xff]  ;;  %v17334_v29 = vld [vmem:[#allocation71_spill] sm:$0xff] }
 0x19a   :  { %7253 = vmatmul.mubr.f32.gmra.mrb[18].mxu0 %v6513_v50  ;;  %vm4630_vm6 = vcmp.eq.s32.totalorder %v10191_v6, %v12340_v51  ;;  %vm4634_vm7 = vcmp.eq.s32.totalorder %v10195_v43, %v12340_v51  ;;  %vm4629_vm8 = vcmp.eq.s32.totalorder %v10179_v60, %v12340_v51  ;;  %v8094_v19 = vsel %vm1281_vm5, 1.0, %v17157_v40 }
 0x19b   :  { %v8851_v1 = vsel %vm4630_vm6, 1.0, %v17157_v40  ;;  %v8855_v63 = vsel %vm4634_vm7, 1.0, %v17157_v40  ;;  %v8850_v52 = vsel %vm4629_vm8, 1.0, %v17157_v40  ;;  %vm4633_vm4 = vcmp.eq.s32.totalorder %v10198_v44, %v12340_v51  ;;  %9707 = vset.pattern.permute.xlu1 %v17123_v31 }
 0x19c   :  { %v5398_v23 = vadd.f32 %v8851_v1, %v4278_v24  ;;  %v5402_v37 = vadd.f32 %v8855_v63, %v4282_v30  ;;  %v5397_v47 = vadd.f32 %v8850_v52, %v4277_v28  ;;  %v8854_v48 = vsel %vm4633_vm4, 1.0, %v17157_v40  ;;  %2277 = vperm.xlu1 %9707, %v12366_v11   ;;  %v12376_v24 = vpop.permute.xlu1 %3367  ;;  %v12391_v52 = vpop.permute.xlu0 %3370 }
 0x19d   :  { %v5401_v50 = vadd.f32 %v8854_v48, %v4281_v42  ;;  %v8346_v61 = vsel %vm2397_vm2, 1.0, %v17157_v40  ;;  %v2049_v58 = vadd.f32 %v8094_v19, %v17334_v29  ;;  %vm2401_vm9 = vcmp.eq.s32.totalorder %v10198_v44, %v11929_v46  ;;  %17335 = vst [vmem:[#allocation53_spill] sm:$0xff] %v12376_v24  ;;  %17336 = vst [vmem:[#allocation93_spill] sm:$0xff] %v12391_v52 }
 0x19e   :  { %v6518_v30 = vadd.f32 %v11894_v9, %v5398_v23  ;;  %v6522_v28 = vadd.f32 %v11907_v62, %v5402_v37  ;;  %v6517_v1 = vadd.f32 %v12029_v59, %v5397_v47  ;;  %v8350_v42 = vsel %vm2401_vm9, 1.0, %v17157_v40 }
 0x19f   :  { %v6521_v63 = vadd.f32 %v9110_v22, %v5401_v50  ;;  %vm3518_vm10 = vcmp.eq.s32.totalorder %v10191_v6, %v12376_v24  ;;  %vm3522_vm11 = vcmp.eq.s32.totalorder %v10195_v43, %v12376_v24  ;;  %vm3517_vm12 = vcmp.eq.s32.totalorder %v10179_v60, %v12376_v24 }
 0x1a0   :  { %6807 = vmatprep.mubr.f32.mxu1 %v6518_v30  ;;  %7257 = vmatprep.mubr.f32.mxu0 %v6522_v28  ;;  %v8603_v9 = vsel %vm3518_vm10, 1.0, %v17157_v40  ;;  %v8607_v62 = vsel %vm3522_vm11, 1.0, %v17157_v40  ;;  %v3165_v19 = vadd.f32 %v8346_v61, %v2045_v53  ;;  %v8602_v59 = vsel %vm3517_vm12, 1.0, %v17157_v40  ;;  %v17337_v53 = vld [vmem:[#allocation79_spill] sm:$0xff] }
 0x1a1   :  { %9708 = vset.pattern.permute.xlu1 %v17144_v35  ;;  %6808 = vmatmul.mubr.f32.gmra.mrb[20].mxu1 %v6517_v1  ;;  %v4286_v22 = vadd.f32 %v8603_v9, %v12301_v26  ;;  %v4290_v23 = vadd.f32 %v8607_v62, %v3170_v55  ;;  %v3169_v37 = vadd.f32 %v8350_v42, %v2049_v58  ;;  %v12399_v47 = vsel %vm446_vm1, 1.0, %v17157_v40  ;;  %v12414_v55 = vpop.permute.xlu1 %2250  ;;  %v17339_v42 = vld [vmem:[#allocation120_spill] sm:$0xff]  ;;  %v17340_v9 = vld [vmem:[#allocation121_spill] sm:$0xff] }
 0x1a2   :  { %4514 = vperm.xlu1 %9708, %v12327_v21   ;;  %7258 = vmatmul.mubr.f32.gmra.mrb[20].mxu0 %v6521_v63  ;;  %vm3521_vm13 = vcmp.eq.s32.totalorder %v10198_v44, %v12376_v24  ;;  %vm3526_vm14 = vcmp.eq.s32.totalorder %v10191_v6, %v12391_v52  ;;  %vm4646_vm15 = vcmp.eq.s32.totalorder %v10191_v6, %v17337_v53  ;;  %v12412_v26 = vsel %vm450_vm3, 1.0, %v17157_v40  ;;  %v17341_v24 = vld [vmem:[#allocation123_spill] sm:$0xff] }
 0x1a3   :  { %17338 = vst [vmem:[#allocation95_spill] sm:$0xff] %v12414_v55  ;;  %v4285_v48 = vadd.f32 %v8602_v59, %v3165_v19  ;;  %v8606_v50 = vsel %vm3521_vm13, 1.0, %v17157_v40  ;;  %v8611_v61 = vsel %vm3526_vm14, 1.0, %v17157_v40  ;;  %vm3530_vm0 = vcmp.eq.s32.totalorder %v10195_v43, %v12391_v52 }
 0x1a4   :  { %vm2406_vm1 = vcmp.eq.s32.totalorder %v10191_v6, %v12414_v55  ;;  %v8867_v29 = vsel %vm4646_vm15, 1.0, %v17157_v40  ;;  %vm2410_vm2 = vcmp.eq.s32.totalorder %v10195_v43, %v12414_v55  ;;  %v8615_v58 = vsel %vm3530_vm0, 1.0, %v17157_v40 }
 0x1a5   :  { %v8355_v30 = vsel %vm2406_vm1, 1.0, %v17157_v40  ;;  %v8359_v28 = vsel %vm2410_vm2, 1.0, %v17157_v40  ;;  %vm4650_vm3 = vcmp.eq.s32.totalorder %v10195_v43, %v17337_v53  ;;  %vm2405_vm5 = vcmp.eq.s32.totalorder %v10179_v60, %v12414_v55  ;;  %v12443_v27 = vpop.permute.xlu1 %4487 }
 0x1a6   :  { %9709 = vset.pattern.permute.xlu1 %v17115_v2  ;;  %v4289_v1 = vadd.f32 %v8606_v50, %v3169_v37  ;;  %v3174_v63 = vadd.f32 %v8355_v30, %v17339_v42  ;;  %v3178_v62 = vadd.f32 %v8359_v28, %v17340_v9  ;;  %v8354_v19 = vsel %vm2405_vm5, 1.0, %v17157_v40  ;;  %17342 = vst [vmem:[#allocation98_spill] sm:$0xff] %v12443_v27 }
 0x1a7   :  { %5634 = vperm.xlu1 %9709, %v12327_v21   ;;  %v8871_v59 = vsel %vm4650_vm3, 1.0, %v17157_v40  ;;  %v3173_v46 = vadd.f32 %v8354_v19, %v17341_v24  ;;  %vm3525_vm6 = vcmp.eq.s32.totalorder %v10179_v60, %v12391_v52  ;;  %vm4645_vm7 = vcmp.eq.s32.totalorder %v10179_v60, %v17337_v53 }
 0x1a8   :  { %v4294_v37 = vadd.f32 %v8611_v61, %v3174_v63  ;;  %v4298_v50 = vadd.f32 %v8615_v58, %v3178_v62  ;;  %v8610_v30 = vsel %vm3525_vm6, 1.0, %v17157_v40  ;;  %vm2409_vm8 = vcmp.eq.s32.totalorder %v10198_v44, %v12414_v55  ;;  %v12470_v62 = vld [vmem:[%s16712_s0 + $0xb0] sm:$0xff] }
 0x1a9   :  { %vm445_vm4 = vcmp.eq.s32.totalorder %v10179_v60, %v17331_v33  ;;  %vm4638_vm9 = vcmp.eq.s32.totalorder %v10191_v6, %v12443_v27  ;;  %vm4642_vm10 = vcmp.eq.s32.totalorder %v10195_v43, %v12443_v27  ;;  %vm4637_vm11 = vcmp.eq.s32.totalorder %v10179_v60, %v12443_v27 }
 0x1aa   :  { %vm4641_vm12 = vcmp.eq.s32.totalorder %v10198_v44, %v12443_v27  ;;  %v8859_v21 = vsel %vm4638_vm9, 1.0, %v17157_v40  ;;  %v8863_v24 = vsel %vm4642_vm10, 1.0, %v17157_v40  ;;  %v8858_v61 = vsel %vm4637_vm11, 1.0, %v17157_v40 }
 0x1ab   :  { %v8862_v58 = vsel %vm4641_vm12, 1.0, %v17157_v40  ;;  %9710 = vset.pattern.permute.xlu1 %v17123_v31  ;;  %v5406_v28 = vadd.f32 %v8859_v21, %v4286_v22  ;;  %v5410_v42 = vadd.f32 %v8863_v24, %v4290_v23  ;;  %v5405_v63 = vadd.f32 %v8858_v61, %v4285_v48  ;;  %v12479_v23 = vpop.permute.xlu1 %5607  ;;  %v17344_v48 = vld [vmem:[#allocation124_spill] sm:$0xff]  ;;  %v17345_v24 = vld [vmem:[#allocation46_spill] sm:$0xff] }
 0x1ac   :  { %v8866_v9 = vsel %vm4645_vm7, 1.0, %v17157_v40  ;;  %2280 = vperm.xlu1 %9710, %v12470_v62   ;;  %v5409_v19 = vadd.f32 %v8862_v58, %v4289_v1  ;;  %v12473_v27 = vadd.f32 %v8867_v29, %v4294_v37  ;;  %v4293_v32 = vadd.f32 %v8610_v30, %v3173_v46  ;;  %17343 = vst [vmem:[#allocation94_spill] sm:$0xff] %v12479_v23 }
 0x1ad   :  { %v8358_v22 = vsel %vm2409_vm8, 1.0, %v17157_v40  ;;  %vm3529_vm13 = vcmp.eq.s32.totalorder %v10198_v44, %v12391_v52  ;;  %vm4649_vm14 = vcmp.eq.s32.totalorder %v10198_v44, %v17337_v53  ;;  %vm1294_vm15 = vcmp.eq.s32.totalorder %v10191_v6, %v17345_v24 }
 0x1ae   :  { %v3177_v21 = vadd.f32 %v8358_v22, %v17344_v48  ;;  %vm5758_vm0 = vcmp.eq.s32.totalorder %v10191_v6, %v12479_v23  ;;  %vm5762_vm1 = vcmp.eq.s32.totalorder %v10195_v43, %v12479_v23  ;;  %vm5757_vm2 = vcmp.eq.s32.totalorder %v10179_v60, %v12479_v23 }
 0x1af   :  { %vm5761_vm3 = vcmp.eq.s32.totalorder %v10198_v44, %v12479_v23  ;;  %v9115_v46 = vsel %vm5758_vm0, 1.0, %v17157_v40  ;;  %v9119_v29 = vsel %vm5762_vm1, 1.0, %v17157_v40  ;;  %v9114_v1 = vsel %vm5757_vm2, 1.0, %v17157_v40 }
 0x1b0   :  { %v9118_v37 = vsel %vm5761_vm3, 1.0, %v17157_v40  ;;  %9711 = vset.pattern.permute.xlu1 %v17130_v17  ;;  %v6526_v30 = vadd.f32 %v9115_v46, %v5406_v28  ;;  %v6530_v61 = vadd.f32 %v9119_v29, %v5410_v42  ;;  %v6525_v58 = vadd.f32 %v9114_v1, %v5405_v63  ;;  %v12514_v28 = vpop.permute.xlu1 %2253  ;;  %v17348_v63 = vld [vmem:[#allocation116_spill] sm:$0xff]  ;;  %v17349_v29 = vld [vmem:[#allocation73_spill] sm:$0xff] }
 0x1b1   :  { %v6529_v22 = vadd.f32 %v9118_v37, %v5409_v19  ;;  %3400 = vperm.xlu1 %9711, %v12470_v62   ;;  %v12502_v48 = vadd.f32 %v8871_v59, %v4298_v50  ;;  %v12504_v55 = vadd.f32 %v8866_v9, %v4293_v32  ;;  %v8614_v23 = vsel %vm3529_vm13, 1.0, %v17157_v40  ;;  %17346 = vst [vmem:[#allocation96_spill] sm:$0xff] %v12514_v28  ;;  %v17347_v59 = vld [vmem:[#allocation72_spill] sm:$0xff] }
 0x1b2   :  { %v8107_v51 = vsel %vm1294_vm15, 1.0, %v17157_v40  ;;  %6812 = vmatprep.mubr.f32.mxu1 %v6526_v30  ;;  %7262 = vmatprep.mubr.f32.mxu0 %v6530_v61  ;;  %v4297_v42 = vadd.f32 %v8614_v23, %v3177_v21  ;;  %v8870_v32 = vsel %vm4649_vm14, 1.0, %v17157_v40  ;;  %vm5774_vm5 = vcmp.eq.s32.totalorder %v10191_v6, %v17348_v63 }
 0x1b3   :  { %v2062_v50 = vadd.f32 %v8107_v51, %v17347_v59  ;;  %6813 = vmatmul.mubr.f32.gmra.mrb[22].mxu1 %v6525_v58  ;;  %7263 = vmatmul.mubr.f32.gmra.mrb[22].mxu0 %v6529_v22  ;;  %vm2414_vm6 = vcmp.eq.s32.totalorder %v10191_v6, %v12514_v28  ;;  %vm1298_vm7 = vcmp.eq.s32.totalorder %v10195_v43, %v17345_v24  ;;  %v12533_v9 = vsel %vm445_vm4, 1.0, %v17157_v40 }
 0x1b4   :  { %vm2418_vm8 = vcmp.eq.s32.totalorder %v10195_v43, %v12514_v28  ;;  %v8363_v51 = vsel %vm2414_vm6, 1.0, %v17157_v40  ;;  %v12537_v19 = vsel %vm5774_vm5, 1.0, %v17157_v40  ;;  %v8111_v23 = vsel %vm1298_vm7, 1.0, %v17157_v40  ;;  %v12554_v58 = vpop.permute.xlu1 %3373 }
 0x1b5   :  { %v8367_v21 = vsel %vm2418_vm8, 1.0, %v17157_v40  ;;  %9712 = vset.pattern.permute.xlu1 %v17115_v2  ;;  %v5417_v46 = vadd.f32 %v8870_v32, %v4297_v42  ;;  %v2066_v1 = vadd.f32 %v8111_v23, %v17349_v29  ;;  %vm5778_vm9 = vcmp.eq.s32.totalorder %v10195_v43, %v17348_v63  ;;  %17350 = vst [vmem:[#allocation99_spill] sm:$0xff] %v12554_v58  ;;  %v17351_v42 = vld [vmem:[#allocation74_spill] sm:$0xff] }
 0x1b6   :  { %vm1293_vm4 = vcmp.eq.s32.totalorder %v10179_v60, %v17345_v24  ;;  %5637 = vperm.xlu1 %9712, %v12366_v11   ;;  %v3182_v37 = vadd.f32 %v8363_v51, %v2062_v50  ;;  %v12549_v30 = vsel %vm5778_vm9, 1.0, %v17157_v40  ;;  %vm2413_vm10 = vcmp.eq.s32.totalorder %v10179_v60, %v12514_v28 }
 0x1b7   :  { %v8106_v61 = vsel %vm1293_vm4, 1.0, %v17157_v40  ;;  %v3186_v22 = vadd.f32 %v8367_v21, %v2066_v1  ;;  %v8362_v59 = vsel %vm2413_vm10, 1.0, %v17157_v40  ;;  %vm5773_vm11 = vcmp.eq.s32.totalorder %v10179_v60, %v17348_v63 }
 0x1b8   :  { %v2061_v32 = vadd.f32 %v8106_v61, %v17351_v42  ;;  %vm3534_vm12 = vcmp.eq.s32.totalorder %v10191_v6, %v12554_v58  ;;  %vm3538_vm13 = vcmp.eq.s32.totalorder %v10195_v43, %v12554_v58  ;;  %vm3533_vm14 = vcmp.eq.s32.totalorder %v10179_v60, %v12554_v58 }
 0x1b9   :  { %vm1297_vm15 = vcmp.eq.s32.totalorder %v10198_v44, %v17345_v24  ;;  %v8619_v11 = vsel %vm3534_vm12, 1.0, %v17157_v40  ;;  %v8623_v50 = vsel %vm3538_vm13, 1.0, %v17157_v40  ;;  %v8618_v23 = vsel %vm3533_vm14, 1.0, %v17157_v40  ;;  %v17352_v24 = vld [vmem:[#allocation76_spill] sm:$0xff] }
 0x1ba   :  { %v3181_v51 = vadd.f32 %v8362_v59, %v2061_v32  ;;  %9713 = vset.pattern.permute.xlu1 %v17144_v35  ;;  %v4302_v21 = vadd.f32 %v8619_v11, %v3182_v37  ;;  %v12573_v29 = vsel %vm5773_vm11, 1.0, %v17157_v40  ;;  %v8110_v1 = vsel %vm1297_vm15, 1.0, %v17157_v40  ;;  %v12581_v59 = vpop.permute.xlu1 %5610  ;;  %v17354_v11 = vld [vmem:[#allocation134_spill] sm:$0xff] }
 0x1bb   :  { %vm2417_vm0 = vcmp.eq.s32.totalorder %v10198_v44, %v12514_v28  ;;  %4520 = vperm.xlu1 %9713, %v12470_v62   ;;  %v4306_v61 = vadd.f32 %v8623_v50, %v3186_v22  ;;  %v2065_v53 = vadd.f32 %v8110_v1, %v17352_v24  ;;  %17353 = vst [vmem:[#allocation101_spill] sm:$0xff] %v12581_v59  ;;  %v17355_v50 = vld [vmem:[#allocation38_spill] sm:$0xff] }
 0x1bc   :  { %v4301_v42 = vadd.f32 %v8618_v23, %v3181_v51  ;;  %v8366_v32 = vsel %vm2417_vm0, 1.0, %v17157_v40  ;;  %vm3537_vm1 = vcmp.eq.s32.totalorder %v10198_v44, %v12554_v58  ;;  %vm5777_vm2 = vcmp.eq.s32.totalorder %v10198_v44, %v17348_v63  ;;  %v17359_v63 = vld [vmem:[#allocation139_spill] sm:$0xff] }
 0x1bd   :  { %vm2422_vm3 = vcmp.eq.s32.totalorder %v10191_v6, %v11959_v38  ;;  %vm2426_vm5 = vcmp.eq.s32.totalorder %v10195_v43, %v11959_v38  ;;  %vm5766_vm6 = vcmp.eq.s32.totalorder %v10191_v6, %v12581_v59  ;;  %vm5770_vm7 = vcmp.eq.s32.totalorder %v10195_v43, %v12581_v59 }
 0x1be   :  { %vm5765_vm8 = vcmp.eq.s32.totalorder %v10179_v60, %v12581_v59  ;;  %vm5769_vm9 = vcmp.eq.s32.totalorder %v10198_v44, %v12581_v59  ;;  %v9123_v62 = vsel %vm5766_vm6, 1.0, %v17157_v40  ;;  %v9127_v24 = vsel %vm5770_vm7, 1.0, %v17157_v40  ;;  %v12614_v59 = vld [vmem:[%s16712_s0 + $0xb8] sm:$0xff] }
 0x1bf   :  { %v9122_v37 = vsel %vm5765_vm8, 1.0, %v17157_v40  ;;  %v9126_v22 = vsel %vm5769_vm9, 1.0, %v17157_v40  ;;  %vm449_vm4 = vcmp.eq.s32.totalorder %v10198_v44, %v17331_v33  ;;  %vm1191_vm10 = vcmp.eq.s32.totalorder %v17355_v50, %v17354_v11  ;;  %9714 = vset.pattern.permute.xlu1 %v17130_v17 }
 0x1c0   :  { %v6534_v51 = vadd.f32 %v9123_v62, %v12473_v27  ;;  %v6538_v23 = vadd.f32 %v9127_v24, %v12502_v48  ;;  %v6533_v1 = vadd.f32 %v9122_v37, %v12504_v55  ;;  %v6537_v28 = vadd.f32 %v9126_v22, %v5417_v46  ;;  %3403 = vperm.xlu1 %9714, %v12614_v59   ;;  %v12629_v48 = vpop.permute.xlu1 %4493  ;;  %v17357_v46 = vld [vmem:[#allocation131_spill] sm:$0xff]  ;;  %v17358_v62 = vld [vmem:[#allocation132_spill] sm:$0xff] }
 0x1c1   :  { %v3185_v52 = vadd.f32 %v8366_v32, %v2065_v53  ;;  %v8622_v41 = vsel %vm3537_vm1, 1.0, %v17157_v40  ;;  %v8371_v27 = vsel %vm2422_vm3, 1.0, %v17157_v40  ;;  %v8375_v55 = vsel %vm2426_vm5, 1.0, %v17157_v40  ;;  %17356 = vst [vmem:[#allocation105_spill] sm:$0xff] %v12629_v48 }
 0x1c2   :  { %6817 = vmatprep.mubr.f32.mxu1 %v6534_v51  ;;  %7267 = vmatprep.mubr.f32.mxu0 %v6538_v23  ;;  %v9134_v53 = vsel %vm5777_vm2, 1.0, %v17157_v40  ;;  %v3190_v32 = vadd.f32 %v8371_v27, %v17357_v46  ;;  %v3194_v24 = vadd.f32 %v8375_v55, %v17358_v62  ;;  %vm2421_vm11 = vcmp.eq.s32.totalorder %v10179_v60, %v11959_v38  ;;  %v12655_v46 = vld [vmem:[%s16712_s0 + $0xc0] sm:$0xff] }
 0x1c3   :  { %6818 = vmatmul.mubr.f32.gmra.mrb[24].mxu1 %v6533_v1  ;;  %7268 = vmatmul.mubr.f32.gmra.mrb[24].mxu0 %v6537_v28  ;;  %vm4654_vm12 = vcmp.eq.s32.totalorder %v10191_v6, %v12629_v48  ;;  %vm4658_vm13 = vcmp.eq.s32.totalorder %v10195_v43, %v12629_v48  ;;  %vm4653_vm14 = vcmp.eq.s32.totalorder %v10179_v60, %v12629_v48  ;;  %v8370_v37 = vsel %vm2421_vm11, 1.0, %v17157_v40 }
 0x1c4   :  { %v8875_v22 = vsel %vm4654_vm12, 1.0, %v17157_v40  ;;  %v8879_v51 = vsel %vm4658_vm13, 1.0, %v17157_v40  ;;  %v8874_v23 = vsel %vm4653_vm14, 1.0, %v17157_v40  ;;  %v4305_v27 = vadd.f32 %v8622_v41, %v3185_v52  ;;  %9715 = vset.pattern.permute.xlu1 %v17123_v31  ;;  %v17360_v41 = vld [vmem:[#allocation151_spill] sm:$0xff]  ;;  %v12664_v52 = vpop.permute.xlu1 %3376 }
 0x1c5   :  { %v5422_v28 = vadd.f32 %v8875_v22, %v4302_v21  ;;  %v5426_v1 = vadd.f32 %v8879_v51, %v4306_v61  ;;  %v5421_v55 = vadd.f32 %v8874_v23, %v4301_v42  ;;  %vm4657_vm15 = vcmp.eq.s32.totalorder %v10198_v44, %v12629_v48  ;;  %2286 = vperm.xlu1 %9715, %v12655_v46  }
 0x1c6   :  { %v8878_v62 = vsel %vm4657_vm15, 1.0, %v17157_v40  ;;  %v3189_v58 = vadd.f32 %v8370_v37, %v17359_v63  ;;  %vm2425_vm0 = vcmp.eq.s32.totalorder %v10198_v44, %v11959_v38  ;;  %vm1310_vm1 = vcmp.eq.s32.totalorder %v10191_v6, %v17360_v41  ;;  %17361 = vst [vmem:[#allocation102_spill] sm:$0xff] %v12664_v52 }
 0x1c7   :  { %v6542_v21 = vadd.f32 %v12537_v19, %v5422_v28  ;;  %v6546_v61 = vadd.f32 %v12549_v30, %v5426_v1  ;;  %v6541_v42 = vadd.f32 %v12573_v29, %v5421_v55  ;;  %v5425_v22 = vadd.f32 %v8878_v62, %v4305_v27  ;;  %v12696_v1 = vpop.permute.xlu0 %3379 }
 0x1c8   :  { %vm3542_vm2 = vcmp.eq.s32.totalorder %v10191_v6, %v12664_v52  ;;  %vm3546_vm3 = vcmp.eq.s32.totalorder %v10195_v43, %v12664_v52  ;;  %vm3541_vm5 = vcmp.eq.s32.totalorder %v10179_v60, %v12664_v52  ;;  %v8374_v63 = vsel %vm2425_vm0, 1.0, %v17157_v40  ;;  %17362 = vst [vmem:[#allocation104_spill] sm:$0xff] %v12696_v1  ;;  %v12702_v62 = vpop.permute.xlu1 %2259 }
 0x1c9   :  { %6822 = vmatprep.mubr.f32.mxu1 %v6542_v21  ;;  %7272 = vmatprep.mubr.f32.mxu0 %v6546_v61  ;;  %v6545_v37 = vadd.f32 %v9134_v53, %v5425_v22  ;;  %v8627_v19 = vsel %vm3542_vm2, 1.0, %v17157_v40  ;;  %v8631_v30 = vsel %vm3546_vm3, 1.0, %v17157_v40  ;;  %v8626_v29 = vsel %vm3541_vm5, 1.0, %v17157_v40  ;;  %17364 = vst [vmem:[#allocation106_spill] sm:$0xff] %v12702_v62  ;;  %v17365_v61 = vld [vmem:[#allocation84_spill] sm:$0xff] }
 0x1ca   :  { %9716 = vset.pattern.permute.xlu1 %v17144_v35  ;;  %6823 = vmatmul.mubr.f32.gmra.mrb[26].mxu1 %v6541_v42  ;;  %v4310_v51 = vadd.f32 %v8627_v19, %v3190_v32  ;;  %v4314_v23 = vadd.f32 %v8631_v30, %v3194_v24  ;;  %v8123_v27 = vsel %vm1310_vm1, 1.0, %v17157_v40  ;;  %v12688_v53 = vsel %vm449_vm4, 1.0, %v17157_v40  ;;  %v17363_v24 = vld [vmem:[#allocation140_spill] sm:$0xff] }
 0x1cb   :  { %v12694_v28 = vsel %vm1191_vm10, 1.0, %v17157_v40  ;;  %4523 = vperm.xlu1 %9716, %v12614_v59   ;;  %7273 = vmatmul.mubr.f32.gmra.mrb[26].mxu0 %v6545_v37  ;;  %v4309_v32 = vadd.f32 %v8626_v29, %v3189_v58  ;;  %v3193_v55 = vadd.f32 %v8374_v63, %v17363_v24  ;;  %vm3545_vm6 = vcmp.eq.s32.totalorder %v10198_v44, %v12664_v52 }
 0x1cc   :  { %v8630_v21 = vsel %vm3545_vm6, 1.0, %v17157_v40  ;;  %vm3550_vm7 = vcmp.eq.s32.totalorder %v10191_v6, %v12696_v1  ;;  %vm4670_vm8 = vcmp.eq.s32.totalorder %v10191_v6, %v17365_v61  ;;  %vm1314_vm9 = vcmp.eq.s32.totalorder %v10195_v43, %v17360_v41 }
 0x1cd   :  { %v4313_v42 = vadd.f32 %v8630_v21, %v3193_v55  ;;  %v2078_v58 = vadd.f32 %v8123_v27, %v12399_v47  ;;  %vm2430_vm4 = vcmp.eq.s32.totalorder %v10191_v6, %v12702_v62  ;;  %v8635_v22 = vsel %vm3550_vm7, 1.0, %v17157_v40  ;;  %v12733_v24 = vpop.permute.xlu1 %4496 }
 0x1ce   :  { %v8379_v63 = vsel %vm2430_vm4, 1.0, %v17157_v40  ;;  %v8127_v37 = vsel %vm1314_vm9, 1.0, %v17157_v40  ;;  %vm2434_vm10 = vcmp.eq.s32.totalorder %v10195_v43, %v12702_v62  ;;  %vm3554_vm11 = vcmp.eq.s32.totalorder %v10195_v43, %v12696_v1  ;;  %17366 = vst [vmem:[#allocation107_spill] sm:$0xff] %v12733_v24 }
 0x1cf   :  { %9718 = vset.pattern.permute.xlu1 %v17130_v17  ;;  %v3198_v19 = vadd.f32 %v8379_v63, %v2078_v58  ;;  %v8891_v47 = vsel %vm4670_vm8, 1.0, %v17157_v40  ;;  %v2082_v30 = vadd.f32 %v8127_v37, %v12412_v26  ;;  %v8383_v29 = vsel %vm2434_vm10, 1.0, %v17157_v40 }
 0x1d0   :  { %3406 = vperm.xlu1 %9718, %v12655_v46   ;;  %v8639_v27 = vsel %vm3554_vm11, 1.0, %v17157_v40  ;;  %vm4674_vm12 = vcmp.eq.s32.totalorder %v10195_v43, %v17365_v61  ;;  %vm1309_vm13 = vcmp.eq.s32.totalorder %v10179_v60, %v17360_v41  ;;  %vm2429_vm14 = vcmp.eq.s32.totalorder %v10179_v60, %v12702_v62 }
 0x1d1   :  { %v4318_v55 = vadd.f32 %v8635_v22, %v3198_v19  ;;  %v3202_v21 = vadd.f32 %v8383_v29, %v2082_v30  ;;  %v8122_v26 = vsel %vm1309_vm13, 1.0, %v17157_v40  ;;  %vm3549_vm15 = vcmp.eq.s32.totalorder %v10179_v60, %v12696_v1 }
 0x1d2   :  { %vm4662_vm0 = vcmp.eq.s32.totalorder %v10191_v6, %v12733_v24  ;;  %vm4666_vm1 = vcmp.eq.s32.totalorder %v10195_v43, %v12733_v24  ;;  %vm4661_vm2 = vcmp.eq.s32.totalorder %v10179_v60, %v12733_v24  ;;  %vm4665_vm3 = vcmp.eq.s32.totalorder %v10198_v44, %v12733_v24  ;;  %v12761_v20 = vpop.permute.xlu1 %5616 }
 0x1d3   :  { %v8883_v58 = vsel %vm4662_vm0, 1.0, %v17157_v40  ;;  %v8887_v22 = vsel %vm4666_vm1, 1.0, %v17157_v40  ;;  %v8882_v63 = vsel %vm4661_vm2, 1.0, %v17157_v40  ;;  %v8886_v37 = vsel %vm4665_vm3, 1.0, %v17157_v40  ;;  %17367 = vst [vmem:[#allocation55_spill] sm:$0xff] %v12761_v20 }
 0x1d4   :  { %9719 = vset.pattern.permute.xlu1 %v17115_v2  ;;  %v5430_v19 = vadd.f32 %v8883_v58, %v4310_v51  ;;  %v5434_v30 = vadd.f32 %v8887_v22, %v4314_v23  ;;  %v5429_v29 = vadd.f32 %v8882_v63, %v4309_v32  ;;  %v8895_v33 = vsel %vm4674_vm12, 1.0, %v17157_v40 }
 0x1d5   :  { %5643 = vperm.xlu1 %9719, %v12614_v59   ;;  %v5433_v24 = vadd.f32 %v8886_v37, %v4313_v42  ;;  %v4322_v52 = vadd.f32 %v8639_v27, %v3202_v21  ;;  %v2077_v38 = vadd.f32 %v8122_v26, %v12533_v9  ;;  %v8378_v48 = vsel %vm2429_vm14, 1.0, %v17157_v40 }
 0x1d6   :  { %v8634_v51 = vsel %vm3549_vm15, 1.0, %v17157_v40  ;;  %vm4669_vm5 = vcmp.eq.s32.totalorder %v10179_v60, %v17365_v61  ;;  %vm1313_vm6 = vcmp.eq.s32.totalorder %v10198_v44, %v17360_v41  ;;  %vm2433_vm7 = vcmp.eq.s32.totalorder %v10198_v44, %v12702_v62 }
 0x1d7   :  { %vm5782_vm8 = vcmp.eq.s32.totalorder %v10191_v6, %v12761_v20  ;;  %vm5786_vm9 = vcmp.eq.s32.totalorder %v10195_v43, %v12761_v20  ;;  %vm5781_vm4 = vcmp.eq.s32.totalorder %v10179_v60, %v12761_v20  ;;  %vm5785_vm10 = vcmp.eq.s32.totalorder %v10198_v44, %v12761_v20 }
 0x1d8   :  { %v9139_v9 = vsel %vm5782_vm8, 1.0, %v17157_v40  ;;  %v9143_v59 = vsel %vm5786_vm9, 1.0, %v17157_v40  ;;  %v9138_v23 = vsel %vm5781_vm4, 1.0, %v17157_v40  ;;  %v9142_v32 = vsel %vm5785_vm10, 1.0, %v17157_v40  ;;  %v12795_v20 = vpop.permute.xlu1 %2262 }
 0x1d9   :  { %9720 = vset.pattern.permute.xlu1 %v17144_v35  ;;  %v6550_v42 = vadd.f32 %v9139_v9, %v5430_v19  ;;  %v6554_v27 = vadd.f32 %v9143_v59, %v5434_v30  ;;  %v6549_v21 = vadd.f32 %v9138_v23, %v5429_v29  ;;  %v6553_v26 = vadd.f32 %v9142_v32, %v5433_v24  ;;  %v17372_v59 = vld [vmem:[#allocation122_spill] sm:$0xff] }
 0x1da   :  { %4526 = vperm.xlu1 %9720, %v12655_v46   ;;  %v12787_v58 = vadd.f32 %v8891_v47, %v4318_v55  ;;  %v12789_v22 = vadd.f32 %v8895_v33, %v4322_v52  ;;  %v3197_v63 = vadd.f32 %v8378_v48, %v2077_v38  ;;  %v8126_v37 = vsel %vm1313_vm6, 1.0, %v17157_v40  ;;  %17368 = vst [vmem:[#allocation57_spill] sm:$0xff] %v12795_v20  ;;  %v17369_v52 = vld [vmem:[#allocation25_spill] sm:$0xff]  ;;  %v17370_v55 = vld [vmem:[#allocation88_spill] sm:$0xff]  ;;  %v12827_v23 = vld [vmem:[%s16712_s0 + $0xd0] sm:$0xff] }
 0x1db   :  { %6827 = vmatprep.mubr.f32.mxu1 %v6550_v42  ;;  %7277 = vmatprep.mubr.f32.mxu0 %v6554_v27  ;;  %v2081_v19 = vadd.f32 %v8126_v37, %v12688_v53  ;;  %v8382_v47 = vsel %vm2433_vm7, 1.0, %v17157_v40  ;;  %vm3553_vm11 = vcmp.eq.s32.totalorder %v10198_v44, %v12696_v1  ;;  %vm4673_vm12 = vcmp.eq.s32.totalorder %v10198_v44, %v17365_v61 }
 0x1dc   :  { %6828 = vmatmul.mubr.f32.gmra.mrb[28].mxu1 %v6549_v21  ;;  %7278 = vmatmul.mubr.f32.gmra.mrb[28].mxu0 %v6553_v26  ;;  %v4317_v38 = vadd.f32 %v8634_v51, %v3197_v63  ;;  %v8890_v33 = vsel %vm4669_vm5, 1.0, %v17157_v40  ;;  %v8638_v48 = vsel %vm3553_vm11, 1.0, %v17157_v40  ;;  %vm454_vm13 = vcmp.eq.s32.totalorder %v10191_v6, %v17369_v52 }
 0x1dd   :  { %v3201_v53 = vadd.f32 %v8382_v47, %v2081_v19  ;;  %v7875_v24 = vsel %vm454_vm13, 1.0, %v17157_v40  ;;  %vm1318_vm14 = vcmp.eq.s32.totalorder %v10191_v6, %v17370_v55  ;;  %vm2438_vm15 = vcmp.eq.s32.totalorder %v10191_v6, %v12795_v20  ;;  %v12832_v21 = vpop.permute.xlu1 %3382 }
 0x1de   :  { %v17371_v30 = vmov 1   ;;  %v8894_v29 = vsel %vm4673_vm12, 1.0, %v17157_v40  ;;  %v8131_v51 = vsel %vm1318_vm14, 1.0, %v17157_v40  ;;  %v8387_v9 = vsel %vm2438_vm15, 1.0, %v17157_v40  ;;  %17373 = vst [vmem:[#allocation135_spill] sm:$0xff] %v12832_v21 }
 0x1df   :  { %9721 = vset.pattern.permute.xlu1 %v17371_v30  ;;  %vm5798_vm0 = vcmp.eq.s32.totalorder %v10191_v6, %v17372_v59  ;;  %v5437_v32 = vadd.f32 %v8890_v33, %v4317_v38  ;;  %v4321_v42 = vadd.f32 %v8638_v48, %v3201_v53  ;;  %v2086_v27 = vadd.f32 %v8131_v51, %v7875_v24 }
 0x1e0   :  { %1172 = vperm.xlu1 %9721, %v12827_v23   ;;  %vm458_vm1 = vcmp.eq.s32.totalorder %v10195_v43, %v17369_v52  ;;  %v12835_v26 = vsel %vm5798_vm0, 1.0, %v17157_v40  ;;  %vm1322_vm2 = vcmp.eq.s32.totalorder %v10195_v43, %v17370_v55  ;;  %vm2442_vm3 = vcmp.eq.s32.totalorder %v10195_v43, %v12795_v20 }
 0x1e1   :  { %v7879_v63 = vsel %vm458_vm1, 1.0, %v17157_v40  ;;  %v3206_v37 = vadd.f32 %v8387_v9, %v2086_v27  ;;  %vm3558_vm5 = vcmp.eq.s32.totalorder %v10191_v6, %v12832_v21  ;;  %v8135_v19 = vsel %vm1322_vm2, 1.0, %v17157_v40 }
 0x1e2   :  { %vm5802_vm6 = vcmp.eq.s32.totalorder %v10195_v43, %v17372_v59  ;;  %v8643_v47 = vsel %vm3558_vm5, 1.0, %v17157_v40  ;;  %v2090_v38 = vadd.f32 %v8135_v19, %v7879_v63  ;;  %v8391_v33 = vsel %vm2442_vm3, 1.0, %v17157_v40  ;;  %v12861_v27 = vpop.permute.xlu1 %5619 }
 0x1e3   :  { %vm3562_vm7 = vcmp.eq.s32.totalorder %v10195_v43, %v12832_v21  ;;  %v5441_v48 = vadd.f32 %v8894_v29, %v4321_v42  ;;  %v4326_v53 = vadd.f32 %v8643_v47, %v3206_v37  ;;  %vm453_vm8 = vcmp.eq.s32.totalorder %v10179_v60, %v17369_v52  ;;  %17374 = vst [vmem:[#allocation136_spill] sm:$0xff] %v12861_v27 }
 0x1e4   :  { %9722 = vset.pattern.permute.xlu1 %v17115_v2  ;;  %v8647_v24 = vsel %vm3562_vm7, 1.0, %v17157_v40  ;;  %v3210_v51 = vadd.f32 %v8391_v33, %v2090_v38  ;;  %v7874_v9 = vsel %vm453_vm8, 1.0, %v17157_v40  ;;  %vm1317_vm9 = vcmp.eq.s32.totalorder %v10179_v60, %v17370_v55 }
 0x1e5   :  { %5646 = vperm.xlu1 %9722, %v12655_v46   ;;  %vm2437_vm4 = vcmp.eq.s32.totalorder %v10179_v60, %v12795_v20  ;;  %v8130_v29 = vsel %vm1317_vm9, 1.0, %v17157_v40  ;;  %vm3557_vm10 = vcmp.eq.s32.totalorder %v10179_v60, %v12832_v21  ;;  %vm5797_vm11 = vcmp.eq.s32.totalorder %v10179_v60, %v17372_v59 }
 0x1e6   :  { %v8386_v42 = vsel %vm2437_vm4, 1.0, %v17157_v40  ;;  %vm5790_vm12 = vcmp.eq.s32.totalorder %v10191_v6, %v12861_v27  ;;  %vm5794_vm13 = vcmp.eq.s32.totalorder %v10195_v43, %v12861_v27  ;;  %vm5789_vm14 = vcmp.eq.s32.totalorder %v10179_v60, %v12861_v27 }
 0x1e7   :  { %vm5793_vm15 = vcmp.eq.s32.totalorder %v10198_v44, %v12861_v27  ;;  %v9147_v46 = vsel %vm5790_vm12, 1.0, %v17157_v40  ;;  %v9151_v63 = vsel %vm5794_vm13, 1.0, %v17157_v40  ;;  %v9146_v37 = vsel %vm5789_vm14, 1.0, %v17157_v40 }
 0x1e8   :  { %v9150_v19 = vsel %vm5793_vm15, 1.0, %v17157_v40  ;;  %v6558_v47 = vadd.f32 %v9147_v46, %v12787_v58  ;;  %v6562_v38 = vadd.f32 %v9151_v63, %v12789_v22  ;;  %v6557_v33 = vadd.f32 %v9146_v37, %v5437_v32  ;;  %v12903_v22 = vpop.permute.xlu1 %4502  ;;  %v12923_v63 = vld [vmem:[%s16712_s0 + $0xd8] sm:$0xff] }
 0x1e9   :  { %9723 = vset.pattern.permute.xlu1 %v17123_v31  ;;  %v6561_v61 = vadd.f32 %v9150_v19, %v5441_v48  ;;  %v4330_v1 = vadd.f32 %v8647_v24, %v3210_v51  ;;  %v9159_v27 = vsel %vm5802_vm6, 1.0, %v17157_v40  ;;  %v2085_v62 = vadd.f32 %v8130_v29, %v7874_v9  ;;  %17375 = vst [vmem:[#allocation108_spill] sm:$0xff] %v12903_v22  ;;  %v12908_v9 = vpop.permute.xlu0 %3388 }
 0x1ea   :  { %2292 = vperm.xlu1 %9723, %v12827_v23   ;;  %v8642_v41 = vsel %vm3557_vm10, 1.0, %v17157_v40  ;;  %6832 = vmatprep.mubr.f32.mxu1 %v6558_v47  ;;  %v9154_v58 = vsel %vm5797_vm11, 1.0, %v17157_v40  ;;  %vm457_vm0 = vcmp.eq.s32.totalorder %v10198_v44, %v17369_v52  ;;  %vm1321_vm1 = vcmp.eq.s32.totalorder %v10198_v44, %v17370_v55  ;;  %17376 = vst [vmem:[#allocation137_spill] sm:$0xff] %v12908_v9 }
 0x1eb   :  { %7282 = vmatprep.mubr.f32.mxu0 %v6562_v38  ;;  %vm2441_vm2 = vcmp.eq.s32.totalorder %v10198_v44, %v12795_v20  ;;  %6833 = vmatmul.mubr.f32.gmra.mrb[30].mxu1 %v6557_v33  ;;  %v3205_v32 = vadd.f32 %v8386_v42, %v2085_v62  ;;  %v7878_v48 = vsel %vm457_vm0, 1.0, %v17157_v40  ;;  %v8134_v24 = vsel %vm1321_vm1, 1.0, %v17157_v40  ;;  %v159_v20 = vld [vmem:[#allocation2 + $0x328] sm:$0xff] }
 0x1ec   :  { %7283 = vmatmul.mubr.f32.gmra.mrb[30].mxu0 %v6561_v61  ;;  %v8390_v51 = vsel %vm2441_vm2, 1.0, %v17157_v40  ;;  %vm4678_vm3 = vcmp.eq.s32.totalorder %v10191_v6, %v12903_v22  ;;  %vm4682_vm5 = vcmp.eq.s32.totalorder %v10195_v43, %v12903_v22  ;;  %vm4677_vm6 = vcmp.eq.s32.totalorder %v10179_v60, %v12903_v22 }
 0x1ed   :  { %v2089_v29 = vadd.f32 %v8134_v24, %v7878_v48  ;;  %v8899_v62 = vsel %vm4678_vm3, 1.0, %v17157_v40  ;;  %v8903_v61 = vsel %vm4682_vm5, 1.0, %v17157_v40  ;;  %v4325_v42 = vadd.f32 %v8642_v41, %v3205_v32  ;;  %v12933_v41 = vpop.permute.xlu1 %3385 }
 0x1ee   :  { %9724 = vset.pattern.permute.xlu1 %v17371_v30  ;;  %v8898_v46 = vsel %vm4677_vm6, 1.0, %v17157_v40  ;;  %v5446_v37 = vadd.f32 %v8899_v62, %v4326_v53  ;;  %v5450_v19 = vadd.f32 %v8903_v61, %v4330_v1  ;;  %vm3561_vm7 = vcmp.eq.s32.totalorder %v10198_v44, %v12832_v21  ;;  %17377 = vst [vmem:[#allocation109_spill] sm:$0xff] %v12933_v41  ;;  %v17379_v62 = vld [vmem:[#allocation52_spill] sm:$0xff]  ;;  %v12942_v61 = vpop.permute.xlu0 %3397 }
 0x1ef   :  { %1175 = vperm.xlu1 %9724, %v12923_v63   ;;  %v3209_v47 = vadd.f32 %v8390_v51, %v2089_v29  ;;  %v5445_v38 = vadd.f32 %v8898_v46, %v4325_v42  ;;  %v8646_v33 = vsel %vm3561_vm7, 1.0, %v17157_v40  ;;  %vm4681_vm8 = vcmp.eq.s32.totalorder %v10198_v44, %v12903_v22  ;;  %v17378_v29 = vld [vmem:[#allocation24_spill] sm:$0xff]  ;;  %17380 = vst [vmem:[#allocation138_spill] sm:$0xff] %v12942_v61 }
 0x1f0   :  { %vm5801_vm9 = vcmp.eq.s32.totalorder %v10198_v44, %v17372_v59  ;;  %v6566_v32 = vadd.f32 %v12835_v26, %v5446_v37  ;;  %v6570_v48 = vadd.f32 %v9159_v27, %v5450_v19  ;;  %v8902_v1 = vsel %vm4681_vm8, 1.0, %v17157_v40  ;;  %v17385_v59 = vld [vmem:[#allocation27_spill] sm:$0xff] }
 0x1f1   :  { %v4329_v53 = vadd.f32 %v8646_v33, %v3209_v47  ;;  %v6565_v24 = vadd.f32 %v9154_v58, %v5445_v38  ;;  %v9158_v51 = vsel %vm5801_vm9, 1.0, %v17157_v40  ;;  %vm462_vm4 = vcmp.eq.s32.totalorder %v10191_v6, %v17378_v29 }
 0x1f2   :  { %vm1326_vm10 = vcmp.eq.s32.totalorder %v10191_v6, %v17379_v62  ;;  %6837 = vmatprep.mubr.f32.mxu1 %v6566_v32  ;;  %v7883_v26 = vsel %vm462_vm4, 1.0, %v17157_v40  ;;  %vm2446_vm11 = vcmp.eq.s32.totalorder %v10191_v6, %v11986_v16  ;;  %7287 = vmatprep.mubr.f32.mxu0 %v6570_v48  ;;  %vm3566_vm12 = vcmp.eq.s32.totalorder %v10191_v6, %v12933_v41  ;;  %v12959_v38 = vpop.permute.xlu1 %2268 }
 0x1f3   :  { %9725 = vset.pattern.permute.xlu1 %v17130_v17  ;;  %v5449_v42 = vadd.f32 %v8902_v1, %v4329_v53  ;;  %v8139_v27 = vsel %vm1326_vm10, 1.0, %v17157_v40  ;;  %v8395_v46 = vsel %vm2446_vm11, 1.0, %v17157_v40  ;;  %vm466_vm13 = vcmp.eq.s32.totalorder %v10195_v43, %v17378_v29  ;;  %6838 = vmatmul.mubr.f32.gmra.mrb[32].mxu1 %v6565_v24  ;;  %17381 = vst [vmem:[#allocation110_spill] sm:$0xff] %v12959_v38 }
 0x1f4   :  { %3412 = vperm.xlu1 %9725, %v12827_v23   ;;  %v2094_v58 = vadd.f32 %v8139_v27, %v7883_v26  ;;  %v8651_v19 = vsel %vm3566_vm12, 1.0, %v17157_v40  ;;  %v7887_v47 = vsel %vm466_vm13, 1.0, %v17157_v40  ;;  %vm1330_vm14 = vcmp.eq.s32.totalorder %v10195_v43, %v17379_v62 }
 0x1f5   :  { %v6569_v37 = vadd.f32 %v9158_v51, %v5449_v42  ;;  %v8143_v32 = vsel %vm1330_vm14, 1.0, %v17157_v40  ;;  %vm2450_vm15 = vcmp.eq.s32.totalorder %v10195_v43, %v11986_v16  ;;  %vm3570_vm0 = vcmp.eq.s32.totalorder %v10195_v43, %v12933_v41  ;;  %v12976_v42 = vpop.permute.xlu0 %3409 }
 0x1f6   :  { %v3214_v33 = vadd.f32 %v8395_v46, %v2094_v58  ;;  %v2098_v48 = vadd.f32 %v8143_v32, %v7887_v47  ;;  %v8399_v53 = vsel %vm2450_vm15, 1.0, %v17157_v40  ;;  %v8655_v1 = vsel %vm3570_vm0, 1.0, %v17157_v40  ;;  %17382 = vst [vmem:[#allocation111_spill] sm:$0xff] %v12976_v42 }
 0x1f7   :  { %7288 = vmatmul.mubr.f32.gmra.mrb[32].mxu0 %v6569_v37  ;;  %vm461_vm1 = vcmp.eq.s32.totalorder %v10179_v60, %v17378_v29  ;;  %vm1325_vm2 = vcmp.eq.s32.totalorder %v10179_v60, %v17379_v62  ;;  %vm2445_vm3 = vcmp.eq.s32.totalorder %v10179_v60, %v11986_v16  ;;  %vm3565_vm5 = vcmp.eq.s32.totalorder %v10179_v60, %v12933_v41 }
 0x1f8   :  { %9726 = vset.pattern.permute.xlu1 %v17123_v31  ;;  %v4334_v24 = vadd.f32 %v8651_v19, %v3214_v33  ;;  %v7882_v51 = vsel %vm461_vm1, 1.0, %v17157_v40  ;;  %v3218_v26 = vadd.f32 %v8399_v53, %v2098_v48  ;;  %v8138_v27 = vsel %vm1325_vm2, 1.0, %v17157_v40  ;;  %v12988_v19 = vpop.permute.xlu1 %4505 }
 0x1f9   :  { %2295 = vperm.xlu1 %9726, %v12923_v63   ;;  %v8394_v58 = vsel %vm2445_vm3, 1.0, %v17157_v40  ;;  %v2093_v46 = vadd.f32 %v8138_v27, %v7882_v51  ;;  %v8650_v37 = vsel %vm3565_vm5, 1.0, %v17157_v40  ;;  %vm465_vm6 = vcmp.eq.s32.totalorder %v10198_v44, %v17378_v29  ;;  %17383 = vst [vmem:[#allocation60_spill] sm:$0xff] %v12988_v19 }
 0x1fa   :  { %vm1329_vm7 = vcmp.eq.s32.totalorder %v10198_v44, %v17379_v62  ;;  %v4338_v47 = vadd.f32 %v8655_v1, %v3218_v26  ;;  %v7886_v33 = vsel %vm465_vm6, 1.0, %v17157_v40  ;;  %vm2449_vm8 = vcmp.eq.s32.totalorder %v10198_v44, %v11986_v16 }
 0x1fb   :  { %v8142_v32 = vsel %vm1329_vm7, 1.0, %v17157_v40  ;;  %vm4686_vm9 = vcmp.eq.s32.totalorder %v10191_v6, %v12988_v19  ;;  %vm4690_vm4 = vcmp.eq.s32.totalorder %v10195_v43, %v12988_v19  ;;  %v3213_v48 = vadd.f32 %v8394_v58, %v2093_v46  ;;  %v13006_v58 = vpop.permute.xlu0 %3418 }
 0x1fc   :  { %vm4685_vm10 = vcmp.eq.s32.totalorder %v10179_v60, %v12988_v19  ;;  %v8907_v53 = vsel %vm4686_vm9, 1.0, %v17157_v40  ;;  %v8911_v1 = vsel %vm4690_vm4, 1.0, %v17157_v40  ;;  %v2097_v26 = vadd.f32 %v8142_v32, %v7886_v33  ;;  %17384 = vst [vmem:[#allocation58_spill] sm:$0xff] %v13006_v58 }
 0x1fd   :  { %9727 = vset.pattern.permute.xlu1 %v17144_v35  ;;  %v8906_v51 = vsel %vm4685_vm10, 1.0, %v17157_v40  ;;  %v5454_v27 = vadd.f32 %v8907_v53, %v4334_v24  ;;  %v5458_v16 = vadd.f32 %v8911_v1, %v4338_v47  ;;  %v4333_v62 = vadd.f32 %v8650_v37, %v3213_v48  ;;  %v13014_v33 = vpop.permute.xlu1 %5625 }
 0x1fe   :  { %4532 = vperm.xlu1 %9727, %v12827_v23   ;;  %v8398_v29 = vsel %vm2449_vm8, 1.0, %v17157_v40  ;;  %vm3569_vm11 = vcmp.eq.s32.totalorder %v10198_v44, %v12933_v41  ;;  %vm4689_vm12 = vcmp.eq.s32.totalorder %v10198_v44, %v12988_v19  ;;  %vm470_vm13 = vcmp.eq.s32.totalorder %v10191_v6, %v17385_v59  ;;  %17386 = vst [vmem:[#allocation65_spill] sm:$0xff] %v13014_v33 }
 0x1ff   :  { %v3217_v46 = vadd.f32 %v8398_v29, %v2097_v26  ;;  %v5453_v32 = vadd.f32 %v8906_v51, %v4333_v62  ;;  %v8654_v24 = vsel %vm3569_vm11, 1.0, %v17157_v40  ;;  %v8910_v37 = vsel %vm4689_vm12, 1.0, %v17157_v40 }
 0x200   :  { %v7891_v47 = vsel %vm470_vm13, 1.0, %v17157_v40  ;;  %vm5806_vm14 = vcmp.eq.s32.totalorder %v10191_v6, %v13014_v33  ;;  %vm5810_vm15 = vcmp.eq.s32.totalorder %v10195_v43, %v13014_v33  ;;  %vm5805_vm0 = vcmp.eq.s32.totalorder %v10179_v60, %v13014_v33 }
 0x201   :  { %v4337_v29 = vadd.f32 %v8654_v24, %v3217_v46  ;;  %v9163_v62 = vsel %vm5806_vm14, 1.0, %v17157_v40  ;;  %v9167_v48 = vsel %vm5810_vm15, 1.0, %v17157_v40  ;;  %v9162_v53 = vsel %vm5805_vm0, 1.0, %v17157_v40  ;;  %v17387_v46 = vld [vmem:[#allocation91_spill] sm:$0xff]  ;;  %v13039_v24 = vpop.permute.xlu0 %4508 }
 0x202   :  { %9728 = vset.pattern.permute.xlu1 %v17130_v17  ;;  %vm5809_vm1 = vcmp.eq.s32.totalorder %v10198_v44, %v13014_v33  ;;  %v6574_v1 = vadd.f32 %v9163_v62, %v5454_v27  ;;  %v6578_v51 = vadd.f32 %v9167_v48, %v5458_v16  ;;  %v6573_v26 = vadd.f32 %v9162_v53, %v5453_v32  ;;  %v13041_v33 = vpop.permute.xlu1 %2271 }
 0x203   :  { %3415 = vperm.xlu1 %9728, %v12923_v63   ;;  %v5457_v19 = vadd.f32 %v8910_v37, %v4337_v29  ;;  %v9166_v41 = vsel %vm5809_vm1, 1.0, %v17157_v40  ;;  %vm1334_vm2 = vcmp.eq.s32.totalorder %v10191_v6, %v17387_v46  ;;  %vm2454_vm3 = vcmp.eq.s32.totalorder %v10191_v6, %v12959_v38  ;;  %17388 = vst [vmem:[#allocation159_spill] sm:$0xff] %v13039_v24 }
 0x204   :  { %vm3574_vm5 = vcmp.eq.s32.totalorder %v10191_v6, %v12908_v9  ;;  %17389 = vst [vmem:[#allocation160_spill] sm:$0xff] %v13041_v33  ;;  %6842 = vmatprep.mubr.f32.mxu1 %v6574_v1  ;;  %7292 = vmatprep.mubr.f32.mxu0 %v6578_v51  ;;  %v8147_v27 = vsel %vm1334_vm2, 1.0, %v17157_v40  ;;  %v8403_v32 = vsel %vm2454_vm3, 1.0, %v17157_v40  ;;  %vm4694_vm6 = vcmp.eq.s32.totalorder %v10191_v6, %v13039_v24 }
 0x205   :  { %v6577_v16 = vadd.f32 %v9166_v41, %v5457_v19  ;;  %v8659_v37 = vsel %vm3574_vm5, 1.0, %v17157_v40  ;;  %6843 = vmatmul.mubr.f32.gmra.mrb[34].mxu1 %v6573_v26  ;;  %v2102_v29 = vadd.f32 %v8147_v27, %v7891_v47  ;;  %vm474_vm7 = vcmp.eq.s32.totalorder %v10195_v43, %v17385_v59 }
 0x206   :  { %vm1338_vm8 = vcmp.eq.s32.totalorder %v10195_v43, %v17387_v46  ;;  %v8915_v41 = vsel %vm4694_vm6, 1.0, %v17157_v40  ;;  %v7895_v19 = vsel %vm474_vm7, 1.0, %v17157_v40  ;;  %vm2458_vm9 = vcmp.eq.s32.totalorder %v10195_v43, %v12959_v38 }
 0x207   :  { %7293 = vmatmul.mubr.f32.gmra.mrb[34].mxu0 %v6577_v16  ;;  %9729 = vset.pattern.permute.xlu1 %v17115_v2  ;;  %v8151_v62 = vsel %vm1338_vm8, 1.0, %v17157_v40  ;;  %v3222_v47 = vadd.f32 %v8403_v32, %v2102_v29  ;;  %v8407_v53 = vsel %vm2458_vm9, 1.0, %v17157_v40  ;;  %vm3578_vm4 = vcmp.eq.s32.totalorder %v10195_v43, %v12908_v9  ;;  %v13069_v51 = vpop.permute.xlu1 %3391 }
 0x208   :  { %5652 = vperm.xlu1 %9729, %v12827_v23   ;;  %v2106_v48 = vadd.f32 %v8151_v62, %v7895_v19  ;;  %v8663_v1 = vsel %vm3578_vm4, 1.0, %v17157_v40  ;;  %vm4698_vm10 = vcmp.eq.s32.totalorder %v10195_v43, %v13039_v24  ;;  %vm469_vm11 = vcmp.eq.s32.totalorder %v10179_v60, %v17385_v59  ;;  %17390 = vst [vmem:[#allocation114_spill] sm:$0xff] %v13069_v51 }
 0x209   :  { %vm1333_vm12 = vcmp.eq.s32.totalorder %v10179_v60, %v17387_v46  ;;  %v4342_v23 = vadd.f32 %v8659_v37, %v3222_v47  ;;  %v8919_v16 = vsel %vm4698_vm10, 1.0, %v17157_v40  ;;  %v7890_v27 = vsel %vm469_vm11, 1.0, %v17157_v40 }
 0x20a   :  { %v3226_v26 = vadd.f32 %v8407_v53, %v2106_v48  ;;  %v8146_v32 = vsel %vm1333_vm12, 1.0, %v17157_v40  ;;  %vm2453_vm13 = vcmp.eq.s32.totalorder %v10179_v60, %v12959_v38  ;;  %vm3573_vm14 = vcmp.eq.s32.totalorder %v10179_v60, %v12908_v9 }
 0x20b   :  { %vm4693_vm15 = vcmp.eq.s32.totalorder %v10179_v60, %v13039_v24  ;;  %v5462_v29 = vadd.f32 %v8915_v41, %v4342_v23  ;;  %v2101_v19 = vadd.f32 %v8146_v32, %v7890_v27  ;;  %v8402_v62 = vsel %vm2453_vm13, 1.0, %v17157_v40 }
 0x20c   :  { %9731 = vset.pattern.permute.xlu1 %v17144_v35  ;;  %v4346_v37 = vadd.f32 %v8663_v1, %v3226_v26  ;;  %v8658_v47 = vsel %vm3573_vm14, 1.0, %v17157_v40  ;;  %v8914_v48 = vsel %vm4693_vm15, 1.0, %v17157_v40  ;;  %vm473_vm0 = vcmp.eq.s32.totalorder %v10198_v44, %v17385_v59  ;;  %v13091_v23 = vpop.permute.xlu1 %5628  ;;  %v17392_v59 = vld [vmem:[#allocation26_spill] sm:$0xff] }
 0x20d   :  { %4535 = vperm.xlu1 %9731, %v12923_v63   ;;  %vm1337_vm1 = vcmp.eq.s32.totalorder %v10198_v44, %v17387_v46  ;;  %v3221_v22 = vadd.f32 %v8402_v62, %v2101_v19  ;;  %v7894_v41 = vsel %vm473_vm0, 1.0, %v17157_v40  ;;  %17391 = vst [vmem:[#allocation115_spill] sm:$0xff] %v13091_v23  ;;  %vm2457_vm2 = vcmp.eq.s32.totalorder %v10198_v44, %v12959_v38  ;;  %v13113_v62 = vld [vmem:[%s16712_s0 + $0xe8] sm:$0xff] }
 0x20e   :  { %v5466_v53 = vadd.f32 %v8919_v16, %v4346_v37  ;;  %v8150_v1 = vsel %vm1337_vm1, 1.0, %v17157_v40  ;;  %vm3577_vm3 = vcmp.eq.s32.totalorder %v10198_v44, %v12908_v9  ;;  %vm4697_vm5 = vcmp.eq.s32.totalorder %v10198_v44, %v13039_v24 }
 0x20f   :  { %v2105_v26 = vadd.f32 %v8150_v1, %v7894_v41  ;;  %vm5814_vm6 = vcmp.eq.s32.totalorder %v10191_v6, %v13091_v23  ;;  %vm5818_vm7 = vcmp.eq.s32.totalorder %v10195_v43, %v13091_v23  ;;  %v4341_v16 = vadd.f32 %v8658_v47, %v3221_v22 }
 0x210   :  { %vm5813_vm8 = vcmp.eq.s32.totalorder %v10179_v60, %v13091_v23  ;;  %v9171_v27 = vsel %vm5814_vm6, 1.0, %v17157_v40  ;;  %v9175_v32 = vsel %vm5818_vm7, 1.0, %v17157_v40  ;;  %v8406_v19 = vsel %vm2457_vm2, 1.0, %v17157_v40 }
 0x211   :  { %9732 = vset.pattern.permute.xlu1 %v17371_v30  ;;  %v9170_v37 = vsel %vm5813_vm8, 1.0, %v17157_v40  ;;  %v6582_v22 = vadd.f32 %v9171_v27, %v5462_v29  ;;  %v6586_v47 = vadd.f32 %v9175_v32, %v5466_v53  ;;  %v5461_v41 = vadd.f32 %v8914_v48, %v4341_v16  ;;  %v13128_v29 = vpop.permute.xlu1 %4511  ;;  %v17394_v27 = vld [vmem:[#allocation154_spill] sm:$0xff] }
 0x212   :  { %1181 = vperm.xlu1 %9732, %v13113_v62   ;;  %v3225_v1 = vadd.f32 %v8406_v19, %v2105_v26  ;;  %v8662_v38 = vsel %vm3577_vm3, 1.0, %v17157_v40  ;;  %v8918_v46 = vsel %vm4697_vm5, 1.0, %v17157_v40  ;;  %vm5817_vm9 = vcmp.eq.s32.totalorder %v10198_v44, %v13091_v23  ;;  %17393 = vst [vmem:[#allocation67_spill] sm:$0xff] %v13128_v29 }
 0x213   :  { %vm478_vm4 = vcmp.eq.s32.totalorder %v10191_v6, %v17392_v59  ;;  %6847 = vmatprep.mubr.f32.mxu1 %v6582_v22  ;;  %7297 = vmatprep.mubr.f32.mxu0 %v6586_v47  ;;  %v6581_v48 = vadd.f32 %v9170_v37, %v5461_v41  ;;  %v9174_v26 = vsel %vm5817_vm9, 1.0, %v17157_v40  ;;  %vm1342_vm10 = vcmp.eq.s32.totalorder %v10191_v6, %v17394_v27  ;;  %v17395_v41 = vld [vmem:[#allocation128_spill] sm:$0xff] }
 0x214   :  { %v4345_v53 = vadd.f32 %v8662_v38, %v3225_v1  ;;  %v7899_v16 = vsel %vm478_vm4, 1.0, %v17157_v40  ;;  %vm2462_vm11 = vcmp.eq.s32.totalorder %v10191_v6, %v13041_v33  ;;  %vm3582_vm12 = vcmp.eq.s32.totalorder %v10191_v6, %v13069_v51 }
 0x215   :  { %vm4702_vm13 = vcmp.eq.s32.totalorder %v10191_v6, %v13128_v29  ;;  %6848 = vmatmul.mubr.f32.gmra.mrb[36].mxu1 %v6581_v48  ;;  %v8155_v38 = vsel %vm1342_vm10, 1.0, %v17157_v40  ;;  %v8411_v37 = vsel %vm2462_vm11, 1.0, %v17157_v40  ;;  %v8667_v19 = vsel %vm3582_vm12, 1.0, %v17157_v40 }
 0x216   :  { %v5465_v32 = vadd.f32 %v8918_v46, %v4345_v53  ;;  %9734 = vset.pattern.permute.xlu1 %v17115_v2  ;;  %v2110_v22 = vadd.f32 %v8155_v38, %v7899_v16  ;;  %v8923_v47 = vsel %vm4702_vm13, 1.0, %v17157_v40  ;;  %vm5822_vm14 = vcmp.eq.s32.totalorder %v10191_v6, %v17395_v41  ;;  %v13154_v53 = vpop.permute.xlu1 %3394 }
 0x217   :  { %5655 = vperm.xlu1 %9734, %v12923_v63   ;;  %vm482_vm15 = vcmp.eq.s32.totalorder %v10195_v43, %v17392_v59  ;;  %v9179_v1 = vsel %vm5822_vm14, 1.0, %v17157_v40  ;;  %vm1346_vm0 = vcmp.eq.s32.totalorder %v10195_v43, %v17394_v27  ;;  %17396 = vst [vmem:[#allocation118_spill] sm:$0xff] %v13154_v53  ;;  %vm2466_vm1 = vcmp.eq.s32.totalorder %v10195_v43, %v13041_v33 }
 0x218   :  { %v6585_v46 = vadd.f32 %v9174_v26, %v5465_v32  ;;  %v7903_v48 = vsel %vm482_vm15, 1.0, %v17157_v40  ;;  %v3230_v63 = vadd.f32 %v8411_v37, %v2110_v22  ;;  %v8159_v16 = vsel %vm1346_vm0, 1.0, %v17157_v40 }
 0x219   :  { %vm3586_vm2 = vcmp.eq.s32.totalorder %v10195_v43, %v13069_v51  ;;  %v2114_v26 = vadd.f32 %v8159_v16, %v7903_v48  ;;  %v8415_v32 = vsel %vm2466_vm1, 1.0, %v17157_v40  ;;  %vm4706_vm3 = vcmp.eq.s32.totalorder %v10195_v43, %v13128_v29 }
 0x21a   :  { %7298 = vmatmul.mubr.f32.gmra.mrb[36].mxu0 %v6585_v46  ;;  %v8671_v38 = vsel %vm3586_vm2, 1.0, %v17157_v40  ;;  %v4350_v37 = vadd.f32 %v8667_v19, %v3230_v63  ;;  %v8927_v22 = vsel %vm4706_vm3, 1.0, %v17157_v40  ;;  %vm5826_vm5 = vcmp.eq.s32.totalorder %v10195_v43, %v17395_v41 }
 0x21b   :  { %9735 = vset.pattern.permute.xlu1 %v17123_v31  ;;  %vm477_vm6 = vcmp.eq.s32.totalorder %v10179_v60, %v17392_v59  ;;  %v3234_v46 = vadd.f32 %v8415_v32, %v2114_v26  ;;  %v9183_v48 = vsel %vm5826_vm5, 1.0, %v17157_v40  ;;  %vm1341_vm7 = vcmp.eq.s32.totalorder %v10179_v60, %v17394_v27  ;;  %v13183_v9 = vpop.permute.xlu1 %2277 }
 0x21c   :  { %2301 = vperm.xlu1 %9735, %v13113_v62   ;;  %v7898_v16 = vsel %vm477_vm6, 1.0, %v17157_v40  ;;  %v5470_v23 = vadd.f32 %v8923_v47, %v4350_v37  ;;  %v8154_v19 = vsel %vm1341_vm7, 1.0, %v17157_v40  ;;  %vm2461_vm8 = vcmp.eq.s32.totalorder %v10179_v60, %v13041_v33  ;;  %17397 = vst [vmem:[#allocation119_spill] sm:$0xff] %v13183_v9 }
 0x21d   :  { %vm3581_vm9 = vcmp.eq.s32.totalorder %v10179_v60, %v13069_v51  ;;  %v4354_v63 = vadd.f32 %v8671_v38, %v3234_v46  ;;  %v2109_v26 = vadd.f32 %v8154_v19, %v7898_v16  ;;  %v8410_v32 = vsel %vm2461_vm8, 1.0, %v17157_v40 }
 0x21e   :  { %v8666_v24 = vsel %vm3581_vm9, 1.0, %v17157_v40  ;;  %v6590_v21 = vadd.f32 %v9179_v1, %v5470_v23  ;;  %vm4701_vm4 = vcmp.eq.s32.totalorder %v10179_v60, %v13128_v29  ;;  %vm5821_vm10 = vcmp.eq.s32.totalorder %v10179_v60, %v17395_v41  ;;  %v13204_v1 = vld [vmem:[%s16712_s0 + $0xf0] sm:$0xff] }
 0x21f   :  { %vm481_vm11 = vcmp.eq.s32.totalorder %v10198_v44, %v17392_v59  ;;  %v5474_v47 = vadd.f32 %v8927_v22, %v4354_v63  ;;  %v3229_v37 = vadd.f32 %v8410_v32, %v2109_v26  ;;  %v8922_v38 = vsel %vm4701_vm4, 1.0, %v17157_v40  ;;  %v158_v59 = vld [vmem:[#allocation2 + $0x320] sm:$0xff] }
 0x220   :  { %v9178_v46 = vsel %vm5821_vm10, 1.0, %v17157_v40  ;;  %9737 = vset.pattern.permute.xlu1 %v17371_v30  ;;  %6852 = vmatprep.mubr.f32.mxu1 %v6590_v21  ;;  %v7902_v23 = vsel %vm481_vm11, 1.0, %v17157_v40  ;;  %vm1345_vm12 = vcmp.eq.s32.totalorder %v10198_v44, %v17394_v27  ;;  %vm2465_vm13 = vcmp.eq.s32.totalorder %v10198_v44, %v13041_v33 }
 0x221   :  { %vm3585_vm14 = vcmp.eq.s32.totalorder %v10198_v44, %v13069_v51  ;;  %1184 = vperm.xlu1 %9737, %v13204_v1   ;;  %v6594_v30 = vadd.f32 %v9183_v48, %v5474_v47  ;;  %v4349_v21 = vadd.f32 %v8666_v24, %v3229_v37  ;;  %v8158_v22 = vsel %vm1345_vm12, 1.0, %v17157_v40  ;;  %v13214_v26 = vpop.permute.xlu1 %4514  ;;  %v17399_v47 = vld [vmem:[#allocation29_spill] sm:$0xff] }
 0x222   :  { %v8414_v16 = vsel %vm2465_vm13, 1.0, %v17157_v40  ;;  %v2113_v19 = vadd.f32 %v8158_v22, %v7902_v23  ;;  %v8670_v63 = vsel %vm3585_vm14, 1.0, %v17157_v40  ;;  %vm4705_vm15 = vcmp.eq.s32.totalorder %v10198_v44, %v13128_v29  ;;  %17398 = vst [vmem:[#allocation68_spill] sm:$0xff] %v13214_v26  ;;  %v17400_v22 = vld [vmem:[#allocation97_spill] sm:$0xff] }
 0x223   :  { %vm5825_vm0 = vcmp.eq.s32.totalorder %v10198_v44, %v17395_v41  ;;  %7302 = vmatprep.mubr.f32.mxu0 %v6594_v30  ;;  %v5469_v32 = vadd.f32 %v8922_v38, %v4349_v21  ;;  %v8926_v48 = vsel %vm4705_vm15, 1.0, %v17157_v40  ;;  %vm486_vm1 = vcmp.eq.s32.totalorder %v10191_v6, %v17399_v47 }
 0x224   :  { %v9182_v24 = vsel %vm5825_vm0, 1.0, %v17157_v40  ;;  %v3233_v37 = vadd.f32 %v8414_v16, %v2113_v19  ;;  %v7907_v23 = vsel %vm486_vm1, 1.0, %v17157_v40  ;;  %vm1350_vm2 = vcmp.eq.s32.totalorder %v10191_v6, %v17400_v22 }
 0x225   :  { %9738 = vset.pattern.permute.xlu1 %v17130_v17  ;;  %vm2470_vm3 = vcmp.eq.s32.totalorder %v10191_v6, %v12017_v45  ;;  %v6589_v30 = vadd.f32 %v9178_v46, %v5469_v32  ;;  %v8163_v38 = vsel %vm1350_vm2, 1.0, %v17157_v40  ;;  %vm3590_vm5 = vcmp.eq.s32.totalorder %v10191_v6, %v13154_v53 }
 0x226   :  { %3421 = vperm.xlu1 %9738, %v13113_v62   ;;  %v8419_v21 = vsel %vm2470_vm3, 1.0, %v17157_v40  ;;  %v4353_v16 = vadd.f32 %v8670_v63, %v3233_v37  ;;  %v2118_v19 = vadd.f32 %v8163_v38, %v7907_v23  ;;  %v8675_v41 = vsel %vm3590_vm5, 1.0, %v17157_v40  ;;  %v13234_v29 = vpop.permute.xlu1 %5634 }
 0x227   :  { %vm4710_vm6 = vcmp.eq.s32.totalorder %v10191_v6, %v13214_v26  ;;  %6853 = vmatmul.mubr.f32.gmra.mrb[38].mxu1 %v6589_v30  ;;  %17401 = vst [vmem:[#allocation69_spill] sm:$0xff] %v13234_v29  ;;  %vm490_vm7 = vcmp.eq.s32.totalorder %v10195_v43, %v17399_v47  ;;  %vm1354_vm8 = vcmp.eq.s32.totalorder %v10195_v43, %v17400_v22 }
 0x228   :  { %v8931_v46 = vsel %vm4710_vm6, 1.0, %v17157_v40  ;;  %vm2474_vm9 = vcmp.eq.s32.totalorder %v10195_v43, %v12017_v45  ;;  %v5473_v63 = vadd.f32 %v8926_v48, %v4353_v16  ;;  %v3238_v32 = vadd.f32 %v8419_v21, %v2118_v19 }
 0x229   :  { %vm5830_vm4 = vcmp.eq.s32.totalorder %v10191_v6, %v13234_v29  ;;  %v7911_v37 = vsel %vm490_vm7, 1.0, %v17157_v40  ;;  %v8167_v30 = vsel %vm1354_vm8, 1.0, %v17157_v40  ;;  %v8423_v38 = vsel %vm2474_vm9, 1.0, %v17157_v40 }
 0x22a   :  { %9740 = vset.pattern.permute.xlu1 %v17123_v31  ;;  %v9187_v23 = vsel %vm5830_vm4, 1.0, %v17157_v40  ;;  %vm3594_vm10 = vcmp.eq.s32.totalorder %v10195_v43, %v13154_v53  ;;  %v6593_v51 = vadd.f32 %v9182_v24, %v5473_v63  ;;  %v4358_v48 = vadd.f32 %v8675_v41, %v3238_v32 }
 0x22b   :  { %2304 = vperm.xlu1 %9740, %v13204_v1   ;;  %v2122_v21 = vadd.f32 %v8167_v30, %v7911_v37  ;;  %v8679_v16 = vsel %vm3594_vm10, 1.0, %v17157_v40  ;;  %vm4714_vm11 = vcmp.eq.s32.totalorder %v10195_v43, %v13214_v26  ;;  %vm5834_vm12 = vcmp.eq.s32.totalorder %v10195_v43, %v13234_v29  ;;  %v13262_v31 = vpop.permute.xlu1 %2280 }
 0x22c   :  { %vm485_vm13 = vcmp.eq.s32.totalorder %v10179_v60, %v17399_v47  ;;  %vm1349_vm14 = vcmp.eq.s32.totalorder %v10179_v60, %v17400_v22  ;;  %7303 = vmatmul.mubr.f32.gmra.mrb[38].mxu0 %v6593_v51  ;;  %17402 = vst [vmem:[#allocation71_spill] sm:$0xff] %v13262_v31  ;;  %v5478_v24 = vadd.f32 %v8931_v46, %v4358_v48  ;;  %v8935_v19 = vsel %vm4714_vm11, 1.0, %v17157_v40 }
 0x22d   :  { %v3242_v41 = vadd.f32 %v8423_v38, %v2122_v21  ;;  %v9191_v63 = vsel %vm5834_vm12, 1.0, %v17157_v40  ;;  %v7906_v32 = vsel %vm485_vm13, 1.0, %v17157_v40  ;;  %v8162_v37 = vsel %vm1349_vm14, 1.0, %v17157_v40 }
 0x22e   :  { %vm2469_vm15 = vcmp.eq.s32.totalorder %v10179_v60, %v12017_v45  ;;  %vm3589_vm0 = vcmp.eq.s32.totalorder %v10179_v60, %v13154_v53  ;;  %v6598_v30 = vadd.f32 %v9187_v23, %v5478_v24  ;;  %v2117_v33 = vadd.f32 %v8162_v37, %v7906_v32 }
 0x22f   :  { %v4362_v51 = vadd.f32 %v8679_v16, %v3242_v41  ;;  %v8418_v46 = vsel %vm2469_vm15, 1.0, %v17157_v40  ;;  %9741 = vset.pattern.permute.xlu1 %v17144_v35  ;;  %v8674_v38 = vsel %vm3589_vm0, 1.0, %v17157_v40  ;;  %vm4709_vm1 = vcmp.eq.s32.totalorder %v10179_v60, %v13214_v26 }
 0x230   :  { %vm5829_vm2 = vcmp.eq.s32.totalorder %v10179_v60, %v13234_v29  ;;  %vm489_vm3 = vcmp.eq.s32.totalorder %v10198_v44, %v17399_v47  ;;  %4541 = vperm.xlu1 %9741, %v13113_v62   ;;  %6857 = vmatprep.mubr.f32.mxu1 %v6598_v30  ;;  %v3237_v48 = vadd.f32 %v8418_v46, %v2117_v33  ;;  %v8930_v21 = vsel %vm4709_vm1, 1.0, %v17157_v40  ;;  %v13291_v41 = vpop.permute.xlu1 %3400 }
 0x231   :  { %v5482_v23 = vadd.f32 %v8935_v19, %v4362_v51  ;;  %v9186_v16 = vsel %vm5829_vm2, 1.0, %v17157_v40  ;;  %v7910_v24 = vsel %vm489_vm3, 1.0, %v17157_v40  ;;  %vm1353_vm5 = vcmp.eq.s32.totalorder %v10198_v44, %v17400_v22  ;;  %17403 = vst [vmem:[#allocation120_spill] sm:$0xff] %v13291_v41 }
 0x232   :  { %vm2473_vm6 = vcmp.eq.s32.totalorder %v10198_v44, %v12017_v45  ;;  %vm3593_vm7 = vcmp.eq.s32.totalorder %v10198_v44, %v13154_v53  ;;  %v4357_v19 = vadd.f32 %v8674_v38, %v3237_v48  ;;  %v8166_v33 = vsel %vm1353_vm5, 1.0, %v17157_v40 }
 0x233   :  { %v6602_v32 = vadd.f32 %v9191_v63, %v5482_v23  ;;  %v8422_v37 = vsel %vm2473_vm6, 1.0, %v17157_v40  ;;  %v2121_v30 = vadd.f32 %v8166_v33, %v7910_v24  ;;  %v8678_v51 = vsel %vm3593_vm7, 1.0, %v17157_v40  ;;  %v17404_v23 = vld [vmem:[#allocation28_spill] sm:$0xff]  ;;  %v17405_v33 = vld [vmem:[#allocation157_spill] sm:$0xff] }
 0x234   :  { %vm4713_vm8 = vcmp.eq.s32.totalorder %v10198_v44, %v13214_v26  ;;  %vm5833_vm9 = vcmp.eq.s32.totalorder %v10198_v44, %v13234_v29  ;;  %9742 = vset.pattern.permute.xlu1 %v17130_v17  ;;  %v5477_v46 = vadd.f32 %v8930_v21, %v4357_v19  ;;  %vm494_vm4 = vcmp.eq.s32.totalorder %v10191_v6, %v17404_v23 }
 0x235   :  { %7307 = vmatprep.mubr.f32.mxu0 %v6602_v32  ;;  %v8934_v63 = vsel %vm4713_vm8, 1.0, %v17157_v40  ;;  %v9190_v38 = vsel %vm5833_vm9, 1.0, %v17157_v40  ;;  %3424 = vperm.xlu1 %9742, %v13204_v1   ;;  %v3241_v48 = vadd.f32 %v8422_v37, %v2121_v30  ;;  %v7915_v24 = vsel %vm494_vm4, 1.0, %v17157_v40  ;;  %v13311_v32 = vpop.permute.xlu0 %4517  ;;  %v13313_v19 = vpop.permute.xlu1 %5637 }
 0x236   :  { %vm1358_vm10 = vcmp.eq.s32.totalorder %v10191_v6, %v17405_v33  ;;  %vm2478_vm11 = vcmp.eq.s32.totalorder %v10191_v6, %v13183_v9  ;;  %17406 = vst [vmem:[#allocation121_spill] sm:$0xff] %v13311_v32  ;;  %v6597_v21 = vadd.f32 %v9186_v16, %v5477_v46  ;;  %17407 = vst [vmem:[#allocation123_spill] sm:$0xff] %v13313_v19 }
 0x237   :  { %v8171_v29 = vsel %vm1358_vm10, 1.0, %v17157_v40  ;;  %v8427_v26 = vsel %vm2478_vm11, 1.0, %v17157_v40  ;;  %vm3598_vm12 = vcmp.eq.s32.totalorder %v10191_v6, %v12942_v61  ;;  %v4361_v37 = vadd.f32 %v8678_v51, %v3241_v48 }
 0x238   :  { %v2126_v30 = vadd.f32 %v8171_v29, %v7915_v24  ;;  %v8683_v53 = vsel %vm3598_vm12, 1.0, %v17157_v40  ;;  %vm4718_vm13 = vcmp.eq.s32.totalorder %v10191_v6, %v13311_v32  ;;  %6858 = vmatmul.mubr.f32.gmra.mrb[40].mxu1 %v6597_v21  ;;  %vm5838_vm14 = vcmp.eq.s32.totalorder %v10191_v6, %v13313_v19 }
 0x239   :  { %9743 = vset.pattern.permute.xlu1 %v17115_v2  ;;  %v8939_v16 = vsel %vm4718_vm13, 1.0, %v17157_v40  ;;  %vm498_vm15 = vcmp.eq.s32.totalorder %v10195_v43, %v17404_v23  ;;  %vm1362_vm0 = vcmp.eq.s32.totalorder %v10195_v43, %v17405_v33  ;;  %v5481_v29 = vadd.f32 %v8934_v63, %v4361_v37 }
 0x23a   :  { %5661 = vperm.xlu1 %9743, %v13113_v62   ;;  %v3246_v51 = vadd.f32 %v8427_v26, %v2126_v30  ;;  %v9195_v46 = vsel %vm5838_vm14, 1.0, %v17157_v40  ;;  %v7919_v48 = vsel %vm498_vm15, 1.0, %v17157_v40  ;;  %v8175_v24 = vsel %vm1362_vm0, 1.0, %v17157_v40  ;;  %v13340_v63 = vpop.permute.xlu1 %4520  ;;  %v13343_v30 = vpop.permute.xlu0 %4529 }
 0x23b   :  { %vm2482_vm1 = vcmp.eq.s32.totalorder %v10195_v43, %v13183_v9  ;;  %vm3602_vm2 = vcmp.eq.s32.totalorder %v10195_v43, %v12942_v61  ;;  %vm4722_vm3 = vcmp.eq.s32.totalorder %v10195_v43, %v13311_v32  ;;  %v6601_v21 = vadd.f32 %v9190_v38, %v5481_v29  ;;  %17408 = vst [vmem:[#allocation124_spill] sm:$0xff] %v13340_v63 }
 0x23c   :  { %v4366_v62 = vadd.f32 %v8683_v53, %v3246_v51  ;;  %v2130_v26 = vadd.f32 %v8175_v24, %v7919_v48  ;;  %v8431_v37 = vsel %vm2482_vm1, 1.0, %v17157_v40  ;;  %v8687_v45 = vsel %vm3602_vm2, 1.0, %v17157_v40 }
 0x23d   :  { %v8943_v22 = vsel %vm4722_vm3, 1.0, %v17157_v40  ;;  %vm5842_vm5 = vcmp.eq.s32.totalorder %v10195_v43, %v13313_v19  ;;  %vm493_vm6 = vcmp.eq.s32.totalorder %v10179_v60, %v17404_v23  ;;  %7308 = vmatmul.mubr.f32.gmra.mrb[40].mxu0 %v6601_v21  ;;  %vm1357_vm7 = vcmp.eq.s32.totalorder %v10179_v60, %v17405_v33 }
 0x23e   :  { %v5486_v38 = vadd.f32 %v8939_v16, %v4366_v62  ;;  %v3250_v29 = vadd.f32 %v8431_v37, %v2130_v26  ;;  %v9199_v53 = vsel %vm5842_vm5, 1.0, %v17157_v40  ;;  %v7914_v51 = vsel %vm493_vm6, 1.0, %v17157_v40  ;;  %9745 = vset.pattern.permute.xlu1 %v17144_v35 }
 0x23f   :  { %vm2477_vm8 = vcmp.eq.s32.totalorder %v10179_v60, %v13183_v9  ;;  %vm3597_vm9 = vcmp.eq.s32.totalorder %v10179_v60, %v12942_v61  ;;  %vm4717_vm4 = vcmp.eq.s32.totalorder %v10179_v60, %v13311_v32  ;;  %4544 = vperm.xlu1 %9745, %v13204_v1   ;;  %v8170_v24 = vsel %vm1357_vm7, 1.0, %v17157_v40  ;;  %v13369_v47 = vpop.permute.xlu1 %3403 }
 0x240   :  { %v6606_v16 = vadd.f32 %v9195_v46, %v5486_v38  ;;  %v4370_v48 = vadd.f32 %v8687_v45, %v3250_v29  ;;  %v8426_v21 = vsel %vm2477_vm8, 1.0, %v17157_v40  ;;  %v2125_v62 = vadd.f32 %v8170_v24, %v7914_v51  ;;  %17409 = vst [vmem:[#allocation72_spill] sm:$0xff] %v13369_v47  ;;  %v13376_v45 = vpop.permute.xlu0 %4538 }
 0x241   :  { %v8682_v26 = vsel %vm3597_vm9, 1.0, %v17157_v40  ;;  %v8938_v37 = vsel %vm4717_vm4, 1.0, %v17157_v40  ;;  %vm5837_vm10 = vcmp.eq.s32.totalorder %v10179_v60, %v13313_v19  ;;  %vm497_vm11 = vcmp.eq.s32.totalorder %v10198_v44, %v17404_v23  ;;  %17410 = vst [vmem:[#allocation73_spill] sm:$0xff] %v13376_v45  ;;  %v95_v23 = vld [vmem:[#allocation2 + $0x128] sm:$0xff] }
 0x242   :  { %6862 = vmatprep.mubr.f32.mxu1 %v6606_v16  ;;  %v5490_v27 = vadd.f32 %v8943_v22, %v4370_v48  ;;  %v9194_v1 = vsel %vm5837_vm10, 1.0, %v17157_v40  ;;  %vm1361_vm12 = vcmp.eq.s32.totalorder %v10198_v44, %v17405_v33  ;;  %v3245_v46 = vadd.f32 %v8426_v21, %v2125_v62  ;;  %v9779_v48 = vld [vmem:[%s16712_s0 + $0xf8] sm:$0xff]  ;;  %v17418_v33 = vld [vmem:[#allocation30_spill] sm:$0xff]  ;;  %s9839_s0 = smov [#allocation5]  }
 0x243   :  { %v7918_v38 = vsel %vm497_vm11, 1.0, %v17157_v40  ;;  %v8174_v29 = vsel %vm1361_vm12, 1.0, %v17157_v40  ;;  %vm2481_vm13 = vcmp.eq.s32.totalorder %v10198_v44, %v13183_v9  ;;  %9746 = vset.pattern.permute.xlu1 %v17130_v17  ;;  %vm3601_vm14 = vcmp.eq.s32.totalorder %v10198_v44, %v12942_v61  ;;  %v17411_v62 = vld [vmem:[#allocation31_spill] sm:$0xff]  ;;  %s7734_s10 = sshll.u32 %s9839_s0, 4  ;;  %s7735_s10 = int_to_ptr.vmem [resolvable:$true] %s7734_s10 }
 0x244   :  { %v6610_v22 = vadd.f32 %v9199_v53, %v5490_v27  ;;  %v2129_v51 = vadd.f32 %v8174_v29, %v7918_v38  ;;  %v8430_v16 = vsel %vm2481_vm13, 1.0, %v17157_v40  ;;  %3427 = vperm.xlu1 %9746, %v9779_v48   ;;  %v4365_v24 = vadd.f32 %v8682_v26, %v3245_v46  ;;  %v13398_v38 = vpop.permute.xlu1 %2286  ;;  %v17413_v29 = vld [vmem:[#allocation103_spill] sm:$0xff]  ;;  %s9802_s11 = scalar_lea.vmem %s7735_s10, 4096  ;;  %p9807_p9 = scmp.lt.s32.totalorder %s7735_s10, %s7735_s10 }
 0x245   :  { %v8686_v21 = vsel %vm3601_vm14, 1.0, %v17157_v40  ;;  %vm4721_vm15 = vcmp.eq.s32.totalorder %v10198_v44, %v13311_v32  ;;  %vm5841_vm0 = vcmp.eq.s32.totalorder %v10198_v44, %v13313_v19  ;;  %vm502_vm1 = vcmp.eq.s32.totalorder %v10191_v6, %v17411_v62  ;;  %17412 = vst [vmem:[#allocation74_spill] sm:$0xff] %v13398_v38  ;;  %v13410_v19 = vpop.permute.xlu0 %5640  ;;  %p9803_p8 = scmp.ne.s32.totalorder %s7735_s10, %s9802_s11  ;;  %p9808_p10 = scmp.lt.s32.totalorder %s9802_s11, %s9802_s11 }
 0x246   :  { %7312 = vmatprep.mubr.f32.mxu0 %v6610_v22  ;;  %v3249_v17 = vadd.f32 %v8430_v16, %v2129_v51  ;;  %v8942_v27 = vsel %vm4721_vm15, 1.0, %v17157_v40  ;;  %v9198_v53 = vsel %vm5841_vm0, 1.0, %v17157_v40  ;;  %v5485_v26 = vadd.f32 %v8938_v37, %v4365_v24  ;;  %17414 = vst [vmem:[#allocation76_spill] sm:$0xff] %v13410_v19 }
 0x247   :  { %v7923_v46 = vsel %vm502_vm1, 1.0, %v17157_v40  ;;  %vm1366_vm2 = vcmp.eq.s32.totalorder %v10191_v6, %v17413_v29  ;;  %vm2486_vm3 = vcmp.eq.s32.totalorder %v10191_v6, %v13262_v31  ;;  %vm3606_vm5 = vcmp.eq.s32.totalorder %v10191_v6, %v13291_v41  ;;  %p9809_p11 = por %p9808_p10, %p9807_p9 }
 0x248   :  { %v4369_v22 = vadd.f32 %v8686_v21, %v3249_v17  ;;  %v8179_v51 = vsel %vm1366_vm2, 1.0, %v17157_v40  ;;  %v8435_v16 = vsel %vm2486_vm3, 1.0, %v17157_v40  ;;  %9748 = vset.pattern.permute.xlu1 %v17144_v35  ;;  %v6605_v37 = vadd.f32 %v9194_v1, %v5485_v26 }
 0x249   :  { %v2134_v24 = vadd.f32 %v8179_v51, %v7923_v46  ;;  %v8691_v32 = vsel %vm3606_vm5, 1.0, %v17157_v40  ;;  %vm4726_vm6 = vcmp.eq.s32.totalorder %v10191_v6, %v13340_v63  ;;  %4547 = vperm.xlu1 %9748, %v9779_v48   ;;  %vm5846_vm7 = vcmp.eq.s32.totalorder %v10191_v6, %v13410_v19  ;;  %p9810_p12 = pnand %p9809_p11, %p9803_p8 }
 0x24a   :  { %v5489_v21 = vadd.f32 %v8942_v27, %v4369_v22  ;;  %v8947_v17 = vsel %vm4726_vm6, 1.0, %v17157_v40  ;;  %vm506_vm8 = vcmp.eq.s32.totalorder %v10195_v43, %v17411_v62  ;;  %6863 = vmatmul.mubr.f32.gmra.mrb[42].mxu1 %v6605_v37  ;;  %v9203_v1 = vsel %vm5846_vm7, 1.0, %v17157_v40  ;;  %v13424_v46 = vpop.permute.xlu1 %4523 }
 0x24b   :  { %v3254_v35 = vadd.f32 %v8435_v16, %v2134_v24  ;;  %v7927_v26 = vsel %vm506_vm8, 1.0, %v17157_v40  ;;  %vm1370_vm9 = vcmp.eq.s32.totalorder %v10195_v43, %v17413_v29  ;;  %17415 = vst [vmem:[#allocation134_spill] sm:$0xff] %v13424_v46  ;;  %vm2490_vm4 = vcmp.eq.s32.totalorder %v10195_v43, %v13262_v31 }
 0x24c   :  { %v6609_v27 = vadd.f32 %v9198_v53, %v5489_v21  ;;  %v8183_v22 = vsel %vm1370_vm9, 1.0, %v17157_v40  ;;  %vm3610_vm10 = vcmp.eq.s32.totalorder %v10195_v43, %v13291_v41  ;;  %v8439_v37 = vsel %vm2490_vm4, 1.0, %v17157_v40 }
 0x24d   :  { %v4374_v51 = vadd.f32 %v8691_v32, %v3254_v35  ;;  %v2138_v16 = vadd.f32 %v8183_v22, %v7927_v26  ;;  %v8695_v24 = vsel %vm3610_vm10, 1.0, %v17157_v40  ;;  %9749 = vset.pattern.permute.xlu1 %v17115_v2  ;;  %vm4730_vm11 = vcmp.eq.s32.totalorder %v10195_v43, %v13340_v63 }
 0x24e   :  { %7313 = vmatmul.mubr.f32.gmra.mrb[42].mxu0 %v6609_v27  ;;  %vm5850_vm12 = vcmp.eq.s32.totalorder %v10195_v43, %v13410_v19  ;;  %vm501_vm13 = vcmp.eq.s32.totalorder %v10179_v60, %v17411_v62  ;;  %vm1365_vm14 = vcmp.eq.s32.totalorder %v10179_v60, %v17413_v29  ;;  %v8951_v21 = vsel %vm4730_vm11, 1.0, %v17157_v40  ;;  %5667 = vperm.xlu1 %9749, %v9779_v48  }
 0x24f   :  { %v5494_v32 = vadd.f32 %v8947_v17, %v4374_v51  ;;  %v3258_v53 = vadd.f32 %v8439_v37, %v2138_v16  ;;  %v9207_v35 = vsel %vm5850_vm12, 1.0, %v17157_v40  ;;  %v7922_v2 = vsel %vm501_vm13, 1.0, %v17157_v40  ;;  %v13450_v27 = vpop.permute.xlu1 %3406 }
 0x250   :  { %v8178_v26 = vsel %vm1365_vm14, 1.0, %v17157_v40  ;;  %vm2485_vm15 = vcmp.eq.s32.totalorder %v10179_v60, %v13262_v31  ;;  %vm3605_vm0 = vcmp.eq.s32.totalorder %v10179_v60, %v13291_v41  ;;  %17416 = vst [vmem:[#allocation38_spill] sm:$0xff] %v13450_v27  ;;  %vm4725_vm1 = vcmp.eq.s32.totalorder %v10179_v60, %v13340_v63 }
 0x251   :  { %v6614_v22 = vadd.f32 %v9203_v1, %v5494_v32  ;;  %v4378_v17 = vadd.f32 %v8695_v24, %v3258_v53  ;;  %v2133_v51 = vadd.f32 %v8178_v26, %v7922_v2  ;;  %v8434_v16 = vsel %vm2485_vm15, 1.0, %v17157_v40  ;;  %v90_v53 = vld [vmem:[#allocation2 + $0x100] sm:$0xff]  ;;  %v91_v2 = vld [vmem:[#allocation2 + $0x108] sm:$0xff] }
 0x252   :  { %v8690_v37 = vsel %vm3605_vm0, 1.0, %v17157_v40  ;;  %vm5845_vm2 = vcmp.eq.s32.totalorder %v10179_v60, %v13410_v19  ;;  %vm505_vm3 = vcmp.eq.s32.totalorder %v10198_v44, %v17411_v62  ;;  %v8946_v1 = vsel %vm4725_vm1, 1.0, %v17157_v40  ;;  %v155_v62 = vld [vmem:[#allocation2 + $0x308] sm:$0xff] }
 0x253   :  { %6867 = vmatprep.mubr.f32.mxu1 %v6614_v22  ;;  %v5498_v48 = vadd.f32 %v8951_v21, %v4378_v17  ;;  %v3253_v61 = vadd.f32 %v8434_v16, %v2133_v51  ;;  %v9202_v24 = vsel %vm5845_vm2, 1.0, %v17157_v40  ;;  %v7926_v32 = vsel %vm505_vm3, 1.0, %v17157_v40  ;;  %v154_v16 = vld [vmem:[#allocation2 + $0x300] sm:$0xff] }
 0x254   :  { %vm1369_vm5 = vcmp.eq.s32.totalorder %v10198_v44, %v17413_v29  ;;  %vm2489_vm6 = vcmp.eq.s32.totalorder %v10198_v44, %v13262_v31  ;;  %vm3609_vm7 = vcmp.eq.s32.totalorder %v10198_v44, %v13291_v41  ;;  %v13471_v51 = vpop.permute.xlu1 %5643  ;;  %vm4729_vm8 = vcmp.eq.s32.totalorder %v10198_v44, %v13340_v63 }
 0x255   :  { %v6618_v26 = vadd.f32 %v9207_v35, %v5498_v48  ;;  %v4373_v21 = vadd.f32 %v8690_v37, %v3253_v61  ;;  %v8182_v22 = vsel %vm1369_vm5, 1.0, %v17157_v40  ;;  %v8438_v17 = vsel %vm2489_vm6, 1.0, %v17157_v40  ;;  %17417 = vst [vmem:[#allocation131_spill] sm:$0xff] %v13471_v51 }
 0x256   :  { %v2137_v9 = vadd.f32 %v8182_v22, %v7926_v32  ;;  %v8694_v29 = vsel %vm3609_vm7, 1.0, %v17157_v40  ;;  %vm5849_vm9 = vcmp.eq.s32.totalorder %v10198_v44, %v13410_v19  ;;  %v8950_v61 = vsel %vm4729_vm8, 1.0, %v17157_v40  ;;  %v17419_v32 = vld [vmem:[#allocation59_spill] sm:$0xff] }
 0x257   :  { %7317 = vmatprep.mubr.f32.mxu0 %v6618_v26  ;;  %v5493_v35 = vadd.f32 %v8946_v1, %v4373_v21  ;;  %v9206_v37 = vsel %vm5849_vm9, 1.0, %v17157_v40  ;;  %v9331_v48 = vpack.c.bf16 %v91_v2, %v90_v53  ;;  %v9427_v31 = vpack.c.bf16 %v155_v62, %v154_v16 }
 0x258   :  { %v3257_v41 = vadd.f32 %v8438_v17, %v2137_v9  ;;  %vm510_vm4 = vcmp.eq.s32.totalorder %v10191_v6, %v17418_v33  ;;  %vm1374_vm10 = vcmp.eq.s32.totalorder %v10191_v6, %v17419_v32  ;;  %vm2494_vm11 = vcmp.eq.s32.totalorder %v10191_v6, %v12048_v36 }
 0x259   :  { %v6613_v22 = vadd.f32 %v9202_v24, %v5493_v35  ;;  %9332 = vmatpush1.bf16.msra.mxu1 %v9331_v48  ;;  %v7931_v63 = vsel %vm510_vm4, 1.0, %v17157_v40  ;;  %v8187_v26 = vsel %vm1374_vm10, 1.0, %v17157_v40  ;;  %9428 = vmatpush1.bf16.msra.mxu0 %v9427_v31  ;;  %v13488_v53 = vpop.permute.xlu1 %4526  ;;  %v8443_v62 = vsel %vm2494_vm11, 1.0, %v17157_v40 }
 0x25a   :  { %v4377_v1 = vadd.f32 %v8694_v29, %v3257_v41  ;;  %17420 = vst [vmem:[#allocation132_spill] sm:$0xff] %v13488_v53  ;;  %v2142_v9 = vadd.f32 %v8187_v26, %v7931_v63  ;;  %vm3614_vm12 = vcmp.eq.s32.totalorder %v10191_v6, %v13369_v47  ;;  %v17421_v2 = vmov 0.0|0.0  }
 0x25b   :  { %9333 = vmatprep.subr.bf16.mxu1 %v17421_v2  ;;  %6868 = vmatmul.mubr.f32.gmra.mrb[44].mxu1 %v6613_v22  ;;  %v8699_v24 = vsel %vm3614_vm12, 1.0, %v17157_v40  ;;  %vm4734_vm13 = vcmp.eq.s32.totalorder %v10191_v6, %v13424_v46  ;;  %vm5854_vm14 = vcmp.eq.s32.totalorder %v10191_v6, %v13471_v51  ;;  %vm514_vm15 = vcmp.eq.s32.totalorder %v10195_v43, %v17418_v33 }
 0x25c   :  { %9429 = vmatprep.subr.bf16.mxu0 %v17421_v2  ;;  %v5497_v31 = vadd.f32 %v8950_v61, %v4377_v1  ;;  %v3262_v41 = vadd.f32 %v8443_v62, %v2142_v9  ;;  %v8955_v63 = vsel %vm4734_vm13, 1.0, %v17157_v40  ;;  %v9211_v29 = vsel %vm5854_vm14, 1.0, %v17157_v40 }
 0x25d   :  { %v7935_v21 = vsel %vm514_vm15, 1.0, %v17157_v40  ;;  %vm1378_vm0 = vcmp.eq.s32.totalorder %v10195_v43, %v17419_v32  ;;  %vm2498_vm1 = vcmp.eq.s32.totalorder %v10195_v43, %v12048_v36  ;;  %vm3618_vm2 = vcmp.eq.s32.totalorder %v10195_v43, %v13369_v47 }
 0x25e   :  { %v6617_v17 = vadd.f32 %v9206_v37, %v5497_v31  ;;  %v4382_v16 = vadd.f32 %v8699_v24, %v3262_v41  ;;  %v8191_v35 = vsel %vm1378_vm0, 1.0, %v17157_v40  ;;  %v8447_v61 = vsel %vm2498_vm1, 1.0, %v17157_v40  ;;  %v17423_v31 = vld [vmem:[#allocation41_spill] sm:$0xff] }
 0x25f   :  { %v2146_v48 = vadd.f32 %v8191_v35, %v7935_v21  ;;  %v8703_v22 = vsel %vm3618_vm2, 1.0, %v17157_v40  ;;  %vm4738_vm3 = vcmp.eq.s32.totalorder %v10195_v43, %v13424_v46  ;;  %vm5858_vm5 = vcmp.eq.s32.totalorder %v10195_v43, %v13471_v51  ;;  %v13518_v26 = vpop.permute.xlu1 %1172 }
 0x260   :  { %17422 = vst [vmem:[#allocation139_spill] sm:$0xff] %v13518_v26  ;;  %7318 = vmatmul.mubr.f32.gmra.mrb[44].mxu0 %v6617_v17  ;;  %v5502_v1 = vadd.f32 %v8955_v63, %v4382_v16  ;;  %v8959_v37 = vsel %vm4738_vm3, 1.0, %v17157_v40  ;;  %v9215_v9 = vsel %vm5858_vm5, 1.0, %v17157_v40  ;;  %vm509_vm6 = vcmp.eq.s32.totalorder %v10179_v60, %v17418_v33 }
 0x261   :  { %v3266_v62 = vadd.f32 %v8447_v61, %v2146_v48  ;;  %v7930_v24 = vsel %vm509_vm6, 1.0, %v17157_v40  ;;  %vm1373_vm7 = vcmp.eq.s32.totalorder %v10179_v60, %v17419_v32  ;;  %vm2493_vm8 = vcmp.eq.s32.totalorder %v10179_v60, %v12048_v36 }
 0x262   :  { %vm1195_vm9 = vcmp.eq.s32.totalorder %v17423_v31, %v17354_v11  ;;  %v6622_v41 = vadd.f32 %v9211_v29, %v5502_v1  ;;  %v8186_v63 = vsel %vm1373_vm7, 1.0, %v17157_v40  ;;  %v8442_v21 = vsel %vm2493_vm8, 1.0, %v17157_v40 }
 0x263   :  { %vm3613_vm4 = vcmp.eq.s32.totalorder %v10179_v60, %v13369_v47  ;;  %v4386_v17 = vadd.f32 %v8703_v22, %v3266_v62  ;;  %v2141_v16 = vadd.f32 %v8186_v63, %v7930_v24  ;;  %vm4733_vm10 = vcmp.eq.s32.totalorder %v10179_v60, %v13424_v46  ;;  %v92_v24 = vld [vmem:[#allocation2 + $0x110] sm:$0xff] }
 0x264   :  { %v8698_v35 = vsel %vm3613_vm4, 1.0, %v17157_v40  ;;  %6872 = vmatprep.mubr.f32.mxu1 %v6622_v41  ;;  %v8954_v61 = vsel %vm4733_vm10, 1.0, %v17157_v40  ;;  %vm5853_vm11 = vcmp.eq.s32.totalorder %v10179_v60, %v13471_v51  ;;  %vm513_vm12 = vcmp.eq.s32.totalorder %v10198_v44, %v17418_v33  ;;  %v13545_v29 = vpop.permute.xlu1 %5646  ;;  %v93_v41 = vld [vmem:[#allocation2 + $0x118] sm:$0xff] }
 0x265   :  { %vm1377_vm13 = vcmp.eq.s32.totalorder %v10198_v44, %v17419_v32  ;;  %17424 = vst [vmem:[#allocation140_spill] sm:$0xff] %v13545_v29  ;;  %v5506_v48 = vadd.f32 %v8959_v37, %v4386_v17  ;;  %v3261_v22 = vadd.f32 %v8442_v21, %v2141_v16  ;;  %v9210_v1 = vsel %vm5853_vm11, 1.0, %v17157_v40  ;;  %v156_v32 = vld [vmem:[#allocation2 + $0x310] sm:$0xff]  ;;  %v157_v37 = vld [vmem:[#allocation2 + $0x318] sm:$0xff]  ;;  %v94_v21 = vld [vmem:[#allocation2 + $0x120] sm:$0xff] }
 0x266   :  { %v7934_v62 = vsel %vm513_vm12, 1.0, %v17157_v40  ;;  %v8190_v63 = vsel %vm1377_vm13, 1.0, %v17157_v40  ;;  %vm2497_vm14 = vcmp.eq.s32.totalorder %v10198_v44, %v12048_v36  ;;  %vm3617_vm15 = vcmp.eq.s32.totalorder %v10198_v44, %v13369_v47 }
 0x267   :  { %vm4737_vm0 = vcmp.eq.s32.totalorder %v10198_v44, %v13424_v46  ;;  %v6626_v17 = vadd.f32 %v9215_v9, %v5506_v48  ;;  %v4381_v16 = vadd.f32 %v8698_v35, %v3261_v22  ;;  %v2145_v33 = vadd.f32 %v8190_v63, %v7934_v62  ;;  %v17426_v63 = vld [vmem:[#allocation33_spill] sm:$0xff] }
 0x268   :  { %v8446_v19 = vsel %vm2497_vm14, 1.0, %v17157_v40  ;;  %v8702_v55 = vsel %vm3617_vm15, 1.0, %v17157_v40  ;;  %v8958_v36 = vsel %vm4737_vm0, 1.0, %v17157_v40  ;;  %vm5857_vm1 = vcmp.eq.s32.totalorder %v10198_v44, %v13471_v51 }
 0x269   :  { %v9334_v47 = vpack.c.bf16 %v93_v41, %v92_v24  ;;  %7322 = vmatprep.mubr.f32.mxu0 %v6626_v17  ;;  %v5501_v46 = vadd.f32 %v8954_v61, %v4381_v16  ;;  %v3265_v52 = vadd.f32 %v8446_v19, %v2145_v33  ;;  %v9214_v9 = vsel %vm5857_vm1, 1.0, %v17157_v40  ;;  %v13562_v48 = vpop.permute.xlu1 %2292 }
 0x26a   :  { %v9430_v35 = vpack.c.bf16 %v157_v37, %v156_v32  ;;  %17425 = vst [vmem:[#allocation41_spill] sm:$0xff] %v13562_v48  ;;  %v9337_v22 = vpack.c.bf16 %v95_v23, %v94_v21  ;;  %v9433_v62 = vpack.c.bf16 %v159_v20, %v158_v59  ;;  %vm518_vm2 = vcmp.eq.s32.totalorder %v10191_v6, %v17426_v63 }
 0x26b   :  { %9335 = vmatpush1.bf16.msra.mxu1 %v9334_v47  ;;  %vm1382_vm3 = vcmp.eq.s32.totalorder %v10191_v6, %v17427_v4  ;;  %v6621_v13 = vadd.f32 %v9210_v1, %v5501_v46  ;;  %v4385_v51 = vadd.f32 %v8702_v55, %v3265_v52  ;;  %v7939_v33 = vsel %vm518_vm2, 1.0, %v17157_v40 }
 0x26c   :  { %9431 = vmatpush1.bf16.msra.mxu0 %v9430_v35  ;;  %9336 = vmatprep.subr.bf16.mxu1 %v17421_v2  ;;  %v8195_v19 = vsel %vm1382_vm3, 1.0, %v17157_v40  ;;  %vm2502_vm5 = vcmp.eq.s32.totalorder %v10191_v6, %v13398_v38  ;;  %vm3622_vm6 = vcmp.eq.s32.totalorder %v10191_v6, %v13450_v27  ;;  %vm4742_vm7 = vcmp.eq.s32.totalorder %v10191_v6, %v13488_v53 }
 0x26d   :  { %9432 = vmatprep.subr.bf16.mxu0 %v17421_v2  ;;  %v2150_v47 = vadd.f32 %v8195_v19, %v7939_v33  ;;  %v13582_v20 = vsel %vm1195_vm9, 1.0, %v17157_v40  ;;  %6873 = vmatmul.mubr.f32.gmra.mrb[46].mxu1 %v6621_v13  ;;  %v5505_v52 = vadd.f32 %v8958_v36, %v4385_v51  ;;  %v8451_v55 = vsel %vm2502_vm5, 1.0, %v17157_v40 }
 0x26e   :  { %v8707_v59 = vsel %vm3622_vm6, 1.0, %v17157_v40  ;;  %vm5862_vm8 = vcmp.eq.s32.totalorder %v10191_v6, %v13545_v29  ;;  %vm522_vm4 = vcmp.eq.s32.totalorder %v10195_v43, %v17426_v63  ;;  %vm1386_vm10 = vcmp.eq.s32.totalorder %v10195_v43, %v17427_v4  ;;  %v13592_v46 = vpop.permute.xlu1 %1175 }
 0x26f   :  { %9338 = vmatpush1.bf16.msra.mxu1 %v9337_v22  ;;  %v3270_v23 = vadd.f32 %v8451_v55, %v2150_v47  ;;  %17428 = vst [vmem:[#allocation162_spill] sm:$0xff] %v13592_v46  ;;  %v6625_v32 = vadd.f32 %v9214_v9, %v5505_v52  ;;  %v8963_v36 = vsel %vm4742_vm7, 1.0, %v17157_v40  ;;  %v7943_v13 = vsel %vm522_vm4, 1.0, %v17157_v40 }
 0x270   :  { %9434 = vmatpush1.bf16.msra.mxu0 %v9433_v62  ;;  %v8199_v51 = vsel %vm1386_vm10, 1.0, %v17157_v40  ;;  %9339 = vmatprep.subr.bf16.mxu1 %v17421_v2  ;;  %vm2506_vm9 = vcmp.eq.s32.totalorder %v10195_v43, %v13398_v38  ;;  %vm3626_vm11 = vcmp.eq.s32.totalorder %v10195_v43, %v13450_v27  ;;  %v9219_v24 = vsel %vm5862_vm8, 1.0, %v17157_v40 }
 0x271   :  { %v4390_v61 = vadd.f32 %v8707_v59, %v3270_v23  ;;  %v2154_v1 = vadd.f32 %v8199_v51, %v7943_v13  ;;  %9435 = vmatprep.subr.bf16.mxu0 %v17421_v2  ;;  %7323 = vmatmul.mubr.f32.gmra.mrb[46].mxu0 %v6625_v32  ;;  %v8455_v41 = vsel %vm2506_vm9, 1.0, %v17157_v40  ;;  %v8711_v37 = vsel %vm3626_vm11, 1.0, %v17157_v40 }
 0x272   :  { %vm4746_vm12 = vcmp.eq.s32.totalorder %v10195_v43, %v13488_v53  ;;  %vm5866_vm13 = vcmp.eq.s32.totalorder %v10195_v43, %v13545_v29  ;;  %vm517_vm14 = vcmp.eq.s32.totalorder %v10179_v60, %v17426_v63  ;;  %vm1381_vm15 = vcmp.eq.s32.totalorder %v10179_v60, %v17427_v4 }
 0x273   :  { %v5510_v21 = vadd.f32 %v8963_v36, %v4390_v61  ;;  %v3274_v17 = vadd.f32 %v8455_v41, %v2154_v1  ;;  %v8967_v16 = vsel %vm4746_vm12, 1.0, %v17157_v40  ;;  %vm2501_vm0 = vcmp.eq.s32.totalorder %v10179_v60, %v13398_v38  ;;  %v13622_v9 = vpop.permute.xlu1 %3412 }
 0x274   :  { %vm3621_vm1 = vcmp.eq.s32.totalorder %v10179_v60, %v13450_v27  ;;  %17429 = vst [vmem:[#allocation163_spill] sm:$0xff] %v13622_v9  ;;  %v7938_v62 = vsel %vm517_vm14, 1.0, %v17157_v40  ;;  %v8194_v33 = vsel %vm1381_vm15, 1.0, %v17157_v40  ;;  %v9223_v19 = vsel %vm5866_vm13, 1.0, %v17157_v40 }
 0x275   :  { %v6630_v35 = vadd.f32 %v9219_v24, %v5510_v21  ;;  %v4394_v22 = vadd.f32 %v8711_v37, %v3274_v17  ;;  %v2149_v47 = vadd.f32 %v8194_v33, %v7938_v62  ;;  %v8450_v52 = vsel %vm2501_vm0, 1.0, %v17157_v40  ;;  %v17431_v17 = vld [vmem:[#allocation32_spill] sm:$0xff]  ;;  %v13658_v33 = vpop.permute.xlu0 %5649 }
 0x276   :  { %vm4741_vm2 = vcmp.eq.s32.totalorder %v10179_v60, %v13488_v53  ;;  %v8706_v59 = vsel %vm3621_vm1, 1.0, %v17157_v40  ;;  %vm5861_vm3 = vcmp.eq.s32.totalorder %v10179_v60, %v13545_v29  ;;  %vm521_vm5 = vcmp.eq.s32.totalorder %v10198_v44, %v17426_v63 }
 0x277   :  { %6877 = vmatprep.mubr.f32.mxu1 %v6630_v35  ;;  %v5514_v55 = vadd.f32 %v8967_v16, %v4394_v22  ;;  %v3269_v23 = vadd.f32 %v8450_v52, %v2149_v47  ;;  %v8962_v32 = vsel %vm4741_vm2, 1.0, %v17157_v40  ;;  %v7942_v36 = vsel %vm521_vm5, 1.0, %v17157_v40  ;;  %v17432_v16 = vld [vmem:[#allocation158_spill] sm:$0xff] }
 0x278   :  { %vm1385_vm6 = vcmp.eq.s32.totalorder %v10198_v44, %v17427_v4  ;;  %vm2505_vm7 = vcmp.eq.s32.totalorder %v10198_v44, %v13398_v38  ;;  %vm3625_vm8 = vcmp.eq.s32.totalorder %v10198_v44, %v13450_v27  ;;  %v13644_v61 = vpop.permute.xlu1 %2295  ;;  %v9218_v24 = vsel %vm5861_vm3, 1.0, %v17157_v40  ;;  %v101_v38 = vld [vmem:[#allocation2 + $0x158] sm:$0xff]  ;;  %v13731_v4 = vld [vmem:[#allocation2 + $0x350] sm:$0xff] }
 0x279   :  { %v6634_v13 = vadd.f32 %v9223_v19, %v5514_v55  ;;  %v8198_v51 = vsel %vm1385_vm6, 1.0, %v17157_v40  ;;  %17430 = vst [vmem:[#allocation164_spill] sm:$0xff] %v13644_v61  ;;  %v4389_v1 = vadd.f32 %v8706_v59, %v3269_v23  ;;  %v8454_v37 = vsel %vm2505_vm7, 1.0, %v17157_v40 }
 0x27a   :  { %v2153_v41 = vadd.f32 %v8198_v51, %v7942_v36  ;;  %v8710_v21 = vsel %vm3625_vm8, 1.0, %v17157_v40  ;;  %vm4745_vm4 = vcmp.eq.s32.totalorder %v10198_v44, %v13488_v53  ;;  %vm526_vm10 = vcmp.eq.s32.totalorder %v10191_v6, %v17431_v17 }
 0x27b   :  { %7327 = vmatprep.mubr.f32.mxu0 %v6634_v13  ;;  %vm1390_vm9 = vcmp.eq.s32.totalorder %v10191_v6, %v17432_v16  ;;  %v5509_v35 = vadd.f32 %v8962_v32, %v4389_v1  ;;  %v8966_v62 = vsel %vm4745_vm4, 1.0, %v17157_v40  ;;  %vm5865_vm11 = vcmp.eq.s32.totalorder %v10198_v44, %v13545_v29 }
 0x27c   :  { %v3273_v22 = vadd.f32 %v8454_v37, %v2153_v41  ;;  %v7947_v19 = vsel %vm526_vm10, 1.0, %v17157_v40  ;;  %v8203_v47 = vsel %vm1390_vm9, 1.0, %v17157_v40  ;;  %vm2510_vm12 = vcmp.eq.s32.totalorder %v10191_v6, %v12091_v18 }
 0x27d   :  { %vm3630_vm13 = vcmp.eq.s32.totalorder %v10191_v6, %v12976_v42  ;;  %v6629_v52 = vadd.f32 %v9218_v24, %v5509_v35  ;;  %v2158_v59 = vadd.f32 %v8203_v47, %v7947_v19  ;;  %v8459_v23 = vsel %vm2510_vm12, 1.0, %v17157_v40  ;;  %v13667_v32 = vpop.permute.xlu1 %4532 }
 0x27e   :  { %v4393_v55 = vadd.f32 %v8710_v21, %v3273_v22  ;;  %17433 = vst [vmem:[#allocation165_spill] sm:$0xff] %v13667_v32  ;;  %v9222_v36 = vsel %vm5865_vm11, 1.0, %v17157_v40  ;;  %v8715_v13 = vsel %vm3630_vm13, 1.0, %v17157_v40  ;;  %vm4750_vm14 = vcmp.eq.s32.totalorder %v10191_v6, %v13343_v30 }
 0x27f   :  { %vm530_vm15 = vcmp.eq.s32.totalorder %v10195_v43, %v17431_v17  ;;  %6878 = vmatmul.mubr.f32.gmra.mrb[48].mxu1 %v6629_v52  ;;  %v3278_v1 = vadd.f32 %v8459_v23, %v2158_v59  ;;  %v8971_v24 = vsel %vm4750_vm14, 1.0, %v17157_v40  ;;  %vm5870_vm0 = vcmp.eq.s32.totalorder %v10191_v6, %v13658_v33 }
 0x280   :  { %v5513_v51 = vadd.f32 %v8966_v62, %v4393_v55  ;;  %v7951_v41 = vsel %vm530_vm15, 1.0, %v17157_v40  ;;  %vm1394_vm1 = vcmp.eq.s32.totalorder %v10195_v43, %v17432_v16  ;;  %vm2514_vm2 = vcmp.eq.s32.totalorder %v10195_v43, %v12091_v18 }
 0x281   :  { %vm3634_vm3 = vcmp.eq.s32.totalorder %v10195_v43, %v12976_v42  ;;  %v4398_v21 = vadd.f32 %v8715_v13, %v3278_v1  ;;  %v8207_v35 = vsel %vm1394_vm1, 1.0, %v17157_v40  ;;  %v8463_v22 = vsel %vm2514_vm2, 1.0, %v17157_v40 }
 0x282   :  { %v6633_v37 = vadd.f32 %v9222_v36, %v5513_v51  ;;  %v9227_v62 = vsel %vm5870_vm0, 1.0, %v17157_v40  ;;  %v2162_v19 = vadd.f32 %v8207_v35, %v7951_v41  ;;  %v8719_v47 = vsel %vm3634_vm3, 1.0, %v17157_v40  ;;  %v13696_v59 = vpop.permute.xlu1 %3415 }
 0x283   :  { %vm4754_vm5 = vcmp.eq.s32.totalorder %v10195_v43, %v13343_v30  ;;  %v5518_v52 = vadd.f32 %v8971_v24, %v4398_v21  ;;  %vm5874_vm6 = vcmp.eq.s32.totalorder %v10195_v43, %v13658_v33  ;;  %vm525_vm7 = vcmp.eq.s32.totalorder %v10179_v60, %v17431_v17  ;;  %17434 = vst [vmem:[#allocation166_spill] sm:$0xff] %v13696_v59 }
 0x284   :  { %7328 = vmatmul.mubr.f32.gmra.mrb[48].mxu0 %v6633_v37  ;;  %v8975_v55 = vsel %vm4754_vm5, 1.0, %v17157_v40  ;;  %v3282_v23 = vadd.f32 %v8463_v22, %v2162_v19  ;;  %v7946_v36 = vsel %vm525_vm7, 1.0, %v17157_v40  ;;  %vm1389_vm8 = vcmp.eq.s32.totalorder %v10179_v60, %v17432_v16  ;;  %v96_v22 = vld [vmem:[#allocation2 + $0x130] sm:$0xff] }
 0x285   :  { %vm2509_vm4 = vcmp.eq.s32.totalorder %v10179_v60, %v12091_v18  ;;  %v6638_v13 = vadd.f32 %v9227_v62, %v5518_v52  ;;  %v8202_v51 = vsel %vm1389_vm8, 1.0, %v17157_v40  ;;  %vm3629_vm10 = vcmp.eq.s32.totalorder %v10179_v60, %v12976_v42  ;;  %v97_v62 = vld [vmem:[#allocation2 + $0x138] sm:$0xff]  ;;  %v160_v19 = vld [vmem:[#allocation2 + $0x330] sm:$0xff] }
 0x286   :  { %v8458_v1 = vsel %vm2509_vm4, 1.0, %v17157_v40  ;;  %v4402_v24 = vadd.f32 %v8719_v47, %v3282_v23  ;;  %v9231_v41 = vsel %vm5874_vm6, 1.0, %v17157_v40  ;;  %v2157_v37 = vadd.f32 %v8202_v51, %v7946_v36  ;;  %v161_v36 = vld [vmem:[#allocation2 + $0x338] sm:$0xff]  ;;  %v99_v51 = vld [vmem:[#allocation2 + $0x148] sm:$0xff] }
 0x287   :  { %vm4749_vm9 = vcmp.eq.s32.totalorder %v10179_v60, %v13343_v30  ;;  %6882 = vmatprep.mubr.f32.mxu1 %v6638_v13  ;;  %v8714_v21 = vsel %vm3629_vm10, 1.0, %v17157_v40  ;;  %vm529_vm11 = vcmp.eq.s32.totalorder %v10198_v44, %v17431_v17  ;;  %vm1393_vm12 = vcmp.eq.s32.totalorder %v10198_v44, %v17432_v16  ;;  %v98_v13 = vld [vmem:[#allocation2 + $0x140] sm:$0xff] }
 0x288   :  { %v8970_v35 = vsel %vm4749_vm9, 1.0, %v17157_v40  ;;  %v5522_v47 = vadd.f32 %v8975_v55, %v4402_v24  ;;  %v3277_v52 = vadd.f32 %v8458_v1, %v2157_v37  ;;  %vm5869_vm13 = vcmp.eq.s32.totalorder %v10179_v60, %v13658_v33  ;;  %v162_v55 = vld [vmem:[#allocation2 + $0x340] sm:$0xff]  ;;  %v163_v1 = vld [vmem:[#allocation2 + $0x348] sm:$0xff]  ;;  %v13726_v24 = vld [vmem:[#allocation2 + $0x150] sm:$0xff]  ;;  %v13728_v37 = vpop.permute.xlu1 %5652 }
 0x289   :  { %v7950_v23 = vsel %vm529_vm11, 1.0, %v17157_v40  ;;  %v8206_v29 = vsel %vm1393_vm12, 1.0, %v17157_v40  ;;  %vm2513_vm14 = vcmp.eq.s32.totalorder %v10198_v44, %v12091_v18  ;;  %vm3633_vm15 = vcmp.eq.s32.totalorder %v10198_v44, %v12976_v42  ;;  %17435 = vst [vmem:[#allocation167_spill] sm:$0xff] %v13728_v37  ;;  %v13733_v18 = vld [vmem:[#allocation2 + $0x358] sm:$0xff] }
 0x28a   :  { %vm4753_vm0 = vcmp.eq.s32.totalorder %v10198_v44, %v13343_v30  ;;  %v6642_v16 = vadd.f32 %v9231_v41, %v5522_v47  ;;  %v4397_v17 = vadd.f32 %v8714_v21, %v3277_v52  ;;  %v2161_v53 = vadd.f32 %v8206_v29, %v7950_v23  ;;  %v13742_v21 = vld [vmem:[#allocation2 + $0x160] sm:$0xff]  ;;  %v13744_v29 = vld [vmem:[#allocation2 + $0x168] sm:$0xff] }
 0x28b   :  { %v8462_v27 = vsel %vm2513_vm14, 1.0, %v17157_v40  ;;  %v9226_v42 = vsel %vm5869_vm13, 1.0, %v17157_v40  ;;  %v8718_v63 = vsel %vm3633_vm15, 1.0, %v17157_v40  ;;  %vm5873_vm1 = vcmp.eq.s32.totalorder %v10198_v44, %v13658_v33 }
 0x28c   :  { %v9340_v41 = vpack.c.bf16 %v97_v62, %v96_v22  ;;  %7332 = vmatprep.mubr.f32.mxu0 %v6642_v16  ;;  %v5517_v47 = vadd.f32 %v8970_v35, %v4397_v17  ;;  %v3281_v52 = vadd.f32 %v8462_v27, %v2161_v53  ;;  %v8974_v23 = vsel %vm4753_vm0, 1.0, %v17157_v40  ;;  %v166_v17 = vld [vmem:[#allocation2 + $0x360] sm:$0xff]  ;;  %v167_v16 = vld [vmem:[#allocation2 + $0x368] sm:$0xff] }
 0x28d   :  { %v9436_v3 = vpack.c.bf16 %v161_v36, %v160_v19  ;;  %v9343_v14 = vpack.c.bf16 %v99_v51, %v98_v13  ;;  %v9439_v34 = vpack.c.bf16 %v163_v1, %v162_v55  ;;  %v9346_v7 = vpack.c.bf16 %v101_v38, %v13726_v24  ;;  %v13761_v38 = vpop.permute.xlu1 %4535 }
 0x28e   :  { %9341 = vmatpush1.bf16.msra.mxu1 %v9340_v41  ;;  %v9442_v22 = vpack.c.bf16 %v13733_v18, %v13731_v4  ;;  %v6637_v62 = vadd.f32 %v9226_v42, %v5517_v47  ;;  %v4401_v8 = vadd.f32 %v8718_v63, %v3281_v52  ;;  %v9230_v27 = vsel %vm5873_vm1, 1.0, %v17157_v40  ;;  %17436 = vst [vmem:[#allocation168_spill] sm:$0xff] %v13761_v38  ;;  %v17437_v18 = vld [vmem:[#allocation35_spill] sm:$0xff] }
 0x28f   :  { %9437 = vmatpush1.bf16.msra.mxu0 %v9436_v3  ;;  %9342 = vmatprep.subr.bf16.mxu1 %v17421_v2  ;;  %v9349_v53 = vpack.c.bf16 %v13744_v29, %v13742_v21  ;;  %vm534_vm2 = vcmp.eq.s32.totalorder %v10191_v6, %v17437_v18  ;;  %vm1398_vm3 = vcmp.eq.s32.totalorder %v10191_v6, %v13518_v26  ;;  %v13770_v3 = vadd.s32 384, %v10179_v60 }
 0x290   :  { %9438 = vmatprep.subr.bf16.mxu0 %v17421_v2  ;;  %vm2518_vm5 = vcmp.eq.s32.totalorder %v10191_v6, %v13562_v48  ;;  %6883 = vmatmul.mubr.f32.gmra.mrb[50].mxu1 %v6637_v62  ;;  %v5521_v4 = vadd.f32 %v8974_v23, %v4401_v8  ;;  %v7955_v42 = vsel %vm534_vm2, 1.0, %v17157_v40  ;;  %v8211_v63 = vsel %vm1398_vm3, 1.0, %v17157_v40 }
 0x291   :  { %v8467_v35 = vsel %vm2518_vm5, 1.0, %v17157_v40  ;;  %v9445_v19 = vpack.c.bf16 %v167_v16, %v166_v17  ;;  %v2166_v36 = vadd.f32 %v8211_v63, %v7955_v42  ;;  %vm3638_vm6 = vcmp.eq.s32.totalorder %v10191_v6, %v13622_v9  ;;  %v13799_v29 = vpop.permute.xlu1 %1181 }
 0x292   :  { %9344 = vmatpush1.bf16.msra.mxu1 %v9343_v14  ;;  %vm4758_vm7 = vcmp.eq.s32.totalorder %v10191_v6, %v13667_v32  ;;  %v6641_v13 = vadd.f32 %v9230_v27, %v5521_v4  ;;  %v8723_v8 = vsel %vm3638_vm6, 1.0, %v17157_v40  ;;  %vm5878_vm8 = vcmp.eq.s32.totalorder %v10191_v6, %v13728_v37 }
 0x293   :  { %9440 = vmatpush1.bf16.msra.mxu0 %v9439_v34  ;;  %9345 = vmatprep.subr.bf16.mxu1 %v17421_v2  ;;  %v8979_v51 = vsel %vm4758_vm7, 1.0, %v17157_v40  ;;  %v3286_v14 = vadd.f32 %v8467_v35, %v2166_v36  ;;  %vm538_vm4 = vcmp.eq.s32.totalorder %v10195_v43, %v17437_v18  ;;  %vm1402_vm10 = vcmp.eq.s32.totalorder %v10195_v43, %v13518_v26 }
 0x294   :  { %9441 = vmatprep.subr.bf16.mxu0 %v17421_v2  ;;  %vm2522_vm9 = vcmp.eq.s32.totalorder %v10195_v43, %v13562_v48  ;;  %7333 = vmatmul.mubr.f32.gmra.mrb[50].mxu0 %v6641_v13  ;;  %v7959_v34 = vsel %vm538_vm4, 1.0, %v17157_v40  ;;  %v8215_v55 = vsel %vm1402_vm10, 1.0, %v17157_v40  ;;  %vm3642_vm11 = vcmp.eq.s32.totalorder %v10195_v43, %v13622_v9 }
 0x295   :  { %v8471_v1 = vsel %vm2522_vm9, 1.0, %v17157_v40  ;;  %v4406_v24 = vadd.f32 %v8723_v8, %v3286_v14  ;;  %v9235_v41 = vsel %vm5878_vm8, 1.0, %v17157_v40  ;;  %v2170_v21 = vadd.f32 %v8215_v55, %v7959_v34  ;;  %v105_v8 = vld [vmem:[#allocation2 + $0x178] sm:$0xff]  ;;  %v168_v14 = vld [vmem:[#allocation2 + $0x370] sm:$0xff]  ;;  %v106_v55 = vld [vmem:[#allocation2 + $0x180] sm:$0xff] }
 0x296   :  { %9347 = vmatpush1.bf16.msra.mxu1 %v9346_v7  ;;  %vm4762_vm12 = vcmp.eq.s32.totalorder %v10195_v43, %v13667_v32  ;;  %v8727_v47 = vsel %vm3642_vm11, 1.0, %v17157_v40  ;;  %vm533_vm13 = vcmp.eq.s32.totalorder %v10179_v60, %v17437_v18  ;;  %vm1397_vm14 = vcmp.eq.s32.totalorder %v10179_v60, %v13518_v26  ;;  %v169_v34 = vld [vmem:[#allocation2 + $0x378] sm:$0xff] }
 0x297   :  { %9443 = vmatpush1.bf16.msra.mxu0 %v9442_v22  ;;  %9348 = vmatprep.subr.bf16.mxu1 %v17421_v2  ;;  %v8983_v52 = vsel %vm4762_vm12, 1.0, %v17157_v40  ;;  %v5526_v7 = vadd.f32 %v8979_v51, %v4406_v24  ;;  %v3290_v23 = vadd.f32 %v8471_v1, %v2170_v21  ;;  %vm5882_vm15 = vcmp.eq.s32.totalorder %v10195_v43, %v13728_v37  ;;  %v13830_v51 = vpop.permute.xlu1 %5655 }
 0x298   :  { %9444 = vmatprep.subr.bf16.mxu0 %v17421_v2  ;;  %v7954_v22 = vsel %vm533_vm13, 1.0, %v17157_v40  ;;  %v8210_v62 = vsel %vm1397_vm14, 1.0, %v17157_v40  ;;  %vm2517_vm0 = vcmp.eq.s32.totalorder %v10179_v60, %v13562_v48  ;;  %vm3637_vm1 = vcmp.eq.s32.totalorder %v10179_v60, %v13622_v9  ;;  %17438 = vst [vmem:[#allocation35_spill] sm:$0xff] %v13830_v51 }
 0x299   :  { %vm4757_vm2 = vcmp.eq.s32.totalorder %v10179_v60, %v13667_v32  ;;  %v6646_v27 = vadd.f32 %v9235_v41, %v5526_v7  ;;  %v4410_v17 = vadd.f32 %v8727_v47, %v3290_v23  ;;  %v2165_v16 = vadd.f32 %v8210_v62, %v7954_v22  ;;  %v107_v47 = vld [vmem:[#allocation2 + $0x188] sm:$0xff] }
 0x29a   :  { %9350 = vmatpush1.bf16.msra.mxu1 %v9349_v53  ;;  %v8466_v4 = vsel %vm2517_vm0, 1.0, %v17157_v40  ;;  %v9239_v42 = vsel %vm5882_vm15, 1.0, %v17157_v40  ;;  %v8722_v63 = vsel %vm3637_vm1, 1.0, %v17157_v40  ;;  %v8978_v35 = vsel %vm4757_vm2, 1.0, %v17157_v40  ;;  %v171_v7 = vld [vmem:[#allocation2 + $0x388] sm:$0xff] }
 0x29b   :  { %9446 = vmatpush1.bf16.msra.mxu0 %v9445_v19  ;;  %vm537_vm3 = vcmp.eq.s32.totalorder %v10198_v44, %v17437_v18  ;;  %9351 = vmatprep.subr.bf16.mxu1 %v17421_v2  ;;  %v5530_v36 = vadd.f32 %v8983_v52, %v4410_v17  ;;  %v3285_v53 = vadd.f32 %v8466_v4, %v2165_v16  ;;  %v104_v19 = vld [vmem:[#allocation2 + $0x170] sm:$0xff]  ;;  %v170_v52 = vld [vmem:[#allocation2 + $0x380] sm:$0xff] }
 0x29c   :  { %6887 = vmatprep.mubr.f32.mxu1 %v6646_v27  ;;  %vm5877_vm5 = vcmp.eq.s32.totalorder %v10179_v60, %v13728_v37  ;;  %v7958_v13 = vsel %vm537_vm3, 1.0, %v17157_v40  ;;  %9447 = vmatprep.subr.bf16.mxu0 %v17421_v2  ;;  %vm1401_vm6 = vcmp.eq.s32.totalorder %v10198_v44, %v13518_v26  ;;  %vm2521_vm7 = vcmp.eq.s32.totalorder %v10198_v44, %v13562_v48 }
 0x29d   :  { %vm3641_vm8 = vcmp.eq.s32.totalorder %v10198_v44, %v13622_v9  ;;  %vm4761_vm4 = vcmp.eq.s32.totalorder %v10198_v44, %v13667_v32  ;;  %v6650_v1 = vadd.f32 %v9239_v42, %v5530_v36  ;;  %v4405_v24 = vadd.f32 %v8722_v63, %v3285_v53  ;;  %v17439_v53 = vld [vmem:[#allocation34_spill] sm:$0xff] }
 0x29e   :  { %v8214_v41 = vsel %vm1401_vm6, 1.0, %v17157_v40  ;;  %v8470_v21 = vsel %vm2521_vm7, 1.0, %v17157_v40  ;;  %v9234_v23 = vsel %vm5877_vm5, 1.0, %v17157_v40  ;;  %v8726_v62 = vsel %vm3641_vm8, 1.0, %v17157_v40 }
 0x29f   :  { %v2169_v22 = vadd.f32 %v8214_v41, %v7958_v13  ;;  %v8982_v27 = vsel %vm4761_vm4, 1.0, %v17157_v40  ;;  %7337 = vmatprep.mubr.f32.mxu0 %v6650_v1  ;;  %v5525_v17 = vadd.f32 %v8978_v35, %v4405_v24  ;;  %vm5881_vm10 = vcmp.eq.s32.totalorder %v10198_v44, %v13728_v37  ;;  %v13852_v13 = vpop.permute.xlu1 %2301 }
 0x2a0   :  { %v9352_v16 = vpack.c.bf16 %v105_v8, %v104_v19  ;;  %v9448_v4 = vpack.c.bf16 %v169_v34, %v168_v14  ;;  %v9355_v63 = vpack.c.bf16 %v107_v47, %v106_v55  ;;  %v9451_v36 = vpack.c.bf16 %v171_v7, %v170_v52 }
 0x2a1   :  { %v3289_v42 = vadd.f32 %v8470_v21, %v2169_v22  ;;  %vm542_vm9 = vcmp.eq.s32.totalorder %v10191_v6, %v17439_v53  ;;  %v6645_v32 = vadd.f32 %v9234_v23, %v5525_v17  ;;  %vm1406_vm11 = vcmp.eq.s32.totalorder %v10191_v6, %v13592_v46  ;;  %v13893_v17 = vpop.permute.xlu0 %5658 }
 0x2a2   :  { %9353 = vmatpush1.bf16.msra.mxu1 %v9352_v16  ;;  %9449 = vmatpush1.bf16.msra.mxu0 %v9448_v4  ;;  %v7963_v41 = vsel %vm542_vm9, 1.0, %v17157_v40  ;;  %vm2526_vm12 = vcmp.eq.s32.totalorder %v10191_v6, %v13644_v61  ;;  %v8219_v19 = vsel %vm1406_vm11, 1.0, %v17157_v40  ;;  %vm3646_vm13 = vcmp.eq.s32.totalorder %v10191_v6, %v13696_v59 }
 0x2a3   :  { %v4409_v35 = vadd.f32 %v8726_v62, %v3289_v42  ;;  %9354 = vmatprep.subr.bf16.mxu1 %v17421_v2  ;;  %9450 = vmatprep.subr.bf16.mxu0 %v17421_v2  ;;  %v8475_v8 = vsel %vm2526_vm12, 1.0, %v17157_v40  ;;  %v9238_v14 = vsel %vm5881_vm10, 1.0, %v17157_v40  ;;  %v2174_v34 = vadd.f32 %v8219_v19, %v7963_v41 }
 0x2a4   :  { %6888 = vmatmul.mubr.f32.gmra.mrb[52].mxu1 %v6645_v32  ;;  %v8731_v55 = vsel %vm3646_vm13, 1.0, %v17157_v40  ;;  %vm4766_vm14 = vcmp.eq.s32.totalorder %v10191_v6, %v13761_v38  ;;  %vm5886_vm15 = vcmp.eq.s32.totalorder %v10191_v6, %v13830_v51  ;;  %vm546_vm0 = vcmp.eq.s32.totalorder %v10195_v43, %v17439_v53 }
 0x2a5   :  { %v5529_v1 = vadd.f32 %v8982_v27, %v4409_v35  ;;  %v8987_v24 = vsel %vm4766_vm14, 1.0, %v17157_v40  ;;  %v3294_v32 = vadd.f32 %v8475_v8, %v2174_v34  ;;  %v7967_v21 = vsel %vm546_vm0, 1.0, %v17157_v40  ;;  %v13891_v27 = vpop.permute.xlu1 %1184 }
 0x2a6   :  { %9356 = vmatpush1.bf16.msra.mxu1 %v9355_v63  ;;  %9452 = vmatpush1.bf16.msra.mxu0 %v9451_v36  ;;  %vm1410_vm1 = vcmp.eq.s32.totalorder %v10195_v43, %v13592_v46  ;;  %vm2530_vm2 = vcmp.eq.s32.totalorder %v10195_v43, %v13644_v61  ;;  %vm3650_vm3 = vcmp.eq.s32.totalorder %v10195_v43, %v13696_v59  ;;  %v9243_v22 = vsel %vm5886_vm15, 1.0, %v17157_v40 }
 0x2a7   :  { %v6649_v47 = vadd.f32 %v9238_v14, %v5529_v1  ;;  %v8223_v52 = vsel %vm1410_vm1, 1.0, %v17157_v40  ;;  %v8479_v7 = vsel %vm2530_vm2, 1.0, %v17157_v40  ;;  %9357 = vmatprep.subr.bf16.mxu1 %v17421_v2  ;;  %9453 = vmatprep.subr.bf16.mxu0 %v17421_v2  ;;  %v4414_v23 = vadd.f32 %v8731_v55, %v3294_v32  ;;  %17440 = vst [vmem:[#allocation169_spill] sm:$0xff] %v13891_v27 }
 0x2a8   :  { %v2178_v62 = vadd.f32 %v8223_v52, %v7967_v21  ;;  %vm4770_vm5 = vcmp.eq.s32.totalorder %v10195_v43, %v13761_v38  ;;  %v8735_v16 = vsel %vm3650_vm3, 1.0, %v17157_v40  ;;  %vm541_vm6 = vcmp.eq.s32.totalorder %v10179_v60, %v17439_v53  ;;  %v13922_v52 = vpop.permute.xlu0 %1178 }
 0x2a9   :  { %7338 = vmatmul.mubr.f32.gmra.mrb[52].mxu0 %v6649_v47  ;;  %v8991_v4 = vsel %vm4770_vm5, 1.0, %v17157_v40  ;;  %vm1405_vm7 = vcmp.eq.s32.totalorder %v10179_v60, %v13592_v46  ;;  %v5534_v42 = vadd.f32 %v8987_v24, %v4414_v23  ;;  %vm5890_vm8 = vcmp.eq.s32.totalorder %v10195_v43, %v13830_v51  ;;  %v13920_v47 = vpop.permute.xlu1 %3421  ;;  %17442 = vst [vmem:[#allocation171_spill] sm:$0xff] %v13922_v52 }
 0x2aa   :  { %v3298_v63 = vadd.f32 %v8479_v7, %v2178_v62  ;;  %v7962_v36 = vsel %vm541_vm6, 1.0, %v17157_v40  ;;  %v8218_v41 = vsel %vm1405_vm7, 1.0, %v17157_v40  ;;  %vm2525_vm4 = vcmp.eq.s32.totalorder %v10179_v60, %v13644_v61  ;;  %17441 = vst [vmem:[#allocation170_spill] sm:$0xff] %v13920_v47 }
 0x2ab   :  { %vm3645_vm10 = vcmp.eq.s32.totalorder %v10179_v60, %v13696_v59  ;;  %vm4765_vm9 = vcmp.eq.s32.totalorder %v10179_v60, %v13761_v38  ;;  %v6654_v35 = vadd.f32 %v9243_v22, %v5534_v42  ;;  %v2173_v8 = vadd.f32 %v8218_v41, %v7962_v36  ;;  %v17443_v41 = vld [vmem:[#allocation37_spill] sm:$0xff] }
 0x2ac   :  { %v4418_v19 = vadd.f32 %v8735_v16, %v3298_v63  ;;  %v8474_v14 = vsel %vm2525_vm4, 1.0, %v17157_v40  ;;  %v9247_v34 = vsel %vm5890_vm8, 1.0, %v17157_v40  ;;  %v8730_v55 = vsel %vm3645_vm10, 1.0, %v17157_v40 }
 0x2ad   :  { %v8986_v1 = vsel %vm4765_vm9, 1.0, %v17157_v40  ;;  %vm545_vm11 = vcmp.eq.s32.totalorder %v10198_v44, %v17439_v53  ;;  %6892 = vmatprep.mubr.f32.mxu1 %v6654_v35  ;;  %v3293_v32 = vadd.f32 %v8474_v14, %v2173_v8  ;;  %vm5885_vm12 = vcmp.eq.s32.totalorder %v10179_v60, %v13830_v51 }
 0x2ae   :  { %v5538_v24 = vadd.f32 %v8991_v4, %v4418_v19  ;;  %v7966_v21 = vsel %vm545_vm11, 1.0, %v17157_v40  ;;  %vm1409_vm13 = vcmp.eq.s32.totalorder %v10198_v44, %v13592_v46  ;;  %vm2529_vm14 = vcmp.eq.s32.totalorder %v10198_v44, %v13644_v61  ;;  %v179_v61 = vld [vmem:[#allocation2 + $0x3c8] sm:$0xff] }
 0x2af   :  { %vm3649_vm15 = vcmp.eq.s32.totalorder %v10198_v44, %v13696_v59  ;;  %vm4769_vm0 = vcmp.eq.s32.totalorder %v10198_v44, %v13761_v38  ;;  %v4413_v23 = vadd.f32 %v8730_v55, %v3293_v32  ;;  %v8222_v22 = vsel %vm1409_vm13, 1.0, %v17157_v40 }
 0x2b0   :  { %v6658_v7 = vadd.f32 %v9247_v34, %v5538_v24  ;;  %v8478_v62 = vsel %vm2529_vm14, 1.0, %v17157_v40  ;;  %v9242_v16 = vsel %vm5885_vm12, 1.0, %v17157_v40  ;;  %v2177_v4 = vadd.f32 %v8222_v22, %v7966_v21 }
 0x2b1   :  { %v8734_v42 = vsel %vm3649_vm15, 1.0, %v17157_v40  ;;  %v8990_v63 = vsel %vm4769_vm0, 1.0, %v17157_v40  ;;  %v5533_v36 = vadd.f32 %v8986_v1, %v4413_v23  ;;  %vm5889_vm1 = vcmp.eq.s32.totalorder %v10198_v44, %v13830_v51  ;;  %v13950_v1 = vpop.permute.xlu1 %2304 }
 0x2b2   :  { %7342 = vmatprep.mubr.f32.mxu0 %v6658_v7  ;;  %vm550_vm2 = vcmp.eq.s32.totalorder %v10191_v6, %v17443_v41  ;;  %vm1414_vm3 = vcmp.eq.s32.totalorder %v10191_v6, %v13922_v52  ;;  %v3297_v35 = vadd.f32 %v8478_v62, %v2177_v4  ;;  %vm2534_vm5 = vcmp.eq.s32.totalorder %v10191_v6, %v12126_v25  ;;  %v109_v4 = vld [vmem:[#allocation2 + $0x198] sm:$0xff] }
 0x2b3   :  { %v7971_v19 = vsel %vm550_vm2, 1.0, %v17157_v40  ;;  %v8227_v8 = vsel %vm1414_vm3, 1.0, %v17157_v40  ;;  %v6653_v14 = vadd.f32 %v9242_v16, %v5533_v36  ;;  %v8483_v55 = vsel %vm2534_vm5, 1.0, %v17157_v40  ;;  %17444 = vst [vmem:[#allocation172_spill] sm:$0xff] %v13950_v1  ;;  %v108_v16 = vld [vmem:[#allocation2 + $0x190] sm:$0xff] }
 0x2b4   :  { %v2182_v34 = vadd.f32 %v8227_v8, %v7971_v19  ;;  %vm3654_vm6 = vcmp.eq.s32.totalorder %v10191_v6, %v13006_v58  ;;  %v4417_v24 = vadd.f32 %v8734_v42, %v3297_v35  ;;  %v9246_v32 = vsel %vm5889_vm1, 1.0, %v17157_v40  ;;  %v172_v19 = vld [vmem:[#allocation2 + $0x390] sm:$0xff] }
 0x2b5   :  { %v8739_v21 = vsel %vm3654_vm6, 1.0, %v17157_v40  ;;  %vm4774_vm7 = vcmp.eq.s32.totalorder %v10191_v6, %v13376_v45  ;;  %6893 = vmatmul.mubr.f32.gmra.mrb[54].mxu1 %v6653_v14  ;;  %vm5894_vm8 = vcmp.eq.s32.totalorder %v10191_v6, %v13893_v17  ;;  %vm554_vm4 = vcmp.eq.s32.totalorder %v10195_v43, %v17443_v41  ;;  %v13975_v51 = vpop.permute.xlu1 %4541 }
 0x2b6   :  { %v3302_v7 = vadd.f32 %v8483_v55, %v2182_v34  ;;  %v8995_v23 = vsel %vm4774_vm7, 1.0, %v17157_v40  ;;  %v5537_v22 = vadd.f32 %v8990_v63, %v4417_v24  ;;  %v7975_v62 = vsel %vm554_vm4, 1.0, %v17157_v40  ;;  %v173_v63 = vld [vmem:[#allocation2 + $0x398] sm:$0xff]  ;;  %17445 = vst [vmem:[#allocation173_spill] sm:$0xff] %v13975_v51 }
 0x2b7   :  { %vm1418_vm10 = vcmp.eq.s32.totalorder %v10195_v43, %v13922_v52  ;;  %vm2538_vm9 = vcmp.eq.s32.totalorder %v10195_v43, %v12126_v25  ;;  %vm3658_vm11 = vcmp.eq.s32.totalorder %v10195_v43, %v13006_v58  ;;  %v9251_v14 = vsel %vm5894_vm8, 1.0, %v17157_v40 }
 0x2b8   :  { %v4422_v42 = vadd.f32 %v8739_v21, %v3302_v7  ;;  %v8231_v36 = vsel %vm1418_vm10, 1.0, %v17157_v40  ;;  %v8487_v35 = vsel %vm2538_vm9, 1.0, %v17157_v40  ;;  %v6657_v8 = vadd.f32 %v9246_v32, %v5537_v22  ;;  %v17446_v22 = vld [vmem:[#allocation161_spill] sm:$0xff] }
 0x2b9   :  { %v2186_v34 = vadd.f32 %v8231_v36, %v7975_v62  ;;  %vm4778_vm12 = vcmp.eq.s32.totalorder %v10195_v43, %v13376_v45  ;;  %v8743_v24 = vsel %vm3658_vm11, 1.0, %v17157_v40  ;;  %v9358_v7 = vpack.c.bf16 %v109_v4, %v108_v16 }
 0x2ba   :  { %v5542_v55 = vadd.f32 %v8995_v23, %v4422_v42  ;;  %v8999_v21 = vsel %vm4778_vm12, 1.0, %v17157_v40  ;;  %7343 = vmatmul.mubr.f32.gmra.mrb[54].mxu0 %v6657_v8  ;;  %vm5898_vm13 = vcmp.eq.s32.totalorder %v10195_v43, %v13893_v17  ;;  %v9454_v32 = vpack.c.bf16 %v173_v63, %v172_v19  ;;  %v110_v8 = vld [vmem:[#allocation2 + $0x1a0] sm:$0xff] }
 0x2bb   :  { %v3306_v38 = vadd.f32 %v8487_v35, %v2186_v34  ;;  %vm549_vm14 = vcmp.eq.s32.totalorder %v10179_v60, %v17443_v41  ;;  %vm2311_vm15 = vcmp.eq.s32.totalorder %v17355_v50, %v17446_v22  ;;  %9359 = vmatpush1.bf16.msra.mxu1 %v9358_v7  ;;  %vm1413_vm0 = vcmp.eq.s32.totalorder %v10179_v60, %v13922_v52  ;;  %v174_v34 = vld [vmem:[#allocation2 + $0x3a0] sm:$0xff]  ;;  %v112_v7 = vld [vmem:[#allocation2 + $0x1b0] sm:$0xff] }
 0x2bc   :  { %v6662_v23 = vadd.f32 %v9251_v14, %v5542_v55  ;;  %v7970_v62 = vsel %vm549_vm14, 1.0, %v17157_v40  ;;  %vm2533_vm1 = vcmp.eq.s32.totalorder %v10179_v60, %v12126_v25  ;;  %9455 = vmatpush1.bf16.msra.mxu0 %v9454_v32  ;;  %v8226_v4 = vsel %vm1413_vm0, 1.0, %v17157_v40  ;;  %9360 = vmatprep.subr.bf16.mxu1 %v17421_v2  ;;  %v111_v14 = vld [vmem:[#allocation2 + $0x1a8] sm:$0xff]  ;;  %v113_v32 = vld [vmem:[#allocation2 + $0x1b8] sm:$0xff] }
 0x2bd   :  { %v4426_v16 = vadd.f32 %v8743_v24, %v3306_v38  ;;  %v8482_v42 = vsel %vm2533_vm1, 1.0, %v17157_v40  ;;  %vm3653_vm2 = vcmp.eq.s32.totalorder %v10179_v60, %v13006_v58  ;;  %v9255_v36 = vsel %vm5898_vm13, 1.0, %v17157_v40  ;;  %9456 = vmatprep.subr.bf16.mxu0 %v17421_v2 }
 0x2be   :  { %6897 = vmatprep.mubr.f32.mxu1 %v6662_v23  ;;  %v2181_v35 = vadd.f32 %v8226_v4, %v7970_v62  ;;  %v8738_v19 = vsel %vm3653_vm2, 1.0, %v17157_v40  ;;  %vm4773_vm3 = vcmp.eq.s32.totalorder %v10179_v60, %v13376_v45  ;;  %vm2315_vm5 = vcmp.eq.s32.totalorder %v17423_v31, %v17446_v22  ;;  %v14013_v23 = vpop.permute.xlu1 %3424 }
 0x2bf   :  { %v5546_v38 = vadd.f32 %v8999_v21, %v4426_v16  ;;  %v8994_v63 = vsel %vm4773_vm3, 1.0, %v17157_v40  ;;  %vm5893_vm6 = vcmp.eq.s32.totalorder %v10179_v60, %v13893_v17  ;;  %vm553_vm7 = vcmp.eq.s32.totalorder %v10198_v44, %v17443_v41  ;;  %v175_v21 = vld [vmem:[#allocation2 + $0x3a8] sm:$0xff]  ;;  %17447 = vst [vmem:[#allocation161_spill] sm:$0xff] %v14013_v23  ;;  %v114_v41 = vld [vmem:[#allocation2 + $0x1c0] sm:$0xff] }
 0x2c0   :  { %v3301_v55 = vadd.f32 %v8482_v42, %v2181_v35  ;;  %v7974_v24 = vsel %vm553_vm7, 1.0, %v17157_v40  ;;  %vm1417_vm8 = vcmp.eq.s32.totalorder %v10198_v44, %v13922_v52  ;;  %vm2537_vm4 = vcmp.eq.s32.totalorder %v10198_v44, %v12126_v25  ;;  %v176_v42 = vld [vmem:[#allocation2 + $0x3b0] sm:$0xff]  ;;  %v177_v35 = vld [vmem:[#allocation2 + $0x3b8] sm:$0xff] }
 0x2c1   :  { %v6666_v62 = vadd.f32 %v9255_v36, %v5546_v38  ;;  %v8230_v16 = vsel %vm1417_vm8, 1.0, %v17157_v40  ;;  %v8486_v4 = vsel %vm2537_vm4, 1.0, %v17157_v40  ;;  %vm3657_vm10 = vcmp.eq.s32.totalorder %v10198_v44, %v13006_v58  ;;  %v115_v36 = vld [vmem:[#allocation2 + $0x1c8] sm:$0xff]  ;;  %v178_v38 = vld [vmem:[#allocation2 + $0x3c0] sm:$0xff] }
 0x2c2   :  { %v4421_v52 = vadd.f32 %v8738_v19, %v3301_v55  ;;  %v9250_v25 = vsel %vm5893_vm6, 1.0, %v17157_v40  ;;  %v2185_v59 = vadd.f32 %v8230_v16, %v7974_v24  ;;  %vm4777_vm9 = vcmp.eq.s32.totalorder %v10198_v44, %v13376_v45 }
 0x2c3   :  { %7347 = vmatprep.mubr.f32.mxu0 %v6666_v62  ;;  %v8742_v46 = vsel %vm3657_vm10, 1.0, %v17157_v40  ;;  %vm5897_vm11 = vcmp.eq.s32.totalorder %v10198_v44, %v13893_v17  ;;  %v9361_v58 = vpack.c.bf16 %v111_v14, %v110_v8  ;;  %v9457_v19 = vpack.c.bf16 %v175_v21, %v174_v34  ;;  %v14032_v8 = vpop.permute.xlu1 %5661 }
 0x2c4   :  { %v5541_v55 = vadd.f32 %v8994_v63, %v4421_v52  ;;  %v3305_v53 = vadd.f32 %v8486_v4, %v2185_v59  ;;  %v8998_v37 = vsel %vm4777_vm9, 1.0, %v17157_v40  ;;  %v9364_v9 = vpack.c.bf16 %v113_v32, %v112_v7  ;;  %17448 = vst [vmem:[#allocation174_spill] sm:$0xff] %v14032_v8  ;;  %v17449_v52 = vld [vmem:[#allocation36_spill] sm:$0xff] }
 0x2c5   :  { %v9254_v24 = vsel %vm5897_vm11, 1.0, %v17157_v40  ;;  %9362 = vmatpush1.bf16.msra.mxu1 %v9361_v58  ;;  %9458 = vmatpush1.bf16.msra.mxu0 %v9457_v19  ;;  %v9460_v16 = vpack.c.bf16 %v177_v35, %v176_v42  ;;  %v9367_v45 = vpack.c.bf16 %v115_v36, %v114_v41  ;;  %v9463_v48 = vpack.c.bf16 %v179_v61, %v178_v38  ;;  %v14086_v36 = vpop.permute.xlu0 %1187 }
 0x2c6   :  { %v6661_v62 = vadd.f32 %v9250_v25, %v5541_v55  ;;  %v4425_v26 = vadd.f32 %v8742_v46, %v3305_v53  ;;  %9363 = vmatprep.subr.bf16.mxu1 %v17421_v2  ;;  %9459 = vmatprep.subr.bf16.mxu0 %v17421_v2  ;;  %vm558_vm12 = vcmp.eq.s32.totalorder %v10191_v6, %v17449_v52  ;;  %v14037_v59 = vadd.s32 896, %v10179_v60 }
 0x2c7   :  { %vm1422_vm13 = vcmp.eq.s32.totalorder %v10191_v6, %v13799_v29  ;;  %vm2542_vm14 = vcmp.eq.s32.totalorder %v10191_v6, %v13852_v13  ;;  %vm3662_vm0 = vcmp.eq.s32.totalorder %v10191_v6, %v13920_v47  ;;  %v14049_v25 = vsel %vm2311_vm15, 1.0, %v17157_v40 }
 0x2c8   :  { %6898 = vmatmul.mubr.f32.gmra.mrb[56].mxu1 %v6661_v62  ;;  %v5545_v58 = vadd.f32 %v8998_v37, %v4425_v26  ;;  %v7979_v46 = vsel %vm558_vm12, 1.0, %v17157_v40  ;;  %v8235_v61 = vsel %vm1422_vm13, 1.0, %v17157_v40  ;;  %v8491_v53 = vsel %vm2542_vm14, 1.0, %v17157_v40 }
 0x2c9   :  { %9365 = vmatpush1.bf16.msra.mxu1 %v9364_v9  ;;  %9461 = vmatpush1.bf16.msra.mxu0 %v9460_v16  ;;  %v2190_v41 = vadd.f32 %v8235_v61, %v7979_v46  ;;  %v8747_v63 = vsel %vm3662_vm0, 1.0, %v17157_v40  ;;  %vm4782_vm1 = vcmp.eq.s32.totalorder %v10191_v6, %v13975_v51  ;;  %vm5902_vm15 = vcmp.eq.s32.totalorder %v10191_v6, %v14032_v8  ;;  %v117_v16 = vld [vmem:[#allocation2 + $0x1d8] sm:$0xff] }
 0x2ca   :  { %v6665_v14 = vadd.f32 %v9254_v24, %v5545_v58  ;;  %9366 = vmatprep.subr.bf16.mxu1 %v17421_v2  ;;  %9462 = vmatprep.subr.bf16.mxu0 %v17421_v2  ;;  %v9003_v26 = vsel %vm4782_vm1, 1.0, %v17157_v40  ;;  %vm562_vm2 = vcmp.eq.s32.totalorder %v10195_v43, %v17449_v52  ;;  %v14068_v9 = vsel %vm2315_vm5, 1.0, %v17157_v40  ;;  %v116_v24 = vld [vmem:[#allocation2 + $0x1d0] sm:$0xff] }
 0x2cb   :  { %v3310_v37 = vadd.f32 %v8491_v53, %v2190_v41  ;;  %v7983_v34 = vsel %vm562_vm2, 1.0, %v17157_v40  ;;  %vm1426_vm3 = vcmp.eq.s32.totalorder %v10195_v43, %v13799_v29  ;;  %vm2546_vm6 = vcmp.eq.s32.totalorder %v10195_v43, %v13852_v13 }
 0x2cc   :  { %7348 = vmatmul.mubr.f32.gmra.mrb[56].mxu0 %v6665_v14  ;;  %v8239_v21 = vsel %vm1426_vm3, 1.0, %v17157_v40  ;;  %v8495_v7 = vsel %vm2546_vm6, 1.0, %v17157_v40  ;;  %vm3666_vm7 = vcmp.eq.s32.totalorder %v10195_v43, %v13920_v47  ;;  %vm4786_vm5 = vcmp.eq.s32.totalorder %v10195_v43, %v13975_v51 }
 0x2cd   :  { %9368 = vmatpush1.bf16.msra.mxu1 %v9367_v45  ;;  %9464 = vmatpush1.bf16.msra.mxu0 %v9463_v48  ;;  %v4430_v32 = vadd.f32 %v8747_v63, %v3310_v37  ;;  %v9259_v4 = vsel %vm5902_vm15, 1.0, %v17157_v40  ;;  %v2194_v42 = vadd.f32 %v8239_v21, %v7983_v34  ;;  %v8751_v35 = vsel %vm3666_vm7, 1.0, %v17157_v40  ;;  %v14114_v21 = vpop.permute.xlu0 %2307 }
 0x2ce   :  { %9369 = vmatprep.subr.bf16.mxu1 %v17421_v2  ;;  %v9007_v38 = vsel %vm4786_vm5, 1.0, %v17157_v40  ;;  %vm5906_vm8 = vcmp.eq.s32.totalorder %v10195_v43, %v14032_v8  ;;  %9465 = vmatprep.subr.bf16.mxu0 %v17421_v2  ;;  %vm557_vm4 = vcmp.eq.s32.totalorder %v10179_v60, %v17449_v52  ;;  %vm1421_vm10 = vcmp.eq.s32.totalorder %v10179_v60, %v13799_v29 }
 0x2cf   :  { %v5550_v45 = vadd.f32 %v9003_v26, %v4430_v32  ;;  %v3314_v48 = vadd.f32 %v8495_v7, %v2194_v42  ;;  %v9263_v19 = vsel %vm5906_vm8, 1.0, %v17157_v40  ;;  %v7978_v55 = vsel %vm557_vm4, 1.0, %v17157_v40  ;;  %v180_v32 = vld [vmem:[#allocation2 + $0x3d0] sm:$0xff] }
 0x2d0   :  { %v8234_v62 = vsel %vm1421_vm10, 1.0, %v17157_v40  ;;  %vm2541_vm9 = vcmp.eq.s32.totalorder %v10179_v60, %v13852_v13  ;;  %vm3661_vm11 = vcmp.eq.s32.totalorder %v10179_v60, %v13920_v47  ;;  %vm4781_vm12 = vcmp.eq.s32.totalorder %v10179_v60, %v13975_v51 }
 0x2d1   :  { %v6670_v58 = vadd.f32 %v9259_v4, %v5550_v45  ;;  %v4434_v46 = vadd.f32 %v8751_v35, %v3314_v48  ;;  %v2189_v61 = vadd.f32 %v8234_v62, %v7978_v55  ;;  %v8490_v53 = vsel %vm2541_vm9, 1.0, %v17157_v40  ;;  %v181_v4 = vld [vmem:[#allocation2 + $0x3d8] sm:$0xff] }
 0x2d2   :  { %v8746_v41 = vsel %vm3661_vm11, 1.0, %v17157_v40  ;;  %v9002_v63 = vsel %vm4781_vm12, 1.0, %v17157_v40  ;;  %vm5901_vm13 = vcmp.eq.s32.totalorder %v10179_v60, %v14032_v8  ;;  %v9370_v14 = vpack.c.bf16 %v117_v16, %v116_v24  ;;  %v14131_v24 = vpop.permute.xlu1 %4544 }
 0x2d3   :  { %6902 = vmatprep.mubr.f32.mxu1 %v6670_v58  ;;  %v5554_v26 = vadd.f32 %v9007_v38, %v4434_v46  ;;  %v3309_v37 = vadd.f32 %v8490_v53, %v2189_v61  ;;  %v9258_v34 = vsel %vm5901_vm13, 1.0, %v17157_v40  ;;  %vm561_vm14 = vcmp.eq.s32.totalorder %v10198_v44, %v17449_v52  ;;  %17450 = vst [vmem:[#allocation36_spill] sm:$0xff] %v14131_v24  ;;  %v14135_v61 = vpop.permute.xlu0 %5664  ;;  %v17451_v53 = vld [vmem:[#allocation40_spill] sm:$0xff] }
 0x2d4   :  { %9371 = vmatpush1.bf16.msra.mxu1 %v9370_v14  ;;  %v7982_v7 = vsel %vm561_vm14, 1.0, %v17157_v40  ;;  %vm1425_vm0 = vcmp.eq.s32.totalorder %v10198_v44, %v13799_v29  ;;  %vm2545_vm1 = vcmp.eq.s32.totalorder %v10198_v44, %v13852_v13  ;;  %vm3665_vm15 = vcmp.eq.s32.totalorder %v10198_v44, %v13920_v47  ;;  %v17452_v47 = vld [vmem:[#allocation39_spill] sm:$0xff] }
 0x2d5   :  { %v6674_v42 = vadd.f32 %v9263_v19, %v5554_v26  ;;  %v4429_v35 = vadd.f32 %v8746_v41, %v3309_v37  ;;  %v8238_v38 = vsel %vm1425_vm0, 1.0, %v17157_v40  ;;  %v8494_v45 = vsel %vm2545_vm1, 1.0, %v17157_v40  ;;  %9372 = vmatprep.subr.bf16.mxu1 %v17421_v2 }
 0x2d6   :  { %v2193_v48 = vadd.f32 %v8238_v38, %v7982_v7  ;;  %v8750_v55 = vsel %vm3665_vm15, 1.0, %v17157_v40  ;;  %vm4785_vm2 = vcmp.eq.s32.totalorder %v10198_v44, %v13975_v51  ;;  %vm5905_vm3 = vcmp.eq.s32.totalorder %v10198_v44, %v14032_v8 }
 0x2d7   :  { %7352 = vmatprep.mubr.f32.mxu0 %v6674_v42  ;;  %v5549_v19 = vadd.f32 %v9002_v63, %v4429_v35  ;;  %v9006_v16 = vsel %vm4785_vm2, 1.0, %v17157_v40  ;;  %v9262_v62 = vsel %vm5905_vm3, 1.0, %v17157_v40  ;;  %v9466_v58 = vpack.c.bf16 %v181_v4, %v180_v32 }
 0x2d8   :  { %v3313_v46 = vadd.f32 %v8494_v45, %v2193_v48  ;;  %vm566_vm6 = vcmp.eq.s32.totalorder %v10191_v6, %v17451_v53  ;;  %vm1430_vm7 = vcmp.eq.s32.totalorder %v10191_v6, %v13891_v27  ;;  %vm2550_vm5 = vcmp.eq.s32.totalorder %v10191_v6, %v13950_v1  ;;  %v14167_v48 = vpop.permute.xlu1 %3427 }
 0x2d9   :  { %v6669_v41 = vadd.f32 %v9258_v34, %v5549_v19  ;;  %9467 = vmatpush1.bf16.msra.mxu0 %v9466_v58  ;;  %v7987_v63 = vsel %vm566_vm6, 1.0, %v17157_v40  ;;  %v8243_v14 = vsel %vm1430_vm7, 1.0, %v17157_v40  ;;  %v8499_v26 = vsel %vm2550_vm5, 1.0, %v17157_v40 }
 0x2da   :  { %v4433_v37 = vadd.f32 %v8750_v55, %v3313_v46  ;;  %v2198_v7 = vadd.f32 %v8243_v14, %v7987_v63  ;;  %vm3670_vm8 = vcmp.eq.s32.totalorder %v10191_v6, %v14013_v23  ;;  %vm4790_vm4 = vcmp.eq.s32.totalorder %v10191_v6, %v14131_v24  ;;  %9468 = vmatprep.subr.bf16.mxu0 %v17421_v2 }
 0x2db   :  { %6903 = vmatmul.mubr.f32.gmra.mrb[58].mxu1 %v6669_v41  ;;  %v8755_v34 = vsel %vm3670_vm8, 1.0, %v17157_v40  ;;  %v9011_v32 = vsel %vm4790_vm4, 1.0, %v17157_v40  ;;  %vm5910_vm10 = vcmp.eq.s32.totalorder %v10191_v6, %v14135_v61  ;;  %vm570_vm9 = vcmp.eq.s32.totalorder %v10195_v43, %v17451_v53 }
 0x2dc   :  { %v5553_v4 = vadd.f32 %v9006_v16, %v4433_v37  ;;  %v3318_v42 = vadd.f32 %v8499_v26, %v2198_v7  ;;  %v9267_v35 = vsel %vm5910_vm10, 1.0, %v17157_v40  ;;  %v7991_v38 = vsel %vm570_vm9, 1.0, %v17157_v40 }
 0x2dd   :  { %vm1434_vm11 = vcmp.eq.s32.totalorder %v10195_v43, %v13891_v27  ;;  %vm2554_vm12 = vcmp.eq.s32.totalorder %v10195_v43, %v13950_v1  ;;  %vm3674_vm13 = vcmp.eq.s32.totalorder %v10195_v43, %v14013_v23  ;;  %vm4794_vm14 = vcmp.eq.s32.totalorder %v10195_v43, %v14131_v24 }
 0x2de   :  { %v6673_v45 = vadd.f32 %v9262_v62, %v5553_v4  ;;  %v4438_v55 = vadd.f32 %v8755_v34, %v3318_v42  ;;  %v8247_v19 = vsel %vm1434_vm11, 1.0, %v17157_v40  ;;  %v8503_v16 = vsel %vm2554_vm12, 1.0, %v17157_v40 }
 0x2df   :  { %v2202_v58 = vadd.f32 %v8247_v19, %v7991_v38  ;;  %v8759_v46 = vsel %vm3674_vm13, 1.0, %v17157_v40  ;;  %v9015_v41 = vsel %vm4794_vm14, 1.0, %v17157_v40  ;;  %vm5914_vm0 = vcmp.eq.s32.totalorder %v10195_v43, %v14135_v61 }
 0x2e0   :  { %7353 = vmatmul.mubr.f32.gmra.mrb[58].mxu0 %v6673_v45  ;;  %v5558_v63 = vadd.f32 %v9011_v32, %v4438_v55  ;;  %v9271_v14 = vsel %vm5914_vm0, 1.0, %v17157_v40  ;;  %vm565_vm1 = vcmp.eq.s32.totalorder %v10179_v60, %v17451_v53  ;;  %vm1429_vm15 = vcmp.eq.s32.totalorder %v10179_v60, %v13891_v27  ;;  %v14196_v55 = vpop.permute.xlu1 %4547 }
 0x2e1   :  { %v3322_v62 = vadd.f32 %v8503_v16, %v2202_v58  ;;  %v7986_v26 = vsel %vm565_vm1, 1.0, %v17157_v40  ;;  %v8242_v37 = vsel %vm1429_vm15, 1.0, %v17157_v40  ;;  %vm2549_vm2 = vcmp.eq.s32.totalorder %v10179_v60, %v13950_v1  ;;  %v118_v58 = vld [vmem:[#allocation2 + $0x1e0] sm:$0xff] }
 0x2e2   :  { %v6678_v7 = vadd.f32 %v9267_v35, %v5558_v63  ;;  %v2197_v34 = vadd.f32 %v8242_v37, %v7986_v26  ;;  %v8498_v32 = vsel %vm2549_vm2, 1.0, %v17157_v40  ;;  %vm3669_vm3 = vcmp.eq.s32.totalorder %v10179_v60, %v14013_v23  ;;  %v182_v63 = vld [vmem:[#allocation2 + $0x3e0] sm:$0xff] }
 0x2e3   :  { %v4442_v4 = vadd.f32 %v8759_v46, %v3322_v62  ;;  %v8754_v42 = vsel %vm3669_vm3, 1.0, %v17157_v40  ;;  %vm4789_vm6 = vcmp.eq.s32.totalorder %v10179_v60, %v14131_v24  ;;  %vm5909_vm7 = vcmp.eq.s32.totalorder %v10179_v60, %v14135_v61  ;;  %v119_v46 = vld [vmem:[#allocation2 + $0x1e8] sm:$0xff] }
 0x2e4   :  { %6907 = vmatprep.mubr.f32.mxu1 %v6678_v7  ;;  %v3317_v38 = vadd.f32 %v8498_v32, %v2197_v34  ;;  %v9010_v45 = vsel %vm4789_vm6, 1.0, %v17157_v40  ;;  %v9266_v35 = vsel %vm5909_vm7, 1.0, %v17157_v40  ;;  %vm569_vm5 = vcmp.eq.s32.totalorder %v10198_v44, %v17451_v53  ;;  %v120_v7 = vld [vmem:[#allocation2 + $0x1f0] sm:$0xff]  ;;  %v121_v34 = vld [vmem:[#allocation2 + $0x1f8] sm:$0xff] }
 0x2e5   :  { %v5562_v19 = vadd.f32 %v9015_v41, %v4442_v4  ;;  %v7990_v16 = vsel %vm569_vm5, 1.0, %v17157_v40  ;;  %vm1433_vm8 = vcmp.eq.s32.totalorder %v10198_v44, %v13891_v27  ;;  %vm2553_vm4 = vcmp.eq.s32.totalorder %v10198_v44, %v13950_v1  ;;  %v183_v41 = vld [vmem:[#allocation2 + $0x3e8] sm:$0xff]  ;;  %v184_v1 = vld [vmem:[#allocation2 + $0x3f0] sm:$0xff]  ;;  %v185_v53 = vld [vmem:[#allocation2 + $0x3f8] sm:$0xff] }
 0x2e6   :  { %v4437_v62 = vadd.f32 %v8754_v42, %v3317_v38  ;;  %v8246_v26 = vsel %vm1433_vm8, 1.0, %v17157_v40  ;;  %v8502_v37 = vsel %vm2553_vm4, 1.0, %v17157_v40  ;;  %vm3673_vm10 = vcmp.eq.s32.totalorder %v10198_v44, %v14013_v23 }
 0x2e7   :  { %v6682_v32 = vadd.f32 %v9271_v14, %v5562_v19  ;;  %v2201_v4 = vadd.f32 %v8246_v26, %v7990_v16  ;;  %v8758_v27 = vsel %vm3673_vm10, 1.0, %v17157_v40  ;;  %vm4793_vm9 = vcmp.eq.s32.totalorder %v10198_v44, %v14131_v24  ;;  %v14214_v26 = vpop.permute.xlu1 %5667 }
 0x2e8   :  { %v5557_v42 = vadd.f32 %v9010_v45, %v4437_v62  ;;  %v9014_v38 = vsel %vm4793_vm9, 1.0, %v17157_v40  ;;  %vm5913_vm11 = vcmp.eq.s32.totalorder %v10198_v44, %v14135_v61  ;;  %v9373_v8 = vpack.c.bf16 %v119_v46, %v118_v58 }
 0x2e9   :  { %7357 = vmatprep.mubr.f32.mxu0 %v6682_v32  ;;  %v3321_v23 = vadd.f32 %v8502_v37, %v2201_v4  ;;  %v9270_v51 = vsel %vm5913_vm11, 1.0, %v17157_v40  ;;  %v9469_v14 = vpack.c.bf16 %v183_v41, %v182_v63  ;;  %v9376_v19 = vpack.c.bf16 %v121_v34, %v120_v7 }
 0x2ea   :  { %v6677_v16 = vadd.f32 %v9266_v35, %v5557_v42  ;;  %9374 = vmatpush1.bf16.msra.mxu1 %v9373_v8  ;;  %v9472_v24 = vpack.c.bf16 %v185_v53, %v184_v1  ;;  %vm574_vm12 = vcmp.eq.s32.totalorder %v10191_v6, %v17452_v47  ;;  %vm1438_vm13 = vcmp.eq.s32.totalorder %v10191_v6, %v14086_v36 }
 0x2eb   :  { %v4441_v45 = vadd.f32 %v8758_v27, %v3321_v23  ;;  %9470 = vmatpush1.bf16.msra.mxu0 %v9469_v14  ;;  %9375 = vmatprep.subr.bf16.mxu1 %v17421_v2  ;;  %v7995_v58 = vsel %vm574_vm12, 1.0, %v17157_v40  ;;  %v8251_v46 = vsel %vm1438_vm13, 1.0, %v17157_v40  ;;  %vm2558_vm14 = vcmp.eq.s32.totalorder %v10191_v6, %v14114_v21 }
 0x2ec   :  { %6908 = vmatmul.mubr.f32.gmra.mrb[60].mxu1 %v6677_v16  ;;  %9471 = vmatprep.subr.bf16.mxu0 %v17421_v2  ;;  %v2206_v1 = vadd.f32 %v8251_v46, %v7995_v58  ;;  %v8507_v8 = vsel %vm2558_vm14, 1.0, %v17157_v40  ;;  %vm3678_vm0 = vcmp.eq.s32.totalorder %v10191_v6, %v14167_v48  ;;  %vm4798_vm1 = vcmp.eq.s32.totalorder %v10191_v6, %v14196_v55 }
 0x2ed   :  { %v5561_v27 = vadd.f32 %v9014_v38, %v4441_v45  ;;  %v8763_v23 = vsel %vm3678_vm0, 1.0, %v17157_v40  ;;  %v9019_v53 = vsel %vm4798_vm1, 1.0, %v17157_v40  ;;  %vm5918_vm15 = vcmp.eq.s32.totalorder %v10191_v6, %v14214_v26 }
 0x2ee   :  { %9377 = vmatpush1.bf16.msra.mxu1 %v9376_v19  ;;  %v3326_v35 = vadd.f32 %v8507_v8, %v2206_v1  ;;  %v9275_v2 = vsel %vm5918_vm15, 1.0, %v17157_v40  ;;  %vm578_vm2 = vcmp.eq.s32.totalorder %v10195_v43, %v17452_v47  ;;  %vm1442_vm3 = vcmp.eq.s32.totalorder %v10195_v43, %v14086_v36 }
 0x2ef   :  { %v6681_v63 = vadd.f32 %v9270_v51, %v5561_v27  ;;  %9473 = vmatpush1.bf16.msra.mxu0 %v9472_v24  ;;  %v7999_v62 = vsel %vm578_vm2, 1.0, %v17157_v40  ;;  %v8255_v37 = vsel %vm1442_vm3, 1.0, %v17157_v40  ;;  %vm2562_vm6 = vcmp.eq.s32.totalorder %v10195_v43, %v14114_v21 }
 0x2f0   :  { %v4446_v6 = vadd.f32 %v8763_v23, %v3326_v35  ;;  %v2210_v41 = vadd.f32 %v8255_v37, %v7999_v62  ;;  %v8511_v7 = vsel %vm2562_vm6, 1.0, %v17157_v40  ;;  %vm3682_vm7 = vcmp.eq.s32.totalorder %v10195_v43, %v14167_v48  ;;  %v17453_v37 = vld [vmem:[#allocation9_spill] sm:$0xff] }
 0x2f1   :  { %7358 = vmatmul.mubr.f32.gmra.mrb[60].mxu0 %v6681_v63  ;;  %v8767_v34 = vsel %vm3682_vm7, 1.0, %v17157_v40  ;;  %vm4802_vm5 = vcmp.eq.s32.totalorder %v10195_v43, %v14196_v55  ;;  %vm5922_vm8 = vcmp.eq.s32.totalorder %v10195_v43, %v14214_v26  ;;  %vm573_vm4 = vcmp.eq.s32.totalorder %v10179_v60, %v17452_v47 }
 0x2f2   :  { %v5566_v51 = vadd.f32 %v9019_v53, %v4446_v6  ;;  %v3330_v24 = vadd.f32 %v8511_v7, %v2210_v41  ;;  %v9023_v32 = vsel %vm4802_vm5, 1.0, %v17157_v40  ;;  %v9279_v4 = vsel %vm5922_vm8, 1.0, %v17157_v40 }
 0x2f3   :  { %v7994_v42 = vsel %vm573_vm4, 1.0, %v17157_v40  ;;  %vm1437_vm10 = vcmp.eq.s32.totalorder %v10179_v60, %v14086_v36  ;;  %vm2557_vm9 = vcmp.eq.s32.totalorder %v10179_v60, %v14114_v21  ;;  %vm3677_vm11 = vcmp.eq.s32.totalorder %v10179_v60, %v14167_v48 }
 0x2f4   :  { %v6686_v43 = vadd.f32 %v9275_v2, %v5566_v51  ;;  %v4450_v38 = vadd.f32 %v8767_v34, %v3330_v24  ;;  %v8250_v14 = vsel %vm1437_vm10, 1.0, %v17157_v40  ;;  %v8506_v19 = vsel %vm2557_vm9, 1.0, %v17157_v40  ;;  %v17454_v24 = vld [vmem:[#allocation117_spill] sm:$0xff] }
 0x2f5   :  { %v2205_v16 = vadd.f32 %v8250_v14, %v7994_v42  ;;  %v8762_v45 = vsel %vm3677_vm11, 1.0, %v17157_v40  ;;  %vm4797_vm12 = vcmp.eq.s32.totalorder %v10179_v60, %v14196_v55  ;;  %vm5917_vm13 = vcmp.eq.s32.totalorder %v10179_v60, %v14214_v26 }
 0x2f6   :  { %6912 = vmatprep.mubr.f32.mxu1 %v6686_v43  ;;  %v5570_v58 = vadd.f32 %v9023_v32, %v4450_v38  ;;  %v9018_v46 = vsel %vm4797_vm12, 1.0, %v17157_v40  ;;  %v9274_v1 = vsel %vm5917_vm13, 1.0, %v17157_v40  ;;  %vm577_vm14 = vcmp.eq.s32.totalorder %v10198_v44, %v17452_v47 }
 0x2f7   :  { %v3325_v8 = vadd.f32 %v8506_v19, %v2205_v16  ;;  %v7998_v27 = vsel %vm577_vm14, 1.0, %v17157_v40  ;;  %vm1441_vm0 = vcmp.eq.s32.totalorder %v10198_v44, %v14086_v36  ;;  %vm2561_vm1 = vcmp.eq.s32.totalorder %v10198_v44, %v14114_v21  ;;  %v17456_v19 = vld [vmem:[#allocation142_spill] sm:$0xff] }
 0x2f8   :  { %v6690_v23 = vadd.f32 %v9279_v4, %v5570_v58  ;;  %v8254_v60 = vsel %vm1441_vm0, 1.0, %v17157_v40  ;;  %v8510_v53 = vsel %vm2561_vm1, 1.0, %v17157_v40  ;;  %vm3681_vm15 = vcmp.eq.s32.totalorder %v10198_v44, %v14167_v48 }
 0x2f9   :  { %v4445_v35 = vadd.f32 %v8762_v45, %v3325_v8  ;;  %v2209_v2 = vadd.f32 %v8254_v60, %v7998_v27  ;;  %v8766_v63 = vsel %vm3681_vm15, 1.0, %v17157_v40  ;;  %vm4801_vm2 = vcmp.eq.s32.totalorder %v10198_v44, %v14196_v55 }
 0x2fa   :  { %7362 = vmatprep.mubr.f32.mxu0 %v6690_v23  ;;  %v9022_v62 = vsel %vm4801_vm2, 1.0, %v17157_v40  ;;  %vm5921_vm3 = vcmp.eq.s32.totalorder %v10198_v44, %v14214_v26  ;;  %vm328_vm6 = vcmp.eq.s32.totalorder %v13770_v3, %v17453_v37  ;;  %vm1192_vm7 = vcmp.eq.s32.totalorder %v13770_v3, %v17354_v11  ;;  %v17455_v44 = vld [vmem:[#allocation56_spill] sm:$0xff] }
 0x2fb   :  { %v5565_v6 = vadd.f32 %v9018_v46, %v4445_v35  ;;  %v3329_v41 = vadd.f32 %v8510_v53, %v2209_v2  ;;  %v9278_v7 = vsel %vm5921_vm3, 1.0, %v17157_v40  ;;  %v7749_v34 = vsel %vm328_vm6, 1.0, %v17157_v40 }
 0x2fc   :  { %v8005_v51 = vsel %vm1192_vm7, 1.0, %v17157_v40  ;;  %vm2312_vm5 = vcmp.eq.s32.totalorder %v13770_v3, %v17446_v22  ;;  %vm3432_vm8 = vcmp.eq.s32.totalorder %v13770_v3, %v17454_v24  ;;  %vm4552_vm4 = vcmp.eq.s32.totalorder %v13770_v3, %v17455_v44 }
 0x2fd   :  { %v6685_v32 = vadd.f32 %v9274_v1, %v5565_v6  ;;  %v4449_v4 = vadd.f32 %v8766_v63, %v3329_v41  ;;  %v1960_v42 = vadd.f32 %v8005_v51, %v7749_v34  ;;  %v8261_v43 = vsel %vm2312_vm5, 1.0, %v17157_v40 }
 0x2fe   :  { %v8517_v38 = vsel %vm3432_vm8, 1.0, %v17157_v40  ;;  %v8773_v14 = vsel %vm4552_vm4, 1.0, %v17157_v40  ;;  %vm5672_vm10 = vcmp.eq.s32.totalorder %v13770_v3, %v17456_v19  ;;  %vm332_vm9 = vcmp.eq.s32.totalorder %v14037_v59, %v17453_v37 }
 0x2ff   :  { %6913 = vmatmul.mubr.f32.gmra.mrb[62].mxu1 %v6685_v32  ;;  %v5569_v16 = vadd.f32 %v9022_v62, %v4449_v4  ;;  %v3080_v45 = vadd.f32 %v8261_v43, %v1960_v42  ;;  %v9029_v58 = vsel %vm5672_vm10, 1.0, %v17157_v40  ;;  %v7753_v46 = vsel %vm332_vm9, 1.0, %v17157_v40 }
 0x300   :  { %vm1196_vm11 = vcmp.eq.s32.totalorder %v14037_v59, %v17354_v11  ;;  %vm2316_vm12 = vcmp.eq.s32.totalorder %v14037_v59, %v17446_v22  ;;  %vm3436_vm13 = vcmp.eq.s32.totalorder %v14037_v59, %v17454_v24  ;;  %vm4556_vm14 = vcmp.eq.s32.totalorder %v14037_v59, %v17455_v44 }
 0x301   :  { %v6689_v1 = vadd.f32 %v9278_v7, %v5569_v16  ;;  %v4200_v8 = vadd.f32 %v8517_v38, %v3080_v45  ;;  %v8009_v27 = vsel %vm1196_vm11, 1.0, %v17157_v40  ;;  %v8265_v23 = vsel %vm2316_vm12, 1.0, %v17157_v40 }
 0x302   :  { %v1964_v60 = vadd.f32 %v8009_v27, %v7753_v46  ;;  %v8521_v53 = vsel %vm3436_vm13, 1.0, %v17157_v40  ;;  %v8777_v11 = vsel %vm4556_vm14, 1.0, %v17157_v40  ;;  %vm5676_vm0 = vcmp.eq.s32.totalorder %v14037_v59, %v17456_v19 }
 0x303   :  { %7363 = vmatmul.mubr.f32.gmra.mrb[62].mxu0 %v6689_v1  ;;  %v5320_v22 = vadd.f32 %v8773_v14, %v4200_v8  ;;  %v9033_v35 = vsel %vm5676_vm0, 1.0, %v17157_v40  ;;  %vm327_vm1 = vcmp.eq.s32.totalorder %v17355_v50, %v17453_v37  ;;  %vm3431_vm15 = vcmp.eq.s32.totalorder %v17355_v50, %v17454_v24  ;;  %v17457_v14 = vld [vmem:[#allocation11_spill] sm:$0xff] }
 0x304   :  { %v3084_v2 = vadd.f32 %v8265_v23, %v1964_v60  ;;  %v7748_v63 = vsel %vm327_vm1, 1.0, %v17157_v40  ;;  %v8516_v62 = vsel %vm3431_vm15, 1.0, %v17157_v40  ;;  %vm4551_vm2 = vcmp.eq.s32.totalorder %v17355_v50, %v17455_v44  ;;  %v17459_v1 = vld [vmem:[#allocation127_spill] sm:$0xff]  ;;  %v17461_v60 = vld [vmem:[#allocation144_spill] sm:$0xff] }
 0x305   :  { %v6440_v6 = vadd.f32 %v9029_v58, %v5320_v22  ;;  %v1959_v41 = vadd.f32 %v12694_v28, %v7748_v63  ;;  %v8772_v7 = vsel %vm4551_vm2, 1.0, %v17157_v40  ;;  %vm5671_vm3 = vcmp.eq.s32.totalorder %v17355_v50, %v17456_v19  ;;  %v17462_v22 = vld [vmem:[#allocation90_spill] sm:$0xff] }
 0x306   :  { %v4204_v34 = vadd.f32 %v8521_v53, %v3084_v2  ;;  %v9028_v51 = vsel %vm5671_vm3, 1.0, %v17157_v40  ;;  %vm331_vm6 = vcmp.eq.s32.totalorder %v17423_v31, %v17453_v37  ;;  %vm3435_vm7 = vcmp.eq.s32.totalorder %v17423_v31, %v17454_v24 }
 0x307   :  { %6982 = vmatprep.mubr.f32.mxu1 %v6440_v6  ;;  %v3079_v32 = vadd.f32 %v14049_v25, %v1959_v41  ;;  %v7752_v4 = vsel %vm331_vm6, 1.0, %v17157_v40  ;;  %v8520_v28 = vsel %vm3435_vm7, 1.0, %v17157_v40  ;;  %vm4555_vm5 = vcmp.eq.s32.totalorder %v17423_v31, %v17455_v44  ;;  %v17458_v25 = vld [vmem:[#allocation43_spill] sm:$0xff] }
 0x308   :  { %v5324_v42 = vadd.f32 %v8777_v11, %v4204_v34  ;;  %v1963_v43 = vadd.f32 %v13582_v20, %v7752_v4  ;;  %v8776_v38 = vsel %vm4555_vm5, 1.0, %v17157_v40  ;;  %vm5675_vm8 = vcmp.eq.s32.totalorder %v17423_v31, %v17456_v19  ;;  %v17460_v19 = vld [vmem:[#allocation133_spill] sm:$0xff] }
 0x309   :  { %v4199_v37 = vadd.f32 %v8516_v62, %v3079_v32  ;;  %v9032_v24 = vsel %vm5675_vm8, 1.0, %v17157_v40  ;;  %vm336_vm4 = vcmp.eq.s32.totalorder %v13770_v3, %v17457_v14  ;;  %vm1200_vm10 = vcmp.eq.s32.totalorder %v13770_v3, %v17458_v25 }
 0x30a   :  { %v6444_v16 = vadd.f32 %v9033_v35, %v5324_v42  ;;  %v3083_v44 = vadd.f32 %v14068_v9, %v1963_v43  ;;  %v7757_v45 = vsel %vm336_vm4, 1.0, %v17157_v40  ;;  %v8013_v20 = vsel %vm1200_vm10, 1.0, %v17157_v40 }
 0x30b   :  { %v5319_v58 = vadd.f32 %v8772_v7, %v4199_v37  ;;  %v1968_v46 = vadd.f32 %v8013_v20, %v7757_v45  ;;  %vm2320_vm9 = vcmp.eq.s32.totalorder %v13770_v3, %v17459_v1  ;;  %vm3440_vm11 = vcmp.eq.s32.totalorder %v13770_v3, %v17460_v19 }
 0x30c   :  { %7432 = vmatprep.mubr.f32.mxu0 %v6444_v16  ;;  %v4203_v8 = vadd.f32 %v8520_v28, %v3083_v44  ;;  %v8269_v27 = vsel %vm2320_vm9, 1.0, %v17157_v40  ;;  %v8525_v23 = vsel %vm3440_vm11, 1.0, %v17157_v40  ;;  %vm4560_vm12 = vcmp.eq.s32.totalorder %v13770_v3, %v17461_v60 }
 0x30d   :  { %v6439_v9 = vadd.f32 %v9028_v51, %v5319_v58  ;;  %v3088_v53 = vadd.f32 %v8269_v27, %v1968_v46  ;;  %v8781_v11 = vsel %vm4560_vm12, 1.0, %v17157_v40  ;;  %vm5680_vm13 = vcmp.eq.s32.totalorder %v13770_v3, %v17462_v22 }
 0x30e   :  { %v5323_v35 = vadd.f32 %v8776_v38, %v4203_v8  ;;  %v9037_v2 = vsel %vm5680_vm13, 1.0, %v17157_v40  ;;  %vm340_vm14 = vcmp.eq.s32.totalorder %v14037_v59, %v17457_v14  ;;  %vm1204_vm0 = vcmp.eq.s32.totalorder %v14037_v59, %v17458_v25 }
 0x30f   :  { %6983 = vmatmul.mubr.f32.vlgmr.msra.gmra.mrb[0].mxu1 %v6439_v9  ;;  %v4208_v63 = vadd.f32 %v8525_v23, %v3088_v53  ;;  %v7761_v62 = vsel %vm340_vm14, 1.0, %v17157_v40  ;;  %v8017_v6 = vsel %vm1204_vm0, 1.0, %v17157_v40  ;;  %vm2324_vm1 = vcmp.eq.s32.totalorder %v14037_v59, %v17459_v1 }
 0x310   :  { %v6443_v41 = vadd.f32 %v9032_v24, %v5323_v35  ;;  %v1972_v7 = vadd.f32 %v8017_v6, %v7761_v62  ;;  %v8273_v34 = vsel %vm2324_vm1, 1.0, %v17157_v40  ;;  %vm3444_vm15 = vcmp.eq.s32.totalorder %v14037_v59, %v17460_v19 }
 0x311   :  { %v5328_v51 = vadd.f32 %v8781_v11, %v4208_v63  ;;  %v8529_v32 = vsel %vm3444_vm15, 1.0, %v17157_v40  ;;  %vm4564_vm2 = vcmp.eq.s32.totalorder %v14037_v59, %v17461_v60  ;;  %vm5684_vm3 = vcmp.eq.s32.totalorder %v14037_v59, %v17462_v22 }
 0x312   :  { %7433 = vmatmul.mubr.f32.vlgmr.msra.gmra.mrb[0].mxu0 %v6443_v41  ;;  %v3092_v4 = vadd.f32 %v8273_v34, %v1972_v7  ;;  %v8785_v28 = vsel %vm4564_vm2, 1.0, %v17157_v40  ;;  %v9041_v42 = vsel %vm5684_vm3, 1.0, %v17157_v40  ;;  %vm335_vm6 = vcmp.eq.s32.totalorder %v17355_v50, %v17457_v14  ;;  %v17465_v41 = vld [vmem:[#allocation146_spill] sm:$0xff] }
 0x313   :  { %v6448_v43 = vadd.f32 %v9037_v2, %v5328_v51  ;;  %v7756_v38 = vsel %vm335_vm6, 1.0, %v17157_v40  ;;  %vm1199_vm7 = vcmp.eq.s32.totalorder %v17355_v50, %v17458_v25  ;;  %vm2319_vm5 = vcmp.eq.s32.totalorder %v17355_v50, %v17459_v1  ;;  %v17464_v2 = vld [vmem:[#allocation48_spill] sm:$0xff] }
 0x314   :  { %v4212_v37 = vadd.f32 %v8529_v32, %v3092_v4  ;;  %v8012_v24 = vsel %vm1199_vm7, 1.0, %v17157_v40  ;;  %v8268_v16 = vsel %vm2319_vm5, 1.0, %v17157_v40  ;;  %vm3439_vm8 = vcmp.eq.s32.totalorder %v17355_v50, %v17460_v19 }
 0x315   :  { %6987 = vmatprep.mubr.f32.mxu1 %v6448_v43  ;;  %v1967_v44 = vadd.f32 %v8012_v24, %v7756_v38  ;;  %v8524_v45 = vsel %vm3439_vm8, 1.0, %v17157_v40  ;;  %vm4559_vm4 = vcmp.eq.s32.totalorder %v17355_v50, %v17461_v60  ;;  %vm5679_vm10 = vcmp.eq.s32.totalorder %v17355_v50, %v17462_v22 }
 0x316   :  { %v5332_v20 = vadd.f32 %v8785_v28, %v4212_v37  ;;  %v8780_v58 = vsel %vm4559_vm4, 1.0, %v17157_v40  ;;  %v9036_v46 = vsel %vm5679_vm10, 1.0, %v17157_v40  ;;  %vm339_vm9 = vcmp.eq.s32.totalorder %v17423_v31, %v17457_v14 }
 0x317   :  { %v3087_v8 = vadd.f32 %v8268_v16, %v1967_v44  ;;  %v7760_v27 = vsel %vm339_vm9, 1.0, %v17157_v40  ;;  %vm1203_vm11 = vcmp.eq.s32.totalorder %v17423_v31, %v17458_v25  ;;  %vm2323_vm12 = vcmp.eq.s32.totalorder %v17423_v31, %v17459_v1  ;;  %v17463_v1 = vld [vmem:[#allocation8_spill] sm:$0xff] }
 0x318   :  { %v6452_v23 = vadd.f32 %v9041_v42, %v5332_v20  ;;  %v8016_v9 = vsel %vm1203_vm11, 1.0, %v17157_v40  ;;  %v8272_v53 = vsel %vm2323_vm12, 1.0, %v17157_v40  ;;  %vm3443_vm13 = vcmp.eq.s32.totalorder %v17423_v31, %v17460_v19  ;;  %v17467_v42 = vld [vmem:[#allocation152_spill] sm:$0xff] }
 0x319   :  { %v4207_v11 = vadd.f32 %v8524_v45, %v3087_v8  ;;  %v1971_v35 = vadd.f32 %v8016_v9, %v7760_v27  ;;  %v8528_v14 = vsel %vm3443_vm13, 1.0, %v17157_v40  ;;  %vm4563_vm14 = vcmp.eq.s32.totalorder %v17423_v31, %v17461_v60 }
 0x31a   :  { %7437 = vmatprep.mubr.f32.mxu0 %v6452_v23  ;;  %v8784_v25 = vsel %vm4563_vm14, 1.0, %v17157_v40  ;;  %vm5683_vm0 = vcmp.eq.s32.totalorder %v17423_v31, %v17462_v22  ;;  %vm344_vm1 = vcmp.eq.s32.totalorder %v13770_v3, %v17463_v1  ;;  %vm1208_vm15 = vcmp.eq.s32.totalorder %v13770_v3, %v17464_v2  ;;  %v17466_v22 = vld [vmem:[#allocation47_spill] sm:$0xff] }
 0x31b   :  { %v5327_v19 = vadd.f32 %v8780_v58, %v4207_v11  ;;  %v3091_v63 = vadd.f32 %v8272_v53, %v1971_v35  ;;  %v9040_v62 = vsel %vm5683_vm0, 1.0, %v17157_v40  ;;  %v7765_v6 = vsel %vm344_vm1, 1.0, %v17157_v40 }
 0x31c   :  { %v8021_v60 = vsel %vm1208_vm15, 1.0, %v17157_v40  ;;  %vm2328_vm2 = vcmp.eq.s32.totalorder %v13770_v3, %v11829_v10  ;;  %vm3448_vm3 = vcmp.eq.s32.totalorder %v13770_v3, %v17465_v41  ;;  %vm4568_vm6 = vcmp.eq.s32.totalorder %v13770_v3, %v17466_v22 }
 0x31d   :  { %v6447_v7 = vadd.f32 %v9036_v46, %v5327_v19  ;;  %v4211_v34 = vadd.f32 %v8528_v14, %v3091_v63  ;;  %v1976_v51 = vadd.f32 %v8021_v60, %v7765_v6  ;;  %v8277_v32 = vsel %vm2328_vm2, 1.0, %v17157_v40 }
 0x31e   :  { %v8533_v4 = vsel %vm3448_vm3, 1.0, %v17157_v40  ;;  %v8789_v28 = vsel %vm4568_vm6, 1.0, %v17157_v40  ;;  %vm5688_vm7 = vcmp.eq.s32.totalorder %v13770_v3, %v17467_v42  ;;  %vm348_vm5 = vcmp.eq.s32.totalorder %v14037_v59, %v17463_v1 }
 0x31f   :  { %6988 = vmatmul.mubr.f32.gmra.mrb[2].mxu1 %v6447_v7  ;;  %v5331_v43 = vadd.f32 %v8784_v25, %v4211_v34  ;;  %v3096_v38 = vadd.f32 %v8277_v32, %v1976_v51  ;;  %v9045_v37 = vsel %vm5688_vm7, 1.0, %v17157_v40  ;;  %v7769_v24 = vsel %vm348_vm5, 1.0, %v17157_v40 }
 0x320   :  { %vm1212_vm8 = vcmp.eq.s32.totalorder %v14037_v59, %v17464_v2  ;;  %vm2332_vm4 = vcmp.eq.s32.totalorder %v14037_v59, %v11829_v10  ;;  %vm3452_vm10 = vcmp.eq.s32.totalorder %v14037_v59, %v17465_v41  ;;  %vm4572_vm9 = vcmp.eq.s32.totalorder %v14037_v59, %v17466_v22 }
 0x321   :  { %v6451_v16 = vadd.f32 %v9040_v62, %v5331_v43  ;;  %v4216_v44 = vadd.f32 %v8533_v4, %v3096_v38  ;;  %v8025_v45 = vsel %vm1212_vm8, 1.0, %v17157_v40  ;;  %v8281_v20 = vsel %vm2332_vm4, 1.0, %v17157_v40 }
 0x322   :  { %v1980_v58 = vadd.f32 %v8025_v45, %v7769_v24  ;;  %v8537_v46 = vsel %vm3452_vm10, 1.0, %v17157_v40  ;;  %v8793_v8 = vsel %vm4572_vm9, 1.0, %v17157_v40  ;;  %vm5692_vm11 = vcmp.eq.s32.totalorder %v14037_v59, %v17467_v42  ;;  %v17470_v45 = vld [vmem:[#allocation42_spill] sm:$0xff] }
 0x323   :  { %7438 = vmatmul.mubr.f32.gmra.mrb[2].mxu0 %v6451_v16  ;;  %v5336_v27 = vadd.f32 %v8789_v28, %v4216_v44  ;;  %v9049_v23 = vsel %vm5692_vm11, 1.0, %v17157_v40  ;;  %vm343_vm12 = vcmp.eq.s32.totalorder %v17355_v50, %v17463_v1  ;;  %vm1207_vm13 = vcmp.eq.s32.totalorder %v17355_v50, %v17464_v2  ;;  %v17469_v16 = vld [vmem:[#allocation141_spill] sm:$0xff] }
 0x324   :  { %v3100_v9 = vadd.f32 %v8281_v20, %v1980_v58  ;;  %v7764_v53 = vsel %vm343_vm12, 1.0, %v17157_v40  ;;  %v8020_v11 = vsel %vm1207_vm13, 1.0, %v17157_v40  ;;  %vm2327_vm14 = vcmp.eq.s32.totalorder %v17355_v50, %v11829_v10  ;;  %v17471_v20 = vld [vmem:[#allocation44_spill] sm:$0xff] }
 0x325   :  { %v6456_v35 = vadd.f32 %v9045_v37, %v5336_v27  ;;  %v1975_v14 = vadd.f32 %v8020_v11, %v7764_v53  ;;  %v8276_v25 = vsel %vm2327_vm14, 1.0, %v17157_v40  ;;  %vm3447_vm0 = vcmp.eq.s32.totalorder %v17355_v50, %v17465_v41  ;;  %v17472_v27 = vld [vmem:[#allocation63_spill] sm:$0xff] }
 0x326   :  { %v4220_v19 = vadd.f32 %v8537_v46, %v3100_v9  ;;  %v8532_v63 = vsel %vm3447_vm0, 1.0, %v17157_v40  ;;  %vm4567_vm1 = vcmp.eq.s32.totalorder %v17355_v50, %v17466_v22  ;;  %vm5687_vm15 = vcmp.eq.s32.totalorder %v17355_v50, %v17467_v42 }
 0x327   :  { %6992 = vmatprep.mubr.f32.mxu1 %v6456_v35  ;;  %v3095_v62 = vadd.f32 %v8276_v25, %v1975_v14  ;;  %v8788_v6 = vsel %vm4567_vm1, 1.0, %v17157_v40  ;;  %v9044_v60 = vsel %vm5687_vm15, 1.0, %v17157_v40  ;;  %vm347_vm2 = vcmp.eq.s32.totalorder %v17423_v31, %v17463_v1 }
 0x328   :  { %v5340_v7 = vadd.f32 %v8793_v8, %v4220_v19  ;;  %v7768_v34 = vsel %vm347_vm2, 1.0, %v17157_v40  ;;  %vm1211_vm3 = vcmp.eq.s32.totalorder %v17423_v31, %v17464_v2  ;;  %vm2331_vm6 = vcmp.eq.s32.totalorder %v17423_v31, %v11829_v10  ;;  %v17468_v10 = vld [vmem:[#allocation10_spill] sm:$0xff] }
 0x329   :  { %v4215_v51 = vadd.f32 %v8532_v63, %v3095_v62  ;;  %v8024_v32 = vsel %vm1211_vm3, 1.0, %v17157_v40  ;;  %v8280_v4 = vsel %vm2331_vm6, 1.0, %v17157_v40  ;;  %vm3451_vm7 = vcmp.eq.s32.totalorder %v17423_v31, %v17465_v41 }
 0x32a   :  { %v6460_v28 = vadd.f32 %v9049_v23, %v5340_v7  ;;  %v1979_v43 = vadd.f32 %v8024_v32, %v7768_v34  ;;  %v8536_v1 = vsel %vm3451_vm7, 1.0, %v17157_v40  ;;  %vm4571_vm5 = vcmp.eq.s32.totalorder %v17423_v31, %v17466_v22  ;;  %v17473_v23 = vld [vmem:[#allocation62_spill] sm:$0xff] }
 0x32b   :  { %v5335_v38 = vadd.f32 %v8788_v6, %v4215_v51  ;;  %v8792_v2 = vsel %vm4571_vm5, 1.0, %v17157_v40  ;;  %vm5691_vm8 = vcmp.eq.s32.totalorder %v17423_v31, %v17467_v42  ;;  %vm352_vm4 = vcmp.eq.s32.totalorder %v13770_v3, %v17468_v10 }
 0x32c   :  { %7442 = vmatprep.mubr.f32.mxu0 %v6460_v28  ;;  %v3099_v37 = vadd.f32 %v8280_v4, %v1979_v43  ;;  %v9048_v41 = vsel %vm5691_vm8, 1.0, %v17157_v40  ;;  %v7773_v24 = vsel %vm352_vm4, 1.0, %v17157_v40  ;;  %vm1216_vm10 = vcmp.eq.s32.totalorder %v13770_v3, %v17469_v16 }
 0x32d   :  { %v6455_v44 = vadd.f32 %v9044_v60, %v5335_v38  ;;  %v8029_v22 = vsel %vm1216_vm10, 1.0, %v17157_v40  ;;  %vm2336_vm9 = vcmp.eq.s32.totalorder %v13770_v3, %v17470_v45  ;;  %vm3456_vm11 = vcmp.eq.s32.totalorder %v13770_v3, %v17471_v20 }
 0x32e   :  { %v4219_v42 = vadd.f32 %v8536_v1, %v3099_v37  ;;  %v1984_v58 = vadd.f32 %v8029_v22, %v7773_v24  ;;  %v8285_v46 = vsel %vm2336_vm9, 1.0, %v17157_v40  ;;  %v8541_v8 = vsel %vm3456_vm11, 1.0, %v17157_v40 }
 0x32f   :  { %6993 = vmatmul.mubr.f32.gmra.mrb[4].mxu1 %v6455_v44  ;;  %vm4576_vm12 = vcmp.eq.s32.totalorder %v13770_v3, %v17472_v27  ;;  %vm5696_vm13 = vcmp.eq.s32.totalorder %v13770_v3, %v17473_v23  ;;  %vm356_vm14 = vcmp.eq.s32.totalorder %v14037_v59, %v17468_v10  ;;  %vm1220_vm0 = vcmp.eq.s32.totalorder %v14037_v59, %v17469_v16 }
 0x330   :  { %v5339_v9 = vadd.f32 %v8792_v2, %v4219_v42  ;;  %v3104_v53 = vadd.f32 %v8285_v46, %v1984_v58  ;;  %v8797_v11 = vsel %vm4576_vm12, 1.0, %v17157_v40  ;;  %v9053_v35 = vsel %vm5696_vm13, 1.0, %v17157_v40 }
 0x331   :  { %v7777_v14 = vsel %vm356_vm14, 1.0, %v17157_v40  ;;  %v8033_v25 = vsel %vm1220_vm0, 1.0, %v17157_v40  ;;  %vm2340_vm1 = vcmp.eq.s32.totalorder %v14037_v59, %v17470_v45  ;;  %vm3460_vm15 = vcmp.eq.s32.totalorder %v14037_v59, %v17471_v20 }
 0x332   :  { %v6459_v19 = vadd.f32 %v9048_v41, %v5339_v9  ;;  %v4224_v63 = vadd.f32 %v8541_v8, %v3104_v53  ;;  %v1988_v62 = vadd.f32 %v8033_v25, %v7777_v14  ;;  %v8289_v6 = vsel %vm2340_vm1, 1.0, %v17157_v40 }
 0x333   :  { %v8545_v60 = vsel %vm3460_vm15, 1.0, %v17157_v40  ;;  %vm4580_vm2 = vcmp.eq.s32.totalorder %v14037_v59, %v17472_v27  ;;  %vm5700_vm3 = vcmp.eq.s32.totalorder %v14037_v59, %v17473_v23  ;;  %vm351_vm6 = vcmp.eq.s32.totalorder %v17355_v50, %v17468_v10 }
 0x334   :  { %7443 = vmatmul.mubr.f32.gmra.mrb[4].mxu0 %v6459_v19  ;;  %v5344_v7 = vadd.f32 %v8797_v11, %v4224_v63  ;;  %v3108_v34 = vadd.f32 %v8289_v6, %v1988_v62  ;;  %v8801_v51 = vsel %vm4580_vm2, 1.0, %v17157_v40  ;;  %v9057_v32 = vsel %vm5700_vm3, 1.0, %v17157_v40  ;;  %v17475_v11 = vld [vmem:[#allocation54_spill] sm:$0xff]  ;;  %v17476_v19 = vld [vmem:[#allocation153_spill] sm:$0xff]  ;;  %v17477_v63 = vld [vmem:[#allocation156_spill] sm:$0xff] }
 0x335   :  { %v7772_v4 = vsel %vm351_vm6, 1.0, %v17157_v40  ;;  %vm1215_vm7 = vcmp.eq.s32.totalorder %v17355_v50, %v17469_v16  ;;  %vm2335_vm5 = vcmp.eq.s32.totalorder %v17355_v50, %v17470_v45  ;;  %vm3455_vm8 = vcmp.eq.s32.totalorder %v17355_v50, %v17471_v20 }
 0x336   :  { %v6464_v28 = vadd.f32 %v9053_v35, %v5344_v7  ;;  %v4228_v43 = vadd.f32 %v8545_v60, %v3108_v34  ;;  %v8028_v1 = vsel %vm1215_vm7, 1.0, %v17157_v40  ;;  %v8284_v38 = vsel %vm2335_vm5, 1.0, %v17157_v40 }
 0x337   :  { %v1983_v2 = vadd.f32 %v8028_v1, %v7772_v4  ;;  %v8540_v37 = vsel %vm3455_vm8, 1.0, %v17157_v40  ;;  %vm4575_vm4 = vcmp.eq.s32.totalorder %v17355_v50, %v17472_v27  ;;  %vm5695_vm10 = vcmp.eq.s32.totalorder %v17355_v50, %v17473_v23 }
 0x338   :  { %6997 = vmatprep.mubr.f32.mxu1 %v6464_v28  ;;  %v5348_v41 = vadd.f32 %v8801_v51, %v4228_v43  ;;  %v8796_v24 = vsel %vm4575_vm4, 1.0, %v17157_v40  ;;  %v9052_v44 = vsel %vm5695_vm10, 1.0, %v17157_v40  ;;  %vm355_vm9 = vcmp.eq.s32.totalorder %v17423_v31, %v17468_v10 }
 0x339   :  { %v3103_v22 = vadd.f32 %v8284_v38, %v1983_v2  ;;  %v7776_v42 = vsel %vm355_vm9, 1.0, %v17157_v40  ;;  %vm1219_vm11 = vcmp.eq.s32.totalorder %v17423_v31, %v17469_v16  ;;  %vm2339_vm12 = vcmp.eq.s32.totalorder %v17423_v31, %v17470_v45  ;;  %v17474_v45 = vld [vmem:[#allocation13_spill] sm:$0xff] }
 0x33a   :  { %v6468_v58 = vadd.f32 %v9057_v32, %v5348_v41  ;;  %v8032_v46 = vsel %vm1219_vm11, 1.0, %v17157_v40  ;;  %v8288_v8 = vsel %vm2339_vm12, 1.0, %v17157_v40  ;;  %vm3459_vm13 = vcmp.eq.s32.totalorder %v17423_v31, %v17471_v20  ;;  %v17479_v32 = vld [vmem:[#allocation92_spill] sm:$0xff] }
 0x33b   :  { %v4223_v9 = vadd.f32 %v8540_v37, %v3103_v22  ;;  %v1987_v53 = vadd.f32 %v8032_v46, %v7776_v42  ;;  %v8544_v10 = vsel %vm3459_vm13, 1.0, %v17157_v40  ;;  %vm4579_vm14 = vcmp.eq.s32.totalorder %v17423_v31, %v17472_v27 }
 0x33c   :  { %7447 = vmatprep.mubr.f32.mxu0 %v6468_v58  ;;  %v8800_v16 = vsel %vm4579_vm14, 1.0, %v17157_v40  ;;  %vm5699_vm0 = vcmp.eq.s32.totalorder %v17423_v31, %v17473_v23  ;;  %vm360_vm1 = vcmp.eq.s32.totalorder %v13770_v3, %v17474_v45  ;;  %vm1224_vm15 = vcmp.eq.s32.totalorder %v13770_v3, %v17475_v11  ;;  %v17478_v23 = vld [vmem:[#allocation64_spill] sm:$0xff] }
 0x33d   :  { %v5343_v20 = vadd.f32 %v8796_v24, %v4223_v9  ;;  %v3107_v35 = vadd.f32 %v8288_v8, %v1987_v53  ;;  %v9056_v14 = vsel %vm5699_vm0, 1.0, %v17157_v40  ;;  %v7781_v25 = vsel %vm360_vm1, 1.0, %v17157_v40 }
 0x33e   :  { %v8037_v27 = vsel %vm1224_vm15, 1.0, %v17157_v40  ;;  %vm2344_vm2 = vcmp.eq.s32.totalorder %v13770_v3, %v17476_v19  ;;  %vm3464_vm3 = vcmp.eq.s32.totalorder %v13770_v3, %v17477_v63  ;;  %vm4584_vm6 = vcmp.eq.s32.totalorder %v13770_v3, %v17478_v23 }
 0x33f   :  { %v6463_v62 = vadd.f32 %v9052_v44, %v5343_v20  ;;  %v4227_v6 = vadd.f32 %v8544_v10, %v3107_v35  ;;  %v1992_v60 = vadd.f32 %v8037_v27, %v7781_v25  ;;  %v8293_v7 = vsel %vm2344_vm2, 1.0, %v17157_v40 }
 0x340   :  { %v8549_v34 = vsel %vm3464_vm3, 1.0, %v17157_v40  ;;  %v8805_v51 = vsel %vm4584_vm6, 1.0, %v17157_v40  ;;  %vm5704_vm7 = vcmp.eq.s32.totalorder %v13770_v3, %v17479_v32  ;;  %vm364_vm5 = vcmp.eq.s32.totalorder %v14037_v59, %v17474_v45 }
 0x341   :  { %6998 = vmatmul.mubr.f32.gmra.mrb[6].mxu1 %v6463_v62  ;;  %v5347_v4 = vadd.f32 %v8800_v16, %v4227_v6  ;;  %v3112_v28 = vadd.f32 %v8293_v7, %v1992_v60  ;;  %v9061_v43 = vsel %vm5704_vm7, 1.0, %v17157_v40  ;;  %v7785_v1 = vsel %vm364_vm5, 1.0, %v17157_v40 }
 0x342   :  { %vm1228_vm8 = vcmp.eq.s32.totalorder %v14037_v59, %v17475_v11  ;;  %vm2348_vm4 = vcmp.eq.s32.totalorder %v14037_v59, %v17476_v19  ;;  %vm3468_vm10 = vcmp.eq.s32.totalorder %v14037_v59, %v17477_v63  ;;  %vm4588_vm9 = vcmp.eq.s32.totalorder %v14037_v59, %v17478_v23 }
 0x343   :  { %v6467_v38 = vadd.f32 %v9056_v14, %v5347_v4  ;;  %v4232_v2 = vadd.f32 %v8549_v34, %v3112_v28  ;;  %v8041_v37 = vsel %vm1228_vm8, 1.0, %v17157_v40  ;;  %v8297_v41 = vsel %vm2348_vm4, 1.0, %v17157_v40 }
 0x344   :  { %v1996_v24 = vadd.f32 %v8041_v37, %v7785_v1  ;;  %v8553_v44 = vsel %vm3468_vm10, 1.0, %v17157_v40  ;;  %v8809_v22 = vsel %vm4588_vm9, 1.0, %v17157_v40  ;;  %vm5708_vm11 = vcmp.eq.s32.totalorder %v14037_v59, %v17479_v32 }
 0x345   :  { %7448 = vmatmul.mubr.f32.gmra.mrb[6].mxu0 %v6467_v38  ;;  %v5352_v42 = vadd.f32 %v8805_v51, %v4232_v2  ;;  %v9065_v58 = vsel %vm5708_vm11, 1.0, %v17157_v40  ;;  %vm359_vm12 = vcmp.eq.s32.totalorder %v17355_v50, %v17474_v45  ;;  %vm1223_vm13 = vcmp.eq.s32.totalorder %v17355_v50, %v17475_v11  ;;  %v17481_v38 = vld [vmem:[#allocation143_spill] sm:$0xff] }
 0x346   :  { %v3116_v46 = vadd.f32 %v8297_v41, %v1996_v24  ;;  %v7780_v8 = vsel %vm359_vm12, 1.0, %v17157_v40  ;;  %v8036_v9 = vsel %vm1223_vm13, 1.0, %v17157_v40  ;;  %vm2343_vm14 = vcmp.eq.s32.totalorder %v17355_v50, %v17476_v19 }
 0x347   :  { %v6472_v53 = vadd.f32 %v9061_v43, %v5352_v42  ;;  %v1991_v10 = vadd.f32 %v8036_v9, %v7780_v8  ;;  %v8292_v16 = vsel %vm2343_vm14, 1.0, %v17157_v40  ;;  %vm3463_vm0 = vcmp.eq.s32.totalorder %v17355_v50, %v17477_v63 }
 0x348   :  { %v4236_v20 = vadd.f32 %v8553_v44, %v3116_v46  ;;  %v8548_v35 = vsel %vm3463_vm0, 1.0, %v17157_v40  ;;  %vm4583_vm1 = vcmp.eq.s32.totalorder %v17355_v50, %v17478_v23  ;;  %vm5703_vm15 = vcmp.eq.s32.totalorder %v17355_v50, %v17479_v32 }
 0x349   :  { %7002 = vmatprep.mubr.f32.mxu1 %v6472_v53  ;;  %v3111_v14 = vadd.f32 %v8292_v16, %v1991_v10  ;;  %v8804_v25 = vsel %vm4583_vm1, 1.0, %v17157_v40  ;;  %v9060_v27 = vsel %vm5703_vm15, 1.0, %v17157_v40  ;;  %vm363_vm2 = vcmp.eq.s32.totalorder %v17423_v31, %v17474_v45 }
 0x34a   :  { %v5356_v62 = vadd.f32 %v8809_v22, %v4236_v20  ;;  %v7784_v6 = vsel %vm363_vm2, 1.0, %v17157_v40  ;;  %vm1227_vm3 = vcmp.eq.s32.totalorder %v17423_v31, %v17475_v11  ;;  %vm2347_vm6 = vcmp.eq.s32.totalorder %v17423_v31, %v17476_v19  ;;  %v17480_v19 = vld [vmem:[#allocation12_spill] sm:$0xff] }
 0x34b   :  { %v4231_v60 = vadd.f32 %v8548_v35, %v3111_v14  ;;  %v8040_v7 = vsel %vm1227_vm3, 1.0, %v17157_v40  ;;  %v8296_v34 = vsel %vm2347_vm6, 1.0, %v17157_v40  ;;  %vm3467_vm7 = vcmp.eq.s32.totalorder %v17423_v31, %v17477_v63 }
 0x34c   :  { %v6476_v51 = vadd.f32 %v9065_v58, %v5356_v62  ;;  %v1995_v4 = vadd.f32 %v8040_v7, %v7784_v6  ;;  %v8552_v45 = vsel %vm3467_vm7, 1.0, %v17157_v40  ;;  %vm4587_vm5 = vcmp.eq.s32.totalorder %v17423_v31, %v17478_v23 }
 0x34d   :  { %v5351_v28 = vadd.f32 %v8804_v25, %v4231_v60  ;;  %v8808_v11 = vsel %vm4587_vm5, 1.0, %v17157_v40  ;;  %vm5707_vm8 = vcmp.eq.s32.totalorder %v17423_v31, %v17479_v32  ;;  %vm368_vm4 = vcmp.eq.s32.totalorder %v13770_v3, %v17480_v19 }
 0x34e   :  { %7452 = vmatprep.mubr.f32.mxu0 %v6476_v51  ;;  %v3115_v43 = vadd.f32 %v8296_v34, %v1995_v4  ;;  %v9064_v63 = vsel %vm5707_vm8, 1.0, %v17157_v40  ;;  %v7789_v1 = vsel %vm368_vm4, 1.0, %v17157_v40  ;;  %vm1232_vm10 = vcmp.eq.s32.totalorder %v13770_v3, %v17481_v38 }
 0x34f   :  { %v6471_v2 = vadd.f32 %v9060_v27, %v5351_v28  ;;  %v8045_v23 = vsel %vm1232_vm10, 1.0, %v17157_v40  ;;  %vm2352_vm9 = vcmp.eq.s32.totalorder %v13770_v3, %v11852_v57  ;;  %vm3472_vm11 = vcmp.eq.s32.totalorder %v13770_v3, %v11814_v12 }
 0x350   :  { %v4235_v32 = vadd.f32 %v8552_v45, %v3115_v43  ;;  %v2000_v37 = vadd.f32 %v8045_v23, %v7789_v1  ;;  %v8301_v41 = vsel %vm2352_vm9, 1.0, %v17157_v40  ;;  %v8557_v24 = vsel %vm3472_vm11, 1.0, %v17157_v40 }
 0x351   :  { %7003 = vmatmul.mubr.f32.gmra.mrb[8].mxu1 %v6471_v2  ;;  %vm4592_vm12 = vcmp.eq.s32.totalorder %v13770_v3, %v11879_v5  ;;  %vm5712_vm13 = vcmp.eq.s32.totalorder %v13770_v3, %v11936_v56  ;;  %vm372_vm14 = vcmp.eq.s32.totalorder %v14037_v59, %v17480_v19  ;;  %vm1236_vm0 = vcmp.eq.s32.totalorder %v14037_v59, %v17481_v38 }
 0x352   :  { %v5355_v44 = vadd.f32 %v8808_v11, %v4235_v32  ;;  %v3120_v22 = vadd.f32 %v8301_v41, %v2000_v37  ;;  %v8813_v42 = vsel %vm4592_vm12, 1.0, %v17157_v40  ;;  %v9069_v58 = vsel %vm5712_vm13, 1.0, %v17157_v40  ;;  %v17483_v41 = vld [vmem:[#allocation61_spill] sm:$0xff] }
 0x353   :  { %v7793_v46 = vsel %vm372_vm14, 1.0, %v17157_v40  ;;  %v8049_v8 = vsel %vm1236_vm0, 1.0, %v17157_v40  ;;  %vm2356_vm1 = vcmp.eq.s32.totalorder %v14037_v59, %v11852_v57  ;;  %vm3476_vm15 = vcmp.eq.s32.totalorder %v14037_v59, %v11814_v12 }
 0x354   :  { %v6475_v9 = vadd.f32 %v9064_v63, %v5355_v44  ;;  %v4240_v53 = vadd.f32 %v8557_v24, %v3120_v22  ;;  %v2004_v10 = vadd.f32 %v8049_v8, %v7793_v46  ;;  %v8305_v16 = vsel %vm2356_vm1, 1.0, %v17157_v40 }
 0x355   :  { %v8561_v20 = vsel %vm3476_vm15, 1.0, %v17157_v40  ;;  %vm4596_vm2 = vcmp.eq.s32.totalorder %v14037_v59, %v11879_v5  ;;  %vm5716_vm3 = vcmp.eq.s32.totalorder %v14037_v59, %v11936_v56  ;;  %vm367_vm6 = vcmp.eq.s32.totalorder %v17355_v50, %v17480_v19 }
 0x356   :  { %7453 = vmatmul.mubr.f32.gmra.mrb[8].mxu0 %v6475_v9  ;;  %v5360_v35 = vadd.f32 %v8813_v42, %v4240_v53  ;;  %v3124_v14 = vadd.f32 %v8305_v16, %v2004_v10  ;;  %v8817_v25 = vsel %vm4596_vm2, 1.0, %v17157_v40  ;;  %v9073_v27 = vsel %vm5716_vm3, 1.0, %v17157_v40  ;;  %v17484_v42 = vld [vmem:[#allocation49_spill] sm:$0xff] }
 0x357   :  { %v7788_v62 = vsel %vm367_vm6, 1.0, %v17157_v40  ;;  %vm1231_vm7 = vcmp.eq.s32.totalorder %v17355_v50, %v17481_v38  ;;  %vm2351_vm5 = vcmp.eq.s32.totalorder %v17355_v50, %v11852_v57  ;;  %vm3471_vm8 = vcmp.eq.s32.totalorder %v17355_v50, %v11814_v12 }
 0x358   :  { %v6480_v6 = vadd.f32 %v9069_v58, %v5360_v35  ;;  %v4244_v60 = vadd.f32 %v8561_v20, %v3124_v14  ;;  %v8044_v7 = vsel %vm1231_vm7, 1.0, %v17157_v40  ;;  %v8300_v34 = vsel %vm2351_vm5, 1.0, %v17157_v40 }
 0x359   :  { %v1999_v51 = vadd.f32 %v8044_v7, %v7788_v62  ;;  %v8556_v4 = vsel %vm3471_vm8, 1.0, %v17157_v40  ;;  %vm4591_vm4 = vcmp.eq.s32.totalorder %v17355_v50, %v11879_v5  ;;  %vm5711_vm10 = vcmp.eq.s32.totalorder %v17355_v50, %v11936_v56 }
 0x35a   :  { %7007 = vmatprep.mubr.f32.mxu1 %v6480_v6  ;;  %v5364_v45 = vadd.f32 %v8817_v25, %v4244_v60  ;;  %v8812_v28 = vsel %vm4591_vm4, 1.0, %v17157_v40  ;;  %v9068_v11 = vsel %vm5711_vm10, 1.0, %v17157_v40  ;;  %vm371_vm9 = vcmp.eq.s32.totalorder %v17423_v31, %v17480_v19 }
 0x35b   :  { %v3119_v43 = vadd.f32 %v8300_v34, %v1999_v51  ;;  %v7792_v63 = vsel %vm371_vm9, 1.0, %v17157_v40  ;;  %vm1235_vm11 = vcmp.eq.s32.totalorder %v17423_v31, %v17481_v38  ;;  %vm2355_vm12 = vcmp.eq.s32.totalorder %v17423_v31, %v11852_v57  ;;  %v17482_v57 = vld [vmem:[#allocation15_spill] sm:$0xff] }
 0x35c   :  { %v6484_v1 = vadd.f32 %v9073_v27, %v5364_v45  ;;  %v8048_v2 = vsel %vm1235_vm11, 1.0, %v17157_v40  ;;  %v8304_v23 = vsel %vm2355_vm12, 1.0, %v17157_v40  ;;  %vm3475_vm13 = vcmp.eq.s32.totalorder %v17423_v31, %v11814_v12 }
 0x35d   :  { %v4239_v32 = vadd.f32 %v8556_v4, %v3119_v43  ;;  %v2003_v37 = vadd.f32 %v8048_v2, %v7792_v63  ;;  %v8560_v19 = vsel %vm3475_vm13, 1.0, %v17157_v40  ;;  %vm4595_vm14 = vcmp.eq.s32.totalorder %v17423_v31, %v11879_v5 }
 0x35e   :  { %7457 = vmatprep.mubr.f32.mxu0 %v6484_v1  ;;  %v8816_v38 = vsel %vm4595_vm14, 1.0, %v17157_v40  ;;  %vm5715_vm0 = vcmp.eq.s32.totalorder %v17423_v31, %v11936_v56  ;;  %vm376_vm1 = vcmp.eq.s32.totalorder %v13770_v3, %v17482_v57  ;;  %vm1240_vm15 = vcmp.eq.s32.totalorder %v13770_v3, %v17483_v41  ;;  %v17485_v56 = vld [vmem:[#allocation70_spill] sm:$0xff] }
 0x35f   :  { %v5359_v12 = vadd.f32 %v8812_v28, %v4239_v32  ;;  %v3123_v24 = vadd.f32 %v8304_v23, %v2003_v37  ;;  %v9072_v44 = vsel %vm5715_vm0, 1.0, %v17157_v40  ;;  %v7797_v22 = vsel %vm376_vm1, 1.0, %v17157_v40 }
 0x360   :  { %v8053_v5 = vsel %vm1240_vm15, 1.0, %v17157_v40  ;;  %vm2360_vm2 = vcmp.eq.s32.totalorder %v13770_v3, %v11846_v49  ;;  %vm3480_vm3 = vcmp.eq.s32.totalorder %v13770_v3, %v17484_v42  ;;  %vm4600_vm6 = vcmp.eq.s32.totalorder %v13770_v3, %v17485_v56 }
 0x361   :  { %v6479_v58 = vadd.f32 %v9068_v11, %v5359_v12  ;;  %v4243_v46 = vadd.f32 %v8560_v19, %v3123_v24  ;;  %v2008_v8 = vadd.f32 %v8053_v5, %v7797_v22  ;;  %v8309_v9 = vsel %vm2360_vm2, 1.0, %v17157_v40 }
 0x362   :  { %v8565_v53 = vsel %vm3480_vm3, 1.0, %v17157_v40  ;;  %v8821_v10 = vsel %vm4600_vm6, 1.0, %v17157_v40  ;;  %vm5720_vm7 = vcmp.eq.s32.totalorder %v13770_v3, %v12046_v54  ;;  %vm380_vm5 = vcmp.eq.s32.totalorder %v14037_v59, %v17482_v57 }
 0x363   :  { %7008 = vmatmul.mubr.f32.gmra.mrb[10].mxu1 %v6479_v58  ;;  %v5363_v16 = vadd.f32 %v8816_v38, %v4243_v46  ;;  %v3128_v20 = vadd.f32 %v8309_v9, %v2008_v8  ;;  %v9077_v35 = vsel %vm5720_vm7, 1.0, %v17157_v40  ;;  %v7801_v14 = vsel %vm380_vm5, 1.0, %v17157_v40 }
 0x364   :  { %vm1244_vm8 = vcmp.eq.s32.totalorder %v14037_v59, %v17483_v41  ;;  %vm2364_vm4 = vcmp.eq.s32.totalorder %v14037_v59, %v11846_v49  ;;  %vm3484_vm10 = vcmp.eq.s32.totalorder %v14037_v59, %v17484_v42  ;;  %vm4604_vm9 = vcmp.eq.s32.totalorder %v14037_v59, %v17485_v56 }
 0x365   :  { %v6483_v25 = vadd.f32 %v9072_v44, %v5363_v16  ;;  %v4248_v27 = vadd.f32 %v8565_v53, %v3128_v20  ;;  %v8057_v62 = vsel %vm1244_vm8, 1.0, %v17157_v40  ;;  %v8313_v6 = vsel %vm2364_vm4, 1.0, %v17157_v40  ;;  %v17487_v53 = vld [vmem:[#allocation145_spill] sm:$0xff] }
 0x366   :  { %v2012_v60 = vadd.f32 %v8057_v62, %v7801_v14  ;;  %v8569_v7 = vsel %vm3484_vm10, 1.0, %v17157_v40  ;;  %v8825_v34 = vsel %vm4604_vm9, 1.0, %v17157_v40  ;;  %vm5724_vm11 = vcmp.eq.s32.totalorder %v14037_v59, %v12046_v54  ;;  %v17488_v14 = vld [vmem:[#allocation100_spill] sm:$0xff] }
 0x367   :  { %7458 = vmatmul.mubr.f32.gmra.mrb[10].mxu0 %v6483_v25  ;;  %v5368_v51 = vadd.f32 %v8821_v10, %v4248_v27  ;;  %v9081_v4 = vsel %vm5724_vm11, 1.0, %v17157_v40  ;;  %vm375_vm12 = vcmp.eq.s32.totalorder %v17355_v50, %v17482_v57  ;;  %vm1239_vm13 = vcmp.eq.s32.totalorder %v17355_v50, %v17483_v41 }
 0x368   :  { %v3132_v45 = vadd.f32 %v8313_v6, %v2012_v60  ;;  %v7796_v28 = vsel %vm375_vm12, 1.0, %v17157_v40  ;;  %v8052_v11 = vsel %vm1239_vm13, 1.0, %v17157_v40  ;;  %vm2359_vm14 = vcmp.eq.s32.totalorder %v17355_v50, %v11846_v49 }
 0x369   :  { %v6488_v43 = vadd.f32 %v9077_v35, %v5368_v51  ;;  %v2007_v63 = vadd.f32 %v8052_v11, %v7796_v28  ;;  %v8308_v1 = vsel %vm2359_vm14, 1.0, %v17157_v40  ;;  %vm3479_vm0 = vcmp.eq.s32.totalorder %v17355_v50, %v17484_v42 }
 0x36a   :  { %v4252_v2 = vadd.f32 %v8569_v7, %v3132_v45  ;;  %v8564_v23 = vsel %vm3479_vm0, 1.0, %v17157_v40  ;;  %vm4599_vm1 = vcmp.eq.s32.totalorder %v17355_v50, %v17485_v56  ;;  %vm5719_vm15 = vcmp.eq.s32.totalorder %v17355_v50, %v12046_v54 }
 0x36b   :  { %7012 = vmatprep.mubr.f32.mxu1 %v6488_v43  ;;  %v3127_v32 = vadd.f32 %v8308_v1, %v2007_v63  ;;  %v8820_v37 = vsel %vm4599_vm1, 1.0, %v17157_v40  ;;  %v9076_v19 = vsel %vm5719_vm15, 1.0, %v17157_v40  ;;  %vm379_vm2 = vcmp.eq.s32.totalorder %v17423_v31, %v17482_v57 }
 0x36c   :  { %v5372_v38 = vadd.f32 %v8825_v34, %v4252_v2  ;;  %v7800_v12 = vsel %vm379_vm2, 1.0, %v17157_v40  ;;  %vm1243_vm3 = vcmp.eq.s32.totalorder %v17423_v31, %v17483_v41  ;;  %vm2363_vm6 = vcmp.eq.s32.totalorder %v17423_v31, %v11846_v49  ;;  %v17486_v49 = vld [vmem:[#allocation14_spill] sm:$0xff] }
 0x36d   :  { %v4247_v24 = vadd.f32 %v8564_v23, %v3127_v32  ;;  %v8056_v44 = vsel %vm1243_vm3, 1.0, %v17157_v40  ;;  %v8312_v22 = vsel %vm2363_vm6, 1.0, %v17157_v40  ;;  %vm3483_vm7 = vcmp.eq.s32.totalorder %v17423_v31, %v17484_v42 }
 0x36e   :  { %v6492_v5 = vadd.f32 %v9081_v4, %v5372_v38  ;;  %v2011_v58 = vadd.f32 %v8056_v44, %v7800_v12  ;;  %v8568_v57 = vsel %vm3483_vm7, 1.0, %v17157_v40  ;;  %vm4603_vm5 = vcmp.eq.s32.totalorder %v17423_v31, %v17485_v56 }
 0x36f   :  { %v5367_v46 = vadd.f32 %v8820_v37, %v4247_v24  ;;  %v8824_v41 = vsel %vm4603_vm5, 1.0, %v17157_v40  ;;  %vm5723_vm8 = vcmp.eq.s32.totalorder %v17423_v31, %v12046_v54  ;;  %vm384_vm4 = vcmp.eq.s32.totalorder %v13770_v3, %v17486_v49 }
 0x370   :  { %7462 = vmatprep.mubr.f32.mxu0 %v6492_v5  ;;  %v3131_v8 = vadd.f32 %v8312_v22, %v2011_v58  ;;  %v9080_v42 = vsel %vm5723_vm8, 1.0, %v17157_v40  ;;  %v7805_v9 = vsel %vm384_vm4, 1.0, %v17157_v40  ;;  %vm1248_vm10 = vcmp.eq.s32.totalorder %v13770_v3, %v17487_v53 }
 0x371   :  { %v6487_v10 = vadd.f32 %v9076_v19, %v5367_v46  ;;  %v8061_v56 = vsel %vm1248_vm10, 1.0, %v17157_v40  ;;  %vm2368_vm9 = vcmp.eq.s32.totalorder %v13770_v3, %v11973_v0  ;;  %vm3488_vm11 = vcmp.eq.s32.totalorder %v13770_v3, %v12009_v15 }
 0x372   :  { %v4251_v54 = vadd.f32 %v8568_v57, %v3131_v8  ;;  %v2016_v16 = vadd.f32 %v8061_v56, %v7805_v9  ;;  %v8317_v20 = vsel %vm2368_vm9, 1.0, %v17157_v40  ;;  %v8573_v35 = vsel %vm3488_vm11, 1.0, %v17157_v40 }
 0x373   :  { %7013 = vmatmul.mubr.f32.gmra.mrb[12].mxu1 %v6487_v10  ;;  %vm4608_vm12 = vcmp.eq.s32.totalorder %v13770_v3, %v12079_v39  ;;  %vm5728_vm13 = vcmp.eq.s32.totalorder %v13770_v3, %v17488_v14  ;;  %vm388_vm14 = vcmp.eq.s32.totalorder %v14037_v59, %v17486_v49  ;;  %vm1252_vm0 = vcmp.eq.s32.totalorder %v14037_v59, %v17487_v53 }
 0x374   :  { %v5371_v25 = vadd.f32 %v8824_v41, %v4251_v54  ;;  %v3136_v27 = vadd.f32 %v8317_v20, %v2016_v16  ;;  %v8829_v62 = vsel %vm4608_vm12, 1.0, %v17157_v40  ;;  %v9085_v6 = vsel %vm5728_vm13, 1.0, %v17157_v40  ;;  %v17491_v16 = vld [vmem:[#allocation86_spill] sm:$0xff]  ;;  %v17492_v20 = vld [vmem:[#allocation83_spill] sm:$0xff] }
 0x375   :  { %v7809_v60 = vsel %vm388_vm14, 1.0, %v17157_v40  ;;  %v8065_v7 = vsel %vm1252_vm0, 1.0, %v17157_v40  ;;  %vm2372_vm1 = vcmp.eq.s32.totalorder %v14037_v59, %v11973_v0  ;;  %vm3492_vm15 = vcmp.eq.s32.totalorder %v14037_v59, %v12009_v15 }
 0x376   :  { %v6491_v34 = vadd.f32 %v9080_v42, %v5371_v25  ;;  %v4256_v51 = vadd.f32 %v8573_v35, %v3136_v27  ;;  %v2020_v4 = vadd.f32 %v8065_v7, %v7809_v60  ;;  %v8321_v45 = vsel %vm2372_vm1, 1.0, %v17157_v40  ;;  %v17493_v35 = vld [vmem:[#allocation129_spill] sm:$0xff]  ;;  %v17494_v7 = vld [vmem:[#allocation150_spill] sm:$0xff] }
 0x377   :  { %v8577_v28 = vsel %vm3492_vm15, 1.0, %v17157_v40  ;;  %vm4612_vm2 = vcmp.eq.s32.totalorder %v14037_v59, %v12079_v39  ;;  %vm5732_vm3 = vcmp.eq.s32.totalorder %v14037_v59, %v17488_v14  ;;  %vm383_vm6 = vcmp.eq.s32.totalorder %v17355_v50, %v17486_v49 }
 0x378   :  { %7463 = vmatmul.mubr.f32.gmra.mrb[12].mxu0 %v6491_v34  ;;  %v5376_v11 = vadd.f32 %v8829_v62, %v4256_v51  ;;  %v3140_v43 = vadd.f32 %v8321_v45, %v2020_v4  ;;  %v8833_v63 = vsel %vm4612_vm2, 1.0, %v17157_v40  ;;  %v9089_v1 = vsel %vm5732_vm3, 1.0, %v17157_v40 }
 0x379   :  { %v7804_v2 = vsel %vm383_vm6, 1.0, %v17157_v40  ;;  %vm1247_vm7 = vcmp.eq.s32.totalorder %v17355_v50, %v17487_v53  ;;  %vm2367_vm5 = vcmp.eq.s32.totalorder %v17355_v50, %v11973_v0  ;;  %vm3487_vm8 = vcmp.eq.s32.totalorder %v17355_v50, %v12009_v15 }
 0x37a   :  { %v6496_v23 = vadd.f32 %v9085_v6, %v5376_v11  ;;  %v4260_v32 = vadd.f32 %v8577_v28, %v3140_v43  ;;  %v8060_v37 = vsel %vm1247_vm7, 1.0, %v17157_v40  ;;  %v8316_v19 = vsel %vm2367_vm5, 1.0, %v17157_v40 }
 0x37b   :  { %v2015_v38 = vadd.f32 %v8060_v37, %v7804_v2  ;;  %v8572_v12 = vsel %vm3487_vm8, 1.0, %v17157_v40  ;;  %vm4607_vm4 = vcmp.eq.s32.totalorder %v17355_v50, %v12079_v39  ;;  %vm5727_vm10 = vcmp.eq.s32.totalorder %v17355_v50, %v17488_v14 }
 0x37c   :  { %7017 = vmatprep.mubr.f32.mxu1 %v6496_v23  ;;  %v5380_v24 = vadd.f32 %v8833_v63, %v4260_v32  ;;  %v8828_v44 = vsel %vm4607_vm4, 1.0, %v17157_v40  ;;  %v9084_v22 = vsel %vm5727_vm10, 1.0, %v17157_v40  ;;  %vm387_vm9 = vcmp.eq.s32.totalorder %v17423_v31, %v17486_v49 }
 0x37d   :  { %v3135_v5 = vadd.f32 %v8316_v19, %v2015_v38  ;;  %v7808_v58 = vsel %vm387_vm9, 1.0, %v17157_v40  ;;  %vm1251_vm11 = vcmp.eq.s32.totalorder %v17423_v31, %v17487_v53  ;;  %vm2371_vm12 = vcmp.eq.s32.totalorder %v17423_v31, %v11973_v0  ;;  %v17489_v0 = vld [vmem:[#allocation17_spill] sm:$0xff]  ;;  %v17490_v53 = vld [vmem:[#allocation66_spill] sm:$0xff] }
 0x37e   :  { %v6500_v57 = vadd.f32 %v9089_v1, %v5380_v24  ;;  %v8064_v46 = vsel %vm1251_vm11, 1.0, %v17157_v40  ;;  %v8320_v41 = vsel %vm2371_vm12, 1.0, %v17157_v40  ;;  %vm3491_vm13 = vcmp.eq.s32.totalorder %v17423_v31, %v12009_v15 }
 0x37f   :  { %v4255_v8 = vadd.f32 %v8572_v12, %v3135_v5  ;;  %v2019_v42 = vadd.f32 %v8064_v46, %v7808_v58  ;;  %v8576_v49 = vsel %vm3491_vm13, 1.0, %v17157_v40  ;;  %vm4611_vm14 = vcmp.eq.s32.totalorder %v17423_v31, %v12079_v39 }
 0x380   :  { %7467 = vmatprep.mubr.f32.mxu0 %v6500_v57  ;;  %v8832_v9 = vsel %vm4611_vm14, 1.0, %v17157_v40  ;;  %vm5731_vm0 = vcmp.eq.s32.totalorder %v17423_v31, %v17488_v14  ;;  %vm392_vm1 = vcmp.eq.s32.totalorder %v13770_v3, %v17489_v0  ;;  %vm1256_vm15 = vcmp.eq.s32.totalorder %v13770_v3, %v17490_v53 }
 0x381   :  { %v5375_v15 = vadd.f32 %v8828_v44, %v4255_v8  ;;  %v3139_v10 = vadd.f32 %v8320_v41, %v2019_v42  ;;  %v9088_v56 = vsel %vm5731_vm0, 1.0, %v17157_v40  ;;  %v7813_v54 = vsel %vm392_vm1, 1.0, %v17157_v40 }
 0x382   :  { %v8069_v39 = vsel %vm1256_vm15, 1.0, %v17157_v40  ;;  %vm2376_vm2 = vcmp.eq.s32.totalorder %v13770_v3, %v17491_v16  ;;  %vm3496_vm3 = vcmp.eq.s32.totalorder %v13770_v3, %v17492_v20  ;;  %vm4616_vm6 = vcmp.eq.s32.totalorder %v13770_v3, %v17493_v35 }
 0x383   :  { %v6495_v14 = vadd.f32 %v9084_v22, %v5375_v15  ;;  %v4259_v25 = vadd.f32 %v8576_v49, %v3139_v10  ;;  %v2024_v27 = vadd.f32 %v8069_v39, %v7813_v54  ;;  %v8325_v62 = vsel %vm2376_vm2, 1.0, %v17157_v40  ;;  %v17495_v39 = vld [vmem:[#allocation16_spill] sm:$0xff] }
 0x384   :  { %v8581_v6 = vsel %vm3496_vm3, 1.0, %v17157_v40  ;;  %v8837_v60 = vsel %vm4616_vm6, 1.0, %v17157_v40  ;;  %vm5736_vm7 = vcmp.eq.s32.totalorder %v13770_v3, %v17494_v7  ;;  %vm396_vm5 = vcmp.eq.s32.totalorder %v14037_v59, %v17489_v0 }
 0x385   :  { %7018 = vmatmul.mubr.f32.gmra.mrb[14].mxu1 %v6495_v14  ;;  %v5379_v34 = vadd.f32 %v8832_v9, %v4259_v25  ;;  %v3144_v51 = vadd.f32 %v8325_v62, %v2024_v27  ;;  %v9093_v4 = vsel %vm5736_vm7, 1.0, %v17157_v40  ;;  %v7817_v45 = vsel %vm396_vm5, 1.0, %v17157_v40  ;;  %v17496_v25 = vld [vmem:[#allocation147_spill] sm:$0xff]  ;;  %v17497_v62 = vld [vmem:[#allocation125_spill] sm:$0xff] }
 0x386   :  { %vm1260_vm8 = vcmp.eq.s32.totalorder %v14037_v59, %v17490_v53  ;;  %vm2380_vm4 = vcmp.eq.s32.totalorder %v14037_v59, %v17491_v16  ;;  %vm3500_vm10 = vcmp.eq.s32.totalorder %v14037_v59, %v17492_v20  ;;  %vm4620_vm9 = vcmp.eq.s32.totalorder %v14037_v59, %v17493_v35 }
 0x387   :  { %v6499_v28 = vadd.f32 %v9088_v56, %v5379_v34  ;;  %v4264_v11 = vadd.f32 %v8581_v6, %v3144_v51  ;;  %v8073_v43 = vsel %vm1260_vm8, 1.0, %v17157_v40  ;;  %v8329_v63 = vsel %vm2380_vm4, 1.0, %v17157_v40  ;;  %v17498_v6 = vld [vmem:[#allocation126_spill] sm:$0xff] }
 0x388   :  { %v2028_v1 = vadd.f32 %v8073_v43, %v7817_v45  ;;  %v8585_v2 = vsel %vm3500_vm10, 1.0, %v17157_v40  ;;  %v8841_v23 = vsel %vm4620_vm9, 1.0, %v17157_v40  ;;  %vm5740_vm11 = vcmp.eq.s32.totalorder %v14037_v59, %v17494_v7  ;;  %v17500_v45 = vld [vmem:[#allocation130_spill] sm:$0xff] }
 0x389   :  { %7468 = vmatmul.mubr.f32.gmra.mrb[14].mxu0 %v6499_v28  ;;  %v5384_v32 = vadd.f32 %v8837_v60, %v4264_v11  ;;  %v9097_v37 = vsel %vm5740_vm11, 1.0, %v17157_v40  ;;  %vm391_vm12 = vcmp.eq.s32.totalorder %v17355_v50, %v17489_v0  ;;  %vm1255_vm13 = vcmp.eq.s32.totalorder %v17355_v50, %v17490_v53 }
 0x38a   :  { %v3148_v19 = vadd.f32 %v8329_v63, %v2028_v1  ;;  %v7812_v38 = vsel %vm391_vm12, 1.0, %v17157_v40  ;;  %v8068_v12 = vsel %vm1255_vm13, 1.0, %v17157_v40  ;;  %vm2375_vm14 = vcmp.eq.s32.totalorder %v17355_v50, %v17491_v16 }
 0x38b   :  { %v6504_v24 = vadd.f32 %v9093_v4, %v5384_v32  ;;  %v2023_v44 = vadd.f32 %v8068_v12, %v7812_v38  ;;  %v8324_v22 = vsel %vm2375_vm14, 1.0, %v17157_v40  ;;  %vm3495_vm0 = vcmp.eq.s32.totalorder %v17355_v50, %v17492_v20  ;;  %v17499_v4 = vld [vmem:[#allocation77_spill] sm:$0xff] }
 0x38c   :  { %v4268_v5 = vadd.f32 %v8585_v2, %v3148_v19  ;;  %v8580_v58 = vsel %vm3495_vm0, 1.0, %v17157_v40  ;;  %vm4615_vm1 = vcmp.eq.s32.totalorder %v17355_v50, %v17493_v35  ;;  %vm5735_vm15 = vcmp.eq.s32.totalorder %v17355_v50, %v17494_v7 }
 0x38d   :  { %7022 = vmatprep.mubr.f32.mxu1 %v6504_v24  ;;  %v3143_v57 = vadd.f32 %v8324_v22, %v2023_v44  ;;  %v8836_v46 = vsel %vm4615_vm1, 1.0, %v17157_v40  ;;  %v9092_v41 = vsel %vm5735_vm15, 1.0, %v17157_v40  ;;  %vm395_vm2 = vcmp.eq.s32.totalorder %v17423_v31, %v17489_v0 }
 0x38e   :  { %v5388_v8 = vadd.f32 %v8841_v23, %v4268_v5  ;;  %v7816_v42 = vsel %vm395_vm2, 1.0, %v17157_v40  ;;  %vm1259_vm3 = vcmp.eq.s32.totalorder %v17423_v31, %v17490_v53  ;;  %vm2379_vm6 = vcmp.eq.s32.totalorder %v17423_v31, %v17491_v16 }
 0x38f   :  { %v4263_v49 = vadd.f32 %v8580_v58, %v3143_v57  ;;  %v8072_v9 = vsel %vm1259_vm3, 1.0, %v17157_v40  ;;  %v8328_v15 = vsel %vm2379_vm6, 1.0, %v17157_v40  ;;  %vm3499_vm7 = vcmp.eq.s32.totalorder %v17423_v31, %v17492_v20 }
 0x390   :  { %v6508_v10 = vadd.f32 %v9097_v37, %v5388_v8  ;;  %v2027_v56 = vadd.f32 %v8072_v9, %v7816_v42  ;;  %v8584_v0 = vsel %vm3499_vm7, 1.0, %v17157_v40  ;;  %vm4619_vm5 = vcmp.eq.s32.totalorder %v17423_v31, %v17493_v35 }
 0x391   :  { %v5383_v54 = vadd.f32 %v8836_v46, %v4263_v49  ;;  %v8840_v53 = vsel %vm4619_vm5, 1.0, %v17157_v40  ;;  %vm5739_vm8 = vcmp.eq.s32.totalorder %v17423_v31, %v17494_v7  ;;  %vm400_vm4 = vcmp.eq.s32.totalorder %v13770_v3, %v17495_v39 }
 0x392   :  { %7472 = vmatprep.mubr.f32.mxu0 %v6508_v10  ;;  %v3147_v16 = vadd.f32 %v8328_v15, %v2027_v56  ;;  %v9096_v20 = vsel %vm5739_vm8, 1.0, %v17157_v40  ;;  %v7821_v14 = vsel %vm400_vm4, 1.0, %v17157_v40  ;;  %vm1264_vm10 = vcmp.eq.s32.totalorder %v13770_v3, %v17496_v25 }
 0x393   :  { %v6503_v27 = vadd.f32 %v9092_v41, %v5383_v54  ;;  %v8077_v35 = vsel %vm1264_vm10, 1.0, %v17157_v40  ;;  %vm2384_vm9 = vcmp.eq.s32.totalorder %v13770_v3, %v17497_v62  ;;  %vm3504_vm11 = vcmp.eq.s32.totalorder %v13770_v3, %v17498_v6 }
 0x394   :  { %v4267_v60 = vadd.f32 %v8584_v0, %v3147_v16  ;;  %v2032_v7 = vadd.f32 %v8077_v35, %v7821_v14  ;;  %v8333_v34 = vsel %vm2384_vm9, 1.0, %v17157_v40  ;;  %v8589_v51 = vsel %vm3504_vm11, 1.0, %v17157_v40 }
 0x395   :  { %7023 = vmatmul.mubr.f32.gmra.mrb[16].mxu1 %v6503_v27  ;;  %vm4624_vm12 = vcmp.eq.s32.totalorder %v13770_v3, %v17499_v4  ;;  %vm5744_vm13 = vcmp.eq.s32.totalorder %v13770_v3, %v17500_v45  ;;  %vm404_vm14 = vcmp.eq.s32.totalorder %v14037_v59, %v17495_v39  ;;  %vm1268_vm0 = vcmp.eq.s32.totalorder %v14037_v59, %v17496_v25  ;;  %v17502_v27 = vld [vmem:[#allocation75_spill] sm:$0xff] }
 0x396   :  { %v5387_v28 = vadd.f32 %v8840_v53, %v4267_v60  ;;  %v3152_v11 = vadd.f32 %v8333_v34, %v2032_v7  ;;  %v8845_v43 = vsel %vm4624_vm12, 1.0, %v17157_v40  ;;  %v9101_v63 = vsel %vm5744_vm13, 1.0, %v17157_v40  ;;  %v17503_v34 = vld [vmem:[#allocation155_spill] sm:$0xff] }
 0x397   :  { %v7825_v1 = vsel %vm404_vm14, 1.0, %v17157_v40  ;;  %v8081_v2 = vsel %vm1268_vm0, 1.0, %v17157_v40  ;;  %vm2388_vm1 = vcmp.eq.s32.totalorder %v14037_v59, %v17497_v62  ;;  %vm3508_vm15 = vcmp.eq.s32.totalorder %v14037_v59, %v17498_v6 }
 0x398   :  { %v6507_v23 = vadd.f32 %v9096_v20, %v5387_v28  ;;  %v4272_v32 = vadd.f32 %v8589_v51, %v3152_v11  ;;  %v2036_v37 = vadd.f32 %v8081_v2, %v7825_v1  ;;  %v8337_v19 = vsel %vm2388_vm1, 1.0, %v17157_v40  ;;  %v17504_v51 = vld [vmem:[#allocation50_spill] sm:$0xff]  ;;  %v17506_v2 = vld [vmem:[#allocation112_spill] sm:$0xff] }
 0x399   :  { %v8593_v38 = vsel %vm3508_vm15, 1.0, %v17157_v40  ;;  %vm4628_vm2 = vcmp.eq.s32.totalorder %v14037_v59, %v17499_v4  ;;  %vm5748_vm3 = vcmp.eq.s32.totalorder %v14037_v59, %v17500_v45  ;;  %vm399_vm6 = vcmp.eq.s32.totalorder %v17355_v50, %v17495_v39 }
 0x39a   :  { %7473 = vmatmul.mubr.f32.gmra.mrb[16].mxu0 %v6507_v23  ;;  %v5392_v12 = vadd.f32 %v8845_v43, %v4272_v32  ;;  %v3156_v24 = vadd.f32 %v8337_v19, %v2036_v37  ;;  %v8849_v44 = vsel %vm4628_vm2, 1.0, %v17157_v40  ;;  %v9105_v22 = vsel %vm5748_vm3, 1.0, %v17157_v40 }
 0x39b   :  { %v7820_v5 = vsel %vm399_vm6, 1.0, %v17157_v40  ;;  %vm1263_vm7 = vcmp.eq.s32.totalorder %v17355_v50, %v17496_v25  ;;  %vm2383_vm5 = vcmp.eq.s32.totalorder %v17355_v50, %v17497_v62  ;;  %vm3503_vm8 = vcmp.eq.s32.totalorder %v17355_v50, %v17498_v6 }
 0x39c   :  { %v6512_v58 = vadd.f32 %v9101_v63, %v5392_v12  ;;  %v4276_v57 = vadd.f32 %v8593_v38, %v3156_v24  ;;  %v8076_v46 = vsel %vm1263_vm7, 1.0, %v17157_v40  ;;  %v8332_v41 = vsel %vm2383_vm5, 1.0, %v17157_v40 }
 0x39d   :  { %v2031_v8 = vadd.f32 %v8076_v46, %v7820_v5  ;;  %v8588_v42 = vsel %vm3503_vm8, 1.0, %v17157_v40  ;;  %vm4623_vm4 = vcmp.eq.s32.totalorder %v17355_v50, %v17499_v4  ;;  %vm5743_vm10 = vcmp.eq.s32.totalorder %v17355_v50, %v17500_v45 }
 0x39e   :  { %7027 = vmatprep.mubr.f32.mxu1 %v6512_v58  ;;  %v5396_v49 = vadd.f32 %v8849_v44, %v4276_v57  ;;  %v8844_v9 = vsel %vm4623_vm4, 1.0, %v17157_v40  ;;  %v9100_v15 = vsel %vm5743_vm10, 1.0, %v17157_v40  ;;  %vm403_vm9 = vcmp.eq.s32.totalorder %v17423_v31, %v17495_v39 }
 0x39f   :  { %v3151_v10 = vadd.f32 %v8332_v41, %v2031_v8  ;;  %v7824_v56 = vsel %vm403_vm9, 1.0, %v17157_v40  ;;  %vm1267_vm11 = vcmp.eq.s32.totalorder %v17423_v31, %v17496_v25  ;;  %vm2387_vm12 = vcmp.eq.s32.totalorder %v17423_v31, %v17497_v62  ;;  %v17501_v25 = vld [vmem:[#allocation19_spill] sm:$0xff] }
 0x3a0   :  { %v6516_v0 = vadd.f32 %v9105_v22, %v5396_v49  ;;  %v8080_v54 = vsel %vm1267_vm11, 1.0, %v17157_v40  ;;  %v8336_v53 = vsel %vm2387_vm12, 1.0, %v17157_v40  ;;  %vm3507_vm13 = vcmp.eq.s32.totalorder %v17423_v31, %v17498_v6 }
 0x3a1   :  { %v4271_v16 = vadd.f32 %v8588_v42, %v3151_v10  ;;  %v2035_v20 = vadd.f32 %v8080_v54, %v7824_v56  ;;  %v8592_v39 = vsel %vm3507_vm13, 1.0, %v17157_v40  ;;  %vm4627_vm14 = vcmp.eq.s32.totalorder %v17423_v31, %v17499_v4  ;;  %v17505_v4 = vld [vmem:[#allocation51_spill] sm:$0xff] }
 0x3a2   :  { %7477 = vmatprep.mubr.f32.mxu0 %v6516_v0  ;;  %v8848_v14 = vsel %vm4627_vm14, 1.0, %v17157_v40  ;;  %vm5747_vm0 = vcmp.eq.s32.totalorder %v17423_v31, %v17500_v45  ;;  %vm408_vm1 = vcmp.eq.s32.totalorder %v13770_v3, %v17501_v25  ;;  %vm1272_vm15 = vcmp.eq.s32.totalorder %v13770_v3, %v17502_v27 }
 0x3a3   :  { %v5391_v35 = vadd.f32 %v8844_v9, %v4271_v16  ;;  %v3155_v62 = vadd.f32 %v8336_v53, %v2035_v20  ;;  %v9104_v6 = vsel %vm5747_vm0, 1.0, %v17157_v40  ;;  %v7829_v60 = vsel %vm408_vm1, 1.0, %v17157_v40 }
 0x3a4   :  { %v8085_v7 = vsel %vm1272_vm15, 1.0, %v17157_v40  ;;  %vm2392_vm2 = vcmp.eq.s32.totalorder %v13770_v3, %v17503_v34  ;;  %vm3512_vm3 = vcmp.eq.s32.totalorder %v13770_v3, %v17504_v51  ;;  %vm4632_vm6 = vcmp.eq.s32.totalorder %v13770_v3, %v17505_v4 }
 0x3a5   :  { %v6511_v45 = vadd.f32 %v9100_v15, %v5391_v35  ;;  %v4275_v28 = vadd.f32 %v8592_v39, %v3155_v62  ;;  %v2040_v11 = vadd.f32 %v8085_v7, %v7829_v60  ;;  %v8341_v43 = vsel %vm2392_vm2, 1.0, %v17157_v40  ;;  %v17507_v7 = vld [vmem:[#allocation18_spill] sm:$0xff] }
 0x3a6   :  { %v8597_v63 = vsel %vm3512_vm3, 1.0, %v17157_v40  ;;  %v8853_v1 = vsel %vm4632_vm6, 1.0, %v17157_v40  ;;  %vm5752_vm7 = vcmp.eq.s32.totalorder %v13770_v3, %v17506_v2  ;;  %vm412_vm5 = vcmp.eq.s32.totalorder %v14037_v59, %v17501_v25 }
 0x3a7   :  { %7028 = vmatmul.mubr.f32.gmra.mrb[18].mxu1 %v6511_v45  ;;  %v5395_v23 = vadd.f32 %v8848_v14, %v4275_v28  ;;  %v3160_v32 = vadd.f32 %v8341_v43, %v2040_v11  ;;  %v9109_v37 = vsel %vm5752_vm7, 1.0, %v17157_v40  ;;  %v7833_v19 = vsel %vm412_vm5, 1.0, %v17157_v40  ;;  %v17508_v28 = vld [vmem:[#allocation45_spill] sm:$0xff]  ;;  %v17509_v43 = vld [vmem:[#allocation80_spill] sm:$0xff] }
 0x3a8   :  { %vm1276_vm8 = vcmp.eq.s32.totalorder %v14037_v59, %v17502_v27  ;;  %vm2396_vm4 = vcmp.eq.s32.totalorder %v14037_v59, %v17503_v34  ;;  %vm3516_vm10 = vcmp.eq.s32.totalorder %v14037_v59, %v17504_v51  ;;  %vm4636_vm9 = vcmp.eq.s32.totalorder %v14037_v59, %v17505_v4 }
 0x3a9   :  { %v6515_v38 = vadd.f32 %v9104_v6, %v5395_v23  ;;  %v4280_v12 = vadd.f32 %v8597_v63, %v3160_v32  ;;  %v8089_v24 = vsel %vm1276_vm8, 1.0, %v17157_v40  ;;  %v8345_v44 = vsel %vm2396_vm4, 1.0, %v17157_v40  ;;  %v17510_v63 = vld [vmem:[#allocation53_spill] sm:$0xff] }
 0x3aa   :  { %v2044_v22 = vadd.f32 %v8089_v24, %v7833_v19  ;;  %v8601_v5 = vsel %vm3516_vm10, 1.0, %v17157_v40  ;;  %v8857_v58 = vsel %vm4636_vm9, 1.0, %v17157_v40  ;;  %vm5756_vm11 = vcmp.eq.s32.totalorder %v14037_v59, %v17506_v2  ;;  %v17512_v19 = vld [vmem:[#allocation94_spill] sm:$0xff] }
 0x3ab   :  { %7478 = vmatmul.mubr.f32.gmra.mrb[18].mxu0 %v6515_v38  ;;  %v5400_v57 = vadd.f32 %v8853_v1, %v4280_v12  ;;  %v9113_v46 = vsel %vm5756_vm11, 1.0, %v17157_v40  ;;  %vm407_vm12 = vcmp.eq.s32.totalorder %v17355_v50, %v17501_v25  ;;  %vm1271_vm13 = vcmp.eq.s32.totalorder %v17355_v50, %v17502_v27 }
 0x3ac   :  { %v3164_v41 = vadd.f32 %v8345_v44, %v2044_v22  ;;  %v7828_v8 = vsel %vm407_vm12, 1.0, %v17157_v40  ;;  %v8084_v42 = vsel %vm1271_vm13, 1.0, %v17157_v40  ;;  %vm2391_vm14 = vcmp.eq.s32.totalorder %v17355_v50, %v17503_v34 }
 0x3ad   :  { %v6520_v49 = vadd.f32 %v9109_v37, %v5400_v57  ;;  %v2039_v9 = vadd.f32 %v8084_v42, %v7828_v8  ;;  %v8340_v15 = vsel %vm2391_vm14, 1.0, %v17157_v40  ;;  %vm3511_vm0 = vcmp.eq.s32.totalorder %v17355_v50, %v17504_v51  ;;  %v17511_v37 = vld [vmem:[#allocation98_spill] sm:$0xff] }
 0x3ae   :  { %v4284_v10 = vadd.f32 %v8601_v5, %v3164_v41  ;;  %v8596_v56 = vsel %vm3511_vm0, 1.0, %v17157_v40  ;;  %vm4631_vm1 = vcmp.eq.s32.totalorder %v17355_v50, %v17505_v4  ;;  %vm5751_vm15 = vcmp.eq.s32.totalorder %v17355_v50, %v17506_v2 }
 0x3af   :  { %7032 = vmatprep.mubr.f32.mxu1 %v6520_v49  ;;  %v3159_v0 = vadd.f32 %v8340_v15, %v2039_v9  ;;  %v8852_v54 = vsel %vm4631_vm1, 1.0, %v17157_v40  ;;  %v9108_v53 = vsel %vm5751_vm15, 1.0, %v17157_v40  ;;  %vm411_vm2 = vcmp.eq.s32.totalorder %v17423_v31, %v17501_v25 }
 0x3b0   :  { %v5404_v16 = vadd.f32 %v8857_v58, %v4284_v10  ;;  %v7832_v20 = vsel %vm411_vm2, 1.0, %v17157_v40  ;;  %vm1275_vm3 = vcmp.eq.s32.totalorder %v17423_v31, %v17502_v27  ;;  %vm2395_vm6 = vcmp.eq.s32.totalorder %v17423_v31, %v17503_v34 }
 0x3b1   :  { %v4279_v39 = vadd.f32 %v8596_v56, %v3159_v0  ;;  %v8088_v14 = vsel %vm1275_vm3, 1.0, %v17157_v40  ;;  %v8344_v35 = vsel %vm2395_vm6, 1.0, %v17157_v40  ;;  %vm3515_vm7 = vcmp.eq.s32.totalorder %v17423_v31, %v17504_v51 }
 0x3b2   :  { %v6524_v62 = vadd.f32 %v9113_v46, %v5404_v16  ;;  %v2043_v6 = vadd.f32 %v8088_v14, %v7832_v20  ;;  %v8600_v25 = vsel %vm3515_vm7, 1.0, %v17157_v40  ;;  %vm4635_vm5 = vcmp.eq.s32.totalorder %v17423_v31, %v17505_v4 }
 0x3b3   :  { %v5399_v60 = vadd.f32 %v8852_v54, %v4279_v39  ;;  %v8856_v27 = vsel %vm4635_vm5, 1.0, %v17157_v40  ;;  %vm5755_vm8 = vcmp.eq.s32.totalorder %v17423_v31, %v17506_v2  ;;  %vm416_vm4 = vcmp.eq.s32.totalorder %v13770_v3, %v17507_v7 }
 0x3b4   :  { %7482 = vmatprep.mubr.f32.mxu0 %v6524_v62  ;;  %v3163_v34 = vadd.f32 %v8344_v35, %v2043_v6  ;;  %v9112_v51 = vsel %vm5755_vm8, 1.0, %v17157_v40  ;;  %v7837_v45 = vsel %vm416_vm4, 1.0, %v17157_v40  ;;  %vm1280_vm10 = vcmp.eq.s32.totalorder %v13770_v3, %v17508_v28 }
 0x3b5   :  { %v6519_v11 = vadd.f32 %v9108_v53, %v5399_v60  ;;  %v8093_v4 = vsel %vm1280_vm10, 1.0, %v17157_v40  ;;  %vm2400_vm9 = vcmp.eq.s32.totalorder %v13770_v3, %v17509_v43  ;;  %vm3520_vm11 = vcmp.eq.s32.totalorder %v13770_v3, %v17510_v63 }
 0x3b6   :  { %v4283_v1 = vadd.f32 %v8600_v25, %v3163_v34  ;;  %v2048_v2 = vadd.f32 %v8093_v4, %v7837_v45  ;;  %v8349_v23 = vsel %vm2400_vm9, 1.0, %v17157_v40  ;;  %v8605_v32 = vsel %vm3520_vm11, 1.0, %v17157_v40 }
 0x3b7   :  { %7033 = vmatmul.mubr.f32.gmra.mrb[20].mxu1 %v6519_v11  ;;  %vm4640_vm12 = vcmp.eq.s32.totalorder %v13770_v3, %v17511_v37  ;;  %vm5760_vm13 = vcmp.eq.s32.totalorder %v13770_v3, %v17512_v19  ;;  %vm420_vm14 = vcmp.eq.s32.totalorder %v14037_v59, %v17507_v7  ;;  %vm1284_vm0 = vcmp.eq.s32.totalorder %v14037_v59, %v17508_v28  ;;  %v17514_v11 = vld [vmem:[#allocation78_spill] sm:$0xff] }
 0x3b8   :  { %v5403_v38 = vadd.f32 %v8856_v27, %v4283_v1  ;;  %v3168_v12 = vadd.f32 %v8349_v23, %v2048_v2  ;;  %v8861_v24 = vsel %vm4640_vm12, 1.0, %v17157_v40  ;;  %v9117_v44 = vsel %vm5760_vm13, 1.0, %v17157_v40  ;;  %v17515_v23 = vld [vmem:[#allocation95_spill] sm:$0xff] }
 0x3b9   :  { %v7841_v22 = vsel %vm420_vm14, 1.0, %v17157_v40  ;;  %v8097_v5 = vsel %vm1284_vm0, 1.0, %v17157_v40  ;;  %vm2404_vm1 = vcmp.eq.s32.totalorder %v14037_v59, %v17509_v43  ;;  %vm3524_vm15 = vcmp.eq.s32.totalorder %v14037_v59, %v17510_v63 }
 0x3ba   :  { %v6523_v58 = vadd.f32 %v9112_v51, %v5403_v38  ;;  %v4288_v57 = vadd.f32 %v8605_v32, %v3168_v12  ;;  %v2052_v46 = vadd.f32 %v8097_v5, %v7841_v22  ;;  %v8353_v41 = vsel %vm2404_vm1, 1.0, %v17157_v40  ;;  %v17516_v32 = vld [vmem:[#allocation93_spill] sm:$0xff] }
 0x3bb   :  { %v8609_v8 = vsel %vm3524_vm15, 1.0, %v17157_v40  ;;  %vm4644_vm2 = vcmp.eq.s32.totalorder %v14037_v59, %v17511_v37  ;;  %vm5764_vm3 = vcmp.eq.s32.totalorder %v14037_v59, %v17512_v19  ;;  %vm415_vm6 = vcmp.eq.s32.totalorder %v17355_v50, %v17507_v7  ;;  %v17518_v5 = vld [vmem:[#allocation101_spill] sm:$0xff] }
 0x3bc   :  { %7483 = vmatmul.mubr.f32.gmra.mrb[20].mxu0 %v6523_v58  ;;  %v5408_v42 = vadd.f32 %v8861_v24, %v4288_v57  ;;  %v3172_v49 = vadd.f32 %v8353_v41, %v2052_v46  ;;  %v8865_v9 = vsel %vm4644_vm2, 1.0, %v17157_v40  ;;  %v9121_v15 = vsel %vm5764_vm3, 1.0, %v17157_v40 }
 0x3bd   :  { %v7836_v10 = vsel %vm415_vm6, 1.0, %v17157_v40  ;;  %vm1279_vm7 = vcmp.eq.s32.totalorder %v17355_v50, %v17508_v28  ;;  %vm2399_vm5 = vcmp.eq.s32.totalorder %v17355_v50, %v17509_v43  ;;  %vm3519_vm8 = vcmp.eq.s32.totalorder %v17355_v50, %v17510_v63 }
 0x3be   :  { %v6528_v56 = vadd.f32 %v9117_v44, %v5408_v42  ;;  %v4292_v0 = vadd.f32 %v8609_v8, %v3172_v49  ;;  %v8092_v54 = vsel %vm1279_vm7, 1.0, %v17157_v40  ;;  %v8348_v53 = vsel %vm2399_vm5, 1.0, %v17157_v40 }
 0x3bf   :  { %v2047_v16 = vadd.f32 %v8092_v54, %v7836_v10  ;;  %v8604_v20 = vsel %vm3519_vm8, 1.0, %v17157_v40  ;;  %vm4639_vm4 = vcmp.eq.s32.totalorder %v17355_v50, %v17511_v37  ;;  %vm5759_vm10 = vcmp.eq.s32.totalorder %v17355_v50, %v17512_v19 }
 0x3c0   :  { %7037 = vmatprep.mubr.f32.mxu1 %v6528_v56  ;;  %v5412_v39 = vadd.f32 %v8865_v9, %v4292_v0  ;;  %v8860_v14 = vsel %vm4639_vm4, 1.0, %v17157_v40  ;;  %v9116_v35 = vsel %vm5759_vm10, 1.0, %v17157_v40  ;;  %vm419_vm9 = vcmp.eq.s32.totalorder %v17423_v31, %v17507_v7 }
 0x3c1   :  { %v3167_v62 = vadd.f32 %v8348_v53, %v2047_v16  ;;  %v7840_v6 = vsel %vm419_vm9, 1.0, %v17157_v40  ;;  %vm1283_vm11 = vcmp.eq.s32.totalorder %v17423_v31, %v17508_v28  ;;  %vm2403_vm12 = vcmp.eq.s32.totalorder %v17423_v31, %v17509_v43  ;;  %v17513_v28 = vld [vmem:[#allocation21_spill] sm:$0xff] }
 0x3c2   :  { %v6532_v25 = vadd.f32 %v9121_v15, %v5412_v39  ;;  %v8096_v60 = vsel %vm1283_vm11, 1.0, %v17157_v40  ;;  %v8352_v27 = vsel %vm2403_vm12, 1.0, %v17157_v40  ;;  %vm3523_vm13 = vcmp.eq.s32.totalorder %v17423_v31, %v17510_v63 }
 0x3c3   :  { %v4287_v34 = vadd.f32 %v8604_v20, %v3167_v62  ;;  %v2051_v51 = vadd.f32 %v8096_v60, %v7840_v6  ;;  %v8608_v7 = vsel %vm3523_vm13, 1.0, %v17157_v40  ;;  %vm4643_vm14 = vcmp.eq.s32.totalorder %v17423_v31, %v17511_v37  ;;  %v17517_v37 = vld [vmem:[#allocation79_spill] sm:$0xff] }
 0x3c4   :  { %7487 = vmatprep.mubr.f32.mxu0 %v6532_v25  ;;  %v8864_v45 = vsel %vm4643_vm14, 1.0, %v17157_v40  ;;  %vm5763_vm0 = vcmp.eq.s32.totalorder %v17423_v31, %v17512_v19  ;;  %vm424_vm1 = vcmp.eq.s32.totalorder %v13770_v3, %v17513_v28  ;;  %vm1288_vm15 = vcmp.eq.s32.totalorder %v13770_v3, %v17514_v11 }
 0x3c5   :  { %v5407_v4 = vadd.f32 %v8860_v14, %v4287_v34  ;;  %v3171_v43 = vadd.f32 %v8352_v27, %v2051_v51  ;;  %v9120_v63 = vsel %vm5763_vm0, 1.0, %v17157_v40  ;;  %v7845_v1 = vsel %vm424_vm1, 1.0, %v17157_v40 }
 0x3c6   :  { %v8101_v2 = vsel %vm1288_vm15, 1.0, %v17157_v40  ;;  %vm2408_vm2 = vcmp.eq.s32.totalorder %v13770_v3, %v17515_v23  ;;  %vm3528_vm3 = vcmp.eq.s32.totalorder %v13770_v3, %v17516_v32  ;;  %vm4648_vm6 = vcmp.eq.s32.totalorder %v13770_v3, %v17517_v37 }
 0x3c7   :  { %v6527_v19 = vadd.f32 %v9116_v35, %v5407_v4  ;;  %v4291_v38 = vadd.f32 %v8608_v7, %v3171_v43  ;;  %v2056_v12 = vadd.f32 %v8101_v2, %v7845_v1  ;;  %v8357_v24 = vsel %vm2408_vm2, 1.0, %v17157_v40  ;;  %v17519_v2 = vld [vmem:[#allocation20_spill] sm:$0xff] }
 0x3c8   :  { %v8613_v44 = vsel %vm3528_vm3, 1.0, %v17157_v40  ;;  %v8869_v22 = vsel %vm4648_vm6, 1.0, %v17157_v40  ;;  %vm5768_vm7 = vcmp.eq.s32.totalorder %v13770_v3, %v17518_v5  ;;  %vm428_vm5 = vcmp.eq.s32.totalorder %v14037_v59, %v17513_v28 }
 0x3c9   :  { %7038 = vmatmul.mubr.f32.gmra.mrb[22].mxu1 %v6527_v19  ;;  %v5411_v58 = vadd.f32 %v8864_v45, %v4291_v38  ;;  %v3176_v57 = vadd.f32 %v8357_v24, %v2056_v12  ;;  %v9125_v46 = vsel %vm5768_vm7, 1.0, %v17157_v40  ;;  %v7849_v41 = vsel %vm428_vm5, 1.0, %v17157_v40  ;;  %v17520_v38 = vld [vmem:[#allocation46_spill] sm:$0xff]  ;;  %v17521_v24 = vld [vmem:[#allocation96_spill] sm:$0xff] }
 0x3ca   :  { %vm1292_vm8 = vcmp.eq.s32.totalorder %v14037_v59, %v17514_v11  ;;  %vm2412_vm4 = vcmp.eq.s32.totalorder %v14037_v59, %v17515_v23  ;;  %vm3532_vm10 = vcmp.eq.s32.totalorder %v14037_v59, %v17516_v32  ;;  %vm4652_vm9 = vcmp.eq.s32.totalorder %v14037_v59, %v17517_v37 }
 0x3cb   :  { %v6531_v8 = vadd.f32 %v9120_v63, %v5411_v58  ;;  %v4296_v42 = vadd.f32 %v8613_v44, %v3176_v57  ;;  %v8105_v49 = vsel %vm1292_vm8, 1.0, %v17157_v40  ;;  %v8361_v9 = vsel %vm2412_vm4, 1.0, %v17157_v40  ;;  %v17522_v44 = vld [vmem:[#allocation99_spill] sm:$0xff] }
 0x3cc   :  { %v2060_v15 = vadd.f32 %v8105_v49, %v7849_v41  ;;  %v8617_v10 = vsel %vm3532_vm10, 1.0, %v17157_v40  ;;  %v8873_v56 = vsel %vm4652_vm9, 1.0, %v17157_v40  ;;  %vm5772_vm11 = vcmp.eq.s32.totalorder %v14037_v59, %v17518_v5  ;;  %v17524_v41 = vld [vmem:[#allocation116_spill] sm:$0xff] }
 0x3cd   :  { %7488 = vmatmul.mubr.f32.gmra.mrb[22].mxu0 %v6531_v8  ;;  %v5416_v0 = vadd.f32 %v8869_v22, %v4296_v42  ;;  %v9129_v54 = vsel %vm5772_vm11, 1.0, %v17157_v40  ;;  %vm423_vm12 = vcmp.eq.s32.totalorder %v17355_v50, %v17513_v28  ;;  %vm1287_vm13 = vcmp.eq.s32.totalorder %v17355_v50, %v17514_v11 }
 0x3ce   :  { %v3180_v53 = vadd.f32 %v8361_v9, %v2060_v15  ;;  %v7844_v16 = vsel %vm423_vm12, 1.0, %v17157_v40  ;;  %v8100_v20 = vsel %vm1287_vm13, 1.0, %v17157_v40  ;;  %vm2407_vm14 = vcmp.eq.s32.totalorder %v17355_v50, %v17515_v23 }
 0x3cf   :  { %v6536_v39 = vadd.f32 %v9125_v46, %v5416_v0  ;;  %v2055_v14 = vadd.f32 %v8100_v20, %v7844_v16  ;;  %v8356_v35 = vsel %vm2407_vm14, 1.0, %v17157_v40  ;;  %vm3527_vm0 = vcmp.eq.s32.totalorder %v17355_v50, %v17516_v32  ;;  %v17523_v46 = vld [vmem:[#allocation105_spill] sm:$0xff] }
 0x3d0   :  { %v4300_v62 = vadd.f32 %v8617_v10, %v3180_v53  ;;  %v8612_v6 = vsel %vm3527_vm0, 1.0, %v17157_v40  ;;  %vm4647_vm1 = vcmp.eq.s32.totalorder %v17355_v50, %v17517_v37  ;;  %vm5767_vm15 = vcmp.eq.s32.totalorder %v17355_v50, %v17518_v5 }
 0x3d1   :  { %7042 = vmatprep.mubr.f32.mxu1 %v6536_v39  ;;  %v3175_v25 = vadd.f32 %v8356_v35, %v2055_v14  ;;  %v8868_v60 = vsel %vm4647_vm1, 1.0, %v17157_v40  ;;  %v9124_v27 = vsel %vm5767_vm15, 1.0, %v17157_v40  ;;  %vm427_vm2 = vcmp.eq.s32.totalorder %v17423_v31, %v17513_v28 }
 0x3d2   :  { %v5420_v34 = vadd.f32 %v8873_v56, %v4300_v62  ;;  %v7848_v51 = vsel %vm427_vm2, 1.0, %v17157_v40  ;;  %vm1291_vm3 = vcmp.eq.s32.totalorder %v17423_v31, %v17514_v11  ;;  %vm2411_vm6 = vcmp.eq.s32.totalorder %v17423_v31, %v17515_v23 }
 0x3d3   :  { %v4295_v7 = vadd.f32 %v8612_v6, %v3175_v25  ;;  %v8104_v45 = vsel %vm1291_vm3, 1.0, %v17157_v40  ;;  %v8360_v4 = vsel %vm2411_vm6, 1.0, %v17157_v40  ;;  %vm3531_vm7 = vcmp.eq.s32.totalorder %v17423_v31, %v17516_v32 }
 0x3d4   :  { %v6540_v43 = vadd.f32 %v9129_v54, %v5420_v34  ;;  %v2059_v63 = vadd.f32 %v8104_v45, %v7848_v51  ;;  %v8616_v28 = vsel %vm3531_vm7, 1.0, %v17157_v40  ;;  %vm4651_vm5 = vcmp.eq.s32.totalorder %v17423_v31, %v17517_v37 }
 0x3d5   :  { %v5415_v1 = vadd.f32 %v8868_v60, %v4295_v7  ;;  %v8872_v11 = vsel %vm4651_vm5, 1.0, %v17157_v40  ;;  %vm5771_vm8 = vcmp.eq.s32.totalorder %v17423_v31, %v17518_v5  ;;  %vm432_vm4 = vcmp.eq.s32.totalorder %v13770_v3, %v17519_v2 }
 0x3d6   :  { %7492 = vmatprep.mubr.f32.mxu0 %v6540_v43  ;;  %v3179_v23 = vadd.f32 %v8360_v4, %v2059_v63  ;;  %v9128_v32 = vsel %vm5771_vm8, 1.0, %v17157_v40  ;;  %v7853_v19 = vsel %vm432_vm4, 1.0, %v17157_v40  ;;  %vm1296_vm10 = vcmp.eq.s32.totalorder %v13770_v3, %v17520_v38 }
 0x3d7   :  { %v6535_v12 = vadd.f32 %v9124_v27, %v5415_v1  ;;  %v8109_v37 = vsel %vm1296_vm10, 1.0, %v17157_v40  ;;  %vm2416_vm9 = vcmp.eq.s32.totalorder %v13770_v3, %v17521_v24  ;;  %vm3536_vm11 = vcmp.eq.s32.totalorder %v13770_v3, %v17522_v44 }
 0x3d8   :  { %v4299_v22 = vadd.f32 %v8616_v28, %v3179_v23  ;;  %v2064_v5 = vadd.f32 %v8109_v37, %v7853_v19  ;;  %v8365_v58 = vsel %vm2416_vm9, 1.0, %v17157_v40  ;;  %v8621_v57 = vsel %vm3536_vm11, 1.0, %v17157_v40 }
 0x3d9   :  { %7043 = vmatmul.mubr.f32.gmra.mrb[24].mxu1 %v6535_v12  ;;  %vm4656_vm12 = vcmp.eq.s32.totalorder %v13770_v3, %v17523_v46  ;;  %vm5776_vm13 = vcmp.eq.s32.totalorder %v13770_v3, %v17524_v41  ;;  %vm436_vm14 = vcmp.eq.s32.totalorder %v14037_v59, %v17519_v2  ;;  %vm1300_vm0 = vcmp.eq.s32.totalorder %v14037_v59, %v17520_v38  ;;  %v17526_v12 = vld [vmem:[#allocation82_spill] sm:$0xff] }
 0x3da   :  { %v5419_v8 = vadd.f32 %v8872_v11, %v4299_v22  ;;  %v3184_v42 = vadd.f32 %v8365_v58, %v2064_v5  ;;  %v8877_v49 = vsel %vm4656_vm12, 1.0, %v17157_v40  ;;  %v9133_v9 = vsel %vm5776_vm13, 1.0, %v17157_v40  ;;  %v17527_v58 = vld [vmem:[#allocation81_spill] sm:$0xff] }
 0x3db   :  { %v7857_v15 = vsel %vm436_vm14, 1.0, %v17157_v40  ;;  %v8113_v10 = vsel %vm1300_vm0, 1.0, %v17157_v40  ;;  %vm2420_vm1 = vcmp.eq.s32.totalorder %v14037_v59, %v17521_v24  ;;  %vm3540_vm15 = vcmp.eq.s32.totalorder %v14037_v59, %v17522_v44 }
 0x3dc   :  { %v6539_v56 = vadd.f32 %v9128_v32, %v5419_v8  ;;  %v4304_v0 = vadd.f32 %v8621_v57, %v3184_v42  ;;  %v2068_v54 = vadd.f32 %v8113_v10, %v7857_v15  ;;  %v8369_v53 = vsel %vm2420_vm1, 1.0, %v17157_v40  ;;  %v17528_v57 = vld [vmem:[#allocation102_spill] sm:$0xff]  ;;  %v17530_v10 = vld [vmem:[#allocation55_spill] sm:$0xff] }
 0x3dd   :  { %v8625_v16 = vsel %vm3540_vm15, 1.0, %v17157_v40  ;;  %vm4660_vm2 = vcmp.eq.s32.totalorder %v14037_v59, %v17523_v46  ;;  %vm5780_vm3 = vcmp.eq.s32.totalorder %v14037_v59, %v17524_v41  ;;  %vm431_vm6 = vcmp.eq.s32.totalorder %v17355_v50, %v17519_v2 }
 0x3de   :  { %7493 = vmatmul.mubr.f32.gmra.mrb[24].mxu0 %v6539_v56  ;;  %v5424_v20 = vadd.f32 %v8877_v49, %v4304_v0  ;;  %v3188_v39 = vadd.f32 %v8369_v53, %v2068_v54  ;;  %v8881_v14 = vsel %vm4660_vm2, 1.0, %v17157_v40  ;;  %v9137_v35 = vsel %vm5780_vm3, 1.0, %v17157_v40 }
 0x3df   :  { %v7852_v62 = vsel %vm431_vm6, 1.0, %v17157_v40  ;;  %vm1295_vm7 = vcmp.eq.s32.totalorder %v17355_v50, %v17520_v38  ;;  %vm2415_vm5 = vcmp.eq.s32.totalorder %v17355_v50, %v17521_v24  ;;  %vm3535_vm8 = vcmp.eq.s32.totalorder %v17355_v50, %v17522_v44 }
 0x3e0   :  { %v6544_v6 = vadd.f32 %v9133_v9, %v5424_v20  ;;  %v4308_v25 = vadd.f32 %v8625_v16, %v3188_v39  ;;  %v8108_v60 = vsel %vm1295_vm7, 1.0, %v17157_v40  ;;  %v8364_v27 = vsel %vm2415_vm5, 1.0, %v17157_v40 }
 0x3e1   :  { %v2063_v34 = vadd.f32 %v8108_v60, %v7852_v62  ;;  %v8620_v51 = vsel %vm3535_vm8, 1.0, %v17157_v40  ;;  %vm4655_vm4 = vcmp.eq.s32.totalorder %v17355_v50, %v17523_v46  ;;  %vm5775_vm10 = vcmp.eq.s32.totalorder %v17355_v50, %v17524_v41 }
 0x3e2   :  { %7047 = vmatprep.mubr.f32.mxu1 %v6544_v6  ;;  %v5428_v7 = vadd.f32 %v8881_v14, %v4308_v25  ;;  %v8876_v45 = vsel %vm4655_vm4, 1.0, %v17157_v40  ;;  %v9132_v4 = vsel %vm5775_vm10, 1.0, %v17157_v40  ;;  %vm435_vm9 = vcmp.eq.s32.totalorder %v17423_v31, %v17519_v2 }
 0x3e3   :  { %v3183_v43 = vadd.f32 %v8364_v27, %v2063_v34  ;;  %v7856_v63 = vsel %vm435_vm9, 1.0, %v17157_v40  ;;  %vm1299_vm11 = vcmp.eq.s32.totalorder %v17423_v31, %v17520_v38  ;;  %vm2419_vm12 = vcmp.eq.s32.totalorder %v17423_v31, %v17521_v24  ;;  %v17525_v38 = vld [vmem:[#allocation23_spill] sm:$0xff] }
 0x3e4   :  { %v6548_v28 = vadd.f32 %v9137_v35, %v5428_v7  ;;  %v8112_v1 = vsel %vm1299_vm11, 1.0, %v17157_v40  ;;  %v8368_v11 = vsel %vm2419_vm12, 1.0, %v17157_v40  ;;  %vm3539_vm13 = vcmp.eq.s32.totalorder %v17423_v31, %v17522_v44 }
 0x3e5   :  { %v4303_v23 = vadd.f32 %v8620_v51, %v3183_v43  ;;  %v2067_v32 = vadd.f32 %v8112_v1, %v7856_v63  ;;  %v8624_v2 = vsel %vm3539_vm13, 1.0, %v17157_v40  ;;  %vm4659_vm14 = vcmp.eq.s32.totalorder %v17423_v31, %v17523_v46  ;;  %v17529_v46 = vld [vmem:[#allocation107_spill] sm:$0xff] }
 0x3e6   :  { %7497 = vmatprep.mubr.f32.mxu0 %v6548_v28  ;;  %v8880_v19 = vsel %vm4659_vm14, 1.0, %v17157_v40  ;;  %vm5779_vm0 = vcmp.eq.s32.totalorder %v17423_v31, %v17524_v41  ;;  %vm440_vm1 = vcmp.eq.s32.totalorder %v13770_v3, %v17525_v38  ;;  %vm1304_vm15 = vcmp.eq.s32.totalorder %v13770_v3, %v17526_v12 }
 0x3e7   :  { %v5423_v37 = vadd.f32 %v8876_v45, %v4303_v23  ;;  %v3187_v24 = vadd.f32 %v8368_v11, %v2067_v32  ;;  %v9136_v44 = vsel %vm5779_vm0, 1.0, %v17157_v40  ;;  %v7861_v22 = vsel %vm440_vm1, 1.0, %v17157_v40 }
 0x3e8   :  { %v8117_v5 = vsel %vm1304_vm15, 1.0, %v17157_v40  ;;  %vm2424_vm2 = vcmp.eq.s32.totalorder %v13770_v3, %v17527_v58  ;;  %vm3544_vm3 = vcmp.eq.s32.totalorder %v13770_v3, %v17528_v57  ;;  %vm4664_vm6 = vcmp.eq.s32.totalorder %v13770_v3, %v17529_v46 }
 0x3e9   :  { %v6543_v41 = vadd.f32 %v9132_v4, %v5423_v37  ;;  %v4307_v8 = vadd.f32 %v8624_v2, %v3187_v24  ;;  %v2072_v42 = vadd.f32 %v8117_v5, %v7861_v22  ;;  %v8373_v49 = vsel %vm2424_vm2, 1.0, %v17157_v40  ;;  %v17531_v5 = vld [vmem:[#allocation22_spill] sm:$0xff] }
 0x3ea   :  { %v8629_v9 = vsel %vm3544_vm3, 1.0, %v17157_v40  ;;  %v8885_v15 = vsel %vm4664_vm6, 1.0, %v17157_v40  ;;  %vm5784_vm7 = vcmp.eq.s32.totalorder %v13770_v3, %v17530_v10  ;;  %vm444_vm5 = vcmp.eq.s32.totalorder %v14037_v59, %v17525_v38 }
 0x3eb   :  { %7048 = vmatmul.mubr.f32.gmra.mrb[26].mxu1 %v6543_v41  ;;  %v5427_v56 = vadd.f32 %v8880_v19, %v4307_v8  ;;  %v3192_v0 = vadd.f32 %v8373_v49, %v2072_v42  ;;  %v9141_v54 = vsel %vm5784_vm7, 1.0, %v17157_v40  ;;  %v7865_v53 = vsel %vm444_vm5, 1.0, %v17157_v40  ;;  %v17532_v8 = vld [vmem:[#allocation151_spill] sm:$0xff]  ;;  %v17533_v49 = vld [vmem:[#allocation106_spill] sm:$0xff] }
 0x3ec   :  { %vm1308_vm8 = vcmp.eq.s32.totalorder %v14037_v59, %v17526_v12  ;;  %vm2428_vm4 = vcmp.eq.s32.totalorder %v14037_v59, %v17527_v58  ;;  %vm3548_vm10 = vcmp.eq.s32.totalorder %v14037_v59, %v17528_v57  ;;  %vm4668_vm9 = vcmp.eq.s32.totalorder %v14037_v59, %v17529_v46 }
 0x3ed   :  { %v6547_v16 = vadd.f32 %v9136_v44, %v5427_v56  ;;  %v4312_v20 = vadd.f32 %v8629_v9, %v3192_v0  ;;  %v8121_v39 = vsel %vm1308_vm8, 1.0, %v17157_v40  ;;  %v8377_v14 = vsel %vm2428_vm4, 1.0, %v17157_v40  ;;  %v17534_v9 = vld [vmem:[#allocation104_spill] sm:$0xff] }
 0x3ee   :  { %v2076_v35 = vadd.f32 %v8121_v39, %v7865_v53  ;;  %v8633_v62 = vsel %vm3548_vm10, 1.0, %v17157_v40  ;;  %v8889_v6 = vsel %vm4668_vm9, 1.0, %v17157_v40  ;;  %vm5788_vm11 = vcmp.eq.s32.totalorder %v14037_v59, %v17530_v10  ;;  %v17536_v53 = vld [vmem:[#allocation136_spill] sm:$0xff] }
 0x3ef   :  { %7498 = vmatmul.mubr.f32.gmra.mrb[26].mxu0 %v6547_v16  ;;  %v5432_v25 = vadd.f32 %v8885_v15, %v4312_v20  ;;  %v9145_v60 = vsel %vm5788_vm11, 1.0, %v17157_v40  ;;  %vm439_vm12 = vcmp.eq.s32.totalorder %v17355_v50, %v17525_v38  ;;  %vm1303_vm13 = vcmp.eq.s32.totalorder %v17355_v50, %v17526_v12 }
 0x3f0   :  { %v3196_v27 = vadd.f32 %v8377_v14, %v2076_v35  ;;  %v7860_v34 = vsel %vm439_vm12, 1.0, %v17157_v40  ;;  %v8116_v51 = vsel %vm1303_vm13, 1.0, %v17157_v40  ;;  %vm2423_vm14 = vcmp.eq.s32.totalorder %v17355_v50, %v17527_v58 }
 0x3f1   :  { %v6552_v7 = vadd.f32 %v9141_v54, %v5432_v25  ;;  %v2071_v45 = vadd.f32 %v8116_v51, %v7860_v34  ;;  %v8372_v4 = vsel %vm2423_vm14, 1.0, %v17157_v40  ;;  %vm3543_vm0 = vcmp.eq.s32.totalorder %v17355_v50, %v17528_v57  ;;  %v17535_v54 = vld [vmem:[#allocation84_spill] sm:$0xff] }
 0x3f2   :  { %v4316_v43 = vadd.f32 %v8633_v62, %v3196_v27  ;;  %v8628_v63 = vsel %vm3543_vm0, 1.0, %v17157_v40  ;;  %vm4663_vm1 = vcmp.eq.s32.totalorder %v17355_v50, %v17529_v46  ;;  %vm5783_vm15 = vcmp.eq.s32.totalorder %v17355_v50, %v17530_v10 }
 0x3f3   :  { %7052 = vmatprep.mubr.f32.mxu1 %v6552_v7  ;;  %v3191_v28 = vadd.f32 %v8372_v4, %v2071_v45  ;;  %v8884_v1 = vsel %vm4663_vm1, 1.0, %v17157_v40  ;;  %v9140_v11 = vsel %vm5783_vm15, 1.0, %v17157_v40  ;;  %vm443_vm2 = vcmp.eq.s32.totalorder %v17423_v31, %v17525_v38 }
 0x3f4   :  { %v5436_v23 = vadd.f32 %v8889_v6, %v4316_v43  ;;  %v7864_v32 = vsel %vm443_vm2, 1.0, %v17157_v40  ;;  %vm1307_vm3 = vcmp.eq.s32.totalorder %v17423_v31, %v17526_v12  ;;  %vm2427_vm6 = vcmp.eq.s32.totalorder %v17423_v31, %v17527_v58 }
 0x3f5   :  { %v4311_v2 = vadd.f32 %v8628_v63, %v3191_v28  ;;  %v8120_v19 = vsel %vm1307_vm3, 1.0, %v17157_v40  ;;  %v8376_v37 = vsel %vm2427_vm6, 1.0, %v17157_v40  ;;  %vm3547_vm7 = vcmp.eq.s32.totalorder %v17423_v31, %v17528_v57 }
 0x3f6   :  { %v6556_v24 = vadd.f32 %v9145_v60, %v5436_v23  ;;  %v2075_v44 = vadd.f32 %v8120_v19, %v7864_v32  ;;  %v8632_v38 = vsel %vm3547_vm7, 1.0, %v17157_v40  ;;  %vm4667_vm5 = vcmp.eq.s32.totalorder %v17423_v31, %v17529_v46 }
 0x3f7   :  { %v5431_v22 = vadd.f32 %v8884_v1, %v4311_v2  ;;  %v8888_v12 = vsel %vm4667_vm5, 1.0, %v17157_v40  ;;  %vm5787_vm8 = vcmp.eq.s32.totalorder %v17423_v31, %v17530_v10  ;;  %vm448_vm4 = vcmp.eq.s32.totalorder %v13770_v3, %v17531_v5 }
 0x3f8   :  { %7502 = vmatprep.mubr.f32.mxu0 %v6556_v24  ;;  %v3195_v58 = vadd.f32 %v8376_v37, %v2075_v44  ;;  %v9144_v57 = vsel %vm5787_vm8, 1.0, %v17157_v40  ;;  %v7869_v41 = vsel %vm448_vm4, 1.0, %v17157_v40  ;;  %vm1312_vm10 = vcmp.eq.s32.totalorder %v13770_v3, %v17532_v8 }
 0x3f9   :  { %v6551_v42 = vadd.f32 %v9140_v11, %v5431_v22  ;;  %v8125_v46 = vsel %vm1312_vm10, 1.0, %v17157_v40  ;;  %vm2432_vm9 = vcmp.eq.s32.totalorder %v13770_v3, %v17533_v49  ;;  %vm3552_vm11 = vcmp.eq.s32.totalorder %v13770_v3, %v17534_v9 }
 0x3fa   :  { %v4315_v15 = vadd.f32 %v8632_v38, %v3195_v58  ;;  %v2080_v10 = vadd.f32 %v8125_v46, %v7869_v41  ;;  %v8381_v56 = vsel %vm2432_vm9, 1.0, %v17157_v40  ;;  %v8637_v0 = vsel %vm3552_vm11, 1.0, %v17157_v40 }
 0x3fb   :  { %7053 = vmatmul.mubr.f32.gmra.mrb[28].mxu1 %v6551_v42  ;;  %vm4672_vm12 = vcmp.eq.s32.totalorder %v13770_v3, %v17535_v54  ;;  %vm5792_vm13 = vcmp.eq.s32.totalorder %v13770_v3, %v17536_v53  ;;  %vm452_vm14 = vcmp.eq.s32.totalorder %v14037_v59, %v17531_v5  ;;  %vm1316_vm0 = vcmp.eq.s32.totalorder %v14037_v59, %v17532_v8  ;;  %v17538_v42 = vld [vmem:[#allocation88_spill] sm:$0xff] }
 0x3fc   :  { %v5435_v16 = vadd.f32 %v8888_v12, %v4315_v15  ;;  %v3200_v20 = vadd.f32 %v8381_v56, %v2080_v10  ;;  %v8893_v39 = vsel %vm4672_vm12, 1.0, %v17157_v40  ;;  %v9149_v14 = vsel %vm5792_vm13, 1.0, %v17157_v40  ;;  %v17539_v56 = vld [vmem:[#allocation57_spill] sm:$0xff] }
 0x3fd   :  { %v7873_v35 = vsel %vm452_vm14, 1.0, %v17157_v40  ;;  %v8129_v62 = vsel %vm1316_vm0, 1.0, %v17157_v40  ;;  %vm2436_vm1 = vcmp.eq.s32.totalorder %v14037_v59, %v17533_v49  ;;  %vm3556_vm15 = vcmp.eq.s32.totalorder %v14037_v59, %v17534_v9 }
 0x3fe   :  { %v6555_v6 = vadd.f32 %v9144_v57, %v5435_v16  ;;  %v4320_v25 = vadd.f32 %v8637_v0, %v3200_v20  ;;  %v2084_v60 = vadd.f32 %v8129_v62, %v7873_v35  ;;  %v8385_v27 = vsel %vm2436_vm1, 1.0, %v17157_v40  ;;  %v17540_v0 = vld [vmem:[#allocation135_spill] sm:$0xff]  ;;  %v17542_v62 = vld [vmem:[#allocation122_spill] sm:$0xff] }
 0x3ff   :  { %v8641_v34 = vsel %vm3556_vm15, 1.0, %v17157_v40  ;;  %vm4676_vm2 = vcmp.eq.s32.totalorder %v14037_v59, %v17535_v54  ;;  %vm5796_vm3 = vcmp.eq.s32.totalorder %v14037_v59, %v17536_v53  ;;  %vm447_vm6 = vcmp.eq.s32.totalorder %v17355_v50, %v17531_v5 }
 0x400   :  { %7503 = vmatmul.mubr.f32.gmra.mrb[28].mxu0 %v6555_v6  ;;  %v5440_v51 = vadd.f32 %v8893_v39, %v4320_v25  ;;  %v3204_v7 = vadd.f32 %v8385_v27, %v2084_v60  ;;  %v8897_v45 = vsel %vm4676_vm2, 1.0, %v17157_v40  ;;  %v9153_v4 = vsel %vm5796_vm3, 1.0, %v17157_v40 }
 0x401   :  { %v7868_v43 = vsel %vm447_vm6, 1.0, %v17157_v40  ;;  %vm1311_vm7 = vcmp.eq.s32.totalorder %v17355_v50, %v17532_v8  ;;  %vm2431_vm5 = vcmp.eq.s32.totalorder %v17355_v50, %v17533_v49  ;;  %vm3551_vm8 = vcmp.eq.s32.totalorder %v17355_v50, %v17534_v9 }
 0x402   :  { %v6560_v63 = vadd.f32 %v9149_v14, %v5440_v51  ;;  %v4324_v28 = vadd.f32 %v8641_v34, %v3204_v7  ;;  %v8124_v1 = vsel %vm1311_vm7, 1.0, %v17157_v40  ;;  %v8380_v11 = vsel %vm2431_vm5, 1.0, %v17157_v40 }
 0x403   :  { %v2079_v23 = vadd.f32 %v8124_v1, %v7868_v43  ;;  %v8636_v32 = vsel %vm3551_vm8, 1.0, %v17157_v40  ;;  %vm4671_vm4 = vcmp.eq.s32.totalorder %v17355_v50, %v17535_v54  ;;  %vm5791_vm10 = vcmp.eq.s32.totalorder %v17355_v50, %v17536_v53 }
 0x404   :  { %7057 = vmatprep.mubr.f32.mxu1 %v6560_v63  ;;  %v5444_v2 = vadd.f32 %v8897_v45, %v4324_v28  ;;  %v8892_v19 = vsel %vm4671_vm4, 1.0, %v17157_v40  ;;  %v9148_v37 = vsel %vm5791_vm10, 1.0, %v17157_v40  ;;  %vm451_vm9 = vcmp.eq.s32.totalorder %v17423_v31, %v17531_v5 }
 0x405   :  { %v3199_v24 = vadd.f32 %v8380_v11, %v2079_v23  ;;  %v7872_v44 = vsel %vm451_vm9, 1.0, %v17157_v40  ;;  %vm1315_vm11 = vcmp.eq.s32.totalorder %v17423_v31, %v17532_v8  ;;  %vm2435_vm12 = vcmp.eq.s32.totalorder %v17423_v31, %v17533_v49  ;;  %v17537_v8 = vld [vmem:[#allocation25_spill] sm:$0xff] }
 0x406   :  { %v6564_v38 = vadd.f32 %v9153_v4, %v5444_v2  ;;  %v8128_v22 = vsel %vm1315_vm11, 1.0, %v17157_v40  ;;  %v8384_v12 = vsel %vm2435_vm12, 1.0, %v17157_v40  ;;  %vm3555_vm13 = vcmp.eq.s32.totalorder %v17423_v31, %v17534_v9 }
 0x407   :  { %v4319_v58 = vadd.f32 %v8636_v32, %v3199_v24  ;;  %v2083_v57 = vadd.f32 %v8128_v22, %v7872_v44  ;;  %v8640_v5 = vsel %vm3555_vm13, 1.0, %v17157_v40  ;;  %vm4675_vm14 = vcmp.eq.s32.totalorder %v17423_v31, %v17535_v54  ;;  %v17541_v54 = vld [vmem:[#allocation108_spill] sm:$0xff] }
 0x408   :  { %7507 = vmatprep.mubr.f32.mxu0 %v6564_v38  ;;  %v8896_v41 = vsel %vm4675_vm14, 1.0, %v17157_v40  ;;  %vm5795_vm0 = vcmp.eq.s32.totalorder %v17423_v31, %v17536_v53  ;;  %vm456_vm1 = vcmp.eq.s32.totalorder %v13770_v3, %v17537_v8  ;;  %vm1320_vm15 = vcmp.eq.s32.totalorder %v13770_v3, %v17538_v42 }
 0x409   :  { %v5439_v46 = vadd.f32 %v8892_v19, %v4319_v58  ;;  %v3203_v49 = vadd.f32 %v8384_v12, %v2083_v57  ;;  %v9152_v9 = vsel %vm5795_vm0, 1.0, %v17157_v40  ;;  %v7877_v15 = vsel %vm456_vm1, 1.0, %v17157_v40 }
 0x40a   :  { %v8133_v10 = vsel %vm1320_vm15, 1.0, %v17157_v40  ;;  %vm2440_vm2 = vcmp.eq.s32.totalorder %v13770_v3, %v17539_v56  ;;  %vm3560_vm3 = vcmp.eq.s32.totalorder %v13770_v3, %v17540_v0  ;;  %vm4680_vm6 = vcmp.eq.s32.totalorder %v13770_v3, %v17541_v54 }
 0x40b   :  { %v6559_v53 = vadd.f32 %v9148_v37, %v5439_v46  ;;  %v4323_v16 = vadd.f32 %v8640_v5, %v3203_v49  ;;  %v2088_v20 = vadd.f32 %v8133_v10, %v7877_v15  ;;  %v8389_v39 = vsel %vm2440_vm2, 1.0, %v17157_v40  ;;  %v17543_v10 = vld [vmem:[#allocation24_spill] sm:$0xff] }
 0x40c   :  { %v8645_v14 = vsel %vm3560_vm3, 1.0, %v17157_v40  ;;  %v8901_v35 = vsel %vm4680_vm6, 1.0, %v17157_v40  ;;  %vm5800_vm7 = vcmp.eq.s32.totalorder %v13770_v3, %v17542_v62  ;;  %vm460_vm5 = vcmp.eq.s32.totalorder %v14037_v59, %v17537_v8 }
 0x40d   :  { %7058 = vmatmul.mubr.f32.gmra.mrb[30].mxu1 %v6559_v53  ;;  %v5443_v6 = vadd.f32 %v8896_v41, %v4323_v16  ;;  %v3208_v25 = vadd.f32 %v8389_v39, %v2088_v20  ;;  %v9157_v60 = vsel %vm5800_vm7, 1.0, %v17157_v40  ;;  %v7881_v27 = vsel %vm460_vm5, 1.0, %v17157_v40  ;;  %v17544_v16 = vld [vmem:[#allocation52_spill] sm:$0xff]  ;;  %v17545_v39 = vld [vmem:[#allocation87_spill] sm:$0xff] }
 0x40e   :  { %vm1324_vm8 = vcmp.eq.s32.totalorder %v14037_v59, %v17538_v42  ;;  %vm2444_vm4 = vcmp.eq.s32.totalorder %v14037_v59, %v17539_v56  ;;  %vm3564_vm10 = vcmp.eq.s32.totalorder %v14037_v59, %v17540_v0  ;;  %vm4684_vm9 = vcmp.eq.s32.totalorder %v14037_v59, %v17541_v54 }
 0x40f   :  { %v6563_v34 = vadd.f32 %v9152_v9, %v5443_v6  ;;  %v4328_v51 = vadd.f32 %v8645_v14, %v3208_v25  ;;  %v8137_v7 = vsel %vm1324_vm8, 1.0, %v17157_v40  ;;  %v8393_v45 = vsel %vm2444_vm4, 1.0, %v17157_v40  ;;  %v17546_v14 = vld [vmem:[#allocation109_spill] sm:$0xff] }
 0x410   :  { %v2092_v4 = vadd.f32 %v8137_v7, %v7881_v27  ;;  %v8649_v43 = vsel %vm3564_vm10, 1.0, %v17157_v40  ;;  %v8905_v63 = vsel %vm4684_vm9, 1.0, %v17157_v40  ;;  %vm5804_vm11 = vcmp.eq.s32.totalorder %v14037_v59, %v17542_v62  ;;  %v17548_v27 = vld [vmem:[#allocation65_spill] sm:$0xff] }
 0x411   :  { %7508 = vmatmul.mubr.f32.gmra.mrb[30].mxu0 %v6563_v34  ;;  %v5448_v28 = vadd.f32 %v8901_v35, %v4328_v51  ;;  %v9161_v1 = vsel %vm5804_vm11, 1.0, %v17157_v40  ;;  %vm455_vm12 = vcmp.eq.s32.totalorder %v17355_v50, %v17537_v8  ;;  %vm1319_vm13 = vcmp.eq.s32.totalorder %v17355_v50, %v17538_v42 }
 0x412   :  { %v3212_v11 = vadd.f32 %v8393_v45, %v2092_v4  ;;  %v7876_v23 = vsel %vm455_vm12, 1.0, %v17157_v40  ;;  %v8132_v32 = vsel %vm1319_vm13, 1.0, %v17157_v40  ;;  %vm2439_vm14 = vcmp.eq.s32.totalorder %v17355_v50, %v17539_v56 }
 0x413   :  { %v6568_v2 = vadd.f32 %v9157_v60, %v5448_v28  ;;  %v2087_v19 = vadd.f32 %v8132_v32, %v7876_v23  ;;  %v8388_v37 = vsel %vm2439_vm14, 1.0, %v17157_v40  ;;  %vm3559_vm0 = vcmp.eq.s32.totalorder %v17355_v50, %v17540_v0  ;;  %v17547_v60 = vld [vmem:[#allocation60_spill] sm:$0xff] }
 0x414   :  { %v4332_v24 = vadd.f32 %v8649_v43, %v3212_v11  ;;  %v8644_v44 = vsel %vm3559_vm0, 1.0, %v17157_v40  ;;  %vm4679_vm1 = vcmp.eq.s32.totalorder %v17355_v50, %v17541_v54  ;;  %vm5799_vm15 = vcmp.eq.s32.totalorder %v17355_v50, %v17542_v62 }
 0x415   :  { %7062 = vmatprep.mubr.f32.mxu1 %v6568_v2  ;;  %v3207_v38 = vadd.f32 %v8388_v37, %v2087_v19  ;;  %v8900_v22 = vsel %vm4679_vm1, 1.0, %v17157_v40  ;;  %v9156_v12 = vsel %vm5799_vm15, 1.0, %v17157_v40  ;;  %vm459_vm2 = vcmp.eq.s32.totalorder %v17423_v31, %v17537_v8 }
 0x416   :  { %v5452_v58 = vadd.f32 %v8905_v63, %v4332_v24  ;;  %v7880_v57 = vsel %vm459_vm2, 1.0, %v17157_v40  ;;  %vm1323_vm3 = vcmp.eq.s32.totalorder %v17423_v31, %v17538_v42  ;;  %vm2443_vm6 = vcmp.eq.s32.totalorder %v17423_v31, %v17539_v56 }
 0x417   :  { %v4327_v5 = vadd.f32 %v8644_v44, %v3207_v38  ;;  %v8136_v41 = vsel %vm1323_vm3, 1.0, %v17157_v40  ;;  %v8392_v46 = vsel %vm2443_vm6, 1.0, %v17157_v40  ;;  %vm3563_vm7 = vcmp.eq.s32.totalorder %v17423_v31, %v17540_v0 }
 0x418   :  { %v6572_v49 = vadd.f32 %v9161_v1, %v5452_v58  ;;  %v2091_v9 = vadd.f32 %v8136_v41, %v7880_v57  ;;  %v8648_v8 = vsel %vm3563_vm7, 1.0, %v17157_v40  ;;  %vm4683_vm5 = vcmp.eq.s32.totalorder %v17423_v31, %v17541_v54 }
 0x419   :  { %v5447_v15 = vadd.f32 %v8900_v22, %v4327_v5  ;;  %v8904_v42 = vsel %vm4683_vm5, 1.0, %v17157_v40  ;;  %vm5803_vm8 = vcmp.eq.s32.totalorder %v17423_v31, %v17542_v62  ;;  %vm464_vm4 = vcmp.eq.s32.totalorder %v13770_v3, %v17543_v10 }
 0x41a   :  { %7512 = vmatprep.mubr.f32.mxu0 %v6572_v49  ;;  %v3211_v56 = vadd.f32 %v8392_v46, %v2091_v9  ;;  %v9160_v0 = vsel %vm5803_vm8, 1.0, %v17157_v40  ;;  %v7885_v53 = vsel %vm464_vm4, 1.0, %v17157_v40  ;;  %vm1328_vm10 = vcmp.eq.s32.totalorder %v13770_v3, %v17544_v16 }
 0x41b   :  { %v6567_v20 = vadd.f32 %v9156_v12, %v5447_v15  ;;  %v8141_v54 = vsel %vm1328_vm10, 1.0, %v17157_v40  ;;  %vm2448_vm9 = vcmp.eq.s32.totalorder %v13770_v3, %v17545_v39  ;;  %vm3568_vm11 = vcmp.eq.s32.totalorder %v13770_v3, %v17546_v14 }
 0x41c   :  { %v4331_v35 = vadd.f32 %v8648_v8, %v3211_v56  ;;  %v2096_v62 = vadd.f32 %v8141_v54, %v7885_v53  ;;  %v8397_v6 = vsel %vm2448_vm9, 1.0, %v17157_v40  ;;  %v8653_v25 = vsel %vm3568_vm11, 1.0, %v17157_v40 }
 0x41d   :  { %7063 = vmatmul.mubr.f32.gmra.mrb[32].mxu1 %v6567_v20  ;;  %vm4688_vm12 = vcmp.eq.s32.totalorder %v13770_v3, %v17547_v60  ;;  %vm5808_vm13 = vcmp.eq.s32.totalorder %v13770_v3, %v17548_v27  ;;  %vm468_vm14 = vcmp.eq.s32.totalorder %v14037_v59, %v17543_v10  ;;  %vm1332_vm0 = vcmp.eq.s32.totalorder %v14037_v59, %v17544_v16  ;;  %v17550_v20 = vld [vmem:[#allocation91_spill] sm:$0xff] }
 0x41e   :  { %v5451_v34 = vadd.f32 %v8904_v42, %v4331_v35  ;;  %v3216_v51 = vadd.f32 %v8397_v6, %v2096_v62  ;;  %v8909_v7 = vsel %vm4688_vm12, 1.0, %v17157_v40  ;;  %v9165_v45 = vsel %vm5808_vm13, 1.0, %v17157_v40  ;;  %v17551_v6 = vld [vmem:[#allocation110_spill] sm:$0xff] }
 0x41f   :  { %v7889_v4 = vsel %vm468_vm14, 1.0, %v17157_v40  ;;  %v8145_v43 = vsel %vm1332_vm0, 1.0, %v17157_v40  ;;  %vm2452_vm1 = vcmp.eq.s32.totalorder %v14037_v59, %v17545_v39  ;;  %vm3572_vm15 = vcmp.eq.s32.totalorder %v14037_v59, %v17546_v14 }
 0x420   :  { %v6571_v63 = vadd.f32 %v9160_v0, %v5451_v34  ;;  %v4336_v28 = vadd.f32 %v8653_v25, %v3216_v51  ;;  %v2100_v1 = vadd.f32 %v8145_v43, %v7889_v4  ;;  %v8401_v11 = vsel %vm2452_vm1, 1.0, %v17157_v40  ;;  %v17552_v25 = vld [vmem:[#allocation137_spill] sm:$0xff]  ;;  %v17554_v43 = vld [vmem:[#allocation115_spill] sm:$0xff] }
 0x421   :  { %v8657_v23 = vsel %vm3572_vm15, 1.0, %v17157_v40  ;;  %vm4692_vm2 = vcmp.eq.s32.totalorder %v14037_v59, %v17547_v60  ;;  %vm5812_vm3 = vcmp.eq.s32.totalorder %v14037_v59, %v17548_v27  ;;  %vm463_vm6 = vcmp.eq.s32.totalorder %v17355_v50, %v17543_v10 }
 0x422   :  { %7513 = vmatmul.mubr.f32.gmra.mrb[32].mxu0 %v6571_v63  ;;  %v5456_v32 = vadd.f32 %v8909_v7, %v4336_v28  ;;  %v3220_v2 = vadd.f32 %v8401_v11, %v2100_v1  ;;  %v8913_v19 = vsel %vm4692_vm2, 1.0, %v17157_v40  ;;  %v9169_v37 = vsel %vm5812_vm3, 1.0, %v17157_v40 }
 0x423   :  { %v7884_v24 = vsel %vm463_vm6, 1.0, %v17157_v40  ;;  %vm1327_vm7 = vcmp.eq.s32.totalorder %v17355_v50, %v17544_v16  ;;  %vm2447_vm5 = vcmp.eq.s32.totalorder %v17355_v50, %v17545_v39  ;;  %vm3567_vm8 = vcmp.eq.s32.totalorder %v17355_v50, %v17546_v14 }
 0x424   :  { %v6576_v44 = vadd.f32 %v9165_v45, %v5456_v32  ;;  %v4340_v38 = vadd.f32 %v8657_v23, %v3220_v2  ;;  %v8140_v22 = vsel %vm1327_vm7, 1.0, %v17157_v40  ;;  %v8396_v12 = vsel %vm2447_vm5, 1.0, %v17157_v40 }
 0x425   :  { %v2095_v58 = vadd.f32 %v8140_v22, %v7884_v24  ;;  %v8652_v57 = vsel %vm3567_vm8, 1.0, %v17157_v40  ;;  %vm4687_vm4 = vcmp.eq.s32.totalorder %v17355_v50, %v17547_v60  ;;  %vm5807_vm10 = vcmp.eq.s32.totalorder %v17355_v50, %v17548_v27 }
 0x426   :  { %7067 = vmatprep.mubr.f32.mxu1 %v6576_v44  ;;  %v5460_v5 = vadd.f32 %v8913_v19, %v4340_v38  ;;  %v8908_v41 = vsel %vm4687_vm4, 1.0, %v17157_v40  ;;  %v9164_v46 = vsel %vm5807_vm10, 1.0, %v17157_v40  ;;  %vm467_vm9 = vcmp.eq.s32.totalorder %v17423_v31, %v17543_v10 }
 0x427   :  { %v3215_v49 = vadd.f32 %v8396_v12, %v2095_v58  ;;  %v7888_v9 = vsel %vm467_vm9, 1.0, %v17157_v40  ;;  %vm1331_vm11 = vcmp.eq.s32.totalorder %v17423_v31, %v17544_v16  ;;  %vm2451_vm12 = vcmp.eq.s32.totalorder %v17423_v31, %v17545_v39  ;;  %v17549_v16 = vld [vmem:[#allocation27_spill] sm:$0xff] }
 0x428   :  { %v6580_v8 = vadd.f32 %v9169_v37, %v5460_v5  ;;  %v8144_v15 = vsel %vm1331_vm11, 1.0, %v17157_v40  ;;  %v8400_v42 = vsel %vm2451_vm12, 1.0, %v17157_v40  ;;  %vm3571_vm13 = vcmp.eq.s32.totalorder %v17423_v31, %v17546_v14 }
 0x429   :  { %v4335_v56 = vadd.f32 %v8652_v57, %v3215_v49  ;;  %v2099_v0 = vadd.f32 %v8144_v15, %v7888_v9  ;;  %v8656_v10 = vsel %vm3571_vm13, 1.0, %v17157_v40  ;;  %vm4691_vm14 = vcmp.eq.s32.totalorder %v17423_v31, %v17547_v60  ;;  %v17553_v60 = vld [vmem:[#allocation159_spill] sm:$0xff] }
 0x42a   :  { %7517 = vmatprep.mubr.f32.mxu0 %v6580_v8  ;;  %v8912_v53 = vsel %vm4691_vm14, 1.0, %v17157_v40  ;;  %vm5811_vm0 = vcmp.eq.s32.totalorder %v17423_v31, %v17548_v27  ;;  %vm472_vm1 = vcmp.eq.s32.totalorder %v13770_v3, %v17549_v16  ;;  %vm1336_vm15 = vcmp.eq.s32.totalorder %v13770_v3, %v17550_v20 }
 0x42b   :  { %v5455_v54 = vadd.f32 %v8908_v41, %v4335_v56  ;;  %v3219_v39 = vadd.f32 %v8400_v42, %v2099_v0  ;;  %v9168_v14 = vsel %vm5811_vm0, 1.0, %v17157_v40  ;;  %v7893_v35 = vsel %vm472_vm1, 1.0, %v17157_v40 }
 0x42c   :  { %v8149_v62 = vsel %vm1336_vm15, 1.0, %v17157_v40  ;;  %vm2456_vm2 = vcmp.eq.s32.totalorder %v13770_v3, %v17551_v6  ;;  %vm3576_vm3 = vcmp.eq.s32.totalorder %v13770_v3, %v17552_v25  ;;  %vm4696_vm6 = vcmp.eq.s32.totalorder %v13770_v3, %v17553_v60 }
 0x42d   :  { %v6575_v27 = vadd.f32 %v9164_v46, %v5455_v54  ;;  %v4339_v34 = vadd.f32 %v8656_v10, %v3219_v39  ;;  %v2104_v51 = vadd.f32 %v8149_v62, %v7893_v35  ;;  %v8405_v7 = vsel %vm2456_vm2, 1.0, %v17157_v40  ;;  %v17555_v62 = vld [vmem:[#allocation26_spill] sm:$0xff] }
 0x42e   :  { %v8661_v45 = vsel %vm3576_vm3, 1.0, %v17157_v40  ;;  %v8917_v4 = vsel %vm4696_vm6, 1.0, %v17157_v40  ;;  %vm5816_vm7 = vcmp.eq.s32.totalorder %v13770_v3, %v17554_v43  ;;  %vm476_vm5 = vcmp.eq.s32.totalorder %v14037_v59, %v17549_v16 }
 0x42f   :  { %7068 = vmatmul.mubr.f32.gmra.mrb[34].mxu1 %v6575_v27  ;;  %v5459_v63 = vadd.f32 %v8912_v53, %v4339_v34  ;;  %v3224_v28 = vadd.f32 %v8405_v7, %v2104_v51  ;;  %v9173_v1 = vsel %vm5816_vm7, 1.0, %v17157_v40  ;;  %v7897_v11 = vsel %vm476_vm5, 1.0, %v17157_v40  ;;  %v17556_v34 = vld [vmem:[#allocation154_spill] sm:$0xff]  ;;  %v17557_v7 = vld [vmem:[#allocation160_spill] sm:$0xff] }
 0x430   :  { %vm1340_vm8 = vcmp.eq.s32.totalorder %v14037_v59, %v17550_v20  ;;  %vm2460_vm4 = vcmp.eq.s32.totalorder %v14037_v59, %v17551_v6  ;;  %vm3580_vm10 = vcmp.eq.s32.totalorder %v14037_v59, %v17552_v25  ;;  %vm4700_vm9 = vcmp.eq.s32.totalorder %v14037_v59, %v17553_v60 }
 0x431   :  { %v6579_v23 = vadd.f32 %v9168_v14, %v5459_v63  ;;  %v4344_v32 = vadd.f32 %v8661_v45, %v3224_v28  ;;  %v8153_v2 = vsel %vm1340_vm8, 1.0, %v17157_v40  ;;  %v8409_v19 = vsel %vm2460_vm4, 1.0, %v17157_v40  ;;  %v17558_v45 = vld [vmem:[#allocation114_spill] sm:$0xff] }
 0x432   :  { %v2108_v37 = vadd.f32 %v8153_v2, %v7897_v11  ;;  %v8665_v24 = vsel %vm3580_vm10, 1.0, %v17157_v40  ;;  %v8921_v44 = vsel %vm4700_vm9, 1.0, %v17157_v40  ;;  %vm5820_vm11 = vcmp.eq.s32.totalorder %v14037_v59, %v17554_v43  ;;  %v17560_v11 = vld [vmem:[#allocation128_spill] sm:$0xff] }
 0x433   :  { %7518 = vmatmul.mubr.f32.gmra.mrb[34].mxu0 %v6579_v23  ;;  %v5464_v38 = vadd.f32 %v8917_v4, %v4344_v32  ;;  %v9177_v22 = vsel %vm5820_vm11, 1.0, %v17157_v40  ;;  %vm471_vm12 = vcmp.eq.s32.totalorder %v17355_v50, %v17549_v16  ;;  %vm1335_vm13 = vcmp.eq.s32.totalorder %v17355_v50, %v17550_v20 }
 0x434   :  { %v3228_v12 = vadd.f32 %v8409_v19, %v2108_v37  ;;  %v7892_v58 = vsel %vm471_vm12, 1.0, %v17157_v40  ;;  %v8148_v57 = vsel %vm1335_vm13, 1.0, %v17157_v40  ;;  %vm2455_vm14 = vcmp.eq.s32.totalorder %v17355_v50, %v17551_v6 }
 0x435   :  { %v6584_v5 = vadd.f32 %v9173_v1, %v5464_v38  ;;  %v2103_v41 = vadd.f32 %v8148_v57, %v7892_v58  ;;  %v8404_v46 = vsel %vm2455_vm14, 1.0, %v17157_v40  ;;  %vm3575_vm0 = vcmp.eq.s32.totalorder %v17355_v50, %v17552_v25  ;;  %v17559_v1 = vld [vmem:[#allocation67_spill] sm:$0xff] }
 0x436   :  { %v4348_v49 = vadd.f32 %v8665_v24, %v3228_v12  ;;  %v8660_v9 = vsel %vm3575_vm0, 1.0, %v17157_v40  ;;  %vm4695_vm1 = vcmp.eq.s32.totalorder %v17355_v50, %v17553_v60  ;;  %vm5815_vm15 = vcmp.eq.s32.totalorder %v17355_v50, %v17554_v43 }
 0x437   :  { %7072 = vmatprep.mubr.f32.mxu1 %v6584_v5  ;;  %v3223_v8 = vadd.f32 %v8404_v46, %v2103_v41  ;;  %v8916_v15 = vsel %vm4695_vm1, 1.0, %v17157_v40  ;;  %v9172_v42 = vsel %vm5815_vm15, 1.0, %v17157_v40  ;;  %vm475_vm2 = vcmp.eq.s32.totalorder %v17423_v31, %v17549_v16 }
 0x438   :  { %v5468_v56 = vadd.f32 %v8921_v44, %v4348_v49  ;;  %v7896_v0 = vsel %vm475_vm2, 1.0, %v17157_v40  ;;  %vm1339_vm3 = vcmp.eq.s32.totalorder %v17423_v31, %v17550_v20  ;;  %vm2459_vm6 = vcmp.eq.s32.totalorder %v17423_v31, %v17551_v6 }
 0x439   :  { %v4343_v10 = vadd.f32 %v8660_v9, %v3223_v8  ;;  %v8152_v53 = vsel %vm1339_vm3, 1.0, %v17157_v40  ;;  %v8408_v54 = vsel %vm2459_vm6, 1.0, %v17157_v40  ;;  %vm3579_vm7 = vcmp.eq.s32.totalorder %v17423_v31, %v17552_v25 }
 0x43a   :  { %v6588_v39 = vadd.f32 %v9177_v22, %v5468_v56  ;;  %v2107_v14 = vadd.f32 %v8152_v53, %v7896_v0  ;;  %v8664_v16 = vsel %vm3579_vm7, 1.0, %v17157_v40  ;;  %vm4699_vm5 = vcmp.eq.s32.totalorder %v17423_v31, %v17553_v60 }
 0x43b   :  { %v5463_v35 = vadd.f32 %v8916_v15, %v4343_v10  ;;  %v8920_v20 = vsel %vm4699_vm5, 1.0, %v17157_v40  ;;  %vm5819_vm8 = vcmp.eq.s32.totalorder %v17423_v31, %v17554_v43  ;;  %vm480_vm4 = vcmp.eq.s32.totalorder %v13770_v3, %v17555_v62 }
 0x43c   :  { %7522 = vmatprep.mubr.f32.mxu0 %v6588_v39  ;;  %v3227_v6 = vadd.f32 %v8408_v54, %v2107_v14  ;;  %v9176_v25 = vsel %vm5819_vm8, 1.0, %v17157_v40  ;;  %v7901_v27 = vsel %vm480_vm4, 1.0, %v17157_v40  ;;  %vm1344_vm10 = vcmp.eq.s32.totalorder %v13770_v3, %v17556_v34 }
 0x43d   :  { %v6583_v51 = vadd.f32 %v9172_v42, %v5463_v35  ;;  %v8157_v60 = vsel %vm1344_vm10, 1.0, %v17157_v40  ;;  %vm2464_vm9 = vcmp.eq.s32.totalorder %v13770_v3, %v17557_v7  ;;  %vm3584_vm11 = vcmp.eq.s32.totalorder %v13770_v3, %v17558_v45 }
 0x43e   :  { %v4347_v4 = vadd.f32 %v8664_v16, %v3227_v6  ;;  %v2112_v43 = vadd.f32 %v8157_v60, %v7901_v27  ;;  %v8413_v63 = vsel %vm2464_vm9, 1.0, %v17157_v40  ;;  %v8669_v28 = vsel %vm3584_vm11, 1.0, %v17157_v40 }
 0x43f   :  { %7073 = vmatmul.mubr.f32.gmra.mrb[36].mxu1 %v6583_v51  ;;  %vm4704_vm12 = vcmp.eq.s32.totalorder %v13770_v3, %v17559_v1  ;;  %vm5824_vm13 = vcmp.eq.s32.totalorder %v13770_v3, %v17560_v11  ;;  %vm484_vm14 = vcmp.eq.s32.totalorder %v14037_v59, %v17555_v62  ;;  %vm1348_vm0 = vcmp.eq.s32.totalorder %v14037_v59, %v17556_v34  ;;  %v17562_v51 = vld [vmem:[#allocation97_spill] sm:$0xff] }
 0x440   :  { %v5467_v23 = vadd.f32 %v8920_v20, %v4347_v4  ;;  %v3232_v32 = vadd.f32 %v8413_v63, %v2112_v43  ;;  %v8925_v2 = vsel %vm4704_vm12, 1.0, %v17157_v40  ;;  %v9181_v19 = vsel %vm5824_vm13, 1.0, %v17157_v40  ;;  %v17563_v63 = vld [vmem:[#allocation89_spill] sm:$0xff] }
 0x441   :  { %v7905_v37 = vsel %vm484_vm14, 1.0, %v17157_v40  ;;  %v8161_v24 = vsel %vm1348_vm0, 1.0, %v17157_v40  ;;  %vm2468_vm1 = vcmp.eq.s32.totalorder %v14037_v59, %v17557_v7  ;;  %vm3588_vm15 = vcmp.eq.s32.totalorder %v14037_v59, %v17558_v45 }
 0x442   :  { %v6587_v44 = vadd.f32 %v9176_v25, %v5467_v23  ;;  %v4352_v38 = vadd.f32 %v8669_v28, %v3232_v32  ;;  %v2116_v22 = vadd.f32 %v8161_v24, %v7905_v37  ;;  %v8417_v12 = vsel %vm2468_vm1, 1.0, %v17157_v40  ;;  %v17564_v28 = vld [vmem:[#allocation118_spill] sm:$0xff]  ;;  %v17566_v24 = vld [vmem:[#allocation69_spill] sm:$0xff] }
 0x443   :  { %v8673_v58 = vsel %vm3588_vm15, 1.0, %v17157_v40  ;;  %vm4708_vm2 = vcmp.eq.s32.totalorder %v14037_v59, %v17559_v1  ;;  %vm5828_vm3 = vcmp.eq.s32.totalorder %v14037_v59, %v17560_v11  ;;  %vm479_vm6 = vcmp.eq.s32.totalorder %v17355_v50, %v17555_v62 }
 0x444   :  { %7523 = vmatmul.mubr.f32.gmra.mrb[36].mxu0 %v6587_v44  ;;  %v5472_v57 = vadd.f32 %v8925_v2, %v4352_v38  ;;  %v3236_v5 = vadd.f32 %v8417_v12, %v2116_v22  ;;  %v8929_v41 = vsel %vm4708_vm2, 1.0, %v17157_v40  ;;  %v9185_v46 = vsel %vm5828_vm3, 1.0, %v17157_v40 }
 0x445   :  { %v7900_v49 = vsel %vm479_vm6, 1.0, %v17157_v40  ;;  %vm1343_vm7 = vcmp.eq.s32.totalorder %v17355_v50, %v17556_v34  ;;  %vm2463_vm5 = vcmp.eq.s32.totalorder %v17355_v50, %v17557_v7  ;;  %vm3583_vm8 = vcmp.eq.s32.totalorder %v17355_v50, %v17558_v45 }
 0x446   :  { %v6592_v9 = vadd.f32 %v9181_v19, %v5472_v57  ;;  %v4356_v8 = vadd.f32 %v8673_v58, %v3236_v5  ;;  %v8156_v15 = vsel %vm1343_vm7, 1.0, %v17157_v40  ;;  %v8412_v42 = vsel %vm2463_vm5, 1.0, %v17157_v40 }
 0x447   :  { %v2111_v56 = vadd.f32 %v8156_v15, %v7900_v49  ;;  %v8668_v0 = vsel %vm3583_vm8, 1.0, %v17157_v40  ;;  %vm4703_vm4 = vcmp.eq.s32.totalorder %v17355_v50, %v17559_v1  ;;  %vm5823_vm10 = vcmp.eq.s32.totalorder %v17355_v50, %v17560_v11 }
 0x448   :  { %7077 = vmatprep.mubr.f32.mxu1 %v6592_v9  ;;  %v5476_v10 = vadd.f32 %v8929_v41, %v4356_v8  ;;  %v8924_v53 = vsel %vm4703_vm4, 1.0, %v17157_v40  ;;  %v9180_v54 = vsel %vm5823_vm10, 1.0, %v17157_v40  ;;  %vm483_vm9 = vcmp.eq.s32.totalorder %v17423_v31, %v17555_v62 }
 0x449   :  { %v3231_v39 = vadd.f32 %v8412_v42, %v2111_v56  ;;  %v7904_v14 = vsel %vm483_vm9, 1.0, %v17157_v40  ;;  %vm1347_vm11 = vcmp.eq.s32.totalorder %v17423_v31, %v17556_v34  ;;  %vm2467_vm12 = vcmp.eq.s32.totalorder %v17423_v31, %v17557_v7  ;;  %v17561_v34 = vld [vmem:[#allocation29_spill] sm:$0xff] }
 0x44a   :  { %v6596_v16 = vadd.f32 %v9185_v46, %v5476_v10  ;;  %v8160_v35 = vsel %vm1347_vm11, 1.0, %v17157_v40  ;;  %v8416_v20 = vsel %vm2467_vm12, 1.0, %v17157_v40  ;;  %vm3587_vm13 = vcmp.eq.s32.totalorder %v17423_v31, %v17558_v45 }
 0x44b   :  { %v4351_v6 = vadd.f32 %v8668_v0, %v3231_v39  ;;  %v2115_v25 = vadd.f32 %v8160_v35, %v7904_v14  ;;  %v8672_v62 = vsel %vm3587_vm13, 1.0, %v17157_v40  ;;  %vm4707_vm14 = vcmp.eq.s32.totalorder %v17423_v31, %v17559_v1  ;;  %v17565_v1 = vld [vmem:[#allocation68_spill] sm:$0xff] }
 0x44c   :  { %7527 = vmatprep.mubr.f32.mxu0 %v6596_v16  ;;  %v8928_v27 = vsel %vm4707_vm14, 1.0, %v17157_v40  ;;  %vm5827_vm0 = vcmp.eq.s32.totalorder %v17423_v31, %v17560_v11  ;;  %vm488_vm1 = vcmp.eq.s32.totalorder %v13770_v3, %v17561_v34  ;;  %vm1352_vm15 = vcmp.eq.s32.totalorder %v13770_v3, %v17562_v51 }
 0x44d   :  { %v5471_v60 = vadd.f32 %v8924_v53, %v4351_v6  ;;  %v3235_v7 = vadd.f32 %v8416_v20, %v2115_v25  ;;  %v9184_v45 = vsel %vm5827_vm0, 1.0, %v17157_v40  ;;  %v7909_v4 = vsel %vm488_vm1, 1.0, %v17157_v40 }
 0x44e   :  { %v8165_v43 = vsel %vm1352_vm15, 1.0, %v17157_v40  ;;  %vm2472_vm2 = vcmp.eq.s32.totalorder %v13770_v3, %v17563_v63  ;;  %vm3592_vm3 = vcmp.eq.s32.totalorder %v13770_v3, %v17564_v28  ;;  %vm4712_vm6 = vcmp.eq.s32.totalorder %v13770_v3, %v17565_v1 }
 0x44f   :  { %v6591_v11 = vadd.f32 %v9180_v54, %v5471_v60  ;;  %v4355_v23 = vadd.f32 %v8672_v62, %v3235_v7  ;;  %v2120_v32 = vadd.f32 %v8165_v43, %v7909_v4  ;;  %v8421_v2 = vsel %vm2472_vm2, 1.0, %v17157_v40  ;;  %v17567_v43 = vld [vmem:[#allocation28_spill] sm:$0xff] }
 0x450   :  { %v8677_v19 = vsel %vm3592_vm3, 1.0, %v17157_v40  ;;  %v8933_v37 = vsel %vm4712_vm6, 1.0, %v17157_v40  ;;  %vm5832_vm7 = vcmp.eq.s32.totalorder %v13770_v3, %v17566_v24  ;;  %vm492_vm5 = vcmp.eq.s32.totalorder %v14037_v59, %v17561_v34 }
 0x451   :  { %7078 = vmatmul.mubr.f32.gmra.mrb[38].mxu1 %v6591_v11  ;;  %v5475_v44 = vadd.f32 %v8928_v27, %v4355_v23  ;;  %v3240_v38 = vadd.f32 %v8421_v2, %v2120_v32  ;;  %v9189_v22 = vsel %vm5832_vm7, 1.0, %v17157_v40  ;;  %v7913_v12 = vsel %vm492_vm5, 1.0, %v17157_v40  ;;  %v17568_v23 = vld [vmem:[#allocation157_spill] sm:$0xff]  ;;  %v17569_v2 = vld [vmem:[#allocation119_spill] sm:$0xff] }
 0x452   :  { %vm1356_vm8 = vcmp.eq.s32.totalorder %v14037_v59, %v17562_v51  ;;  %vm2476_vm4 = vcmp.eq.s32.totalorder %v14037_v59, %v17563_v63  ;;  %vm3596_vm10 = vcmp.eq.s32.totalorder %v14037_v59, %v17564_v28  ;;  %vm4716_vm9 = vcmp.eq.s32.totalorder %v14037_v59, %v17565_v1 }
 0x453   :  { %v6595_v58 = vadd.f32 %v9184_v45, %v5475_v44  ;;  %v4360_v57 = vadd.f32 %v8677_v19, %v3240_v38  ;;  %v8169_v5 = vsel %vm1356_vm8, 1.0, %v17157_v40  ;;  %v8425_v41 = vsel %vm2476_vm4, 1.0, %v17157_v40  ;;  %v17570_v19 = vld [vmem:[#allocation138_spill] sm:$0xff] }
 0x454   :  { %v2124_v46 = vadd.f32 %v8169_v5, %v7913_v12  ;;  %v8681_v49 = vsel %vm3596_vm10, 1.0, %v17157_v40  ;;  %v8937_v9 = vsel %vm4716_vm9, 1.0, %v17157_v40  ;;  %vm5836_vm11 = vcmp.eq.s32.totalorder %v14037_v59, %v17566_v24  ;;  %v17572_v12 = vld [vmem:[#allocation123_spill] sm:$0xff] }
 0x455   :  { %7528 = vmatmul.mubr.f32.gmra.mrb[38].mxu0 %v6595_v58  ;;  %v5480_v8 = vadd.f32 %v8933_v37, %v4360_v57  ;;  %v9193_v15 = vsel %vm5836_vm11, 1.0, %v17157_v40  ;;  %vm487_vm12 = vcmp.eq.s32.totalorder %v17355_v50, %v17561_v34  ;;  %vm1351_vm13 = vcmp.eq.s32.totalorder %v17355_v50, %v17562_v51 }
 0x456   :  { %v3244_v42 = vadd.f32 %v8425_v41, %v2124_v46  ;;  %v7908_v56 = vsel %vm487_vm12, 1.0, %v17157_v40  ;;  %v8164_v0 = vsel %vm1351_vm13, 1.0, %v17157_v40  ;;  %vm2471_vm14 = vcmp.eq.s32.totalorder %v17355_v50, %v17563_v63 }
 0x457   :  { %v6600_v10 = vadd.f32 %v9189_v22, %v5480_v8  ;;  %v2119_v53 = vadd.f32 %v8164_v0, %v7908_v56  ;;  %v8420_v54 = vsel %vm2471_vm14, 1.0, %v17157_v40  ;;  %vm3591_vm0 = vcmp.eq.s32.totalorder %v17355_v50, %v17564_v28  ;;  %v17571_v22 = vld [vmem:[#allocation121_spill] sm:$0xff] }
 0x458   :  { %v4364_v39 = vadd.f32 %v8681_v49, %v3244_v42  ;;  %v8676_v14 = vsel %vm3591_vm0, 1.0, %v17157_v40  ;;  %vm4711_vm1 = vcmp.eq.s32.totalorder %v17355_v50, %v17565_v1  ;;  %vm5831_vm15 = vcmp.eq.s32.totalorder %v17355_v50, %v17566_v24 }
 0x459   :  { %7082 = vmatprep.mubr.f32.mxu1 %v6600_v10  ;;  %v3239_v16 = vadd.f32 %v8420_v54, %v2119_v53  ;;  %v8932_v35 = vsel %vm4711_vm1, 1.0, %v17157_v40  ;;  %v9188_v20 = vsel %vm5831_vm15, 1.0, %v17157_v40  ;;  %vm491_vm2 = vcmp.eq.s32.totalorder %v17423_v31, %v17561_v34 }
 0x45a   :  { %v5484_v6 = vadd.f32 %v8937_v9, %v4364_v39  ;;  %v7912_v25 = vsel %vm491_vm2, 1.0, %v17157_v40  ;;  %vm1355_vm3 = vcmp.eq.s32.totalorder %v17423_v31, %v17562_v51  ;;  %vm2475_vm6 = vcmp.eq.s32.totalorder %v17423_v31, %v17563_v63 }
 0x45b   :  { %v4359_v62 = vadd.f32 %v8676_v14, %v3239_v16  ;;  %v8168_v27 = vsel %vm1355_vm3, 1.0, %v17157_v40  ;;  %v8424_v60 = vsel %vm2475_vm6, 1.0, %v17157_v40  ;;  %vm3595_vm7 = vcmp.eq.s32.totalorder %v17423_v31, %v17564_v28 }
 0x45c   :  { %v6604_v7 = vadd.f32 %v9193_v15, %v5484_v6  ;;  %v2123_v45 = vadd.f32 %v8168_v27, %v7912_v25  ;;  %v8680_v34 = vsel %vm3595_vm7, 1.0, %v17157_v40  ;;  %vm4715_vm5 = vcmp.eq.s32.totalorder %v17423_v31, %v17565_v1 }
 0x45d   :  { %v5479_v4 = vadd.f32 %v8932_v35, %v4359_v62  ;;  %v8936_v51 = vsel %vm4715_vm5, 1.0, %v17157_v40  ;;  %vm5835_vm8 = vcmp.eq.s32.totalorder %v17423_v31, %v17566_v24  ;;  %vm496_vm4 = vcmp.eq.s32.totalorder %v13770_v3, %v17567_v43 }
 0x45e   :  { %7532 = vmatprep.mubr.f32.mxu0 %v6604_v7  ;;  %v3243_v63 = vadd.f32 %v8424_v60, %v2123_v45  ;;  %v9192_v28 = vsel %vm5835_vm8, 1.0, %v17157_v40  ;;  %v7917_v11 = vsel %vm496_vm4, 1.0, %v17157_v40  ;;  %vm1360_vm10 = vcmp.eq.s32.totalorder %v13770_v3, %v17568_v23 }
 0x45f   :  { %v6599_v32 = vadd.f32 %v9188_v20, %v5479_v4  ;;  %v8173_v1 = vsel %vm1360_vm10, 1.0, %v17157_v40  ;;  %vm2480_vm9 = vcmp.eq.s32.totalorder %v13770_v3, %v17569_v2  ;;  %vm3600_vm11 = vcmp.eq.s32.totalorder %v13770_v3, %v17570_v19 }
 0x460   :  { %v4363_v37 = vadd.f32 %v8680_v34, %v3243_v63  ;;  %v2128_v24 = vadd.f32 %v8173_v1, %v7917_v11  ;;  %v8429_v44 = vsel %vm2480_vm9, 1.0, %v17157_v40  ;;  %v8685_v38 = vsel %vm3600_vm11, 1.0, %v17157_v40 }
 0x461   :  { %7083 = vmatmul.mubr.f32.gmra.mrb[40].mxu1 %v6599_v32  ;;  %vm4720_vm12 = vcmp.eq.s32.totalorder %v13770_v3, %v17571_v22  ;;  %vm5840_vm13 = vcmp.eq.s32.totalorder %v13770_v3, %v17572_v12  ;;  %vm500_vm14 = vcmp.eq.s32.totalorder %v14037_v59, %v17567_v43  ;;  %vm1364_vm0 = vcmp.eq.s32.totalorder %v14037_v59, %v17568_v23  ;;  %v17574_v32 = vld [vmem:[#allocation103_spill] sm:$0xff] }
 0x462   :  { %v5483_v58 = vadd.f32 %v8936_v51, %v4363_v37  ;;  %v3248_v57 = vadd.f32 %v8429_v44, %v2128_v24  ;;  %v8941_v5 = vsel %vm4720_vm12, 1.0, %v17157_v40  ;;  %v9197_v41 = vsel %vm5840_vm13, 1.0, %v17157_v40  ;;  %v17575_v44 = vld [vmem:[#allocation71_spill] sm:$0xff] }
 0x463   :  { %v7921_v46 = vsel %vm500_vm14, 1.0, %v17157_v40  ;;  %v8177_v49 = vsel %vm1364_vm0, 1.0, %v17157_v40  ;;  %vm2484_vm1 = vcmp.eq.s32.totalorder %v14037_v59, %v17569_v2  ;;  %vm3604_vm15 = vcmp.eq.s32.totalorder %v14037_v59, %v17570_v19 }
 0x464   :  { %v6603_v9 = vadd.f32 %v9192_v28, %v5483_v58  ;;  %v4368_v8 = vadd.f32 %v8685_v38, %v3248_v57  ;;  %v2132_v15 = vadd.f32 %v8177_v49, %v7921_v46  ;;  %v8433_v42 = vsel %vm2484_vm1, 1.0, %v17157_v40  ;;  %v17576_v38 = vld [vmem:[#allocation120_spill] sm:$0xff] }
 0x465   :  { %v8689_v56 = vsel %vm3604_vm15, 1.0, %v17157_v40  ;;  %vm4724_vm2 = vcmp.eq.s32.totalorder %v14037_v59, %v17571_v22  ;;  %vm5844_vm3 = vcmp.eq.s32.totalorder %v14037_v59, %v17572_v12  ;;  %vm495_vm6 = vcmp.eq.s32.totalorder %v17355_v50, %v17567_v43  ;;  %v17578_v49 = vld [vmem:[#allocation76_spill] sm:$0xff] }
 0x466   :  { %7533 = vmatmul.mubr.f32.gmra.mrb[40].mxu0 %v6603_v9  ;;  %v5488_v0 = vadd.f32 %v8941_v5, %v4368_v8  ;;  %v3252_v10 = vadd.f32 %v8433_v42, %v2132_v15  ;;  %v8945_v53 = vsel %vm4724_vm2, 1.0, %v17157_v40  ;;  %v9201_v54 = vsel %vm5844_vm3, 1.0, %v17157_v40 }
 0x467   :  { %v7916_v39 = vsel %vm495_vm6, 1.0, %v17157_v40  ;;  %vm1359_vm7 = vcmp.eq.s32.totalorder %v17355_v50, %v17568_v23  ;;  %vm2479_vm5 = vcmp.eq.s32.totalorder %v17355_v50, %v17569_v2  ;;  %vm3599_vm8 = vcmp.eq.s32.totalorder %v17355_v50, %v17570_v19 }
 0x468   :  { %v6608_v14 = vadd.f32 %v9197_v41, %v5488_v0  ;;  %v4372_v16 = vadd.f32 %v8689_v56, %v3252_v10  ;;  %v8172_v35 = vsel %vm1359_vm7, 1.0, %v17157_v40  ;;  %v8428_v20 = vsel %vm2479_vm5, 1.0, %v17157_v40 }
 0x469   :  { %v2127_v6 = vadd.f32 %v8172_v35, %v7916_v39  ;;  %v8684_v25 = vsel %vm3599_vm8, 1.0, %v17157_v40  ;;  %vm4719_vm4 = vcmp.eq.s32.totalorder %v17355_v50, %v17571_v22  ;;  %vm5839_vm10 = vcmp.eq.s32.totalorder %v17355_v50, %v17572_v12 }
 0x46a   :  { %7087 = vmatprep.mubr.f32.mxu1 %v6608_v14  ;;  %v5492_v62 = vadd.f32 %v8945_v53, %v4372_v16  ;;  %v8940_v27 = vsel %vm4719_vm4, 1.0, %v17157_v40  ;;  %v9196_v60 = vsel %vm5839_vm10, 1.0, %v17157_v40  ;;  %vm499_vm9 = vcmp.eq.s32.totalorder %v17423_v31, %v17567_v43 }
 0x46b   :  { %v3247_v7 = vadd.f32 %v8428_v20, %v2127_v6  ;;  %v7920_v45 = vsel %vm499_vm9, 1.0, %v17157_v40  ;;  %vm1363_vm11 = vcmp.eq.s32.totalorder %v17423_v31, %v17568_v23  ;;  %vm2483_vm12 = vcmp.eq.s32.totalorder %v17423_v31, %v17569_v2  ;;  %v17573_v23 = vld [vmem:[#allocation31_spill] sm:$0xff] }
 0x46c   :  { %v6612_v34 = vadd.f32 %v9201_v54, %v5492_v62  ;;  %v8176_v4 = vsel %vm1363_vm11, 1.0, %v17157_v40  ;;  %v8432_v51 = vsel %vm2483_vm12, 1.0, %v17157_v40  ;;  %vm3603_vm13 = vcmp.eq.s32.totalorder %v17423_v31, %v17570_v19 }
 0x46d   :  { %v4367_v63 = vadd.f32 %v8684_v25, %v3247_v7  ;;  %v2131_v28 = vadd.f32 %v8176_v4, %v7920_v45  ;;  %v8688_v43 = vsel %vm3603_vm13, 1.0, %v17157_v40  ;;  %vm4723_vm14 = vcmp.eq.s32.totalorder %v17423_v31, %v17571_v22  ;;  %v17577_v22 = vld [vmem:[#allocation124_spill] sm:$0xff] }
 0x46e   :  { %7537 = vmatprep.mubr.f32.mxu0 %v6612_v34  ;;  %v8944_v11 = vsel %vm4723_vm14, 1.0, %v17157_v40  ;;  %vm5843_vm0 = vcmp.eq.s32.totalorder %v17423_v31, %v17572_v12  ;;  %vm504_vm1 = vcmp.eq.s32.totalorder %v13770_v3, %v17573_v23  ;;  %vm1368_vm15 = vcmp.eq.s32.totalorder %v13770_v3, %v17574_v32 }
 0x46f   :  { %v5487_v1 = vadd.f32 %v8940_v27, %v4367_v63  ;;  %v3251_v2 = vadd.f32 %v8432_v51, %v2131_v28  ;;  %v9200_v19 = vsel %vm5843_vm0, 1.0, %v17157_v40  ;;  %v7925_v37 = vsel %vm504_vm1, 1.0, %v17157_v40 }
 0x470   :  { %v8181_v24 = vsel %vm1368_vm15, 1.0, %v17157_v40  ;;  %vm2488_vm2 = vcmp.eq.s32.totalorder %v13770_v3, %v17575_v44  ;;  %vm3608_vm3 = vcmp.eq.s32.totalorder %v13770_v3, %v17576_v38  ;;  %vm4728_vm6 = vcmp.eq.s32.totalorder %v13770_v3, %v17577_v22 }
 0x471   :  { %v6607_v12 = vadd.f32 %v9196_v60, %v5487_v1  ;;  %v4371_v58 = vadd.f32 %v8688_v43, %v3251_v2  ;;  %v2136_v57 = vadd.f32 %v8181_v24, %v7925_v37  ;;  %v8437_v5 = vsel %vm2488_vm2, 1.0, %v17157_v40  ;;  %v17579_v24 = vld [vmem:[#allocation30_spill] sm:$0xff] }
 0x472   :  { %v8693_v41 = vsel %vm3608_vm3, 1.0, %v17157_v40  ;;  %v8949_v46 = vsel %vm4728_vm6, 1.0, %v17157_v40  ;;  %vm5848_vm7 = vcmp.eq.s32.totalorder %v13770_v3, %v17578_v49  ;;  %vm508_vm5 = vcmp.eq.s32.totalorder %v14037_v59, %v17573_v23 }
 0x473   :  { %7088 = vmatmul.mubr.f32.gmra.mrb[42].mxu1 %v6607_v12  ;;  %v5491_v9 = vadd.f32 %v8944_v11, %v4371_v58  ;;  %v3256_v8 = vadd.f32 %v8437_v5, %v2136_v57  ;;  %v9205_v15 = vsel %vm5848_vm7, 1.0, %v17157_v40  ;;  %v7929_v42 = vsel %vm508_vm5, 1.0, %v17157_v40  ;;  %v17580_v58 = vld [vmem:[#allocation59_spill] sm:$0xff]  ;;  %v17581_v5 = vld [vmem:[#allocation148_spill] sm:$0xff] }
 0x474   :  { %vm1372_vm8 = vcmp.eq.s32.totalorder %v14037_v59, %v17574_v32  ;;  %vm2492_vm4 = vcmp.eq.s32.totalorder %v14037_v59, %v17575_v44  ;;  %vm3612_vm10 = vcmp.eq.s32.totalorder %v14037_v59, %v17576_v38  ;;  %vm4732_vm9 = vcmp.eq.s32.totalorder %v14037_v59, %v17577_v22 }
 0x475   :  { %v6611_v56 = vadd.f32 %v9200_v19, %v5491_v9  ;;  %v4376_v0 = vadd.f32 %v8693_v41, %v3256_v8  ;;  %v8185_v10 = vsel %vm1372_vm8, 1.0, %v17157_v40  ;;  %v8441_v53 = vsel %vm2492_vm4, 1.0, %v17157_v40  ;;  %v17582_v41 = vld [vmem:[#allocation72_spill] sm:$0xff] }
 0x476   :  { %v2140_v54 = vadd.f32 %v8185_v10, %v7929_v42  ;;  %v8697_v39 = vsel %vm3612_vm10, 1.0, %v17157_v40  ;;  %v8953_v14 = vsel %vm4732_vm9, 1.0, %v17157_v40  ;;  %vm5852_vm11 = vcmp.eq.s32.totalorder %v14037_v59, %v17578_v49  ;;  %v17584_v42 = vld [vmem:[#allocation131_spill] sm:$0xff] }
 0x477   :  { %7538 = vmatmul.mubr.f32.gmra.mrb[42].mxu0 %v6611_v56  ;;  %v5496_v16 = vadd.f32 %v8949_v46, %v4376_v0  ;;  %v9209_v35 = vsel %vm5852_vm11, 1.0, %v17157_v40  ;;  %vm503_vm12 = vcmp.eq.s32.totalorder %v17355_v50, %v17573_v23  ;;  %vm1367_vm13 = vcmp.eq.s32.totalorder %v17355_v50, %v17574_v32 }
 0x478   :  { %v3260_v20 = vadd.f32 %v8441_v53, %v2140_v54  ;;  %v7924_v6 = vsel %vm503_vm12, 1.0, %v17157_v40  ;;  %v8180_v25 = vsel %vm1367_vm13, 1.0, %v17157_v40  ;;  %vm2487_vm14 = vcmp.eq.s32.totalorder %v17355_v50, %v17575_v44 }
 0x479   :  { %v6616_v62 = vadd.f32 %v9205_v15, %v5496_v16  ;;  %v2135_v27 = vadd.f32 %v8180_v25, %v7924_v6  ;;  %v8436_v60 = vsel %vm2487_vm14, 1.0, %v17157_v40  ;;  %vm3607_vm0 = vcmp.eq.s32.totalorder %v17355_v50, %v17576_v38  ;;  %v17583_v15 = vld [vmem:[#allocation134_spill] sm:$0xff] }
 0x47a   :  { %v4380_v7 = vadd.f32 %v8697_v39, %v3260_v20  ;;  %v8692_v45 = vsel %vm3607_vm0, 1.0, %v17157_v40  ;;  %vm4727_vm1 = vcmp.eq.s32.totalorder %v17355_v50, %v17577_v22  ;;  %vm5847_vm15 = vcmp.eq.s32.totalorder %v17355_v50, %v17578_v49 }
 0x47b   :  { %7092 = vmatprep.mubr.f32.mxu1 %v6616_v62  ;;  %v3255_v34 = vadd.f32 %v8436_v60, %v2135_v27  ;;  %v8948_v4 = vsel %vm4727_vm1, 1.0, %v17157_v40  ;;  %v9204_v51 = vsel %vm5847_vm15, 1.0, %v17157_v40  ;;  %vm507_vm2 = vcmp.eq.s32.totalorder %v17423_v31, %v17573_v23 }
 0x47c   :  { %v5500_v63 = vadd.f32 %v8953_v14, %v4380_v7  ;;  %v7928_v28 = vsel %vm507_vm2, 1.0, %v17157_v40  ;;  %vm1371_vm3 = vcmp.eq.s32.totalorder %v17423_v31, %v17574_v32  ;;  %vm2491_vm6 = vcmp.eq.s32.totalorder %v17423_v31, %v17575_v44 }
 0x47d   :  { %v4375_v43 = vadd.f32 %v8692_v45, %v3255_v34  ;;  %v8184_v11 = vsel %vm1371_vm3, 1.0, %v17157_v40  ;;  %v8440_v1 = vsel %vm2491_vm6, 1.0, %v17157_v40  ;;  %vm3611_vm7 = vcmp.eq.s32.totalorder %v17423_v31, %v17576_v38 }
 0x47e   :  { %v6620_v2 = vadd.f32 %v9209_v35, %v5500_v63  ;;  %v2139_v19 = vadd.f32 %v8184_v11, %v7928_v28  ;;  %v8696_v23 = vsel %vm3611_vm7, 1.0, %v17157_v40  ;;  %vm4731_vm5 = vcmp.eq.s32.totalorder %v17423_v31, %v17577_v22 }
 0x47f   :  { %v5495_v37 = vadd.f32 %v8948_v4, %v4375_v43  ;;  %v8952_v32 = vsel %vm4731_vm5, 1.0, %v17157_v40  ;;  %vm5851_vm8 = vcmp.eq.s32.totalorder %v17423_v31, %v17578_v49  ;;  %vm512_vm4 = vcmp.eq.s32.totalorder %v13770_v3, %v17579_v24 }
 0x480   :  { %7542 = vmatprep.mubr.f32.mxu0 %v6620_v2  ;;  %v3259_v44 = vadd.f32 %v8440_v1, %v2139_v19  ;;  %v9208_v38 = vsel %vm5851_vm8, 1.0, %v17157_v40  ;;  %v7933_v12 = vsel %vm512_vm4, 1.0, %v17157_v40  ;;  %vm1376_vm10 = vcmp.eq.s32.totalorder %v13770_v3, %v17580_v58 }
 0x481   :  { %v6615_v57 = vadd.f32 %v9204_v51, %v5495_v37  ;;  %v8189_v22 = vsel %vm1376_vm10, 1.0, %v17157_v40  ;;  %vm2496_vm9 = vcmp.eq.s32.totalorder %v13770_v3, %v17581_v5  ;;  %vm3616_vm11 = vcmp.eq.s32.totalorder %v13770_v3, %v17582_v41 }
 0x482   :  { %v4379_v46 = vadd.f32 %v8696_v23, %v3259_v44  ;;  %v2144_v49 = vadd.f32 %v8189_v22, %v7933_v12  ;;  %v8445_v9 = vsel %vm2496_vm9, 1.0, %v17157_v40  ;;  %v8701_v8 = vsel %vm3616_vm11, 1.0, %v17157_v40 }
 0x483   :  { %7093 = vmatmul.mubr.f32.gmra.mrb[44].mxu1 %v6615_v57  ;;  %vm4736_vm12 = vcmp.eq.s32.totalorder %v13770_v3, %v17583_v15  ;;  %vm5856_vm13 = vcmp.eq.s32.totalorder %v13770_v3, %v17584_v42  ;;  %vm516_vm14 = vcmp.eq.s32.totalorder %v14037_v59, %v17579_v24  ;;  %vm1380_vm0 = vcmp.eq.s32.totalorder %v14037_v59, %v17580_v58  ;;  %v17586_v57 = vld [vmem:[#allocation113_spill] sm:$0xff] }
 0x484   :  { %v5499_v56 = vadd.f32 %v8952_v32, %v4379_v46  ;;  %v3264_v0 = vadd.f32 %v8445_v9, %v2144_v49  ;;  %v8957_v10 = vsel %vm4736_vm12, 1.0, %v17157_v40  ;;  %v9213_v53 = vsel %vm5856_vm13, 1.0, %v17157_v40  ;;  %v17587_v9 = vld [vmem:[#allocation74_spill] sm:$0xff] }
 0x485   :  { %v7937_v54 = vsel %vm516_vm14, 1.0, %v17157_v40  ;;  %v8193_v39 = vsel %vm1380_vm0, 1.0, %v17157_v40  ;;  %vm2500_vm1 = vcmp.eq.s32.totalorder %v14037_v59, %v17581_v5  ;;  %vm3620_vm15 = vcmp.eq.s32.totalorder %v14037_v59, %v17582_v41 }
 0x486   :  { %v6619_v14 = vadd.f32 %v9208_v38, %v5499_v56  ;;  %v4384_v16 = vadd.f32 %v8701_v8, %v3264_v0  ;;  %v2148_v35 = vadd.f32 %v8193_v39, %v7937_v54  ;;  %v8449_v20 = vsel %vm2500_vm1, 1.0, %v17157_v40  ;;  %v17588_v8 = vld [vmem:[#allocation38_spill] sm:$0xff]  ;;  %v17590_v39 = vld [vmem:[#allocation140_spill] sm:$0xff] }
 0x487   :  { %v8705_v6 = vsel %vm3620_vm15, 1.0, %v17157_v40  ;;  %vm4740_vm2 = vcmp.eq.s32.totalorder %v14037_v59, %v17583_v15  ;;  %vm5860_vm3 = vcmp.eq.s32.totalorder %v14037_v59, %v17584_v42  ;;  %vm511_vm6 = vcmp.eq.s32.totalorder %v17355_v50, %v17579_v24 }
 0x488   :  { %7543 = vmatmul.mubr.f32.gmra.mrb[44].mxu0 %v6619_v14  ;;  %v5504_v25 = vadd.f32 %v8957_v10, %v4384_v16  ;;  %v3268_v62 = vadd.f32 %v8449_v20, %v2148_v35  ;;  %v8961_v27 = vsel %vm4740_vm2, 1.0, %v17157_v40  ;;  %v9217_v60 = vsel %vm5860_vm3, 1.0, %v17157_v40 }
 0x489   :  { %v7932_v7 = vsel %vm511_vm6, 1.0, %v17157_v40  ;;  %vm1375_vm7 = vcmp.eq.s32.totalorder %v17355_v50, %v17580_v58  ;;  %vm2495_vm5 = vcmp.eq.s32.totalorder %v17355_v50, %v17581_v5  ;;  %vm3615_vm8 = vcmp.eq.s32.totalorder %v17355_v50, %v17582_v41 }
 0x48a   :  { %v6624_v45 = vadd.f32 %v9213_v53, %v5504_v25  ;;  %v4388_v34 = vadd.f32 %v8705_v6, %v3268_v62  ;;  %v8188_v4 = vsel %vm1375_vm7, 1.0, %v17157_v40  ;;  %v8444_v51 = vsel %vm2495_vm5, 1.0, %v17157_v40 }
 0x48b   :  { %v2143_v63 = vadd.f32 %v8188_v4, %v7932_v7  ;;  %v8700_v28 = vsel %vm3615_vm8, 1.0, %v17157_v40  ;;  %vm4735_vm4 = vcmp.eq.s32.totalorder %v17355_v50, %v17583_v15  ;;  %vm5855_vm10 = vcmp.eq.s32.totalorder %v17355_v50, %v17584_v42 }
 0x48c   :  { %7097 = vmatprep.mubr.f32.mxu1 %v6624_v45  ;;  %v5508_v43 = vadd.f32 %v8961_v27, %v4388_v34  ;;  %v8956_v11 = vsel %vm4735_vm4, 1.0, %v17157_v40  ;;  %v9212_v1 = vsel %vm5855_vm10, 1.0, %v17157_v40  ;;  %vm515_vm9 = vcmp.eq.s32.totalorder %v17423_v31, %v17579_v24 }
 0x48d   :  { %v3263_v2 = vadd.f32 %v8444_v51, %v2143_v63  ;;  %v7936_v19 = vsel %vm515_vm9, 1.0, %v17157_v40  ;;  %vm1379_vm11 = vcmp.eq.s32.totalorder %v17423_v31, %v17580_v58  ;;  %vm2499_vm12 = vcmp.eq.s32.totalorder %v17423_v31, %v17581_v5  ;;  %v17585_v58 = vld [vmem:[#allocation33_spill] sm:$0xff] }
 0x48e   :  { %v6628_v23 = vadd.f32 %v9217_v60, %v5508_v43  ;;  %v8192_v37 = vsel %vm1379_vm11, 1.0, %v17157_v40  ;;  %v8448_v32 = vsel %vm2499_vm12, 1.0, %v17157_v40  ;;  %vm3619_vm13 = vcmp.eq.s32.totalorder %v17423_v31, %v17582_v41 }
 0x48f   :  { %v4383_v44 = vadd.f32 %v8700_v28, %v3263_v2  ;;  %v2147_v38 = vadd.f32 %v8192_v37, %v7936_v19  ;;  %v8704_v24 = vsel %vm3619_vm13, 1.0, %v17157_v40  ;;  %vm4739_vm14 = vcmp.eq.s32.totalorder %v17423_v31, %v17583_v15  ;;  %v17589_v15 = vld [vmem:[#allocation132_spill] sm:$0xff] }
 0x490   :  { %7547 = vmatprep.mubr.f32.mxu0 %v6628_v23  ;;  %v8960_v12 = vsel %vm4739_vm14, 1.0, %v17157_v40  ;;  %vm5859_vm0 = vcmp.eq.s32.totalorder %v17423_v31, %v17584_v42  ;;  %vm520_vm1 = vcmp.eq.s32.totalorder %v13770_v3, %v17585_v58  ;;  %vm1384_vm15 = vcmp.eq.s32.totalorder %v13770_v3, %v17586_v57 }
 0x491   :  { %v5503_v22 = vadd.f32 %v8956_v11, %v4383_v44  ;;  %v3267_v5 = vadd.f32 %v8448_v32, %v2147_v38  ;;  %v9216_v41 = vsel %vm5859_vm0, 1.0, %v17157_v40  ;;  %v7941_v46 = vsel %vm520_vm1, 1.0, %v17157_v40 }
 0x492   :  { %v8197_v49 = vsel %vm1384_vm15, 1.0, %v17157_v40  ;;  %vm2504_vm2 = vcmp.eq.s32.totalorder %v13770_v3, %v17587_v9  ;;  %vm3624_vm3 = vcmp.eq.s32.totalorder %v13770_v3, %v17588_v8  ;;  %vm4744_vm6 = vcmp.eq.s32.totalorder %v13770_v3, %v17589_v15 }
 0x493   :  { %v6623_v42 = vadd.f32 %v9212_v1, %v5503_v22  ;;  %v4387_v56 = vadd.f32 %v8704_v24, %v3267_v5  ;;  %v2152_v0 = vadd.f32 %v8197_v49, %v7941_v46  ;;  %v8453_v10 = vsel %vm2504_vm2, 1.0, %v17157_v40  ;;  %v17591_v49 = vld [vmem:[#allocation32_spill] sm:$0xff] }
 0x494   :  { %v8709_v53 = vsel %vm3624_vm3, 1.0, %v17157_v40  ;;  %v8965_v54 = vsel %vm4744_vm6, 1.0, %v17157_v40  ;;  %vm5864_vm7 = vcmp.eq.s32.totalorder %v13770_v3, %v17590_v39  ;;  %vm524_vm5 = vcmp.eq.s32.totalorder %v14037_v59, %v17585_v58 }
 0x495   :  { %7098 = vmatmul.mubr.f32.gmra.mrb[46].mxu1 %v6623_v42  ;;  %v5507_v14 = vadd.f32 %v8960_v12, %v4387_v56  ;;  %v3272_v16 = vadd.f32 %v8453_v10, %v2152_v0  ;;  %v9221_v35 = vsel %vm5864_vm7, 1.0, %v17157_v40  ;;  %v7945_v20 = vsel %vm524_vm5, 1.0, %v17157_v40  ;;  %v16085_v42 = vpop.f32.mrb[0].mxu0 }
 0x496   :  { %vm1388_vm8 = vcmp.eq.s32.totalorder %v14037_v59, %v17586_v57  ;;  %vm2508_vm4 = vcmp.eq.s32.totalorder %v14037_v59, %v17587_v9  ;;  %vm3628_vm10 = vcmp.eq.s32.totalorder %v14037_v59, %v17588_v8  ;;  %vm4748_vm9 = vcmp.eq.s32.totalorder %v14037_v59, %v17589_v15 }
 0x497   :  { %v6627_v6 = vadd.f32 %v9216_v41, %v5507_v14  ;;  %v4392_v25 = vadd.f32 %v8709_v53, %v3272_v16  ;;  %v8201_v62 = vsel %vm1388_vm8, 1.0, %v17157_v40  ;;  %v8457_v27 = vsel %vm2508_vm4, 1.0, %v17157_v40  ;;  %v7436_v53 = vpop.f32.mrb[1].mxu0  ;;  %v17593_v14 = vld [vmem:[#allocation149_spill] sm:$0xff]  ;;  %v17594_v16 = vld [vmem:[#allocation111_spill] sm:$0xff] }
 0x498   :  { %v2156_v60 = vadd.f32 %v8201_v62, %v7945_v20  ;;  %v8713_v7 = vsel %vm3628_vm10, 1.0, %v17157_v40  ;;  %v8969_v45 = vsel %vm4748_vm9, 1.0, %v17157_v40  ;;  %vm5868_vm11 = vcmp.eq.s32.totalorder %v14037_v59, %v17590_v39  ;;  %v16098_v20 = vpop.f32.mrb[2].mxu0 }
 0x499   :  { %7548 = vmatmul.mubr.f32.gmra.mrb[46].mxu0 %v6627_v6  ;;  %v5512_v34 = vadd.f32 %v8965_v54, %v4392_v25  ;;  %v9225_v4 = vsel %vm5868_vm11, 1.0, %v17157_v40  ;;  %vm519_vm12 = vcmp.eq.s32.totalorder %v17355_v50, %v17585_v58  ;;  %vm1383_vm13 = vcmp.eq.s32.totalorder %v17355_v50, %v17586_v57 }
 0x49a   :  { %v3276_v51 = vadd.f32 %v8457_v27, %v2156_v60  ;;  %v7940_v63 = vsel %vm519_vm12, 1.0, %v17157_v40  ;;  %v8196_v28 = vsel %vm1383_vm13, 1.0, %v17157_v40  ;;  %vm2503_vm14 = vcmp.eq.s32.totalorder %v17355_v50, %v17587_v9 }
 0x49b   :  { %v6632_v43 = vadd.f32 %v9221_v35, %v5512_v34  ;;  %v2151_v11 = vadd.f32 %v8196_v28, %v7940_v63  ;;  %v8452_v1 = vsel %vm2503_vm14, 1.0, %v17157_v40  ;;  %vm3623_vm0 = vcmp.eq.s32.totalorder %v17355_v50, %v17588_v8 }
 0x49c   :  { %v4396_v2 = vadd.f32 %v8713_v7, %v3276_v51  ;;  %v8708_v19 = vsel %vm3623_vm0, 1.0, %v17157_v40  ;;  %vm4743_vm1 = vcmp.eq.s32.totalorder %v17355_v50, %v17589_v15  ;;  %vm5863_vm15 = vcmp.eq.s32.totalorder %v17355_v50, %v17590_v39  ;;  %v7441_v7 = vpop.f32.mrb[3].mxu0 }
 0x49d   :  { %7102 = vmatprep.mubr.f32.mxu1 %v6632_v43  ;;  %v3271_v23 = vadd.f32 %v8452_v1, %v2151_v11  ;;  %v8964_v37 = vsel %vm4743_vm1, 1.0, %v17157_v40  ;;  %v9220_v32 = vsel %vm5863_vm15, 1.0, %v17157_v40  ;;  %vm523_vm2 = vcmp.eq.s32.totalorder %v17423_v31, %v17585_v58  ;;  %v16112_v34 = vpop.f32.mrb[4].mxu0 }
 0x49e   :  { %v5516_v44 = vadd.f32 %v8969_v45, %v4396_v2  ;;  %v7944_v38 = vsel %vm523_vm2, 1.0, %v17157_v40  ;;  %vm1387_vm3 = vcmp.eq.s32.totalorder %v17423_v31, %v17586_v57  ;;  %vm2507_vm6 = vcmp.eq.s32.totalorder %v17423_v31, %v17587_v9  ;;  %v16083_v9 = vpop.f32.mrb[0].mxu1  ;;  %v7446_v11 = vpop.f32.mrb[5].mxu0 }
 0x49f   :  { %v4391_v24 = vadd.f32 %v8708_v19, %v3271_v23  ;;  %v8200_v12 = vsel %vm1387_vm3, 1.0, %v17157_v40  ;;  %v8456_v22 = vsel %vm2507_vm6, 1.0, %v17157_v40  ;;  %vm3627_vm7 = vcmp.eq.s32.totalorder %v17423_v31, %v17588_v8  ;;  %v6986_v10 = vpop.f32.mrb[1].mxu1  ;;  %v16124_v23 = vpop.f32.mrb[6].mxu0 }
 0x4a0   :  { %v6636_v5 = vadd.f32 %v9225_v4, %v5516_v44  ;;  %v2155_v41 = vadd.f32 %v8200_v12, %v7944_v38  ;;  %v8712_v58 = vsel %vm3627_vm7, 1.0, %v17157_v40  ;;  %vm4747_vm5 = vcmp.eq.s32.totalorder %v17423_v31, %v17589_v15  ;;  %v17592_v15 = vld [vmem:[#allocation158_spill] sm:$0xff]  ;;  %v16096_v35 = vpop.f32.mrb[2].mxu1  ;;  %v7451_v12 = vpop.f32.mrb[7].mxu0 }
 0x4a1   :  { %v5511_v46 = vadd.f32 %v8964_v37, %v4391_v24  ;;  %v8968_v57 = vsel %vm4747_vm5, 1.0, %v17157_v40  ;;  %vm5867_vm8 = vcmp.eq.s32.totalorder %v17423_v31, %v17590_v39  ;;  %vm528_vm4 = vcmp.eq.s32.totalorder %v13770_v3, %v17591_v49  ;;  %v6991_v60 = vpop.f32.mrb[3].mxu1 }
 0x4a2   :  { %7552 = vmatprep.mubr.f32.mxu0 %v6636_v5  ;;  %v3275_v8 = vadd.f32 %v8456_v22, %v2155_v41  ;;  %v9224_v56 = vsel %vm5867_vm8, 1.0, %v17157_v40  ;;  %v7949_v0 = vsel %vm528_vm4, 1.0, %v17157_v40  ;;  %vm1392_vm10 = vcmp.eq.s32.totalorder %v13770_v3, %v17592_v15  ;;  %v16110_v45 = vpop.f32.mrb[4].mxu1  ;;  %v16136_v41 = vpop.f32.mrb[8].mxu0 }
 0x4a3   :  { %v6631_v54 = vadd.f32 %v9220_v32, %v5511_v46  ;;  %v8205_v39 = vsel %vm1392_vm10, 1.0, %v17157_v40  ;;  %vm2512_vm9 = vcmp.eq.s32.totalorder %v13770_v3, %v17593_v14  ;;  %vm3632_vm11 = vcmp.eq.s32.totalorder %v13770_v3, %v17594_v16  ;;  %v6996_v43 = vpop.f32.mrb[5].mxu1 }
 0x4a4   :  { %v4395_v6 = vadd.f32 %v8712_v58, %v3275_v8  ;;  %v2160_v25 = vadd.f32 %v8205_v39, %v7949_v0  ;;  %v8461_v62 = vsel %vm2512_vm9, 1.0, %v17157_v40  ;;  %v8717_v27 = vsel %vm3632_vm11, 1.0, %v17157_v40  ;;  %v16122_v19 = vpop.f32.mrb[6].mxu1  ;;  %v7456_v0 = vpop.f32.mrb[9].mxu0 }
 0x4a5   :  { %7103 = vmatmul.mubr.f32.gmra.mrb[48].mxu1 %v6631_v54  ;;  %vm4752_vm12 = vcmp.eq.s32.totalorder %v13770_v3, %v13343_v30  ;;  %vm5872_vm13 = vcmp.eq.s32.totalorder %v13770_v3, %v13658_v33  ;;  %vm532_vm14 = vcmp.eq.s32.totalorder %v14037_v59, %v17591_v49  ;;  %vm1396_vm0 = vcmp.eq.s32.totalorder %v14037_v59, %v17592_v15  ;;  %v7001_v24 = vpop.f32.mrb[7].mxu1  ;;  %v16149_v54 = vpop.f32.mrb[10].mxu0 }
 0x4a6   :  { %v5515_v4 = vadd.f32 %v8968_v57, %v4395_v6  ;;  %v3280_v51 = vadd.f32 %v8461_v62, %v2160_v25  ;;  %v8973_v63 = vsel %vm4752_vm12, 1.0, %v17157_v40  ;;  %v9229_v28 = vsel %vm5872_vm13, 1.0, %v17157_v40  ;;  %v16134_v5 = vpop.f32.mrb[8].mxu1  ;;  %v7461_v60 = vpop.f32.mrb[11].mxu0 }
 0x4a7   :  { %v7953_v1 = vsel %vm532_vm14, 1.0, %v17157_v40  ;;  %v8209_v2 = vsel %vm1396_vm0, 1.0, %v17157_v40  ;;  %vm2516_vm1 = vcmp.eq.s32.totalorder %v14037_v59, %v17593_v14  ;;  %vm3636_vm15 = vcmp.eq.s32.totalorder %v14037_v59, %v17594_v16  ;;  %v17596_v60 = vld [vmem:[#allocation41_spill] sm:$0xff] }
 0x4a8   :  { %v6635_v37 = vadd.f32 %v9224_v56, %v5515_v4  ;;  %v4400_v32 = vadd.f32 %v8717_v27, %v3280_v51  ;;  %v2164_v44 = vadd.f32 %v8209_v2, %v7953_v1  ;;  %v8465_v38 = vsel %vm2516_vm1, 1.0, %v17157_v40  ;;  %v7006_v56 = vpop.f32.mrb[9].mxu1 }
 0x4a9   :  { %v8721_v22 = vsel %vm3636_vm15, 1.0, %v17157_v40  ;;  %vm4756_vm2 = vcmp.eq.s32.totalorder %v14037_v59, %v13343_v30  ;;  %vm5876_vm3 = vcmp.eq.s32.totalorder %v14037_v59, %v13658_v33  ;;  %vm527_vm6 = vcmp.eq.s32.totalorder %v17355_v50, %v17591_v49  ;;  %v16147_v53 = vpop.f32.mrb[10].mxu1 }
 0x4aa   :  { %7553 = vmatmul.mubr.f32.gmra.mrb[48].mxu0 %v6635_v37  ;;  %v5520_v58 = vadd.f32 %v8973_v63, %v4400_v32  ;;  %v3284_v46 = vadd.f32 %v8465_v38, %v2164_v44  ;;  %v8977_v57 = vsel %vm4756_vm2, 1.0, %v17157_v40  ;;  %v9233_v8 = vsel %vm5876_vm3, 1.0, %v17157_v40  ;;  %v7011_v27 = vpop.f32.mrb[11].mxu1  ;;  %v16160_v63 = vpop.f32.mrb[12].mxu0 }
 0x4ab   :  { %v7948_v10 = vsel %vm527_vm6, 1.0, %v17157_v40  ;;  %vm1391_vm7 = vcmp.eq.s32.totalorder %v17355_v50, %v17592_v15  ;;  %vm2511_vm5 = vcmp.eq.s32.totalorder %v17355_v50, %v17593_v14  ;;  %vm3631_vm8 = vcmp.eq.s32.totalorder %v17355_v50, %v17594_v16  ;;  %v16158_v51 = vpop.f32.mrb[12].mxu1  ;;  %v7466_v2 = vpop.f32.mrb[13].mxu0 }
 0x4ac   :  { %v6640_v39 = vadd.f32 %v9229_v28, %v5520_v58  ;;  %v4404_v6 = vadd.f32 %v8721_v22, %v3284_v46  ;;  %v8204_v25 = vsel %vm1391_vm7, 1.0, %v17157_v40  ;;  %v8460_v62 = vsel %vm2511_vm5, 1.0, %v17157_v40  ;;  %v7016_v1 = vpop.f32.mrb[13].mxu1  ;;  %v16173_v38 = vpop.f32.mrb[14].mxu0 }
 0x4ad   :  { %v2159_v7 = vadd.f32 %v8204_v25, %v7948_v10  ;;  %v8716_v4 = vsel %vm3631_vm8, 1.0, %v17157_v40  ;;  %vm4751_vm4 = vcmp.eq.s32.totalorder %v17355_v50, %v13343_v30  ;;  %vm5871_vm10 = vcmp.eq.s32.totalorder %v17355_v50, %v13658_v33  ;;  %v16171_v44 = vpop.f32.mrb[14].mxu1  ;;  %v7471_v58 = vpop.f32.mrb[15].mxu0 }
 0x4ae   :  { %7107 = vmatprep.mubr.f32.mxu1 %v6640_v39  ;;  %v5524_v28 = vadd.f32 %v8977_v57, %v4404_v6  ;;  %v8972_v43 = vsel %vm4751_vm4, 1.0, %v17157_v40  ;;  %v9228_v11 = vsel %vm5871_vm10, 1.0, %v17157_v40  ;;  %vm531_vm9 = vcmp.eq.s32.totalorder %v17423_v31, %v17591_v49  ;;  %v7021_v22 = vpop.f32.mrb[15].mxu1  ;;  %v16184_v56 = vpop.f32.mrb[16].mxu0  ;;  %v17599_v58 = vld [vmem:[#allocation167_spill] sm:$0xff] }
 0x4af   :  { %v3279_v37 = vadd.f32 %v8460_v62, %v2159_v7  ;;  %v7952_v32 = vsel %vm531_vm9, 1.0, %v17157_v40  ;;  %vm1395_vm11 = vcmp.eq.s32.totalorder %v17423_v31, %v17592_v15  ;;  %vm2515_vm12 = vcmp.eq.s32.totalorder %v17423_v31, %v17593_v14  ;;  %v16182_v14 = vpop.f32.mrb[16].mxu1  ;;  %v7476_v10 = vpop.f32.mrb[17].mxu0  ;;  %v17597_v7 = vld [vmem:[#allocation163_spill] sm:$0xff] }
 0x4b0   :  { %v6644_v24 = vadd.f32 %v9233_v8, %v5524_v28  ;;  %v8208_v12 = vsel %vm1395_vm11, 1.0, %v17157_v40  ;;  %v8464_v49 = vsel %vm2515_vm12, 1.0, %v17157_v40  ;;  %vm3635_vm13 = vcmp.eq.s32.totalorder %v17423_v31, %v17594_v16  ;;  %v17595_v16 = vld [vmem:[#allocation139_spill] sm:$0xff]  ;;  %v7026_v0 = vpop.f32.mrb[17].mxu1  ;;  %v16197_v27 = vpop.f32.mrb[18].mxu0 }
 0x4b1   :  { %v4399_v46 = vadd.f32 %v8716_v4, %v3279_v37  ;;  %v2163_v57 = vadd.f32 %v8208_v12, %v7952_v32  ;;  %v8720_v15 = vsel %vm3635_vm13, 1.0, %v17157_v40  ;;  %vm4755_vm14 = vcmp.eq.s32.totalorder %v17423_v31, %v13343_v30  ;;  %v16195_v62 = vpop.f32.mrb[18].mxu1  ;;  %v17598_v4 = vld [vmem:[#allocation165_spill] sm:$0xff] }
 0x4b2   :  { %7557 = vmatprep.mubr.f32.mxu0 %v6644_v24  ;;  %v8976_v8 = vsel %vm4755_vm14, 1.0, %v17157_v40  ;;  %vm5875_vm0 = vcmp.eq.s32.totalorder %v17423_v31, %v13658_v33  ;;  %vm536_vm1 = vcmp.eq.s32.totalorder %v13770_v3, %v17437_v18  ;;  %vm1400_vm15 = vcmp.eq.s32.totalorder %v13770_v3, %v17595_v16  ;;  %v7031_v28 = vpop.f32.mrb[19].mxu1 }
 0x4b3   :  { %v5519_v39 = vadd.f32 %v8972_v43, %v4399_v46  ;;  %v3283_v30 = vadd.f32 %v8464_v49, %v2163_v57  ;;  %v9232_v6 = vsel %vm5875_vm0, 1.0, %v17157_v40  ;;  %v7957_v25 = vsel %vm536_vm1, 1.0, %v17157_v40  ;;  %v7481_v43 = vpop.f32.mrb[19].mxu0  ;;  %v16207_v24 = vpop.f32.mrb[20].mxu1 }
 0x4b4   :  { %v8213_v33 = vsel %vm1400_vm15, 1.0, %v17157_v40  ;;  %vm2520_vm2 = vcmp.eq.s32.totalorder %v13770_v3, %v17596_v60  ;;  %vm3640_vm3 = vcmp.eq.s32.totalorder %v13770_v3, %v17597_v7  ;;  %vm4760_vm6 = vcmp.eq.s32.totalorder %v13770_v3, %v17598_v4  ;;  %v16209_v12 = vpop.f32.mrb[20].mxu0  ;;  %v7036_v46 = vpop.f32.mrb[21].mxu1 }
 0x4b5   :  { %v6639_v1 = vadd.f32 %v9228_v11, %v5519_v39  ;;  %v4403_v2 = vadd.f32 %v8720_v15, %v3283_v30  ;;  %v2168_v37 = vadd.f32 %v8213_v33, %v7957_v25  ;;  %v8469_v32 = vsel %vm2520_vm2, 1.0, %v17157_v40  ;;  %v7486_v11 = vpop.f32.mrb[21].mxu0  ;;  %v16219_v39 = vpop.f32.mrb[22].mxu1 }
 0x4b6   :  { %v8725_v49 = vsel %vm3640_vm3, 1.0, %v17157_v40  ;;  %v8981_v22 = vsel %vm4760_vm6, 1.0, %v17157_v40  ;;  %vm5880_vm7 = vcmp.eq.s32.totalorder %v13770_v3, %v17599_v58  ;;  %vm540_vm5 = vcmp.eq.s32.totalorder %v14037_v59, %v17437_v18  ;;  %v16221_v30 = vpop.f32.mrb[22].mxu0 }
 0x4b7   :  { %7108 = vmatmul.mubr.f32.gmra.mrb[50].mxu1 %v6639_v1  ;;  %v5523_v57 = vadd.f32 %v8976_v8, %v4403_v2  ;;  %v3288_v15 = vadd.f32 %v8469_v32, %v2168_v37  ;;  %v9237_v0 = vsel %vm5880_vm7, 1.0, %v17157_v40  ;;  %v7961_v10 = vsel %vm540_vm5, 1.0, %v17157_v40  ;;  %v7041_v8 = vpop.f32.mrb[23].mxu1  ;;  %v7491_v25 = vpop.f32.mrb[23].mxu0 }
 0x4b8   :  { %vm1404_vm8 = vcmp.eq.s32.totalorder %v14037_v59, %v17595_v16  ;;  %vm2524_vm4 = vcmp.eq.s32.totalorder %v14037_v59, %v17596_v60  ;;  %vm3644_vm10 = vcmp.eq.s32.totalorder %v14037_v59, %v17597_v7  ;;  %vm4764_vm9 = vcmp.eq.s32.totalorder %v14037_v59, %v17598_v4  ;;  %v16233_v2 = vpop.f32.mrb[24].mxu1  ;;  %v16235_v37 = vpop.f32.mrb[24].mxu0 }
 0x4b9   :  { %v6643_v33 = vadd.f32 %v9232_v6, %v5523_v57  ;;  %v4408_v28 = vadd.f32 %v8725_v49, %v3288_v15  ;;  %v8217_v43 = vsel %vm1404_vm8, 1.0, %v17157_v40  ;;  %v8473_v1 = vsel %vm2524_vm4, 1.0, %v17157_v40  ;;  %v7046_v8 = vpop.f32.mrb[25].mxu1  ;;  %v7496_v25 = vpop.f32.mrb[25].mxu0 }
 0x4ba   :  { %v2172_v32 = vadd.f32 %v8217_v43, %v7961_v10  ;;  %v8729_v46 = vsel %vm3644_vm10, 1.0, %v17157_v40  ;;  %v8985_v11 = vsel %vm4764_vm9, 1.0, %v17157_v40  ;;  %vm5884_vm11 = vcmp.eq.s32.totalorder %v14037_v59, %v17599_v58 }
 0x4bb   :  { %7558 = vmatmul.mubr.f32.gmra.mrb[50].mxu0 %v6643_v33  ;;  %v5528_v6 = vadd.f32 %v8981_v22, %v4408_v28  ;;  %v9241_v49 = vsel %vm5884_vm11, 1.0, %v17157_v40  ;;  %vm535_vm12 = vcmp.eq.s32.totalorder %v17355_v50, %v17437_v18  ;;  %vm1399_vm13 = vcmp.eq.s32.totalorder %v17355_v50, %v17595_v16 }
 0x4bc   :  { %v3292_v57 = vadd.f32 %v8473_v1, %v2172_v32  ;;  %v7956_v15 = vsel %vm535_vm12, 1.0, %v17157_v40  ;;  %v8212_v10 = vsel %vm1399_vm13, 1.0, %v17157_v40  ;;  %vm2519_vm14 = vcmp.eq.s32.totalorder %v17355_v50, %v17596_v60 }
 0x4bd   :  { %v6648_v43 = vadd.f32 %v9237_v0, %v5528_v6  ;;  %v2167_v8 = vadd.f32 %v8212_v10, %v7956_v15  ;;  %v8468_v22 = vsel %vm2519_vm14, 1.0, %v17157_v40  ;;  %vm3639_vm0 = vcmp.eq.s32.totalorder %v17355_v50, %v17597_v7 }
 0x4be   :  { %v4412_v33 = vadd.f32 %v8729_v46, %v3292_v57  ;;  %v8724_v28 = vsel %vm3639_vm0, 1.0, %v17157_v40  ;;  %vm4759_vm1 = vcmp.eq.s32.totalorder %v17355_v50, %v17598_v4  ;;  %vm5879_vm15 = vcmp.eq.s32.totalorder %v17355_v50, %v17599_v58  ;;  %v16258_v1 = vpop.f32.mrb[26].mxu1 }
 0x4bf   :  { %17600 = vst [vmem:[#allocation39_spill] sm:$0xff] %v16258_v1  ;;  %7112 = vmatprep.mubr.f32.mxu1 %v6648_v43  ;;  %v3287_v32 = vadd.f32 %v8468_v22, %v2167_v8  ;;  %v8980_v0 = vsel %vm4759_vm1, 1.0, %v17157_v40  ;;  %v9236_v25 = vsel %vm5879_vm15, 1.0, %v17157_v40  ;;  %vm539_vm2 = vcmp.eq.s32.totalorder %v17423_v31, %v17437_v18  ;;  %v7051_v46 = vpop.f32.mrb[27].mxu1 }
 0x4c0   :  { %v5532_v6 = vadd.f32 %v8985_v11, %v4412_v33  ;;  %v7960_v57 = vsel %vm539_vm2, 1.0, %v17157_v40  ;;  %vm1403_vm3 = vcmp.eq.s32.totalorder %v17423_v31, %v17595_v16  ;;  %vm2523_vm6 = vcmp.eq.s32.totalorder %v17423_v31, %v17596_v60  ;;  %v17602_v33 = vld [vmem:[#allocation34_spill] sm:$0xff] }
 0x4c1   :  { %v4407_v15 = vadd.f32 %v8724_v28, %v3287_v32  ;;  %v8216_v10 = vsel %vm1403_vm3, 1.0, %v17157_v40  ;;  %v8472_v43 = vsel %vm2523_vm6, 1.0, %v17157_v40  ;;  %vm3643_vm7 = vcmp.eq.s32.totalorder %v17423_v31, %v17597_v7  ;;  %v17603_v46 = vld [vmem:[#allocation162_spill] sm:$0xff] }
 0x4c2   :  { %v6652_v8 = vadd.f32 %v9241_v49, %v5532_v6  ;;  %v2171_v18 = vadd.f32 %v8216_v10, %v7960_v57  ;;  %v8728_v11 = vsel %vm3643_vm7, 1.0, %v17157_v40  ;;  %vm4763_vm5 = vcmp.eq.s32.totalorder %v17423_v31, %v17598_v4  ;;  %v16276_v22 = vpop.f32.mrb[26].mxu0  ;;  %v17604_v6 = vld [vmem:[#allocation164_spill] sm:$0xff] }
 0x4c3   :  { %17601 = vst [vmem:[#allocation9_spill] sm:$0xff] %v16276_v22  ;;  %v5527_v16 = vadd.f32 %v8980_v0, %v4407_v15  ;;  %v8984_v60 = vsel %vm4763_vm5, 1.0, %v17157_v40  ;;  %vm5883_vm8 = vcmp.eq.s32.totalorder %v17423_v31, %v17599_v58  ;;  %vm544_vm4 = vcmp.eq.s32.totalorder %v13770_v3, %v17602_v33  ;;  %v7501_v28 = vpop.f32.mrb[27].mxu0  ;;  %v17605_v58 = vld [vmem:[#allocation166_spill] sm:$0xff] }
 0x4c4   :  { %7562 = vmatprep.mubr.f32.mxu0 %v6652_v8  ;;  %v3291_v7 = vadd.f32 %v8472_v43, %v2171_v18  ;;  %v9240_v49 = vsel %vm5883_vm8, 1.0, %v17157_v40  ;;  %v7965_v32 = vsel %vm544_vm4, 1.0, %v17157_v40  ;;  %vm1408_vm10 = vcmp.eq.s32.totalorder %v13770_v3, %v17603_v46  ;;  %v17606_v8 = vld [vmem:[#allocation168_spill] sm:$0xff]  ;;  %v17607_v18 = vld [vmem:[#allocation35_spill] sm:$0xff] }
 0x4c5   :  { %v6647_v4 = vadd.f32 %v9236_v25, %v5527_v16  ;;  %v8221_v0 = vsel %vm1408_vm10, 1.0, %v17157_v40  ;;  %vm2528_vm9 = vcmp.eq.s32.totalorder %v13770_v3, %v17604_v6  ;;  %vm3648_vm11 = vcmp.eq.s32.totalorder %v13770_v3, %v17605_v58 }
 0x4c6   :  { %v4411_v57 = vadd.f32 %v8728_v11, %v3291_v7  ;;  %v2176_v15 = vadd.f32 %v8221_v0, %v7965_v32  ;;  %v8477_v10 = vsel %vm2528_vm9, 1.0, %v17157_v40  ;;  %v8733_v43 = vsel %vm3648_vm11, 1.0, %v17157_v40 }
 0x4c7   :  { %7113 = vmatmul.mubr.f32.gmra.mrb[52].mxu1 %v6647_v4  ;;  %vm4768_vm12 = vcmp.eq.s32.totalorder %v13770_v3, %v17606_v8  ;;  %vm5888_vm13 = vcmp.eq.s32.totalorder %v13770_v3, %v17607_v18  ;;  %vm548_vm14 = vcmp.eq.s32.totalorder %v14037_v59, %v17602_v33  ;;  %vm1412_vm0 = vcmp.eq.s32.totalorder %v14037_v59, %v17603_v46 }
 0x4c8   :  { %v5531_v25 = vadd.f32 %v8984_v60, %v4411_v57  ;;  %v3296_v11 = vadd.f32 %v8477_v10, %v2176_v15  ;;  %v8989_v16 = vsel %vm4768_vm12, 1.0, %v17157_v40  ;;  %v9245_v28 = vsel %vm5888_vm13, 1.0, %v17157_v40 }
 0x4c9   :  { %v7969_v7 = vsel %vm548_vm14, 1.0, %v17157_v40  ;;  %v8225_v32 = vsel %vm1412_vm0, 1.0, %v17157_v40  ;;  %vm2532_vm1 = vcmp.eq.s32.totalorder %v14037_v59, %v17604_v6  ;;  %vm3652_vm15 = vcmp.eq.s32.totalorder %v14037_v59, %v17605_v58 }
 0x4ca   :  { %v6651_v4 = vadd.f32 %v9240_v49, %v5531_v25  ;;  %v4416_v0 = vadd.f32 %v8733_v43, %v3296_v11  ;;  %v2180_v22 = vadd.f32 %v8225_v32, %v7969_v7  ;;  %v8481_v60 = vsel %vm2532_vm1, 1.0, %v17157_v40 }
 0x4cb   :  { %v8737_v57 = vsel %vm3652_vm15, 1.0, %v17157_v40  ;;  %vm4772_vm2 = vcmp.eq.s32.totalorder %v14037_v59, %v17606_v8  ;;  %vm5892_vm3 = vcmp.eq.s32.totalorder %v14037_v59, %v17607_v18  ;;  %vm543_vm6 = vcmp.eq.s32.totalorder %v17355_v50, %v17602_v33 }
 0x4cc   :  { %7563 = vmatmul.mubr.f32.gmra.mrb[52].mxu0 %v6651_v4  ;;  %v5536_v15 = vadd.f32 %v8989_v16, %v4416_v0  ;;  %v3300_v10 = vadd.f32 %v8481_v60, %v2180_v22  ;;  %v8993_v49 = vsel %vm4772_vm2, 1.0, %v17157_v40  ;;  %v9249_v43 = vsel %vm5892_vm3, 1.0, %v17157_v40 }
 0x4cd   :  { %v7964_v25 = vsel %vm543_vm6, 1.0, %v17157_v40  ;;  %vm1407_vm7 = vcmp.eq.s32.totalorder %v17355_v50, %v17603_v46  ;;  %vm2527_vm5 = vcmp.eq.s32.totalorder %v17355_v50, %v17604_v6  ;;  %vm3647_vm8 = vcmp.eq.s32.totalorder %v17355_v50, %v17605_v58 }
 0x4ce   :  { %v6656_v11 = vadd.f32 %v9245_v28, %v5536_v15  ;;  %v4420_v7 = vadd.f32 %v8737_v57, %v3300_v10  ;;  %v8220_v16 = vsel %vm1407_vm7, 1.0, %v17157_v40  ;;  %v8476_v22 = vsel %vm2527_vm5, 1.0, %v17157_v40  ;;  %v16329_v32 = vpop.f32.mrb[28].mxu1 }
 0x4cf   :  { %17608 = vst [vmem:[#allocation117_spill] sm:$0xff] %v16329_v32  ;;  %v2175_v4 = vadd.f32 %v8220_v16, %v7964_v25  ;;  %v8732_v0 = vsel %vm3647_vm8, 1.0, %v17157_v40  ;;  %vm4767_vm4 = vcmp.eq.s32.totalorder %v17355_v50, %v17606_v8  ;;  %vm5887_vm10 = vcmp.eq.s32.totalorder %v17355_v50, %v17607_v18  ;;  %v7056_v60 = vpop.f32.mrb[29].mxu1 }
 0x4d0   :  { %7117 = vmatprep.mubr.f32.mxu1 %v6656_v11  ;;  %v5540_v1 = vadd.f32 %v8993_v49, %v4420_v7  ;;  %v8988_v28 = vsel %vm4767_vm4, 1.0, %v17157_v40  ;;  %v9244_v57 = vsel %vm5887_vm10, 1.0, %v17157_v40  ;;  %vm547_vm9 = vcmp.eq.s32.totalorder %v17423_v31, %v17602_v33 }
 0x4d1   :  { %v3295_v15 = vadd.f32 %v8476_v22, %v2175_v4  ;;  %v7968_v10 = vsel %vm547_vm9, 1.0, %v17157_v40  ;;  %vm1411_vm11 = vcmp.eq.s32.totalorder %v17423_v31, %v17603_v46  ;;  %vm2531_vm12 = vcmp.eq.s32.totalorder %v17423_v31, %v17604_v6  ;;  %v17611_v6 = vld [vmem:[#allocation171_spill] sm:$0xff] }
 0x4d2   :  { %v6660_v25 = vadd.f32 %v9249_v43, %v5540_v1  ;;  %v8224_v11 = vsel %vm1411_vm11, 1.0, %v17157_v40  ;;  %v8480_v49 = vsel %vm2531_vm12, 1.0, %v17157_v40  ;;  %vm3651_vm13 = vcmp.eq.s32.totalorder %v17423_v31, %v17605_v58  ;;  %v17610_v1 = vld [vmem:[#allocation37_spill] sm:$0xff] }
 0x4d3   :  { %v4415_v7 = vadd.f32 %v8732_v0, %v3295_v15  ;;  %v2179_v16 = vadd.f32 %v8224_v11, %v7968_v10  ;;  %v8736_v33 = vsel %vm3651_vm13, 1.0, %v17157_v40  ;;  %vm4771_vm14 = vcmp.eq.s32.totalorder %v17423_v31, %v17606_v8  ;;  %v16352_v22 = vpop.f32.mrb[28].mxu0  ;;  %v17612_v15 = vld [vmem:[#allocation85_spill] sm:$0xff]  ;;  %v17613_v10 = vld [vmem:[#allocation58_spill] sm:$0xff] }
 0x4d4   :  { %17609 = vst [vmem:[#allocation56_spill] sm:$0xff] %v16352_v22  ;;  %7567 = vmatprep.mubr.f32.mxu0 %v6660_v25  ;;  %v8992_v46 = vsel %vm4771_vm14, 1.0, %v17157_v40  ;;  %vm5891_vm0 = vcmp.eq.s32.totalorder %v17423_v31, %v17607_v18  ;;  %vm552_vm1 = vcmp.eq.s32.totalorder %v13770_v3, %v17610_v1  ;;  %vm1416_vm15 = vcmp.eq.s32.totalorder %v13770_v3, %v17611_v6  ;;  %v7506_v58 = vpop.f32.mrb[29].mxu0  ;;  %v17614_v18 = vld [vmem:[#allocation73_spill] sm:$0xff] }
 0x4d5   :  { %v5535_v43 = vadd.f32 %v8988_v28, %v4415_v7  ;;  %v3299_v4 = vadd.f32 %v8480_v49, %v2179_v16  ;;  %v9248_v0 = vsel %vm5891_vm0, 1.0, %v17157_v40  ;;  %v7973_v8 = vsel %vm552_vm1, 1.0, %v17157_v40 }
 0x4d6   :  { %v8229_v60 = vsel %vm1416_vm15, 1.0, %v17157_v40  ;;  %vm2536_vm2 = vcmp.eq.s32.totalorder %v13770_v3, %v17612_v15  ;;  %vm3656_vm3 = vcmp.eq.s32.totalorder %v13770_v3, %v17613_v10  ;;  %vm4776_vm6 = vcmp.eq.s32.totalorder %v13770_v3, %v17614_v18 }
 0x4d7   :  { %v6655_v25 = vadd.f32 %v9244_v57, %v5535_v43  ;;  %v4419_v11 = vadd.f32 %v8736_v33, %v3299_v4  ;;  %v2184_v58 = vadd.f32 %v8229_v60, %v7973_v8  ;;  %v8485_v28 = vsel %vm2536_vm2, 1.0, %v17157_v40 }
 0x4d8   :  { %v8741_v49 = vsel %vm3656_vm3, 1.0, %v17157_v40  ;;  %v8997_v7 = vsel %vm4776_vm6, 1.0, %v17157_v40  ;;  %vm5896_vm7 = vcmp.eq.s32.totalorder %v13770_v3, %v13893_v17  ;;  %vm556_vm5 = vcmp.eq.s32.totalorder %v14037_v59, %v17610_v1 }
 0x4d9   :  { %7118 = vmatmul.mubr.f32.gmra.mrb[54].mxu1 %v6655_v25  ;;  %v5539_v16 = vadd.f32 %v8992_v46, %v4419_v11  ;;  %v3304_v22 = vadd.f32 %v8485_v28, %v2184_v58  ;;  %v9253_v32 = vsel %vm5896_vm7, 1.0, %v17157_v40  ;;  %v7977_v57 = vsel %vm556_vm5, 1.0, %v17157_v40 }
 0x4da   :  { %vm1420_vm8 = vcmp.eq.s32.totalorder %v14037_v59, %v17611_v6  ;;  %vm2540_vm4 = vcmp.eq.s32.totalorder %v14037_v59, %v17612_v15  ;;  %vm3660_vm10 = vcmp.eq.s32.totalorder %v14037_v59, %v17613_v10  ;;  %vm4780_vm9 = vcmp.eq.s32.totalorder %v14037_v59, %v17614_v18 }
 0x4db   :  { %v6659_v33 = vadd.f32 %v9248_v0, %v5539_v16  ;;  %v4424_v43 = vadd.f32 %v8741_v49, %v3304_v22  ;;  %v8233_v46 = vsel %vm1420_vm8, 1.0, %v17157_v40  ;;  %v8489_v4 = vsel %vm2540_vm4, 1.0, %v17157_v40 }
 0x4dc   :  { %v2188_v8 = vadd.f32 %v8233_v46, %v7977_v57  ;;  %v8745_v60 = vsel %vm3660_vm10, 1.0, %v17157_v40  ;;  %v9001_v25 = vsel %vm4780_vm9, 1.0, %v17157_v40  ;;  %vm5900_vm11 = vcmp.eq.s32.totalorder %v14037_v59, %v13893_v17 }
 0x4dd   :  { %7568 = vmatmul.mubr.f32.gmra.mrb[54].mxu0 %v6659_v33  ;;  %v5544_v11 = vadd.f32 %v8997_v7, %v4424_v43  ;;  %v9257_v58 = vsel %vm5900_vm11, 1.0, %v17157_v40  ;;  %vm551_vm12 = vcmp.eq.s32.totalorder %v17355_v50, %v17610_v1  ;;  %vm1415_vm13 = vcmp.eq.s32.totalorder %v17355_v50, %v17611_v6 }
 0x4de   :  { %v3308_v22 = vadd.f32 %v8489_v4, %v2188_v8  ;;  %v7972_v0 = vsel %vm551_vm12, 1.0, %v17157_v40  ;;  %v8228_v28 = vsel %vm1415_vm13, 1.0, %v17157_v40  ;;  %vm2535_vm14 = vcmp.eq.s32.totalorder %v17355_v50, %v17612_v15 }
 0x4df   :  { %v6664_v49 = vadd.f32 %v9253_v32, %v5544_v11  ;;  %v2183_v16 = vadd.f32 %v8228_v28, %v7972_v0  ;;  %v8484_v7 = vsel %vm2535_vm14, 1.0, %v17157_v40  ;;  %vm3655_vm0 = vcmp.eq.s32.totalorder %v17355_v50, %v17613_v10 }
 0x4e0   :  { %v4428_v57 = vadd.f32 %v8745_v60, %v3308_v22  ;;  %v8740_v33 = vsel %vm3655_vm0, 1.0, %v17157_v40  ;;  %vm4775_vm1 = vcmp.eq.s32.totalorder %v17355_v50, %v17614_v18  ;;  %vm5895_vm15 = vcmp.eq.s32.totalorder %v17355_v50, %v13893_v17  ;;  %v16410_v43 = vpop.f32.mrb[30].mxu1 }
 0x4e1   :  { %7122 = vmatprep.mubr.f32.mxu1 %v6664_v49  ;;  %v3303_v46 = vadd.f32 %v8484_v7, %v2183_v16  ;;  %v8996_v32 = vsel %vm4775_vm1, 1.0, %v17157_v40  ;;  %v9252_v4 = vsel %vm5895_vm15, 1.0, %v17157_v40  ;;  %vm555_vm2 = vcmp.eq.s32.totalorder %v17423_v31, %v17610_v1  ;;  %v7061_v8 = vpop.f32.mrb[31].mxu1 }
 0x4e2   :  { %v5548_v60 = vadd.f32 %v9001_v25, %v4428_v57  ;;  %v7976_v11 = vsel %vm555_vm2, 1.0, %v17157_v40  ;;  %vm1419_vm3 = vcmp.eq.s32.totalorder %v17423_v31, %v17611_v6  ;;  %vm2539_vm6 = vcmp.eq.s32.totalorder %v17423_v31, %v17612_v15 }
 0x4e3   :  { %v4423_v22 = vadd.f32 %v8740_v33, %v3303_v46  ;;  %v8232_v0 = vsel %vm1419_vm3, 1.0, %v17157_v40  ;;  %v8488_v28 = vsel %vm2539_vm6, 1.0, %v17157_v40  ;;  %vm3659_vm7 = vcmp.eq.s32.totalorder %v17423_v31, %v17613_v10 }
 0x4e4   :  { %v6668_v49 = vadd.f32 %v9257_v58, %v5548_v60  ;;  %v2187_v1 = vadd.f32 %v8232_v0, %v7976_v11  ;;  %v8744_v25 = vsel %vm3659_vm7, 1.0, %v17157_v40  ;;  %vm4779_vm5 = vcmp.eq.s32.totalorder %v17423_v31, %v17614_v18  ;;  %v16428_v16 = vpop.f32.mrb[30].mxu0  ;;  %v17616_v11 = vld [vmem:[#allocation173_spill] sm:$0xff] }
 0x4e5   :  { %v5543_v6 = vadd.f32 %v8996_v32, %v4423_v22  ;;  %v9000_v15 = vsel %vm4779_vm5, 1.0, %v17157_v40  ;;  %vm5899_vm8 = vcmp.eq.s32.totalorder %v17423_v31, %v13893_v17  ;;  %vm560_vm4 = vcmp.eq.s32.totalorder %v13770_v3, %v17449_v52  ;;  %v7511_v7 = vpop.f32.mrb[31].mxu0  ;;  %v17615_v17 = vld [vmem:[#allocation170_spill] sm:$0xff] }
 0x4e6   :  { %7572 = vmatprep.mubr.f32.mxu0 %v6668_v49  ;;  %v3307_v10 = vadd.f32 %v8488_v28, %v2187_v1  ;;  %v9256_v58 = vsel %vm5899_vm8, 1.0, %v17157_v40  ;;  %v7981_v57 = vsel %vm560_vm4, 1.0, %v17157_v40  ;;  %vm1424_vm10 = vcmp.eq.s32.totalorder %v13770_v3, %v13799_v29  ;;  %v17617_v22 = vld [vmem:[#allocation174_spill] sm:$0xff] }
 0x4e7   :  { %v6663_v18 = vadd.f32 %v9252_v4, %v5543_v6  ;;  %v8237_v33 = vsel %vm1424_vm10, 1.0, %v17157_v40  ;;  %vm2544_vm9 = vcmp.eq.s32.totalorder %v13770_v3, %v13852_v13  ;;  %vm3664_vm11 = vcmp.eq.s32.totalorder %v13770_v3, %v17615_v17 }
 0x4e8   :  { %v4427_v46 = vadd.f32 %v8744_v25, %v3307_v10  ;;  %v2192_v32 = vadd.f32 %v8237_v33, %v7981_v57  ;;  %v8493_v8 = vsel %vm2544_vm9, 1.0, %v17157_v40  ;;  %v8749_v60 = vsel %vm3664_vm11, 1.0, %v17157_v40 }
 0x4e9   :  { %7123 = vmatmul.mubr.f32.gmra.mrb[56].mxu1 %v6663_v18  ;;  %vm4784_vm12 = vcmp.eq.s32.totalorder %v13770_v3, %v17616_v11  ;;  %vm5904_vm13 = vcmp.eq.s32.totalorder %v13770_v3, %v17617_v22  ;;  %vm564_vm14 = vcmp.eq.s32.totalorder %v14037_v59, %v17449_v52  ;;  %vm1428_vm0 = vcmp.eq.s32.totalorder %v14037_v59, %v13799_v29 }
 0x4ea   :  { %v5547_v4 = vadd.f32 %v9000_v15, %v4427_v46  ;;  %v3312_v0 = vadd.f32 %v8493_v8, %v2192_v32  ;;  %v9005_v28 = vsel %vm4784_vm12, 1.0, %v17157_v40  ;;  %v9261_v49 = vsel %vm5904_vm13, 1.0, %v17157_v40 }
 0x4eb   :  { %v7985_v1 = vsel %vm564_vm14, 1.0, %v17157_v40  ;;  %v8241_v25 = vsel %vm1428_vm0, 1.0, %v17157_v40  ;;  %vm2548_vm1 = vcmp.eq.s32.totalorder %v14037_v59, %v13852_v13  ;;  %vm3668_vm15 = vcmp.eq.s32.totalorder %v14037_v59, %v17615_v17 }
 0x4ec   :  { %v6667_v6 = vadd.f32 %v9256_v58, %v5547_v4  ;;  %v4432_v7 = vadd.f32 %v8749_v60, %v3312_v0  ;;  %v2196_v10 = vadd.f32 %v8241_v25, %v7985_v1  ;;  %v8497_v15 = vsel %vm2548_vm1, 1.0, %v17157_v40 }
 0x4ed   :  { %v8753_v57 = vsel %vm3668_vm15, 1.0, %v17157_v40  ;;  %vm4788_vm2 = vcmp.eq.s32.totalorder %v14037_v59, %v17616_v11  ;;  %vm5908_vm3 = vcmp.eq.s32.totalorder %v14037_v59, %v17617_v22  ;;  %vm559_vm6 = vcmp.eq.s32.totalorder %v17355_v50, %v17449_v52 }
 0x4ee   :  { %7573 = vmatmul.mubr.f32.gmra.mrb[56].mxu0 %v6667_v6  ;;  %v5552_v18 = vadd.f32 %v9005_v28, %v4432_v7  ;;  %v3316_v33 = vadd.f32 %v8497_v15, %v2196_v10  ;;  %v9009_v58 = vsel %vm4788_vm2, 1.0, %v17157_v40  ;;  %v9265_v46 = vsel %vm5908_vm3, 1.0, %v17157_v40 }
 0x4ef   :  { %v7980_v32 = vsel %vm559_vm6, 1.0, %v17157_v40  ;;  %vm1423_vm7 = vcmp.eq.s32.totalorder %v17355_v50, %v13799_v29  ;;  %vm2543_vm5 = vcmp.eq.s32.totalorder %v17355_v50, %v13852_v13  ;;  %vm3663_vm8 = vcmp.eq.s32.totalorder %v17355_v50, %v17615_v17 }
 0x4f0   :  { %v6672_v8 = vadd.f32 %v9261_v49, %v5552_v18  ;;  %v4436_v60 = vadd.f32 %v8753_v57, %v3316_v33  ;;  %v8236_v4 = vsel %vm1423_vm7, 1.0, %v17157_v40  ;;  %v8492_v0 = vsel %vm2543_vm5, 1.0, %v17157_v40  ;;  %v16481_v28 = vpop.f32.mrb[32].mxu1 }
 0x4f1   :  { %v2191_v1 = vadd.f32 %v8236_v4, %v7980_v32  ;;  %v8748_v25 = vsel %vm3663_vm8, 1.0, %v17157_v40  ;;  %vm4783_vm4 = vcmp.eq.s32.totalorder %v17355_v50, %v17616_v11  ;;  %vm5903_vm10 = vcmp.eq.s32.totalorder %v17355_v50, %v17617_v22  ;;  %v7066_v6 = vpop.f32.mrb[33].mxu1 }
 0x4f2   :  { %7127 = vmatprep.mubr.f32.mxu1 %v6672_v8  ;;  %v5556_v7 = vadd.f32 %v9009_v58, %v4436_v60  ;;  %v9004_v49 = vsel %vm4783_vm4, 1.0, %v17157_v40  ;;  %v9260_v10 = vsel %vm5903_vm10, 1.0, %v17157_v40  ;;  %vm563_vm9 = vcmp.eq.s32.totalorder %v17423_v31, %v17449_v52  ;;  %v17620_v6 = vld [vmem:[#allocation172_spill] sm:$0xff] }
 0x4f3   :  { %v3311_v15 = vadd.f32 %v8492_v0, %v2191_v1  ;;  %v7984_v57 = vsel %vm563_vm9, 1.0, %v17157_v40  ;;  %vm1427_vm11 = vcmp.eq.s32.totalorder %v17423_v31, %v13799_v29  ;;  %vm2547_vm12 = vcmp.eq.s32.totalorder %v17423_v31, %v13852_v13  ;;  %v17618_v13 = vld [vmem:[#allocation40_spill] sm:$0xff] }
 0x4f4   :  { %v6676_v18 = vadd.f32 %v9265_v46, %v5556_v7  ;;  %v8240_v33 = vsel %vm1427_vm11, 1.0, %v17157_v40  ;;  %v8496_v58 = vsel %vm2547_vm12, 1.0, %v17157_v40  ;;  %vm3667_vm13 = vcmp.eq.s32.totalorder %v17423_v31, %v17615_v17  ;;  %v17619_v46 = vld [vmem:[#allocation169_spill] sm:$0xff] }
 0x4f5   :  { %v4431_v32 = vadd.f32 %v8748_v25, %v3311_v15  ;;  %v2195_v8 = vadd.f32 %v8240_v33, %v7984_v57  ;;  %v8752_v52 = vsel %vm3667_vm13, 1.0, %v17157_v40  ;;  %vm4787_vm14 = vcmp.eq.s32.totalorder %v17423_v31, %v17616_v11  ;;  %v16504_v60 = vpop.f32.mrb[32].mxu0  ;;  %v17621_v7 = vld [vmem:[#allocation161_spill] sm:$0xff] }
 0x4f6   :  { %7577 = vmatprep.mubr.f32.mxu0 %v6676_v18  ;;  %v9008_v29 = vsel %vm4787_vm14, 1.0, %v17157_v40  ;;  %vm5907_vm0 = vcmp.eq.s32.totalorder %v17423_v31, %v17617_v22  ;;  %vm568_vm1 = vcmp.eq.s32.totalorder %v13770_v3, %v17618_v13  ;;  %vm1432_vm15 = vcmp.eq.s32.totalorder %v13770_v3, %v17619_v46  ;;  %v7516_v17 = vpop.f32.mrb[33].mxu0  ;;  %v17622_v22 = vld [vmem:[#allocation36_spill] sm:$0xff] }
 0x4f7   :  { %v5551_v4 = vadd.f32 %v9004_v49, %v4431_v32  ;;  %v3315_v0 = vadd.f32 %v8496_v58, %v2195_v8  ;;  %v9264_v1 = vsel %vm5907_vm0, 1.0, %v17157_v40  ;;  %v7989_v11 = vsel %vm568_vm1, 1.0, %v17157_v40 }
 0x4f8   :  { %v8245_v25 = vsel %vm1432_vm15, 1.0, %v17157_v40  ;;  %vm2552_vm2 = vcmp.eq.s32.totalorder %v13770_v3, %v17620_v6  ;;  %vm3672_vm3 = vcmp.eq.s32.totalorder %v13770_v3, %v17621_v7  ;;  %vm4792_vm6 = vcmp.eq.s32.totalorder %v13770_v3, %v17622_v22 }
 0x4f9   :  { %v6671_v15 = vadd.f32 %v9260_v10, %v5551_v4  ;;  %v4435_v57 = vadd.f32 %v8752_v52, %v3315_v0  ;;  %v2200_v18 = vadd.f32 %v8245_v25, %v7989_v11  ;;  %v8501_v49 = vsel %vm2552_vm2, 1.0, %v17157_v40 }
 0x4fa   :  { %v8757_v33 = vsel %vm3672_vm3, 1.0, %v17157_v40  ;;  %v9013_v58 = vsel %vm4792_vm6, 1.0, %v17157_v40  ;;  %vm5912_vm7 = vcmp.eq.s32.totalorder %v13770_v3, %v14135_v61  ;;  %vm572_vm5 = vcmp.eq.s32.totalorder %v14037_v59, %v17618_v13 }
 0x4fb   :  { %7128 = vmatmul.mubr.f32.gmra.mrb[58].mxu1 %v6671_v15  ;;  %v5555_v32 = vadd.f32 %v9008_v29, %v4435_v57  ;;  %v3320_v8 = vadd.f32 %v8501_v49, %v2200_v18  ;;  %v9269_v17 = vsel %vm5912_vm7, 1.0, %v17157_v40  ;;  %v7993_v10 = vsel %vm572_vm5, 1.0, %v17157_v40 }
 0x4fc   :  { %vm1436_vm8 = vcmp.eq.s32.totalorder %v14037_v59, %v17619_v46  ;;  %vm2556_vm4 = vcmp.eq.s32.totalorder %v14037_v59, %v17620_v6  ;;  %vm3676_vm10 = vcmp.eq.s32.totalorder %v14037_v59, %v17621_v7  ;;  %vm4796_vm9 = vcmp.eq.s32.totalorder %v14037_v59, %v17622_v22 }
 0x4fd   :  { %v6675_v52 = vadd.f32 %v9264_v1, %v5555_v32  ;;  %v4440_v4 = vadd.f32 %v8757_v33, %v3320_v8  ;;  %v8249_v29 = vsel %vm1436_vm8, 1.0, %v17157_v40  ;;  %v8505_v0 = vsel %vm2556_vm4, 1.0, %v17157_v40 }
 0x4fe   :  { %v2204_v11 = vadd.f32 %v8249_v29, %v7993_v10  ;;  %v8761_v25 = vsel %vm3676_vm10, 1.0, %v17157_v40  ;;  %v9017_v15 = vsel %vm4796_vm9, 1.0, %v17157_v40  ;;  %vm5916_vm11 = vcmp.eq.s32.totalorder %v14037_v59, %v14135_v61 }
 0x4ff   :  { %7578 = vmatmul.mubr.f32.gmra.mrb[58].mxu0 %v6675_v52  ;;  %v5560_v57 = vadd.f32 %v9013_v58, %v4440_v4  ;;  %v9273_v18 = vsel %vm5916_vm11, 1.0, %v17157_v40  ;;  %vm567_vm12 = vcmp.eq.s32.totalorder %v17355_v50, %v17618_v13  ;;  %vm1431_vm13 = vcmp.eq.s32.totalorder %v17355_v50, %v17619_v46 }
 0x500   :  { %v3324_v1 = vadd.f32 %v8505_v0, %v2204_v11  ;;  %v7988_v49 = vsel %vm567_vm12, 1.0, %v17157_v40  ;;  %v8244_v33 = vsel %vm1431_vm13, 1.0, %v17157_v40  ;;  %vm2551_vm14 = vcmp.eq.s32.totalorder %v17355_v50, %v17620_v6 }
 0x501   :  { %v6680_v32 = vadd.f32 %v9269_v17, %v5560_v57  ;;  %v2199_v8 = vadd.f32 %v8244_v33, %v7988_v49  ;;  %v8500_v58 = vsel %vm2551_vm14, 1.0, %v17157_v40  ;;  %vm3671_vm0 = vcmp.eq.s32.totalorder %v17355_v50, %v17621_v7 }
 0x502   :  { %v4444_v10 = vadd.f32 %v8761_v25, %v3324_v1  ;;  %v8756_v52 = vsel %vm3671_vm0, 1.0, %v17157_v40  ;;  %vm4791_vm1 = vcmp.eq.s32.totalorder %v17355_v50, %v17622_v22  ;;  %vm5911_vm15 = vcmp.eq.s32.totalorder %v17355_v50, %v14135_v61  ;;  %v16562_v4 = vpop.f32.mrb[34].mxu1 }
 0x503   :  { %7132 = vmatprep.mubr.f32.mxu1 %v6680_v32  ;;  %v3319_v29 = vadd.f32 %v8500_v58, %v2199_v8  ;;  %v9012_v17 = vsel %vm4791_vm1, 1.0, %v17157_v40  ;;  %v9268_v0 = vsel %vm5911_vm15, 1.0, %v17157_v40  ;;  %vm571_vm2 = vcmp.eq.s32.totalorder %v17423_v31, %v17618_v13  ;;  %v7071_v11 = vpop.f32.mrb[35].mxu1 }
 0x504   :  { %v5564_v25 = vadd.f32 %v9017_v15, %v4444_v10  ;;  %v7992_v57 = vsel %vm571_vm2, 1.0, %v17157_v40  ;;  %vm1435_vm3 = vcmp.eq.s32.totalorder %v17423_v31, %v17619_v46  ;;  %vm2555_vm6 = vcmp.eq.s32.totalorder %v17423_v31, %v17620_v6 }
 0x505   :  { %v4439_v1 = vadd.f32 %v8756_v52, %v3319_v29  ;;  %v8248_v49 = vsel %vm1435_vm3, 1.0, %v17157_v40  ;;  %v8504_v33 = vsel %vm2555_vm6, 1.0, %v17157_v40  ;;  %vm3675_vm7 = vcmp.eq.s32.totalorder %v17423_v31, %v17621_v7 }
 0x506   :  { %v6684_v32 = vadd.f32 %v9273_v18, %v5564_v25  ;;  %v2203_v13 = vadd.f32 %v8248_v49, %v7992_v57  ;;  %v8760_v15 = vsel %vm3675_vm7, 1.0, %v17157_v40  ;;  %vm4795_vm5 = vcmp.eq.s32.totalorder %v17423_v31, %v17622_v22  ;;  %v16580_v8 = vpop.f32.mrb[34].mxu0 }
 0x507   :  { %v5559_v46 = vadd.f32 %v9012_v17, %v4439_v1  ;;  %v9016_v6 = vsel %vm4795_vm5, 1.0, %v17157_v40  ;;  %vm5915_vm8 = vcmp.eq.s32.totalorder %v17423_v31, %v14135_v61  ;;  %vm576_vm4 = vcmp.eq.s32.totalorder %v13770_v3, %v17452_v47  ;;  %v7521_v58 = vpop.f32.mrb[35].mxu0 }
 0x508   :  { %7582 = vmatprep.mubr.f32.mxu0 %v6684_v32  ;;  %v3323_v7 = vadd.f32 %v8504_v33, %v2203_v13  ;;  %v9272_v18 = vsel %vm5915_vm8, 1.0, %v17157_v40  ;;  %v7997_v10 = vsel %vm576_vm4, 1.0, %v17157_v40  ;;  %vm1440_vm10 = vcmp.eq.s32.totalorder %v13770_v3, %v14086_v36 }
 0x509   :  { %v6679_v22 = vadd.f32 %v9268_v0, %v5559_v46  ;;  %v8253_v52 = vsel %vm1440_vm10, 1.0, %v17157_v40  ;;  %vm2560_vm9 = vcmp.eq.s32.totalorder %v13770_v3, %v14114_v21  ;;  %vm3680_vm11 = vcmp.eq.s32.totalorder %v13770_v3, %v14167_v48 }
 0x50a   :  { %v4443_v61 = vadd.f32 %v8760_v15, %v3323_v7  ;;  %v2208_v29 = vadd.f32 %v8253_v52, %v7997_v10  ;;  %v8509_v17 = vsel %vm2560_vm9, 1.0, %v17157_v40  ;;  %v8765_v11 = vsel %vm3680_vm11, 1.0, %v17157_v40 }
 0x50b   :  { %7133 = vmatmul.mubr.f32.gmra.mrb[60].mxu1 %v6679_v22  ;;  %vm4800_vm12 = vcmp.eq.s32.totalorder %v13770_v3, %v14196_v55  ;;  %vm5920_vm13 = vcmp.eq.s32.totalorder %v13770_v3, %v14214_v26  ;;  %vm580_vm14 = vcmp.eq.s32.totalorder %v14037_v59, %v17452_v47  ;;  %vm1444_vm0 = vcmp.eq.s32.totalorder %v14037_v59, %v14086_v36 }
 0x50c   :  { %v5563_v0 = vadd.f32 %v9016_v6, %v4443_v61  ;;  %v3328_v25 = vadd.f32 %v8509_v17, %v2208_v29  ;;  %v9021_v57 = vsel %vm4800_vm12, 1.0, %v17157_v40  ;;  %v9277_v1 = vsel %vm5920_vm13, 1.0, %v17157_v40 }
 0x50d   :  { %v8001_v49 = vsel %vm580_vm14, 1.0, %v17157_v40  ;;  %v8257_v33 = vsel %vm1444_vm0, 1.0, %v17157_v40  ;;  %vm2564_vm1 = vcmp.eq.s32.totalorder %v14037_v59, %v14114_v21  ;;  %vm3684_vm15 = vcmp.eq.s32.totalorder %v14037_v59, %v14167_v48 }
 0x50e   :  { %v6683_v3 = vadd.f32 %v9272_v18, %v5563_v0  ;;  %v4448_v32 = vadd.f32 %v8765_v11, %v3328_v25  ;;  %v2212_v13 = vadd.f32 %v8257_v33, %v8001_v49  ;;  %v8513_v15 = vsel %vm2564_vm1, 1.0, %v17157_v40 }
 0x50f   :  { %v8769_v46 = vsel %vm3684_vm15, 1.0, %v17157_v40  ;;  %vm4804_vm2 = vcmp.eq.s32.totalorder %v14037_v59, %v14196_v55  ;;  %vm5924_vm3 = vcmp.eq.s32.totalorder %v14037_v59, %v14214_v26  ;;  %vm575_vm6 = vcmp.eq.s32.totalorder %v17355_v50, %v17452_v47 }
 0x510   :  { %7583 = vmatmul.mubr.f32.gmra.mrb[60].mxu0 %v6683_v3  ;;  %v5568_v6 = vadd.f32 %v9021_v57, %v4448_v32  ;;  %v3332_v58 = vadd.f32 %v8513_v15, %v2212_v13  ;;  %v9025_v7 = vsel %vm4804_vm2, 1.0, %v17157_v40  ;;  %v9281_v18 = vsel %vm5924_vm3, 1.0, %v17157_v40 }
 0x511   :  { %v7996_v10 = vsel %vm575_vm6, 1.0, %v17157_v40  ;;  %vm1439_vm7 = vcmp.eq.s32.totalorder %v17355_v50, %v14086_v36  ;;  %vm2559_vm5 = vcmp.eq.s32.totalorder %v17355_v50, %v14114_v21  ;;  %vm3679_vm8 = vcmp.eq.s32.totalorder %v17355_v50, %v14167_v48 }
 0x512   :  { %v6688_v59 = vadd.f32 %v9277_v1, %v5568_v6  ;;  %v4452_v22 = vadd.f32 %v8769_v46, %v3332_v58  ;;  %v8252_v52 = vsel %vm1439_vm7, 1.0, %v17157_v40  ;;  %v8508_v61 = vsel %vm2559_vm5, 1.0, %v17157_v40  ;;  %v16633_v29 = vpop.f32.mrb[36].mxu1 }
 0x513   :  { %v2207_v17 = vadd.f32 %v8252_v52, %v7996_v10  ;;  %v8764_v11 = vsel %vm3679_vm8, 1.0, %v17157_v40  ;;  %vm4799_vm4 = vcmp.eq.s32.totalorder %v17355_v50, %v14196_v55  ;;  %vm5919_vm10 = vcmp.eq.s32.totalorder %v17355_v50, %v14214_v26  ;;  %v7076_v0 = vpop.f32.mrb[37].mxu1 }
 0x514   :  { %7137 = vmatprep.mubr.f32.mxu1 %v6688_v59  ;;  %v5572_v25 = vadd.f32 %v9025_v7, %v4452_v22  ;;  %v9020_v57 = vsel %vm4799_vm4, 1.0, %v17157_v40  ;;  %v9276_v1 = vsel %vm5919_vm10, 1.0, %v17157_v40  ;;  %vm579_vm9 = vcmp.eq.s32.totalorder %v17423_v31, %v17452_v47 }
 0x515   :  { %v3327_v49 = vadd.f32 %v8508_v61, %v2207_v17  ;;  %v8000_v33 = vsel %vm579_vm9, 1.0, %v17157_v40  ;;  %vm1443_vm11 = vcmp.eq.s32.totalorder %v17423_v31, %v14086_v36  ;;  %vm2563_vm12 = vcmp.eq.s32.totalorder %v17423_v31, %v14114_v21 }
 0x516   :  { %v6692_v50 = vadd.f32 %v9281_v18, %v5572_v25  ;;  %v8256_v3 = vsel %vm1443_vm11, 1.0, %v17157_v40  ;;  %v8512_v32 = vsel %vm2563_vm12, 1.0, %v17157_v40  ;;  %vm3683_vm13 = vcmp.eq.s32.totalorder %v17423_v31, %v14167_v48 }
 0x517   :  { %v4447_v13 = vadd.f32 %v8764_v11, %v3327_v49  ;;  %v2211_v15 = vadd.f32 %v8256_v3, %v8000_v33  ;;  %v8768_v47 = vsel %vm3683_vm13, 1.0, %v17157_v40  ;;  %vm4803_vm14 = vcmp.eq.s32.totalorder %v17423_v31, %v14196_v55  ;;  %v7524_v46 = vpop.f32.mrb[36].mxu0 }
 0x518   :  { %7587 = vmatprep.mubr.f32.mxu0 %v6692_v50  ;;  %v9024_v36 = vsel %vm4803_vm14, 1.0, %v17157_v40  ;;  %vm5923_vm0 = vcmp.eq.s32.totalorder %v17423_v31, %v14214_v26  ;;  %v9474_v21 = vadd.f32 %v16085_v42, %v16083_v9  ;;  %v9475_v48 = vadd.f32 %v16098_v20, %v16096_v35  ;;  %v7526_v6 = vpop.f32.mrb[37].mxu0 }
 0x519   :  { %v5567_v58 = vadd.f32 %v9020_v57, %v4447_v13  ;;  %v3331_v7 = vadd.f32 %v8512_v32, %v2211_v15  ;;  %v9280_v18 = vsel %vm5923_vm0, 1.0, %v17157_v40  ;;  %v9476_v55 = vadd.f32 %v16112_v34, %v16110_v45 }
 0x51a   :  { %7597 = vst [vmem:[#allocation5] sm:$0xff] %v9474_v21  ;;  %7598 = vst [vmem:[#allocation5 + $0x8] sm:$0xff] %v9475_v48  ;;  %v9477_v10 = vadd.f32 %v16124_v23, %v16122_v19  ;;  %v9478_v31 = vadd.f32 %v16136_v41, %v16134_v5  ;;  %v9479_v26 = vadd.f32 %v16149_v54, %v16147_v53  ;;  %v17623_v41 = vld [vmem:[#allocation39_spill] sm:$0xff]  ;;  %v17624_v53 = vld [vmem:[#allocation9_spill] sm:$0xff] }
 0x51b   :  { %v9480_v9 = vadd.f32 %v16160_v63, %v16158_v51  ;;  %v6687_v42 = vadd.f32 %v9276_v1, %v5567_v58  ;;  %v4451_v35 = vadd.f32 %v8768_v47, %v3331_v7  ;;  %7599 = vst [vmem:[#allocation5 + $0x10] sm:$0xff] %v9476_v55  ;;  %v9481_v40 = vadd.f32 %v16173_v38, %v16171_v44  ;;  %v17625_v51 = vld [vmem:[#allocation117_spill] sm:$0xff]  ;;  %v17626_v63 = vld [vmem:[#allocation56_spill] sm:$0xff] }
 0x51c   :  { %v9482_v20 = vadd.f32 %v16184_v56, %v16182_v14  ;;  %7600 = vst [vmem:[#allocation5 + $0x18] sm:$0xff] %v9477_v10  ;;  %7601 = vst [vmem:[#allocation5 + $0x20] sm:$0xff] %v9478_v31  ;;  %v9483_v45 = vadd.f32 %v16197_v27, %v16195_v62  ;;  %v9484_v34 = vadd.f32 %v16209_v12, %v16207_v24 }
 0x51d   :  { %7602 = vst [vmem:[#allocation5 + $0x28] sm:$0xff] %v9479_v26  ;;  %7603 = vst [vmem:[#allocation5 + $0x30] sm:$0xff] %v9480_v9  ;;  %v9485_v19 = vadd.f32 %v16221_v30, %v16219_v39  ;;  %v9486_v23 = vadd.f32 %v16235_v37, %v16233_v2  ;;  %7138 = vmatmul.mubr.f32.gmra.mrb[62].mxu1 %v6687_v42  ;;  %v5571_v5 = vadd.f32 %v9024_v36, %v4451_v35 }
 0x51e   :  { %7604 = vst [vmem:[#allocation5 + $0x38] sm:$0xff] %v9481_v40  ;;  %7605 = vst [vmem:[#allocation5 + $0x40] sm:$0xff] %v9482_v20  ;;  %v9487_v54 = vadd.f32 %v17624_v53, %v17623_v41  ;;  %v9488_v44 = vadd.f32 %v17626_v63, %v17625_v51  ;;  %v9489_v38 = vadd.f32 %v16428_v16, %v16410_v43 }
 0x51f   :  { %7606 = vst [vmem:[#allocation5 + $0x48] sm:$0xff] %v9483_v45  ;;  %7607 = vst [vmem:[#allocation5 + $0x50] sm:$0xff] %v9484_v34  ;;  %v9490_v14 = vadd.f32 %v16504_v60, %v16481_v28  ;;  %v9491_v56 = vadd.f32 %v16580_v8, %v16562_v4  ;;  %v9492_v62 = vadd.f32 %v7524_v46, %v16633_v29 }
 0x520   :  { %7608 = vst [vmem:[#allocation5 + $0x58] sm:$0xff] %v9485_v19  ;;  %7609 = vst [vmem:[#allocation5 + $0x60] sm:$0xff] %v9486_v23  ;;  %v6691_v27 = vadd.f32 %v9280_v18, %v5571_v5 }
 0x521   :  { %7610 = vst [vmem:[#allocation5 + $0x68] sm:$0xff] %v9487_v54  ;;  %7611 = vst [vmem:[#allocation5 + $0x70] sm:$0xff] %v9488_v44 }
 0x522   :  { %7612 = vst [vmem:[#allocation5 + $0x78] sm:$0xff] %v9489_v38  ;;  %7613 = vst [vmem:[#allocation5 + $0x80] sm:$0xff] %v9490_v14  ;;  %7588 = vmatmul.mubr.f32.gmra.mrb[62].mxu0 %v6691_v27 }
 0x523   :  { %7614 = vst [vmem:[#allocation5 + $0x88] sm:$0xff] %v9491_v56  ;;  %7615 = vst [vmem:[#allocation5 + $0x90] sm:$0xff] %v9492_v62 }
 0x524   :  { %v7079_v24 = vpop.f32.mrb[38].mxu1 }
 0x525   :  { %v7081_v12 = vpop.f32.mrb[39].mxu1 }
 0x528   :  { %v7529_v39 = vpop.f32.mrb[38].mxu0 }
 0x529   :  { %v9493_v30 = vadd.f32 %v7529_v39, %v7079_v24  ;;  %v7531_v2 = vpop.f32.mrb[39].mxu0 }
 0x52b   :  { %7616 = vst [vmem:[#allocation5 + $0x98] sm:$0xff] %v9493_v30 }
 0x534   :  { %v7084_v37 = vpop.f32.mrb[40].mxu1 }
 0x535   :  { %v7086_v43 = vpop.f32.mrb[41].mxu1 }
 0x539   :  { %v7534_v16 = vpop.f32.mrb[40].mxu0 }
 0x53a   :  { %v9494_v28 = vadd.f32 %v7534_v16, %v7084_v37  ;;  %v7536_v60 = vpop.f32.mrb[41].mxu0 }
 0x53c   :  { %7617 = vst [vmem:[#allocation5 + $0xa0] sm:$0xff] %v9494_v28 }
 0x546   :  { %v7089_v4 = vpop.f32.mrb[42].mxu1 }
 0x547   :  { %v7091_v8 = vpop.f32.mrb[43].mxu1 }
 0x54a   :  { %v7539_v59 = vpop.f32.mrb[42].mxu0 }
 0x54b   :  { %v9495_v22 = vadd.f32 %v7539_v59, %v7089_v4  ;;  %v7541_v52 = vpop.f32.mrb[43].mxu0 }
 0x54d   :  { %7618 = vst [vmem:[#allocation5 + $0xa8] sm:$0xff] %v9495_v22 }
 0x556   :  { %v7094_v61 = vpop.f32.mrb[44].mxu1 }
 0x557   :  { %v7096_v29 = vpop.f32.mrb[45].mxu1 }
 0x55b   :  { %v7544_v17 = vpop.f32.mrb[44].mxu0 }
 0x55c   :  { %v9496_v11 = vadd.f32 %v7544_v17, %v7094_v61  ;;  %v7546_v0 = vpop.f32.mrb[45].mxu0 }
 0x55e   :  { %7619 = vst [vmem:[#allocation5 + $0xb0] sm:$0xff] %v9496_v11 }
 0x568   :  { %v7099_v25 = vpop.f32.mrb[46].mxu1 }
 0x569   :  { %v7101_v57 = vpop.f32.mrb[47].mxu1 }
 0x56c   :  { %v7549_v1 = vpop.f32.mrb[46].mxu0 }
 0x56d   :  { %v9497_v49 = vadd.f32 %v7549_v1, %v7099_v25  ;;  %v7551_v33 = vpop.f32.mrb[47].mxu0 }
 0x56f   :  { %7620 = vst [vmem:[#allocation5 + $0xb8] sm:$0xff] %v9497_v49 }
 0x578   :  { %v7104_v50 = vpop.f32.mrb[48].mxu1 }
 0x579   :  { %v7106_v3 = vpop.f32.mrb[49].mxu1 }
 0x57d   :  { %v7554_v32 = vpop.f32.mrb[48].mxu0 }
 0x57e   :  { %v9498_v13 = vadd.f32 %v7554_v32, %v7104_v50  ;;  %v7556_v15 = vpop.f32.mrb[49].mxu0 }
 0x580   :  { %7621 = vst [vmem:[#allocation5 + $0xc0] sm:$0xff] %v9498_v13 }
 0x58a   :  { %v7109_v47 = vpop.f32.mrb[50].mxu1 }
 0x58b   :  { %v7111_v46 = vpop.f32.mrb[51].mxu1 }
 0x58e   :  { %v7559_v36 = vpop.f32.mrb[50].mxu0 }
 0x58f   :  { %v9499_v21 = vadd.f32 %v7559_v36, %v7109_v47  ;;  %v7561_v48 = vpop.f32.mrb[51].mxu0 }
 0x591   :  { %7622 = vst [vmem:[#allocation5 + $0xc8] sm:$0xff] %v9499_v21 }
 0x59a   :  { %v7114_v6 = vpop.f32.mrb[52].mxu1 }
 0x59b   :  { %v7116_v58 = vpop.f32.mrb[53].mxu1 }
 0x59f   :  { %v7564_v7 = vpop.f32.mrb[52].mxu0 }
 0x5a0   :  { %v9500_v18 = vadd.f32 %v7564_v7, %v7114_v6  ;;  %v7566_v55 = vpop.f32.mrb[53].mxu0 }
 0x5a2   :  { %7623 = vst [vmem:[#allocation5 + $0xd0] sm:$0xff] %v9500_v18 }
 0x5ac   :  { %v7119_v10 = vpop.f32.mrb[54].mxu1 }
 0x5ad   :  { %v7121_v31 = vpop.f32.mrb[55].mxu1 }
 0x5b0   :  { %v7569_v26 = vpop.f32.mrb[54].mxu0 }
 0x5b1   :  { %v9501_v9 = vadd.f32 %v7569_v26, %v7119_v10  ;;  %v7571_v42 = vpop.f32.mrb[55].mxu0 }
 0x5b3   :  { %7624 = vst [vmem:[#allocation5 + $0xd8] sm:$0xff] %v9501_v9 }
 0x5bc   :  { %v7124_v35 = vpop.f32.mrb[56].mxu1 }
 0x5bd   :  { %v7126_v40 = vpop.f32.mrb[57].mxu1 }
 0x5c1   :  { %v7574_v20 = vpop.f32.mrb[56].mxu0 }
 0x5c2   :  { %v9502_v45 = vadd.f32 %v7574_v20, %v7124_v35  ;;  %v7576_v34 = vpop.f32.mrb[57].mxu0 }
 0x5c4   :  { %7625 = vst [vmem:[#allocation5 + $0xe0] sm:$0xff] %v9502_v45 }
 0x5ce   :  { %v7129_v19 = vpop.f32.mrb[58].mxu1 }
 0x5cf   :  { %v7131_v23 = vpop.f32.mrb[59].mxu1 }
 0x5d2   :  { %v7579_v5 = vpop.f32.mrb[58].mxu0 }
 0x5d3   :  { %v9503_v41 = vadd.f32 %v7579_v5, %v7129_v19  ;;  %v7581_v53 = vpop.f32.mrb[59].mxu0 }
 0x5d5   :  { %7626 = vst [vmem:[#allocation5 + $0xe8] sm:$0xff] %v9503_v41 }
 0x5de   :  { %v7134_v54 = vpop.f32.mrb[60].mxu1 }
 0x5df   :  { %v7136_v51 = vpop.f32.mrb[61].mxu1 }
 0x5e3   :  { %v7584_v63 = vpop.f32.mrb[60].mxu0 }
 0x5e4   :  { %v9504_v44 = vadd.f32 %v7584_v63, %v7134_v54  ;;  %v7586_v38 = vpop.f32.mrb[61].mxu0 }
 0x5e6   :  { %7627 = vst [vmem:[#allocation5 + $0xf0] sm:$0xff] %v9504_v44 }
 0x5f0   :  { %v7139_v14 = vpop.f32.mrb[62].mxu1 }
 0x5f1   :  { %v7141_v56 = vpop.f32.mrb[63].mxu1 }
 0x5f5   :  { %v7589_v62 = vpop.f32.mrb[62].mxu0 }
 0x5f6   :  { %v9505_v27 = vadd.f32 %v7589_v62, %v7139_v14  ;;  %v7591_v24 = vpop.f32.mrb[63].mxu0 }
 0x5f8   :  { %7628 = vst [vmem:[#allocation5 + $0xf8] sm:$0xff] %v9505_v27 }
 0x5f9   :  { %9813 = shalt.err (!%p9810_p12)
}
 0x5fa   :  { %s9814_s14 = scalar_lea.hbm %s16714_s2, 4096 }
 0x5fb   :  { %p9815_p13 = scmp.ne.s32.totalorder %s16714_s2, %s9814_s14  ;;  %p9818_p0 = scmp.lt.u32.totalorder %s9814_s14, %s16714_s2 }
 0x5fd   :  { %p9820_p1 = pnand %p9818_p0, %p9815_p13 }
 0x5ff   :  { %9823 = shalt.err (!%p9820_p1)
}
 0x600   :  { %7740 = dma.vmem_to_hbm [thread:$0]  %s7735_s10, 4096, %s16714_s2, [#allocation4], %s9829_s19, %s9829_s19, %s9830_s20  }
 0x601   :  { %9826 = dma.done.wait [#allocation4], 4096  }
 0x602   :  { %9827 = vsyncadd [#allocation4], 4294963200 }
 0x603   :  { %7744 = vsyncpa [#allocation3], 1 }
 0x604   :  { %7745 = vsyncpa [#allocation4], 1 }

</bundles_post_ra>
